<compile_context>
chip_gen: v5e
topology: v5e:2x2
jax: 0.10.0
libtpu: 0.0.40
codegen_flags: <defaults>
</compile_context>

<pallas_src>
import jax
import jax.numpy as jnp
from jax.experimental import pallas as pl
from jax.experimental.pallas import tpu as pltpu


# ----------------------------------------------------------------------------
# helpers
# ----------------------------------------------------------------------------
def _round_up(x, m):
    return (x + m - 1) // m * m


def _vmem_limit_bytes():
    # Never exceed the chip's physical VMEM (64 MiB/TC on v7x); leave headroom
    # for the compiler's own scratch.  Fall back conservatively if the query
    # is unavailable on this backend.
    try:
        cap = int(pltpu.get_tpu_info().vmem_capacity_bytes)
    except Exception:
        cap = 64 * 1024 * 1024
    return int(min(cap * 3 // 4, 96 * 1024 * 1024))


def _gelu_tanh(x):
    # tanh-approx GELU (EUP slot, VALU-free). |err| vs exact erf GELU < 1e-3.
    c = 0.7978845608028654  # sqrt(2/pi)
    return 0.5 * x * (1.0 + jnp.tanh(c * (x + 0.044715 * x * x * x)))


# ----------------------------------------------------------------------------
# fused kernel: Linear -> GELU -> Linear  (dropout p=0 is identity)
# ----------------------------------------------------------------------------
def _image_proj_kernel(x_ref, w1_ref, b1_ref, w2_ref, b2_ref, o_ref):
    # bf16 operands into the MXU, f32 accumulation.
    h = jnp.dot(x_ref[...], w1_ref[...], preferred_element_type=jnp.float32)
    h = _gelu_tanh(h + b1_ref[...])                    # f32 math in-register
    y = jnp.dot(h.astype(w2_ref.dtype), w2_ref[...],
                preferred_element_type=jnp.float32)
    o_ref[...] = y + b2_ref[...]


def image_proj_forward(x, params):
    """ImageProjModel_g.forward.  x: (..., in_dim) f32 -> (..., out_dim) f32."""
    *lead, in_dim = x.shape
    M = 1
    for d in lead:
        M *= d
    hidden = params["w1"].shape[1]
    out_dim = params["w2"].shape[1]

    # Row tiling: pad rows to a sublane multiple; aim for >= 2 grid steps so
    # the 'parallel' axis can shard across v7x's two TensorCores; cap the row
    # tile at 256 so activation blocks stay small.
    m8 = max(8, _round_up(M, 8))
    tm = m8 if m8 <= 8 else min(256, _round_up(pl.cdiv(m8, 2), 8))
    Mp = _round_up(m8, tm)

    # HBM-resident tensors narrowed to bf16 (halves DMA bytes; MXU-native).
    x2 = jnp.zeros((Mp, in_dim), jnp.bfloat16).at[:M].set(
        x.reshape(M, in_dim).astype(jnp.bfloat16))
    w1 = params["w1"].astype(jnp.bfloat16)
    w2 = params["w2"].astype(jnp.bfloat16)
    b1 = params["b1"].reshape(1, hidden).astype(jnp.float32)
    b2 = params["b2"].reshape(1, out_dim).astype(jnp.float32)

    out = pl.pallas_call(
        _image_proj_kernel,
        out_shape=jax.ShapeDtypeStruct((Mp, out_dim), jnp.float32),
        grid_spec=pltpu.PrefetchScalarGridSpec(
            num_scalar_prefetch=0,
            grid=(Mp // tm,),
            in_specs=[
                pl.BlockSpec((tm, in_dim), lambda i: (i, 0)),      # x rows
                pl.BlockSpec((in_dim, hidden), lambda i: (0, 0)),  # W1 (resident)
                pl.BlockSpec((1, hidden), lambda i: (0, 0)),       # b1
                pl.BlockSpec((hidden, out_dim), lambda i: (0, 0)), # W2 (resident)
                pl.BlockSpec((1, out_dim), lambda i: (0, 0)),      # b2
            ],
            out_specs=pl.BlockSpec((tm, out_dim), lambda i: (i, 0)),
        ),
        compiler_params=pltpu.CompilerParams(
            dimension_semantics=("parallel",),
            vmem_limit_bytes=_vmem_limit_bytes()),
    )(x2, w1, b1, w2, b2)
    return out[:M].reshape(*lead, out_dim)


# ----------------------------------------------------------------------------
# deterministic parameter init (weights stored transposed vs nn.Linear.weight)
# ----------------------------------------------------------------------------
def init_params(key, in_dim, hidden_dim, out_dim):
    k1, k2, k3, k4 = jax.random.split(key, 4)
    return {
        "w1": jax.random.normal(k1, (in_dim, hidden_dim), jnp.float32) * (in_dim ** -0.5),
        "b1": jax.random.normal(k2, (hidden_dim,), jnp.float32) * 0.01,
        "w2": jax.random.normal(k3, (hidden_dim, out_dim), jnp.float32) * (hidden_dim ** -0.5),
        "b2": jax.random.normal(k4, (out_dim,), jnp.float32) * 0.01,
    }


# ----------------------------------------------------------------------------
# pure-JAX reference (exact erf GELU, matching PyTorch nn.GELU() default)
# ----------------------------------------------------------------------------
def _ref_forward(x, p):
    h = x @ p["w1"] + p["b1"]
    h = jax.nn.gelu(h, approximate=False)   # nn.GELU() default (erf)
    # nn.Dropout(p=0.0) is the identity.
    return h @ p["w2"] + p["b2"]


if __name__ == "__main__":
    key = jax.random.PRNGKey(0)
    kp, kx = jax.random.split(key, 2)

    # Small shapes consistent with an SD image-prompt projector:
    # (batch=2, tokens=8) patch features of width 768 -> hidden 1024 -> out 1024.
    B, N, in_dim, hidden_dim, out_dim = 2, 8, 768, 1024, 1024
    params = init_params(kp, in_dim, hidden_dim, out_dim)
    x = jax.random.normal(kx, (B, N, in_dim), jnp.float32)

    y = image_proj_forward(x, params)
    y = jax.block_until_ready(y)

    ref = _ref_forward(x, params)

    assert y.shape == (B, N, out_dim)
    assert bool(jnp.all(jnp.isfinite(y)))
    # bf16 operand rounding + tanh-GELU approximation are well inside 5e-2.
    assert bool(jnp.allclose(y, ref, rtol=5e-2, atol=5e-2))

    print("KERNEL_OK")
</pallas_src>

<mosaic_0001>
module attributes {stable_mosaic.version = 11 : i64} {
  func.func @_image_proj_kernel(%arg0: i32, %arg1: memref<8x768xbf16, #tpu.memory_space<vmem>>, %arg2: memref<768x1024xbf16, #tpu.memory_space<vmem>>, %arg3: memref<1x1024xf32, #tpu.memory_space<vmem>>, %arg4: memref<1024x1024xbf16, #tpu.memory_space<vmem>>, %arg5: memref<1x1024xf32, #tpu.memory_space<vmem>>, %arg6: memref<8x1024xf32, #tpu.memory_space<vmem>>) attributes {dimension_semantics = [#tpu.dimension_semantics<parallel>], iteration_bounds = array<i64: 2>, scalar_prefetch = 0 : i64, scratch_operands = 0 : i64, tpu.core_type = #tpu.core_type<tc>, window_params = [{transform_indices = @transform_0, window_bounds = array<i64: 8, 768>}, {pipeline_mode = #tpu.pipeline_mode<synchronous>, transform_indices = @transform_1, window_bounds = array<i64: 768, 1024>}, {pipeline_mode = #tpu.pipeline_mode<synchronous>, transform_indices = @transform_2, window_bounds = array<i64: 1, 1024>}, {pipeline_mode = #tpu.pipeline_mode<synchronous>, transform_indices = @transform_3, window_bounds = array<i64: 1024, 1024>}, {pipeline_mode = #tpu.pipeline_mode<synchronous>, transform_indices = @transform_4, window_bounds = array<i64: 1, 1024>}, {transform_indices = @transform_5, window_bounds = array<i64: 8, 1024>}]} {
    %c0 = arith.constant 0 : index
    %c0_0 = arith.constant 0 : index
    %0 = vector.load %arg1[%c0, %c0_0] : memref<8x768xbf16, #tpu.memory_space<vmem>>, vector<8x768xbf16>
    %c0_1 = arith.constant 0 : index
    %c0_2 = arith.constant 0 : index
    %1 = vector.load %arg2[%c0_1, %c0_2] : memref<768x1024xbf16, #tpu.memory_space<vmem>>, vector<768x1024xbf16>
    %cst = arith.constant dense<0.000000e+00> : vector<8x1024xf32>
    %2 = tpu.matmul %0, %1, %cst {dimension_numbers = #tpu.dot_dimension_numbers<[1], [0], [0], [1], [0, 0, 1, 1], [], []>} : vector<8x768xbf16>, vector<768x1024xbf16>, vector<8x1024xf32> -> vector<8x1024xf32>
    %c0_3 = arith.constant 0 : index
    %c0_4 = arith.constant 0 : index
    %3 = vector.load %arg3[%c0_3, %c0_4] : memref<1x1024xf32, #tpu.memory_space<vmem>>, vector<1x1024xf32>
    %4 = vector.broadcast %3 : vector<1x1024xf32> to vector<8x1024xf32>
    %5 = arith.addf %2, %4 : vector<8x1024xf32>
    %cst_5 = arith.constant 5.000000e-01 : f32
    %6 = vector.broadcast %cst_5 : f32 to vector<8x1024xf32>
    %7 = arith.mulf %6, %5 : vector<8x1024xf32>
    %cst_6 = arith.constant 4.471500e-02 : f32
    %8 = vector.broadcast %cst_6 : f32 to vector<8x1024xf32>
    %9 = arith.mulf %8, %5 : vector<8x1024xf32>
    %10 = arith.mulf %9, %5 : vector<8x1024xf32>
    %11 = arith.mulf %10, %5 : vector<8x1024xf32>
    %12 = arith.addf %5, %11 : vector<8x1024xf32>
    %cst_7 = arith.constant 0.797884583 : f32
    %13 = vector.broadcast %cst_7 : f32 to vector<8x1024xf32>
    %14 = arith.mulf %13, %12 : vector<8x1024xf32>
    %15 = math.tanh %14 : vector<8x1024xf32>
    %cst_8 = arith.constant 1.000000e+00 : f32
    %16 = vector.broadcast %cst_8 : f32 to vector<8x1024xf32>
    %17 = arith.addf %16, %15 : vector<8x1024xf32>
    %18 = arith.mulf %7, %17 : vector<8x1024xf32>
    %19 = arith.truncf %18 : vector<8x1024xf32> to vector<8x1024xbf16>
    %c0_9 = arith.constant 0 : index
    %c0_10 = arith.constant 0 : index
    %20 = vector.load %arg4[%c0_9, %c0_10] : memref<1024x1024xbf16, #tpu.memory_space<vmem>>, vector<1024x1024xbf16>
    %cst_11 = arith.constant dense<0.000000e+00> : vector<8x1024xf32>
    %21 = tpu.matmul %19, %20, %cst_11 {dimension_numbers = #tpu.dot_dimension_numbers<[1], [0], [0], [1], [0, 0, 1, 1], [], []>} : vector<8x1024xbf16>, vector<1024x1024xbf16>, vector<8x1024xf32> -> vector<8x1024xf32>
    %c0_12 = arith.constant 0 : index
    %c0_13 = arith.constant 0 : index
    %22 = vector.load %arg5[%c0_12, %c0_13] : memref<1x1024xf32, #tpu.memory_space<vmem>>, vector<1x1024xf32>
    %23 = vector.broadcast %22 : vector<1x1024xf32> to vector<8x1024xf32>
    %24 = arith.addf %21, %23 : vector<8x1024xf32>
    %c0_14 = arith.constant 0 : index
    %c0_15 = arith.constant 0 : index
    %25 = vector.load %arg6[%c0_14, %c0_15] : memref<8x1024xf32, #tpu.memory_space<vmem>>, vector<8x1024xf32>
    tpu.vector_store %arg6[%c0_14, %c0_15], %24 {strides = array<i32>} : memref<8x1024xf32, #tpu.memory_space<vmem>>, vector<8x1024xf32>,
    return
  }
  func.func @transform_0(%arg0: i32) -> (i32, i32) {
    %c0_i32 = arith.constant 0 : i32
    %c0_i32_0 = arith.constant 0 : i32
    return %arg0, %c0_i32 : i32, i32
  }
  func.func @transform_1(%arg0: i32) -> (i32, i32) {
    %c0_i32 = arith.constant 0 : i32
    %c0_i32_0 = arith.constant 0 : i32
    %c0_i32_1 = arith.constant 0 : i32
    return %c0_i32, %c0_i32_0 : i32, i32
  }
  func.func @transform_2(%arg0: i32) -> (i32, i32) {
    %c0_i32 = arith.constant 0 : i32
    %c0_i32_0 = arith.constant 0 : i32
    %c0_i32_1 = arith.constant 0 : i32
    return %c0_i32, %c0_i32_0 : i32, i32
  }
  func.func @transform_3(%arg0: i32) -> (i32, i32) {
    %c0_i32 = arith.constant 0 : i32
    %c0_i32_0 = arith.constant 0 : i32
    %c0_i32_1 = arith.constant 0 : i32
    return %c0_i32, %c0_i32_0 : i32, i32
  }
  func.func @transform_4(%arg0: i32) -> (i32, i32) {
    %c0_i32 = arith.constant 0 : i32
    %c0_i32_0 = arith.constant 0 : i32
    %c0_i32_1 = arith.constant 0 : i32
    return %c0_i32, %c0_i32_0 : i32, i32
  }
  func.func @transform_5(%arg0: i32) -> (i32, i32) {
    %c0_i32 = arith.constant 0 : i32
    %c0_i32_0 = arith.constant 0 : i32
    return %arg0, %c0_i32 : i32, i32
  }
}

</mosaic_0001>

<bundles_post_ra>
// kernel: tpu_custom_call.1
= control target key start
LH: loop header
LB: loop body
LE: loop exit
PB: predicated region body
PF: predicated region fallthrough
CT: control target
= control target key end

     0   :  { %s12832_s0 = inlined_call_operand.hbm [shape: bf16[16,768], index: 0, kind: input, shape index: {}]   ;;  %s12833_s1 = inlined_call_operand.hbm [shape: bf16[768,1024], index: 1, kind: input, shape index: {}]   ;;  %s12834_s2 = inlined_call_operand.hbm [shape: f32[1,1024], index: 2, kind: input, shape index: {}]   ;;  %s12835_s3 = inlined_call_operand.hbm [shape: bf16[1024,1024], index: 3, kind: input, shape index: {}]   ;;  %s12836_s4 = inlined_call_operand.hbm [shape: f32[1,1024], index: 4, kind: input, shape index: {}]   ;;  %s12837_s5 = inlined_call_operand.hbm [shape: f32[16,1024], index: 5, kind: output, shape index: {}]  }
   0x1   :  { %12838 = sst [smem:[#allocation16_spill]] %s12833_s1 }
   0x2   :  { %10 = vsyncpa [#allocation3], 0 }
   0x3   :  { %12 = vsyncpa [#allocation3 + $0x1], 0 }
   0x4   :  { %13 = vsyncpa [#allocation6], 0 }
   0x5   :  { %14 = vsyncpa [#allocation9], 0 }
   0x6   :  { %15 = vsyncpa [#allocation4], 0 }
   0x7   :  { %17 = vsyncpa [#allocation4 + $0x1], 0  ;;  %s12285_s18 = smov 0   ;;  %s12287_s19 = smov 0  }
   0x8   :  { %s12289_s20 = smov 0   ;;  %s12291_s21 = smov 0  }
   0x9 LB: > { %s12839_s1 = sld [smem:[#allocation16_spill]]  ;;  %s12309_s25 = sadd.s32 4294967295, %s12247_s21   ;;  %s12247_s21 = sphi %s12291_s21, %s12850_s21   ;;  %s12243_s20 = sphi %s12289_s20, %s12849_s20   ;;  %s12239_s19 = sphi %s12287_s19, %s12848_s19   ;;  %s12235_s18 = sphi %s12285_s18, %s12847_s18  }
   0xa   : > { %p7411_p0 = scmp.ge.s32.totalorder %s12247_s21, 1  ;;  %p44_p1 = scmp.eq.s32.totalorder %s12309_s25, 0 }
   0xb   : > { %p164_p2 = scmp.lt.s32.totalorder %s12247_s21, 3  ;;  %s12249_s27 = smov [#allocation5]  }
   0xc   : > { %s177_s28 = sshll.u32 %s12249_s27, 4  ;;  %s201_s6 = sshll.u32 %s12835_s3, 4  ;;  %s178_s28 = int_to_ptr.vmem [resolvable:$true] %s177_s28  ;;  %s202_s6 = int_to_ptr.hbm [resolvable:$true] %s201_s6 }
   0xd   : > { %p12314_p3 = pnand %p7411_p0, %p164_p2  ;;  %s190_s10 = sshll.u32 %s12834_s2, 4  ;;  %s191_s10 = int_to_ptr.hbm [resolvable:$true] %s190_s10 }
   0xe   : > { %s12250_s11 = smov [#allocation8]   ;;  %s12251_s13 = smov 512  }
   0xf   : > { %s175_s24 = sshll.u32 %s12839_s1, 4  ;;  %p11933_p4 = pneg %p12314_p3  ;;  %s176_s24 = int_to_ptr.hbm [resolvable:$true] %s175_s24 }
  0x10   : > { %s203_s12 = sshll.u32 %s12250_s11, 4  ;;  %s12252_s14 = smov 32   ;;  %s204_s12 = int_to_ptr.vmem [resolvable:$true] %s203_s12 }
  0x11   : > { %p12326_p6 = pnand %p11933_p4, %p44_p1  ;;  %s216_s17 = sshll.u32 %s12836_s4, 4  ;;  %s217_s17 = int_to_ptr.hbm [resolvable:$true] %s216_s17 }
  0x12   : > { %s12253_s22 = smov [#allocation7]   ;;  %s12346_s29 = sadd.s32 1, %s12247_s21  }
  0x13   : > { %11936 = dma.hbm_to_vmem [thread:$0]  (!%p12326_p6), %s176_s24, 49152, %s178_s28, [#allocation6], %s12251_s13, %s12251_s13, %s12252_s14  }
  0x14   : > { %11942 = dma.hbm_to_vmem [thread:$0]  (!%p12326_p6), %s202_s6, 65536, %s204_s12, [#allocation9], %s12251_s13, %s12251_s13, %s12252_s14  }
  0x15   : > { %s192_s23 = sshll.u32 %s12253_s22, 4  ;;  %s12254_s24 = smov [#allocation10]   ;;  %s193_s23 = int_to_ptr.vmem [resolvable:$true] %s192_s23 }
  0x16   : > { %11939 = dma.hbm_to_vmem [thread:$0]  (!%p12326_p6), %s191_s10, 128, %s193_s23, [#allocation6]  }
  0x17   : > { %s218_s27 = sshll.u32 %s12254_s24, 4  ;;  %s7410_s28 = sadd.s32 4294967294, %s12247_s21   ;;  %s219_s27 = int_to_ptr.vmem [resolvable:$true] %s218_s27 }
  0x18   : > { %11945 = dma.hbm_to_vmem [thread:$0]  (!%p12326_p6), %s217_s17, 128, %s219_s27, [#allocation9]  }
  0x19   : > { %s27_s30 = ssub.s32 %s12247_s21, %s12346_s29  ;;  %s30_s6 = sadd.s32 1, %s12243_s20 }
  0x1a   : > { %p28_p7 = scmp.eq.s32.totalorder %s27_s30, 0  ;;  %p37_p8 = scmp.ne.s32.totalorder %s12243_s20, %s12239_s19 }
  0x1b   : > { %p38_p9 = scmp.eq.s32.totalorder %s12247_s21, 0  ;;  %p43_p10 = scmp.ne.s32.totalorder %s12239_s19, %s12235_s18 }
  0x1c   : > { %s12357_s8 = scalar_select %p28_p7, %s12243_s20, %s30_s6  }
  0x1d   : > { %p39_p11 = por %p38_p9, %p37_p8  ;;  %p12361_p12 = por %p44_p1, %p43_p10 }
  0x1e   : > { %p151_p13 = scmp.eq.s32.totalorder %s12309_s25, 1  ;;  %p157_p0 = scmp.eq.s32.totalorder %s7410_s28, 1 }
  0x1f   : > { %p11958_p2 = scmp.lt.s32.totalorder %s12247_s21, 2  ;;  %s229_s7 = sand.u32 1, %s12243_s20  }
  0x20   : > { %p12368_p4 = por %p151_p13, %p37_p8  ;;  %p12372_p6 = por %p157_p0, %p43_p10 }
  0x21   : > { %s11910_s12 = smul.u32 24, %s229_s7  ;;  %p12377_p7 = pnand %p11958_p2, %p39_p11 }
  0x22   : > { %s11911_s13 = smul.u32 24, %s12247_s21  ;;  %s230_s27 = scalar_lea.sflag [#allocation3], %s229_s7 }
  0x23   : > { %s233_s22 = scalar_lea.vmem [#allocation2], %s11910_s12  ;;  %p12147_p9 = pneg %p12377_p7 }
  0x24   : > { %s238_s17 = scalar_lea.hbm %s12832_s0, %s11911_s13  ;;  %s242_s23 = sshll.u32 %s233_s22, 4  ;;  %s243_s23 = int_to_ptr.vmem [resolvable:$true] %s242_s23 }
  0x25   : > { %s240_s24 = sshll.u32 %s238_s17, 4  ;;  %s12150_s15 = scalar_lea.hbm %s12832_s0, 48  ;;  %s241_s24 = int_to_ptr.hbm [resolvable:$true] %s240_s24 }
  0x26   : > { %s12143_s28 = sshra.s32 %s241_s24, 4  ;;  %s12144_s28 = int_to_ptr.hbm [resolvable:$true] %s12143_s28 }
  0x27   : > { %s12145_s30 = scalar_lea.hbm %s12144_s28, 24  ;;  %p12151_p13 = scmp.lt.s32.totalorder %s12144_s28, %s12832_s0 }
  0x28   : > { %p12146_p8 = scmp.ne.s32.totalorder %s12144_s28, %s12145_s30  ;;  %p12152_p0 = scmp.lt.s32.totalorder %s12150_s15, %s12145_s30 }
  0x2a   : > { %p12148_p10 = pnand %p12147_p9, %p12146_p8  ;;  %p12153_p2 = por %p12152_p0, %p12151_p13 }
  0x2c   : > { %p12149_p11 = pneg %p12148_p10 }
  0x2e   : > { %p12154_p5 = pnand %p12153_p2, %p12149_p11 }
  0x30   : > { %12157 = shalt.err (!%p12154_p5)
}
  0x31   : > { %11949 = dma.hbm_to_vmem [thread:$0]  (!%p12377_p7), %s241_s24, 384, %s243_s23, %s230_s27  }
  0x32   : > { %251 = sbr.rel (%p12314_p3) target bundleno = 1254 (0x4e6), region = 40  ;;  %s12397_s7 = sand.u32 (!%p12314_p3), 1, %s12239_s19  }
  0x33   : > { %s11912_s1 = smul.u32 (!%p12314_p3), 24, %s12397_s7  ;;  %s254_s12 = scalar_lea.sflag (!%p12314_p3), [#allocation3], %s12397_s7 }
  0x35   : > { %s12401_s17 = scalar_lea.vmem (!%p12314_p3), [#allocation2], %s11912_s1 }
  0x37   : > { %12218 = dma.done.wait (%p12361_p12), %s254_s12, 384  }
  0x38   : > { %12220 = vsyncadd (%p12361_p12), %s254_s12, 4294966912 }
  0x39   : > { %12222 = dma.done.wait (%p44_p1), [#allocation6], 49280  }
  0x3a   : > { %12224 = vsyncadd (%p44_p1), [#allocation6], 4294918016 }
  0x3b   : > { %12226 = dma.done.wait (%p44_p1), [#allocation9], 65664  }
  0x3c   : > { %12228 = vsyncadd (%p44_p1), [#allocation9], 4294901632  ;;  %v7650_v0 = vld [vmem:[#allocation5 + $0x1c0] sm:$0xf]  ;;  %s7423_s26 = sshll.u32 %s12397_s7, 6  ;;  %s11909_s14 = sshll.u32 %s12309_s25, 6 }
  0x3d   : > { %v11073_v1 = vld [vmem:[#allocation5 + $0x1dc] sm:$0xf0]  ;;  %s12690_s9 = scalar_lea.vmem [#allocation11], %s7423_s26  ;;  %s7297_s24 = scalar_lea.hbm %s12837_s5, %s11909_s14 }
  0x3e   : > { %v7906_v2 = vld [vmem:[#allocation5 + $0x3c0] sm:$0xf]  ;;  %v7651_v3 = vor.u32 %v11073_v1, %v7650_v0  ;;  %s7299_s27 = sshll.u32 %s12690_s9, 4  ;;  %s7301_s28 = sshll.u32 %s7297_s24, 4  ;;  %s7300_s27 = int_to_ptr.vmem [resolvable:$true] %s7299_s27  ;;  %s7302_s28 = int_to_ptr.hbm [resolvable:$true] %s7301_s28 }
  0x3f   : > { %v11137_v4 = vld [vmem:[#allocation5 + $0x3dc] sm:$0xf0]  ;;  %s7286_s30 = scalar_lea.sflag [#allocation4], %s12397_s7  ;;  %s12187_s6 = sshra.s32 %s7302_s28, 4  ;;  %s12188_s6 = int_to_ptr.hbm [resolvable:$true] %s12187_s6 }
  0x40   : > { %v8162_v5 = vld [vmem:[#allocation5 + $0x5c0] sm:$0xf]  ;;  %v7907_v7 = vor.u32 %v11137_v4, %v7906_v2  ;;  %2651 = vmatpush.bf16.msra.mxu0 %v7651_v3  ;;  %s12189_s15 = scalar_lea.hbm %s12188_s6, 64  ;;  %s12193_s13 = scalar_lea.hbm %s12837_s5, 128 }
  0x41   : > { %v11201_v6 = vld [vmem:[#allocation5 + $0x5dc] sm:$0xf0]  ;;  %p12190_p1 = scmp.ne.s32.totalorder %s12188_s6, %s12189_s15  ;;  %p12194_p12 = scmp.lt.s32.totalorder %s12188_s6, %s12837_s5 }
  0x42   : > { %v8163_v8 = vor.u32 %v11201_v6, %v8162_v5  ;;  %v8418_v9 = vld [vmem:[#allocation5 + $0x7c0] sm:$0xf]  ;;  %2664 = vmatpush.bf16.msra.mxu1 %v7907_v7  ;;  %p12195_p7 = scmp.lt.s32.totalorder %s12193_s13, %s12189_s15 }
  0x43   : > { %v11265_v10 = vld [vmem:[#allocation5 + $0x7dc] sm:$0xf0]  ;;  %p12191_p3 = pnand %p12190_p1, %p12368_p4 }
  0x44   : > { %v7618_v11 = vld [vmem:[#allocation5 + $0x180] sm:$0xf]  ;;  %v8419_v12 = vor.u32 %v11265_v10, %v8418_v9  ;;  %2677 = vmatpush.bf16.msra.mxu2 %v8163_v8  ;;  %p12196_p8 = por %p12195_p7, %p12194_p12 }
  0x45   : > { %v11065_v13 = vld [vmem:[#allocation5 + $0x19c] sm:$0xf0]  ;;  %p12192_p5 = pneg %p12191_p3 }
  0x46   : > { %v7874_v14 = vld [vmem:[#allocation5 + $0x380] sm:$0xf]  ;;  %v7619_v16 = vor.u32 %v11065_v13, %v7618_v11  ;;  %2690 = vmatpush.bf16.msra.mxu3 %v8419_v12 }
  0x47   : > { %v11129_v15 = vld [vmem:[#allocation5 + $0x39c] sm:$0xf0]  ;;  %p12197_p9 = pnand %p12196_p8, %p12192_p5 }
  0x48   : > { %v7875_v17 = vor.u32 %v11129_v15, %v7874_v14  ;;  %v8130_v18 = vld [vmem:[#allocation5 + $0x580] sm:$0xf]  ;;  %2652 = vmatpush.bf16.msra.mxu0 %v7619_v16 }
  0x49   : > { %v11193_v19 = vld [vmem:[#allocation5 + $0x59c] sm:$0xf0] }
  0x4a   : > { %v8386_v20 = vld [vmem:[#allocation5 + $0x780] sm:$0xf]  ;;  %v8131_v21 = vor.u32 %v11193_v19, %v8130_v18  ;;  %2665 = vmatpush.bf16.msra.mxu1 %v7875_v17 }
  0x4b   : > { %v11257_v22 = vld [vmem:[#allocation5 + $0x79c] sm:$0xf0] }
  0x4c   : > { %v7586_v23 = vld [vmem:[#allocation5 + $0x140] sm:$0xf]  ;;  %v8387_v25 = vor.u32 %v11257_v22, %v8386_v20  ;;  %2678 = vmatpush.bf16.msra.mxu2 %v8131_v21 }
  0x4d   : > { %v11057_v24 = vld [vmem:[#allocation5 + $0x15c] sm:$0xf0] }
  0x4e   : > { %v7842_v26 = vld [vmem:[#allocation5 + $0x340] sm:$0xf]  ;;  %v7587_v29 = vor.u32 %v11057_v24, %v7586_v23  ;;  %2691 = vmatpush.bf16.msra.mxu3 %v8387_v25 }
  0x4f   : > { %v11121_v27 = vld [vmem:[#allocation5 + $0x35c] sm:$0xf0] }
  0x50   : > { %v8098_v28 = vld [vmem:[#allocation5 + $0x540] sm:$0xf]  ;;  %v7843_v33 = vor.u32 %v11121_v27, %v7842_v26  ;;  %2653 = vmatpush.bf16.msra.mxu0 %v7587_v29 }
  0x51   : > { %v11185_v30 = vld [vmem:[#allocation5 + $0x55c] sm:$0xf0] }
  0x52   : > { %v8354_v31 = vld [vmem:[#allocation5 + $0x740] sm:$0xf]  ;;  %v8099_v34 = vor.u32 %v11185_v30, %v8098_v28  ;;  %2666 = vmatpush.bf16.msra.mxu1 %v7843_v33  ;;  %v11069_v33 = vld [vmem:[#allocation5 + $0x1c4] sm:$0xf] }
  0x53   : > { %v11249_v32 = vld [vmem:[#allocation5 + $0x75c] sm:$0xf0] }
  0x54   : > { %v7554_v35 = vld [vmem:[#allocation5 + $0x100] sm:$0xf]  ;;  %v8355_v38 = vor.u32 %v11249_v32, %v8354_v31  ;;  %2679 = vmatpush.bf16.msra.mxu2 %v8099_v34  ;;  %v7652_v34 = vld [vmem:[#allocation5 + $0x1e0] sm:$0xf0] }
  0x55   : > { %v11049_v36 = vld [vmem:[#allocation5 + $0x11c] sm:$0xf0] }
  0x56   : > { %v7810_v37 = vld [vmem:[#allocation5 + $0x300] sm:$0xf]  ;;  %v7555_v44 = vor.u32 %v11049_v36, %v7554_v35  ;;  %2692 = vmatpush.bf16.msra.mxu3 %v8355_v38  ;;  %v7908_v38 = vld [vmem:[#allocation5 + $0x3e0] sm:$0xf0] }
  0x57   : > { %v11113_v39 = vld [vmem:[#allocation5 + $0x31c] sm:$0xf0] }
  0x58   : > { %v8066_v40 = vld [vmem:[#allocation5 + $0x500] sm:$0xf]  ;;  %v7811_v45 = vor.u32 %v11113_v39, %v7810_v37  ;;  %2654 = vmatpush.bf16.msra.mxu0 %v7555_v44  ;;  %v11133_v37 = vld [vmem:[#allocation5 + $0x3c4] sm:$0xf] }
  0x59   : > { %v11177_v41 = vld [vmem:[#allocation5 + $0x51c] sm:$0xf0] }
  0x5a   : > { %v8322_v42 = vld [vmem:[#allocation5 + $0x700] sm:$0xf]  ;;  %v8067_v46 = vor.u32 %v11177_v41, %v8066_v40  ;;  %2667 = vmatpush.bf16.msra.mxu1 %v7811_v45 }
  0x5b   : > { %v11241_v43 = vld [vmem:[#allocation5 + $0x71c] sm:$0xf0] }
  0x5c   : > { %v7522_v47 = vld [vmem:[#allocation5 + $0xc0] sm:$0xf]  ;;  %v8323_v50 = vor.u32 %v11241_v43, %v8322_v42  ;;  %2680 = vmatpush.bf16.msra.mxu2 %v8067_v46  ;;  %v7655_v42 = vor.u32 %v11069_v33, %v7652_v34  ;;  %v7911_v46 = vor.u32 %v11133_v37, %v7908_v38  ;;  %v7780_v33 = vld [vmem:[#allocation5 + $0x2e0] sm:$0xf0] }
  0x5d   : > { %v11041_v48 = vld [vmem:[#allocation5 + $0xdc] sm:$0xf0] }
  0x5e   : > { %v7778_v49 = vld [vmem:[#allocation5 + $0x2c0] sm:$0xf]  ;;  %v7523_v56 = vor.u32 %v11041_v48, %v7522_v47  ;;  %2693 = vmatpush.bf16.msra.mxu3 %v8323_v50  ;;  %v11061_v48 = vld [vmem:[#allocation5 + $0x184] sm:$0xf] }
  0x5f   : > { %v11105_v51 = vld [vmem:[#allocation5 + $0x2dc] sm:$0xf0]  ;;  %v11125_v50 = vld [vmem:[#allocation5 + $0x384] sm:$0xf] }
  0x60   : > { %v8034_v52 = vld [vmem:[#allocation5 + $0x4c0] sm:$0xf]  ;;  %v7779_v57 = vor.u32 %v11105_v51, %v7778_v49  ;;  %2655 = vmatpush.bf16.msra.mxu0 %v7523_v56  ;;  %v7620_v49 = vld [vmem:[#allocation5 + $0x1a0] sm:$0xf0] }
  0x61   : > { %v11169_v53 = vld [vmem:[#allocation5 + $0x4dc] sm:$0xf0]  ;;  %v7876_v51 = vld [vmem:[#allocation5 + $0x3a0] sm:$0xf0] }
  0x62   : > { %v8290_v54 = vld [vmem:[#allocation5 + $0x6c0] sm:$0xf]  ;;  %v8035_v58 = vor.u32 %v11169_v53, %v8034_v52  ;;  %2668 = vmatpush.bf16.msra.mxu1 %v7779_v57  ;;  %v305_v52 = vld [vmem:[%s12401_s17] sm:$0xff]  ;;  %v7623_v57 = vor.u32 %v11061_v48, %v7620_v49 }
  0x63   : > { %v11233_v55 = vld [vmem:[#allocation5 + $0x6dc] sm:$0xf0] }
  0x64   : > { %v7490_v59 = vld [vmem:[#allocation5 + $0x80] sm:$0xf]  ;;  %v8291_v62 = vor.u32 %v11233_v55, %v8290_v54  ;;  %2681 = vmatpush.bf16.msra.mxu2 %v8035_v58  ;;  %v713_v54 = vunpack.c.l.b16 %v305_v52  ;;  %v714_v55 = vunpack.c.h.b16 %v305_v52 }
  0x65   : > { %v11033_v60 = vld [vmem:[#allocation5 + $0x9c] sm:$0xf0] }
  0x66   : > { %v7746_v61 = vld [vmem:[#allocation5 + $0x280] sm:$0xf]  ;;  %v7491_v4 = vor.u32 %v11033_v60, %v7490_v59  ;;  %2694 = vmatpush.bf16.msra.mxu3 %v8291_v62 }
  0x67   : > { %v11097_v63 = vld [vmem:[#allocation5 + $0x29c] sm:$0xf0] }
  0x68   : > { %v8002_v0 = vld [vmem:[#allocation5 + $0x480] sm:$0xf]  ;;  %v7747_v5 = vor.u32 %v11097_v63, %v7746_v61  ;;  %2656 = vmatpush.bf16.msra.mxu0 %v7491_v4  ;;  %v7879_v61 = vor.u32 %v11125_v50, %v7876_v51  ;;  %v11053_v63 = vld [vmem:[#allocation5 + $0x144] sm:$0xf] }
  0x69   : > { %v11161_v1 = vld [vmem:[#allocation5 + $0x49c] sm:$0xf0]  ;;  %v7844_v4 = vld [vmem:[#allocation5 + $0x360] sm:$0xf0] }
  0x6a   : > { %v8258_v2 = vld [vmem:[#allocation5 + $0x680] sm:$0xf]  ;;  %v8003_v6 = vor.u32 %v11161_v1, %v8002_v0  ;;  %2669 = vmatpush.bf16.msra.mxu1 %v7747_v5  ;;  %v7588_v0 = vld [vmem:[#allocation5 + $0x160] sm:$0xf0]  ;;  %v12416_v1 = vpack.c.b16 %v713_v54, %v713_v54 }
  0x6b   : > { %v11225_v3 = vld [vmem:[#allocation5 + $0x69c] sm:$0xf0]  ;;  %v11021_v54 = vld [vmem:[#allocation5 + $0x44] sm:$0xf] }
  0x6c   : > { %v7458_v7 = vld [vmem:[#allocation5 + $0x40] sm:$0xf]  ;;  %v8259_v10 = vor.u32 %v11225_v3, %v8258_v2  ;;  %2682 = vmatpush.bf16.msra.mxu2 %v8003_v6  ;;  %v12418_v2 = vpack.c.b16 %v714_v55, %v714_v55  ;;  %v11117_v3 = vld [vmem:[#allocation5 + $0x344] sm:$0xf]  ;;  %v306_v6 = vld [vmem:[%s12401_s17 + $0x8] sm:$0xff] }
  0x6d   : > { %v11025_v8 = vld [vmem:[#allocation5 + $0x5c] sm:$0xf0]  ;;  %v7460_v55 = vld [vmem:[#allocation5 + $0x60] sm:$0xf0] }
  0x6e   : > { %v7714_v9 = vld [vmem:[#allocation5 + $0x240] sm:$0xf]  ;;  %v7459_v16 = vor.u32 %v11025_v8, %v7458_v7  ;;  %2695 = vmatpush.bf16.msra.mxu3 %v8259_v10  ;;  %v7591_v8 = vor.u32 %v11053_v63, %v7588_v0  ;;  %v7463_v63 = vor.u32 %v11021_v54, %v7460_v55  ;;  %v11173_v54 = vld [vmem:[#allocation5 + $0x504] sm:$0xf] }
  0x6f   : > { %v11089_v11 = vld [vmem:[#allocation5 + $0x25c] sm:$0xf0]  ;;  %v8068_v55 = vld [vmem:[#allocation5 + $0x520] sm:$0xf0] }
  0x70   : > { %v7970_v12 = vld [vmem:[#allocation5 + $0x440] sm:$0xf]  ;;  %v7715_v19 = vor.u32 %v11089_v11, %v7714_v9  ;;  %2657 = vmatpush.bf16.msra.mxu0 %v7459_v16  ;;  %v11045_v16 = vld [vmem:[#allocation5 + $0x104] sm:$0xf] }
  0x71   : > { %v11153_v13 = vld [vmem:[#allocation5 + $0x45c] sm:$0xf0] }
  0x72   : > { %v8226_v14 = vld [vmem:[#allocation5 + $0x640] sm:$0xf]  ;;  %v7971_v20 = vor.u32 %v11153_v13, %v7970_v12  ;;  %2670 = vmatpush.bf16.msra.mxu1 %v7715_v19  ;;  %v715_v12 = vunpack.c.l.b16 %v306_v6  ;;  %v716_v13 = vunpack.c.h.b16 %v306_v6  ;;  %v7812_v19 = vld [vmem:[#allocation5 + $0x320] sm:$0xf0] }
  0x73   : > { %v11217_v15 = vld [vmem:[#allocation5 + $0x65c] sm:$0xf0]  ;;  %v7428_v6 = vld [vmem:[#allocation5 + $0x20] sm:$0xf0] }
  0x74   : > { %v7426_v17 = vld [vmem:[#allocation5] sm:$0xf]  ;;  %v8227_v24 = vor.u32 %v11217_v15, %v8226_v14  ;;  %2683 = vmatpush.bf16.msra.mxu2 %v7971_v20  ;;  %v7847_v14 = vor.u32 %v11117_v3, %v7844_v4  ;;  %v12423_v20 = vpack.c.b16 %v715_v12, %v715_v12  ;;  %v11013_v3 = vld [vmem:[#allocation5 + $0x4] sm:$0xf] }
  0x75   : > { %v11017_v18 = vld [vmem:[#allocation5 + $0x1c] sm:$0xf0] }
  0x76   : > { %v7682_v21 = vld [vmem:[#allocation5 + $0x200] sm:$0xf]  ;;  %v7427_v31 = vor.u32 %v11017_v18, %v7426_v17  ;;  %2696 = vmatpush.bf16.msra.mxu3 %v8227_v24  ;;  %v7556_v17 = vld [vmem:[#allocation5 + $0x120] sm:$0xf0] }
  0x77   : > { %v11081_v22 = vld [vmem:[#allocation5 + $0x21c] sm:$0xf0]  ;;  %v11109_v18 = vld [vmem:[#allocation5 + $0x304] sm:$0xf]  ;;  %v7559_v24 = vor.u32 %v11045_v16, %v7556_v17 }
  0x78   : > { %v7938_v23 = vld [vmem:[#allocation5 + $0x400] sm:$0xf]  ;;  %v7683_v35 = vor.u32 %v11081_v22, %v7682_v21  ;;  %2658 = vmatpush.bf16.msra.mxu0 %v7427_v31  ;;  %v12425_v21 = vpack.c.b16 %v716_v13, %v716_v13  ;;  %v7524_v31 = vld [vmem:[#allocation5 + $0xe0] sm:$0xf0] }
  0x79   : > { %v11145_v25 = vld [vmem:[#allocation5 + $0x41c] sm:$0xf0]  ;;  %v8420_v13 = vld [vmem:[#allocation5 + $0x7e0] sm:$0xf0] }
  0x7a   : > { %v8194_v26 = vld [vmem:[#allocation5 + $0x600] sm:$0xf]  ;;  %v7939_v36 = vor.u32 %v11145_v25, %v7938_v23  ;;  %2671 = vmatpush.bf16.msra.mxu1 %v7683_v35 }
  0x7b   : > { %v11209_v27 = vld [vmem:[#allocation5 + $0x61c] sm:$0xf0]  ;;  %2659 = vmatmul.bf16.vlgmr.msra.gmra.mxu0 %v12416_v1 }
  0x7c   : > { %v8674_v28 = vld [vmem:[#allocation5 + $0x9c0] sm:$0xf]  ;;  %v8195_v39 = vor.u32 %v11209_v27, %v8194_v26  ;;  %2684 = vmatpush.bf16.msra.mxu2 %v7939_v36 }
  0x7d   : > { %v11329_v29 = vld [vmem:[#allocation5 + $0x9dc] sm:$0xf0]  ;;  %2672 = vmatmul.bf16.vlgmr.msra.gmra.mxu1 %v12418_v2 }
  0x7e   : > { %v8930_v30 = vld [vmem:[#allocation5 + $0xbc0] sm:$0xf]  ;;  %v8675_v40 = vor.u32 %v11329_v29, %v8674_v28  ;;  %2697 = vmatpush.bf16.msra.mxu3 %v8195_v39  ;;  %v7815_v28 = vor.u32 %v11109_v18, %v7812_v19  ;;  %v7431_v18 = vor.u32 %v11013_v3, %v7428_v6  ;;  %v11389_v19 = vld [vmem:[#allocation5 + $0xbc4] sm:$0xf] }
  0x7f   : > { %v11393_v32 = vld [vmem:[#allocation5 + $0xbdc] sm:$0xf0]  ;;  %2685 = vmatmul.bf16.vlgmr.msra.gmra.mxu2 %v12423_v20  ;;  %v11229_v6 = vld [vmem:[#allocation5 + $0x6c4] sm:$0xf] }
  0x80   : > { %v8931_v41 = vor.u32 %v11393_v32, %v8930_v30  ;;  %v8642_v43 = vld [vmem:[#allocation5 + $0x980] sm:$0xf]  ;;  %2703 = vmatpush.bf16.msrb.mxu0 %v8675_v40  ;;  %2729 = vmatpush.bf16.msrb.mxu2 %v7655_v42  ;;  %v11037_v30 = vld [vmem:[#allocation5 + $0xc4] sm:$0xf] }
  0x81   : > { %v11321_v44 = vld [vmem:[#allocation5 + $0x99c] sm:$0xf0]  ;;  %v11101_v32 = vld [vmem:[#allocation5 + $0x2c4] sm:$0xf]  ;;  %2698 = vmatmul.bf16.vlgmr.msra.gmra.mxu3 %v12425_v21  ;;  %v7527_v36 = vor.u32 %v11037_v30, %v7524_v31 }
  0x82   : > { %v8898_v45 = vld [vmem:[#allocation5 + $0xb80] sm:$0xf]  ;;  %v8643_v53 = vor.u32 %v11321_v44, %v8642_v43  ;;  %2716 = vmatpush.bf16.msrb.mxu1 %v8931_v41  ;;  %2742 = vmatpush.bf16.msrb.mxu3 %v7911_v46  ;;  %v7783_v40 = vor.u32 %v11101_v32, %v7780_v33  ;;  %v11029_v42 = vld [vmem:[#allocation5 + $0x84] sm:$0xf] }
  0x83   : > { %v11385_v47 = vld [vmem:[#allocation5 + $0xb9c] sm:$0xf0]  ;;  %v7492_v43 = vld [vmem:[#allocation5 + $0xa0] sm:$0xf0] }
  0x84   : > { %v8899_v56 = vor.u32 %v11385_v47, %v8898_v45  ;;  %v8610_v58 = vld [vmem:[#allocation5 + $0x940] sm:$0xf]  ;;  %2704 = vmatpush.bf16.msrb.mxu0 %v8643_v53  ;;  %2730 = vmatpush.bf16.msrb.mxu2 %v7623_v57  ;;  %v11093_v44 = vld [vmem:[#allocation5 + $0x284] sm:$0xf]  ;;  %v7495_v48 = vor.u32 %v11029_v42, %v7492_v43 }
  0x85   : > { %v11313_v59 = vld [vmem:[#allocation5 + $0x95c] sm:$0xf0]  ;;  %v7748_v45 = vld [vmem:[#allocation5 + $0x2a0] sm:$0xf0] }
  0x86   : > { %v8866_v60 = vld [vmem:[#allocation5 + $0xb40] sm:$0xf]  ;;  %v8611_v5 = vor.u32 %v11313_v59, %v8610_v58  ;;  %2717 = vmatpush.bf16.msrb.mxu1 %v8899_v56  ;;  %2743 = vmatpush.bf16.msrb.mxu3 %v7879_v61  ;;  %v7751_v52 = vor.u32 %v11093_v44, %v7748_v45  ;;  %v11085_v56 = vld [vmem:[#allocation5 + $0x244] sm:$0xf] }
  0x87   : > { %v11377_v62 = vld [vmem:[#allocation5 + $0xb5c] sm:$0xf0]  ;;  %v7716_v57 = vld [vmem:[#allocation5 + $0x260] sm:$0xf0] }
  0x88   : > { %v8867_v7 = vor.u32 %v11377_v62, %v8866_v60  ;;  %v8578_v9 = vld [vmem:[#allocation5 + $0x900] sm:$0xf]  ;;  %2705 = vmatpush.bf16.msrb.mxu0 %v8611_v5  ;;  %2731 = vmatpush.bf16.msrb.mxu2 %v7591_v8  ;;  %v7719_v5 = vor.u32 %v11085_v56, %v7716_v57  ;;  %v7684_v8 = vld [vmem:[#allocation5 + $0x220] sm:$0xf0] }
  0x89   : > { %v11305_v10 = vld [vmem:[#allocation5 + $0x91c] sm:$0xf0]  ;;  %v11253_v30 = vld [vmem:[#allocation5 + $0x784] sm:$0xf] }
  0x8a   : > { %v8834_v11 = vld [vmem:[#allocation5 + $0xb00] sm:$0xf]  ;;  %v8579_v22 = vor.u32 %v11305_v10, %v8578_v9  ;;  %2718 = vmatpush.bf16.msrb.mxu1 %v8867_v7  ;;  %2744 = vmatpush.bf16.msrb.mxu3 %v7847_v14  ;;  %v11077_v7 = vld [vmem:[#allocation5 + $0x204] sm:$0xf] }
  0x8b   : > { %v11369_v15 = vld [vmem:[#allocation5 + $0xb1c] sm:$0xf0]  ;;  %v11197_v9 = vld [vmem:[#allocation5 + $0x5c4] sm:$0xf] }
  0x8c   : > { %v8835_v23 = vor.u32 %v11369_v15, %v8834_v11  ;;  %v8546_v25 = vld [vmem:[#allocation5 + $0x8c0] sm:$0xf]  ;;  %2706 = vmatpush.bf16.msrb.mxu0 %v8579_v22  ;;  %2732 = vmatpush.bf16.msrb.mxu2 %v7559_v24  ;;  %v8164_v10 = vld [vmem:[#allocation5 + $0x5e0] sm:$0xf0]  ;;  %v7687_v24 = vor.u32 %v11077_v7, %v7684_v8 }
  0x8d   : > { %v11297_v26 = vld [vmem:[#allocation5 + $0x8dc] sm:$0xf0]  ;;  %v11261_v11 = vld [vmem:[#allocation5 + $0x7c4] sm:$0xf] }
  0x8e   : > { %v8802_v27 = vld [vmem:[#allocation5 + $0xac0] sm:$0xf]  ;;  %v8547_v34 = vor.u32 %v11297_v26, %v8546_v25  ;;  %2719 = vmatpush.bf16.msrb.mxu1 %v8835_v23  ;;  %2745 = vmatpush.bf16.msrb.mxu3 %v7815_v28  ;;  %v11325_v14 = vld [vmem:[#allocation5 + $0x9c4] sm:$0xf]  ;;  %v8167_v25 = vor.u32 %v11197_v9, %v8164_v10  ;;  %v8423_v26 = vor.u32 %v11261_v11, %v8420_v13 }
  0x8f   : > { %v11361_v29 = vld [vmem:[#allocation5 + $0xadc] sm:$0xf0]  ;;  %v8676_v15 = vld [vmem:[#allocation5 + $0x9e0] sm:$0xf0] }
  0x90   : > { %v8803_v35 = vor.u32 %v11361_v29, %v8802_v27  ;;  %v8514_v37 = vld [vmem:[#allocation5 + $0x880] sm:$0xf]  ;;  %2707 = vmatpush.bf16.msrb.mxu0 %v8547_v34  ;;  %2733 = vmatpush.bf16.msrb.mxu2 %v7527_v36  ;;  %v8932_v22 = vld [vmem:[#allocation5 + $0xbe0] sm:$0xf0]  ;;  %v8679_v27 = vor.u32 %v11325_v14, %v8676_v15 }
  0x91   : > { %v11289_v38 = vld [vmem:[#allocation5 + $0x89c] sm:$0xf0]  ;;  %v11189_v28 = vld [vmem:[#allocation5 + $0x584] sm:$0xf]  ;;  %v8935_v31 = vor.u32 %v11389_v19, %v8932_v22 }
  0x92   : > { %v8770_v39 = vld [vmem:[#allocation5 + $0xa80] sm:$0xf]  ;;  %v8515_v46 = vor.u32 %v11289_v38, %v8514_v37  ;;  %2720 = vmatpush.bf16.msrb.mxu1 %v8803_v35  ;;  %2746 = vmatpush.bf16.msrb.mxu3 %v7783_v40  ;;  %v8132_v29 = vld [vmem:[#allocation5 + $0x5a0] sm:$0xf0] }
  0x93   : > { %v11353_v41 = vld [vmem:[#allocation5 + $0xa9c] sm:$0xf0]  ;;  %v8388_v33 = vld [vmem:[#allocation5 + $0x7a0] sm:$0xf0] }
  0x94   : > { %v8771_v47 = vor.u32 %v11353_v41, %v8770_v39  ;;  %v8482_v49 = vld [vmem:[#allocation5 + $0x840] sm:$0xf]  ;;  %2708 = vmatpush.bf16.msrb.mxu0 %v8515_v46  ;;  %2734 = vmatpush.bf16.msrb.mxu2 %v7495_v48  ;;  %v11317_v34 = vld [vmem:[#allocation5 + $0x984] sm:$0xf]  ;;  %v8135_v39 = vor.u32 %v11189_v28, %v8132_v29  ;;  %v8391_v40 = vor.u32 %v11253_v30, %v8388_v33 }
  0x95   : > { %v11281_v50 = vld [vmem:[#allocation5 + $0x85c] sm:$0xf0]  ;;  %v8644_v35 = vld [vmem:[#allocation5 + $0x9a0] sm:$0xf0] }
  0x96   : > { %v8738_v51 = vld [vmem:[#allocation5 + $0xa40] sm:$0xf]  ;;  %v8483_v58 = vor.u32 %v11281_v50, %v8482_v49  ;;  %2721 = vmatpush.bf16.msrb.mxu1 %v8771_v47  ;;  %2747 = vmatpush.bf16.msrb.mxu3 %v7751_v52  ;;  %v11381_v37 = vld [vmem:[#allocation5 + $0xb84] sm:$0xf]  ;;  %v8647_v41 = vor.u32 %v11317_v34, %v8644_v35 }
  0x97   : > { %v11345_v53 = vld [vmem:[#allocation5 + $0xa5c] sm:$0xf0]  ;;  %v8900_v38 = vld [vmem:[#allocation5 + $0xba0] sm:$0xf0] }
  0x98   : > { %v8450_v59 = vld [vmem:[#allocation5 + $0x800] sm:$0xf]  ;;  %v8739_v62 = vor.u32 %v11345_v53, %v8738_v51  ;;  %2709 = vmatpush.bf16.msrb.mxu0 %v8483_v58  ;;  %2735 = vmatpush.bf16.msrb.mxu2 %v7463_v63  ;;  %v11181_v42 = vld [vmem:[#allocation5 + $0x544] sm:$0xf]  ;;  %v8903_v45 = vor.u32 %v11381_v37, %v8900_v38  ;;  %v8071_v63 = vor.u32 %v11173_v54, %v8068_v55  ;;  %v11074_v54 = vld [vmem:[#allocation5 + $0x1e4] sm:$0xf0] }
  0x99   : > { %v11273_v60 = vld [vmem:[#allocation5 + $0x81c] sm:$0xf0]  ;;  %v8100_v43 = vld [vmem:[#allocation5 + $0x560] sm:$0xf0]  ;;  %v7914_v55 = vld [vmem:[#allocation5 + $0x3c8] sm:$0xf] }
  0x9a   : > { %v8706_v61 = vld [vmem:[#allocation5 + $0xa00] sm:$0xf]  ;;  %v8451_v12 = vor.u32 %v11273_v60, %v8450_v59  ;;  %2722 = vmatpush.bf16.msrb.mxu1 %v8739_v62  ;;  %2748 = vmatpush.bf16.msrb.mxu3 %v7719_v5  ;;  %v11245_v44 = vld [vmem:[#allocation5 + $0x744] sm:$0xf]  ;;  %v8103_v51 = vor.u32 %v11181_v42, %v8100_v43 }
  0x9b   : > { %v11337_v0 = vld [vmem:[#allocation5 + $0xa1c] sm:$0xf0]  ;;  %v8356_v46 = vld [vmem:[#allocation5 + $0x760] sm:$0xf0] }
  0x9c   : > { %v307_v4 = vld [vmem:[%s12401_s17 + $0x10] sm:$0xff]  ;;  %v8707_v17 = vor.u32 %v11337_v0, %v8706_v61  ;;  %2710 = vmatpush.bf16.msrb.mxu0 %v8451_v12  ;;  %2736 = vmatpush.bf16.msrb.mxu2 %v7431_v18  ;;  %v8359_v52 = vor.u32 %v11245_v44, %v8356_v46 }
  0x9d   : > { %v717_v16 = vunpack.c.l.b16 %v307_v4  ;;  %v718_v23 = vunpack.c.h.b16 %v307_v4  ;;  %v11309_v47 = vld [vmem:[#allocation5 + $0x944] sm:$0xf] }
  0x9e   : > { %2723 = vmatpush.bf16.msrb.mxu1 %v8707_v17  ;;  %2749 = vmatpush.bf16.msrb.mxu3 %v7687_v24  ;;  %v8612_v48 = vld [vmem:[#allocation5 + $0x960] sm:$0xf0] }
  0x9f   : > { %v12430_v32 = vpack.c.b16 %v717_v16, %v717_v16  ;;  %v12432_v36 = vpack.c.b16 %v718_v23, %v718_v23  ;;  %v11373_v49 = vld [vmem:[#allocation5 + $0xb44] sm:$0xf]  ;;  %2737 = vmatmul.bf16.vlgmr.msrb.gmra.mxu2 %v12416_v1  ;;  %v8615_v53 = vor.u32 %v11309_v47, %v8612_v48 }
  0xa0   : > { %2755 = vmatpush.bf16.msra.mxu0 %v8167_v25  ;;  %2781 = vmatpush.bf16.msra.mxu2 %v8679_v27  ;;  %v8868_v50 = vld [vmem:[#allocation5 + $0xb60] sm:$0xf0] }
  0xa1   : > { %2711 = vmatmul.bf16.vlgmr.msrb.gmra.mxu0 %v12430_v32  ;;  %2724 = vmatmul.bf16.vlgmr.msrb.gmra.mxu1 %v12432_v36  ;;  %v11237_v56 = vld [vmem:[#allocation5 + $0x704] sm:$0xf]  ;;  %v8871_v57 = vor.u32 %v11373_v49, %v8868_v50 }
  0xa2   : > { %2768 = vmatpush.bf16.msra.mxu1 %v8423_v26  ;;  %2794 = vmatpush.bf16.msra.mxu3 %v8935_v31  ;;  %v8324_v58 = vld [vmem:[#allocation5 + $0x720] sm:$0xf0] }
  0xa3   : > { %2750 = vmatmul.bf16.vlgmr.msrb.gmra.mxu3 %v12418_v2  ;;  %v11301_v59 = vld [vmem:[#allocation5 + $0x904] sm:$0xf]  ;;  %v8327_v0 = vor.u32 %v11237_v56, %v8324_v58  ;;  %v8170_v58 = vld [vmem:[#allocation5 + $0x5c8] sm:$0xf] }
  0xa4   : > { %2756 = vmatpush.bf16.msra.mxu0 %v8135_v39  ;;  %2782 = vmatpush.bf16.msra.mxu2 %v8647_v41  ;;  %v8580_v60 = vld [vmem:[#allocation5 + $0x920] sm:$0xf0] }
  0xa5   : > { %v11365_v61 = vld [vmem:[#allocation5 + $0xb04] sm:$0xf]  ;;  %v8583_v3 = vor.u32 %v11301_v59, %v8580_v60  ;;  %v11202_v59 = vld [vmem:[#allocation5 + $0x5e4] sm:$0xf0] }
  0xa6   : > { %2769 = vmatpush.bf16.msra.mxu1 %v8391_v40  ;;  %2795 = vmatpush.bf16.msra.mxu3 %v8903_v45  ;;  %v8836_v62 = vld [vmem:[#allocation5 + $0xb20] sm:$0xf0] }
  0xa7   : > { %v11165_v4 = vld [vmem:[#allocation5 + $0x4c4] sm:$0xf]  ;;  %v8839_v7 = vor.u32 %v11365_v61, %v8836_v62  ;;  %v8426_v62 = vld [vmem:[#allocation5 + $0x7c8] sm:$0xf] }
  0xa8   : > { %2757 = vmatpush.bf16.msra.mxu0 %v8103_v51  ;;  %2783 = vmatpush.bf16.msra.mxu2 %v8615_v53  ;;  %v8036_v5 = vld [vmem:[#allocation5 + $0x4e0] sm:$0xf0]  ;;  %v7658_v53 = vld [vmem:[#allocation5 + $0x1c8] sm:$0xf] }
  0xa9   : > { %v8292_v8 = vld [vmem:[#allocation5 + $0x6e0] sm:$0xf0]  ;;  %v8039_v13 = vor.u32 %v11165_v4, %v8036_v5  ;;  %v8171_v5 = vor.u32 %v11202_v59, %v8170_v58  ;;  %v7498_v58 = vld [vmem:[#allocation5 + $0x88] sm:$0xf] }
  0xaa   : > { %2770 = vmatpush.bf16.msra.mxu1 %v8359_v52  ;;  %2796 = vmatpush.bf16.msra.mxu3 %v8871_v57  ;;  %v11293_v9 = vld [vmem:[#allocation5 + $0x8c4] sm:$0xf]  ;;  %v8295_v14 = vor.u32 %v11229_v6, %v8292_v8  ;;  %v11138_v57 = vld [vmem:[#allocation5 + $0x3e4] sm:$0xf0] }
  0xab   : > { %v8548_v10 = vld [vmem:[#allocation5 + $0x8e0] sm:$0xf0]  ;;  %v7915_v4 = vor.u32 %v11138_v57, %v7914_v55  ;;  %v7626_v6 = vld [vmem:[#allocation5 + $0x188] sm:$0xf] }
  0xac   : > { %v11357_v11 = vld [vmem:[#allocation5 + $0xac4] sm:$0xf]  ;;  %2758 = vmatpush.bf16.msra.mxu0 %v8071_v63  ;;  %2784 = vmatpush.bf16.msra.mxu2 %v8583_v3  ;;  %v8551_v15 = vor.u32 %v11293_v9, %v8548_v10  ;;  %v11266_v63 = vld [vmem:[#allocation5 + $0x7e4] sm:$0xf0]  ;;  %v7659_v3 = vor.u32 %v11074_v54, %v7658_v53 }
  0xad   : > { %v8804_v12 = vld [vmem:[#allocation5 + $0xae0] sm:$0xf0]  ;;  %v7882_v8 = vld [vmem:[#allocation5 + $0x388] sm:$0xf]  ;;  %v8427_v9 = vor.u32 %v11266_v63, %v8426_v62 }
  0xae   : > { %2771 = vmatpush.bf16.msra.mxu1 %v8327_v0  ;;  %v11157_v16 = vld [vmem:[#allocation5 + $0x484] sm:$0xf]  ;;  %2797 = vmatpush.bf16.msra.mxu3 %v8839_v7  ;;  %v8807_v19 = vor.u32 %v11357_v11, %v8804_v12  ;;  %v11066_v7 = vld [vmem:[#allocation5 + $0x1a4] sm:$0xf0] }
  0xaf   : > { %v8004_v17 = vld [vmem:[#allocation5 + $0x4a0] sm:$0xf0]  ;;  %v11130_v10 = vld [vmem:[#allocation5 + $0x3a4] sm:$0xf0] }
  0xb0   : > { %v11221_v18 = vld [vmem:[#allocation5 + $0x684] sm:$0xf]  ;;  %2759 = vmatpush.bf16.msra.mxu0 %v8039_v13  ;;  %v8007_v27 = vor.u32 %v11157_v16, %v8004_v17  ;;  %2785 = vmatpush.bf16.msra.mxu2 %v8551_v15  ;;  %v8138_v11 = vld [vmem:[#allocation5 + $0x588] sm:$0xf]  ;;  %v7627_v15 = vor.u32 %v11066_v7, %v7626_v6  ;;  %v7883_v16 = vor.u32 %v11130_v10, %v7882_v8 }
  0xb1   : > { %v8260_v22 = vld [vmem:[#allocation5 + $0x6a0] sm:$0xf0]  ;;  %v11194_v12 = vld [vmem:[#allocation5 + $0x5a4] sm:$0xf0] }
  0xb2   : > { %v11285_v23 = vld [vmem:[#allocation5 + $0x884] sm:$0xf]  ;;  %2772 = vmatpush.bf16.msra.mxu1 %v8295_v14  ;;  %v8263_v28 = vor.u32 %v11221_v18, %v8260_v22  ;;  %2798 = vmatpush.bf16.msra.mxu3 %v8807_v19  ;;  %v8394_v13 = vld [vmem:[#allocation5 + $0x788] sm:$0xf]  ;;  %v8139_v17 = vor.u32 %v11194_v12, %v8138_v11 }
  0xb3   : > { %v8516_v24 = vld [vmem:[#allocation5 + $0x8a0] sm:$0xf0]  ;;  %v11258_v14 = vld [vmem:[#allocation5 + $0x7a4] sm:$0xf0] }
  0xb4   : > { %v11349_v25 = vld [vmem:[#allocation5 + $0xa84] sm:$0xf]  ;;  %v8519_v29 = vor.u32 %v11285_v23, %v8516_v24  ;;  %2760 = vmatpush.bf16.msra.mxu0 %v8007_v27  ;;  %v7594_v18 = vld [vmem:[#allocation5 + $0x148] sm:$0xf]  ;;  %v8395_v23 = vor.u32 %v11258_v14, %v8394_v13 }
  0xb5   : > { %v8772_v26 = vld [vmem:[#allocation5 + $0xaa0] sm:$0xf0]  ;;  %v11058_v19 = vld [vmem:[#allocation5 + $0x164] sm:$0xf0] }
  0xb6   : > { %v11149_v30 = vld [vmem:[#allocation5 + $0x444] sm:$0xf]  ;;  %v8775_v34 = vor.u32 %v11349_v25, %v8772_v26  ;;  %2773 = vmatpush.bf16.msra.mxu1 %v8263_v28  ;;  %2786 = vmatpush.bf16.msra.mxu2 %v8519_v29  ;;  %v7850_v22 = vld [vmem:[#allocation5 + $0x348] sm:$0xf]  ;;  %v7595_v29 = vor.u32 %v11058_v19, %v7594_v18 }
  0xb7   : > { %v7972_v31 = vld [vmem:[#allocation5 + $0x460] sm:$0xf0]  ;;  %v11122_v24 = vld [vmem:[#allocation5 + $0x364] sm:$0xf0] }
  0xb8   : > { %v11213_v33 = vld [vmem:[#allocation5 + $0x644] sm:$0xf]  ;;  %v7975_v41 = vor.u32 %v11149_v30, %v7972_v31  ;;  %2799 = vmatpush.bf16.msra.mxu3 %v8775_v34  ;;  %v8106_v25 = vld [vmem:[#allocation5 + $0x548] sm:$0xf]  ;;  %v7851_v30 = vor.u32 %v11122_v24, %v7850_v22 }
  0xb9   : > { %v8228_v35 = vld [vmem:[#allocation5 + $0x660] sm:$0xf0]  ;;  %v11186_v26 = vld [vmem:[#allocation5 + $0x564] sm:$0xf0] }
  0xba   : > { %v11277_v37 = vld [vmem:[#allocation5 + $0x844] sm:$0xf]  ;;  %v8231_v44 = vor.u32 %v11213_v33, %v8228_v35  ;;  %2761 = vmatpush.bf16.msra.mxu0 %v7975_v41  ;;  %v8362_v27 = vld [vmem:[#allocation5 + $0x748] sm:$0xf]  ;;  %v8107_v31 = vor.u32 %v11186_v26, %v8106_v25 }
  0xbb   : > { %v8484_v38 = vld [vmem:[#allocation5 + $0x860] sm:$0xf0]  ;;  %v11250_v28 = vld [vmem:[#allocation5 + $0x764] sm:$0xf0] }
  0xbc   : > { %v11341_v39 = vld [vmem:[#allocation5 + $0xa44] sm:$0xf]  ;;  %v8487_v45 = vor.u32 %v11277_v37, %v8484_v38  ;;  %2774 = vmatpush.bf16.msra.mxu1 %v8231_v44  ;;  %v7562_v33 = vld [vmem:[#allocation5 + $0x108] sm:$0xf]  ;;  %v8363_v37 = vor.u32 %v11250_v28, %v8362_v27 }
  0xbd   : > { %v8740_v40 = vld [vmem:[#allocation5 + $0xa60] sm:$0xf0]  ;;  %v11050_v34 = vld [vmem:[#allocation5 + $0x124] sm:$0xf0] }
  0xbe   : > { %v11141_v42 = vld [vmem:[#allocation5 + $0x404] sm:$0xf]  ;;  %v8743_v49 = vor.u32 %v11341_v39, %v8740_v40  ;;  %2787 = vmatpush.bf16.msra.mxu2 %v8487_v45  ;;  %v7818_v35 = vld [vmem:[#allocation5 + $0x308] sm:$0xf] }
  0xbf   : > { %v7940_v43 = vld [vmem:[#allocation5 + $0x420] sm:$0xf0]  ;;  %v11114_v38 = vld [vmem:[#allocation5 + $0x324] sm:$0xf0] }
  0xc0   : > { %v11205_v46 = vld [vmem:[#allocation5 + $0x604] sm:$0xf]  ;;  %v7943_v56 = vor.u32 %v11141_v42, %v7940_v43  ;;  %2800 = vmatpush.bf16.msra.mxu3 %v8743_v49  ;;  %v8074_v39 = vld [vmem:[#allocation5 + $0x508] sm:$0xf]  ;;  %v7563_v43 = vor.u32 %v11050_v34, %v7562_v33  ;;  %v7819_v44 = vor.u32 %v11114_v38, %v7818_v35  ;;  %v11070_v38 = vld [vmem:[#allocation5 + $0x1cc] sm:$0xf] }
  0xc1   : > { %v8196_v47 = vld [vmem:[#allocation5 + $0x620] sm:$0xf0]  ;;  %v11178_v40 = vld [vmem:[#allocation5 + $0x524] sm:$0xf0] }
  0xc2   : > { %v11269_v48 = vld [vmem:[#allocation5 + $0x804] sm:$0xf]  ;;  %v8199_v60 = vor.u32 %v11205_v46, %v8196_v47  ;;  %2762 = vmatpush.bf16.msra.mxu0 %v7943_v56  ;;  %v8330_v41 = vld [vmem:[#allocation5 + $0x708] sm:$0xf]  ;;  %v8075_v45 = vor.u32 %v11178_v40, %v8074_v39  ;;  %v7660_v39 = vld [vmem:[#allocation5 + $0x1e8] sm:$0xf0] }
  0xc3   : > { %v8452_v50 = vld [vmem:[#allocation5 + $0x820] sm:$0xf0]  ;;  %v11242_v42 = vld [vmem:[#allocation5 + $0x724] sm:$0xf0] }
  0xc4   : > { %v11333_v51 = vld [vmem:[#allocation5 + $0xa04] sm:$0xf]  ;;  %v8455_v61 = vor.u32 %v11269_v48, %v8452_v50  ;;  %2775 = vmatpush.bf16.msra.mxu1 %v8199_v60  ;;  %v7530_v46 = vld [vmem:[#allocation5 + $0xc8] sm:$0xf]  ;;  %v8331_v49 = vor.u32 %v11242_v42, %v8330_v41  ;;  %v11134_v42 = vld [vmem:[#allocation5 + $0x3cc] sm:$0xf] }
  0xc5   : > { %v8708_v52 = vld [vmem:[#allocation5 + $0xa20] sm:$0xf0]  ;;  %2763 = vmatmul.bf16.vlgmr.msra.gmra.mxu0 %v12423_v20  ;;  %v11042_v47 = vld [vmem:[#allocation5 + $0xe4] sm:$0xf0] }
  0xc6   : > { %v8711_v0 = vor.u32 %v11333_v51, %v8708_v52  ;;  %2788 = vmatpush.bf16.msra.mxu2 %v8455_v61  ;;  %2807 = vmatpush.bf16.msrb.mxu0 %v7659_v3  ;;  %v7786_v48 = vld [vmem:[#allocation5 + $0x2c8] sm:$0xf]  ;;  %v7531_v55 = vor.u32 %v11042_v47, %v7530_v46  ;;  %v7663_v47 = vor.u32 %v11070_v38, %v7660_v39 }
  0xc7   : > { %2776 = vmatmul.bf16.vlgmr.msra.gmra.mxu1 %v12425_v21  ;;  %v11106_v50 = vld [vmem:[#allocation5 + $0x2e4] sm:$0xf0] }
  0xc8   : > { %2801 = vmatpush.bf16.msra.mxu3 %v8711_v0  ;;  %2820 = vmatpush.bf16.msrb.mxu1 %v7915_v4  ;;  %v8042_v51 = vld [vmem:[#allocation5 + $0x4c8] sm:$0xf]  ;;  %v7787_v56 = vor.u32 %v11106_v50, %v7786_v48 }
  0xc9   : > { %2789 = vmatmul.bf16.vlgmr.msra.gmra.mxu2 %v12430_v32  ;;  %v11170_v52 = vld [vmem:[#allocation5 + $0x4e4] sm:$0xf0] }
  0xca   : > { %2833 = vmatpush.bf16.msrb.mxu2 %v8171_v5  ;;  %2808 = vmatpush.bf16.msrb.mxu0 %v7627_v15  ;;  %v8298_v53 = vld [vmem:[#allocation5 + $0x6c8] sm:$0xf]  ;;  %v8043_v57 = vor.u32 %v11170_v52, %v8042_v51 }
  0xcb   : > { %2802 = vmatmul.bf16.vlgmr.msra.gmra.mxu3 %v12432_v36  ;;  %v11234_v54 = vld [vmem:[#allocation5 + $0x6e4] sm:$0xf0] }
  0xcc   : > { %2846 = vmatpush.bf16.msrb.mxu3 %v8427_v9  ;;  %2821 = vmatpush.bf16.msrb.mxu1 %v7883_v16  ;;  %v11034_v59 = vld [vmem:[#allocation5 + $0xa4] sm:$0xf0]  ;;  %v8299_v61 = vor.u32 %v11234_v54, %v8298_v53  ;;  %v11062_v53 = vld [vmem:[#allocation5 + $0x18c] sm:$0xf] }
  0xcd   : > { %v7754_v60 = vld [vmem:[#allocation5 + $0x288] sm:$0xf]  ;;  %v7499_v5 = vor.u32 %v11034_v59, %v7498_v58  ;;  %v7628_v54 = vld [vmem:[#allocation5 + $0x1a8] sm:$0xf0] }
  0xce   : > { %2834 = vmatpush.bf16.msrb.mxu2 %v8139_v17  ;;  %2809 = vmatpush.bf16.msrb.mxu0 %v7595_v29  ;;  %v11098_v62 = vld [vmem:[#allocation5 + $0x2a4] sm:$0xf0]  ;;  %v7631_v59 = vor.u32 %v11062_v53, %v7628_v54 }
  0xcf   : > { %v8010_v63 = vld [vmem:[#allocation5 + $0x488] sm:$0xf]  ;;  %v7755_v6 = vor.u32 %v11098_v62, %v7754_v60 }
  0xd0   : > { %2847 = vmatpush.bf16.msrb.mxu3 %v8395_v23  ;;  %2822 = vmatpush.bf16.msrb.mxu1 %v7851_v30  ;;  %v11162_v0 = vld [vmem:[#allocation5 + $0x4a4] sm:$0xf0] }
  0xd1   : > { %v8266_v3 = vld [vmem:[#allocation5 + $0x688] sm:$0xf]  ;;  %v8011_v7 = vor.u32 %v11162_v0, %v8010_v63 }
  0xd2   : > { %2835 = vmatpush.bf16.msrb.mxu2 %v8107_v31  ;;  %2810 = vmatpush.bf16.msrb.mxu0 %v7563_v43  ;;  %v11226_v4 = vld [vmem:[#allocation5 + $0x6a4] sm:$0xf0]  ;;  %v7916_v43 = vld [vmem:[#allocation5 + $0x3e8] sm:$0xf0] }
  0xd3   : > { %v7466_v8 = vld [vmem:[#allocation5 + $0x48] sm:$0xf]  ;;  %v8267_v11 = vor.u32 %v11226_v4, %v8266_v3  ;;  %v7919_v51 = vor.u32 %v11134_v42, %v7916_v43  ;;  %v11054_v3 = vld [vmem:[#allocation5 + $0x14c] sm:$0xf] }
  0xd4   : > { %2848 = vmatpush.bf16.msrb.mxu3 %v8363_v37  ;;  %2823 = vmatpush.bf16.msrb.mxu1 %v7819_v44  ;;  %v11026_v9 = vld [vmem:[#allocation5 + $0x64] sm:$0xf0]  ;;  %v7596_v4 = vld [vmem:[#allocation5 + $0x168] sm:$0xf0] }
  0xd5   : > { %v7722_v10 = vld [vmem:[#allocation5 + $0x248] sm:$0xf]  ;;  %v7467_v17 = vor.u32 %v11026_v9, %v7466_v8  ;;  %v7599_v9 = vor.u32 %v11054_v3, %v7596_v4  ;;  %v11030_v43 = vld [vmem:[#allocation5 + $0x8c] sm:$0xf] }
  0xd6   : > { %2836 = vmatpush.bf16.msrb.mxu2 %v8075_v45  ;;  %2811 = vmatpush.bf16.msrb.mxu0 %v7531_v55  ;;  %v11090_v12 = vld [vmem:[#allocation5 + $0x264] sm:$0xf0]  ;;  %v11126_v55 = vld [vmem:[#allocation5 + $0x38c] sm:$0xf] }
  0xd7   : > { %v7978_v13 = vld [vmem:[#allocation5 + $0x448] sm:$0xf]  ;;  %v7723_v22 = vor.u32 %v11090_v12, %v7722_v10  ;;  %v11014_v4 = vld [vmem:[#allocation5 + $0xc] sm:$0xf] }
  0xd8   : > { %2849 = vmatpush.bf16.msrb.mxu3 %v8331_v49  ;;  %2824 = vmatpush.bf16.msrb.mxu1 %v7787_v56  ;;  %v11154_v14 = vld [vmem:[#allocation5 + $0x464] sm:$0xf0]  ;;  %v7884_v56 = vld [vmem:[#allocation5 + $0x3a8] sm:$0xf0] }
  0xd9   : > { %v8234_v15 = vld [vmem:[#allocation5 + $0x648] sm:$0xf]  ;;  %v7979_v23 = vor.u32 %v11154_v14, %v7978_v13  ;;  %v7887_v63 = vor.u32 %v11126_v55, %v7884_v56  ;;  %v11022_v55 = vld [vmem:[#allocation5 + $0x4c] sm:$0xf] }
  0xda   : > { %2837 = vmatpush.bf16.msrb.mxu2 %v8043_v57  ;;  %v11218_v16 = vld [vmem:[#allocation5 + $0x664] sm:$0xf0]  ;;  %2812 = vmatpush.bf16.msrb.mxu0 %v7499_v5  ;;  %v11118_v5 = vld [vmem:[#allocation5 + $0x34c] sm:$0xf] }
  0xdb   : > { %v7434_v18 = vld [vmem:[#allocation5 + $0x8] sm:$0xf]  ;;  %v8235_v27 = vor.u32 %v11218_v16, %v8234_v15  ;;  %v11046_v15 = vld [vmem:[#allocation5 + $0x10c] sm:$0xf] }
  0xdc   : > { %2850 = vmatpush.bf16.msrb.mxu3 %v8299_v61  ;;  %v11018_v19 = vld [vmem:[#allocation5 + $0x24] sm:$0xf0]  ;;  %2825 = vmatpush.bf16.msrb.mxu1 %v7755_v6  ;;  %v7852_v6 = vld [vmem:[#allocation5 + $0x368] sm:$0xf0] }
  0xdd   : > { %v7690_v24 = vld [vmem:[#allocation5 + $0x208] sm:$0xf]  ;;  %v7435_v35 = vor.u32 %v11018_v19, %v7434_v18  ;;  %v7855_v13 = vor.u32 %v11118_v5, %v7852_v6  ;;  %v7564_v16 = vld [vmem:[#allocation5 + $0x128] sm:$0xf0] }
  0xde   : > { %2838 = vmatpush.bf16.msrb.mxu2 %v8011_v7  ;;  %v11082_v25 = vld [vmem:[#allocation5 + $0x224] sm:$0xf0]  ;;  %2813 = vmatpush.bf16.msrb.mxu0 %v7467_v17  ;;  %v11110_v17 = vld [vmem:[#allocation5 + $0x30c] sm:$0xf] }
  0xdf   : > { %v7946_v26 = vld [vmem:[#allocation5 + $0x408] sm:$0xf]  ;;  %v7691_v40 = vor.u32 %v11082_v25, %v7690_v24  ;;  %v7820_v18 = vld [vmem:[#allocation5 + $0x328] sm:$0xf0] }
  0xe0   : > { %2851 = vmatpush.bf16.msrb.mxu3 %v8267_v11  ;;  %v11146_v28 = vld [vmem:[#allocation5 + $0x424] sm:$0xf0]  ;;  %2826 = vmatpush.bf16.msrb.mxu1 %v7723_v22  ;;  %v7468_v56 = vld [vmem:[#allocation5 + $0x68] sm:$0xf0] }
  0xe1   : > { %v8202_v29 = vld [vmem:[#allocation5 + $0x608] sm:$0xf]  ;;  %v7947_v41 = vor.u32 %v11146_v28, %v7946_v26  ;;  %v7436_v6 = vld [vmem:[#allocation5 + $0x28] sm:$0xf0] }
  0xe2   : > { %v11210_v30 = vld [vmem:[#allocation5 + $0x624] sm:$0xf0]  ;;  %2839 = vmatpush.bf16.msrb.mxu2 %v7979_v23  ;;  %2814 = vmatpush.bf16.msrb.mxu0 %v7435_v35  ;;  %v7567_v23 = vor.u32 %v11046_v15, %v7564_v16  ;;  %v8684_v15 = vld [vmem:[#allocation5 + $0x9e8] sm:$0xf0] }
  0xe3   : > { %v8682_v31 = vld [vmem:[#allocation5 + $0x9c8] sm:$0xf]  ;;  %v8203_v44 = vor.u32 %v11210_v30, %v8202_v29  ;;  %v11038_v29 = vld [vmem:[#allocation5 + $0xcc] sm:$0xf] }
  0xe4   : > { %v11330_v33 = vld [vmem:[#allocation5 + $0x9e4] sm:$0xf0]  ;;  %2852 = vmatpush.bf16.msrb.mxu3 %v8235_v27  ;;  %2827 = vmatpush.bf16.msrb.mxu1 %v7691_v40  ;;  %v7823_v27 = vor.u32 %v11110_v17, %v7820_v18  ;;  %v7532_v30 = vld [vmem:[#allocation5 + $0xe8] sm:$0xf0]  ;;  %v7439_v17 = vor.u32 %v11014_v4, %v7436_v6 }
  0xe5   : > { %v8938_v34 = vld [vmem:[#allocation5 + $0xbc8] sm:$0xf]  ;;  %v8683_v45 = vor.u32 %v11330_v33, %v8682_v31  ;;  %2815 = vmatmul.bf16.vlgmr.msrb.gmra.mxu0 %v12416_v1  ;;  %v11102_v31 = vld [vmem:[#allocation5 + $0x2cc] sm:$0xf] }
  0xe6   : > { %v11394_v37 = vld [vmem:[#allocation5 + $0xbe4] sm:$0xf0]  ;;  %2840 = vmatpush.bf16.msrb.mxu2 %v7947_v41  ;;  %v7788_v33 = vld [vmem:[#allocation5 + $0x2e8] sm:$0xf0] }
  0xe7   : > { %v8939_v46 = vor.u32 %v11394_v37, %v8938_v34  ;;  %v8650_v48 = vld [vmem:[#allocation5 + $0x988] sm:$0xf]  ;;  %2859 = vmatpush.bf16.msra.mxu0 %v8683_v45  ;;  %2828 = vmatmul.bf16.vlgmr.msrb.gmra.mxu1 %v12418_v2  ;;  %v7535_v37 = vor.u32 %v11038_v29, %v7532_v30  ;;  %v7791_v41 = vor.u32 %v11102_v31, %v7788_v33  ;;  %v11094_v45 = vld [vmem:[#allocation5 + $0x28c] sm:$0xf] }
  0xe8   : > { %v11322_v49 = vld [vmem:[#allocation5 + $0x9a4] sm:$0xf0]  ;;  %2853 = vmatpush.bf16.msrb.mxu3 %v8203_v44  ;;  %v7500_v44 = vld [vmem:[#allocation5 + $0xa8] sm:$0xf0] }
  0xe9   : > { %v8906_v50 = vld [vmem:[#allocation5 + $0xb88] sm:$0xf]  ;;  %v8651_v57 = vor.u32 %v11322_v49, %v8650_v48  ;;  %2872 = vmatpush.bf16.msra.mxu1 %v8939_v46  ;;  %2841 = vmatmul.bf16.vlgmr.msrb.gmra.mxu2 %v12423_v20  ;;  %v7756_v46 = vld [vmem:[#allocation5 + $0x2a8] sm:$0xf0]  ;;  %v7503_v49 = vor.u32 %v11030_v43, %v7500_v44 }
  0xea   : > { %v11386_v52 = vld [vmem:[#allocation5 + $0xba4] sm:$0xf0]  ;;  %2885 = vmatpush.bf16.msra.mxu2 %v7663_v47  ;;  %v7759_v53 = vor.u32 %v11094_v45, %v7756_v46  ;;  %v11390_v18 = vld [vmem:[#allocation5 + $0xbcc] sm:$0xf] }
  0xeb   : > { %v8907_v58 = vor.u32 %v11386_v52, %v8906_v50  ;;  %v8618_v60 = vld [vmem:[#allocation5 + $0x948] sm:$0xf]  ;;  %2860 = vmatpush.bf16.msra.mxu0 %v8651_v57  ;;  %2854 = vmatmul.bf16.vlgmr.msrb.gmra.mxu3 %v12425_v21  ;;  %v11086_v57 = vld [vmem:[#allocation5 + $0x24c] sm:$0xf] }
  0xec   : > { %v11314_v61 = vld [vmem:[#allocation5 + $0x964] sm:$0xf0]  ;;  %2898 = vmatpush.bf16.msra.mxu3 %v7919_v51  ;;  %v8396_v30 = vld [vmem:[#allocation5 + $0x7a8] sm:$0xf0] }
  0xed   : > { %v8874_v62 = vld [vmem:[#allocation5 + $0xb48] sm:$0xf]  ;;  %v8619_v7 = vor.u32 %v11314_v61, %v8618_v60  ;;  %2873 = vmatpush.bf16.msra.mxu1 %v8907_v58  ;;  %v7724_v58 = vld [vmem:[#allocation5 + $0x268] sm:$0xf0] }
  0xee   : > { %v11378_v0 = vld [vmem:[#allocation5 + $0xb64] sm:$0xf0]  ;;  %2886 = vmatpush.bf16.msra.mxu2 %v7631_v59  ;;  %v7727_v5 = vor.u32 %v11086_v57, %v7724_v58  ;;  %v11318_v31 = vld [vmem:[#allocation5 + $0x98c] sm:$0xf] }
  0xef   : > { %v8875_v8 = vor.u32 %v11378_v0, %v8874_v62  ;;  %v8586_v10 = vld [vmem:[#allocation5 + $0x908] sm:$0xf]  ;;  %2861 = vmatpush.bf16.msra.mxu0 %v8619_v7  ;;  %v11078_v7 = vld [vmem:[#allocation5 + $0x20c] sm:$0xf] }
  0xf0   : > { %v11306_v11 = vld [vmem:[#allocation5 + $0x924] sm:$0xf0]  ;;  %2899 = vmatpush.bf16.msra.mxu3 %v7887_v63  ;;  %v7471_v63 = vor.u32 %v11022_v55, %v7468_v56  ;;  %v8652_v33 = vld [vmem:[#allocation5 + $0x9a8] sm:$0xf0]  ;;  %v12450_v55 = vld [vmem:[#allocation7] sm:$0xff] }
  0xf1   : > { %v8842_v12 = vld [vmem:[#allocation5 + $0xb08] sm:$0xf]  ;;  %v8587_v19 = vor.u32 %v11306_v11, %v8586_v10  ;;  %2874 = vmatpush.bf16.msra.mxu1 %v8875_v8  ;;  %v7692_v8 = vld [vmem:[#allocation5 + $0x228] sm:$0xf0] }
  0xf2   : > { %v11370_v14 = vld [vmem:[#allocation5 + $0xb24] sm:$0xf0]  ;;  %2887 = vmatpush.bf16.msra.mxu2 %v7599_v9  ;;  %v11198_v9 = vld [vmem:[#allocation5 + $0x5cc] sm:$0xf] }
  0xf3   : > { %v8843_v22 = vor.u32 %v11370_v14, %v8842_v12  ;;  %v8554_v24 = vld [vmem:[#allocation5 + $0x8c8] sm:$0xf]  ;;  %2862 = vmatpush.bf16.msra.mxu0 %v8587_v19  ;;  %v8172_v10 = vld [vmem:[#allocation5 + $0x5e8] sm:$0xf0] }
  0xf4   : > { %v11298_v25 = vld [vmem:[#allocation5 + $0x8e4] sm:$0xf0]  ;;  %2900 = vmatpush.bf16.msra.mxu3 %v7855_v13  ;;  %v11262_v11 = vld [vmem:[#allocation5 + $0x7cc] sm:$0xf] }
  0xf5   : > { %v8810_v26 = vld [vmem:[#allocation5 + $0xac8] sm:$0xf]  ;;  %v8555_v34 = vor.u32 %v11298_v25, %v8554_v24  ;;  %2875 = vmatpush.bf16.msra.mxu1 %v8843_v22  ;;  %v8428_v13 = vld [vmem:[#allocation5 + $0x7e8] sm:$0xf0]  ;;  %v7695_v22 = vor.u32 %v11078_v7, %v7692_v8 }
  0xf6   : > { %v11362_v28 = vld [vmem:[#allocation5 + $0xae4] sm:$0xf0]  ;;  %2888 = vmatpush.bf16.msra.mxu2 %v7567_v23  ;;  %v11326_v14 = vld [vmem:[#allocation5 + $0x9cc] sm:$0xf]  ;;  %v8175_v23 = vor.u32 %v11198_v9, %v8172_v10  ;;  %v8431_v24 = vor.u32 %v11262_v11, %v8428_v13 }
  0xf7   : > { %v8811_v35 = vor.u32 %v11362_v28, %v8810_v26  ;;  %v8522_v38 = vld [vmem:[#allocation5 + $0x888] sm:$0xf]  ;;  %2863 = vmatpush.bf16.msra.mxu0 %v8555_v34  ;;  %v8940_v19 = vld [vmem:[#allocation5 + $0xbe8] sm:$0xf0]  ;;  %v8687_v25 = vor.u32 %v11326_v14, %v8684_v15 }
  0xf8   : > { %v11290_v39 = vld [vmem:[#allocation5 + $0x8a4] sm:$0xf0]  ;;  %2901 = vmatpush.bf16.msra.mxu3 %v7823_v27  ;;  %v11190_v26 = vld [vmem:[#allocation5 + $0x58c] sm:$0xf]  ;;  %v8943_v29 = vor.u32 %v11390_v18, %v8940_v19  ;;  %v2660_v14 = vpop.f32.mrf.mxu0 }
  0xf9   : > { %v8778_v40 = vld [vmem:[#allocation5 + $0xa88] sm:$0xf]  ;;  %v8523_v47 = vor.u32 %v11290_v39, %v8522_v38  ;;  %2876 = vmatpush.bf16.msra.mxu1 %v8811_v35  ;;  %v8140_v27 = vld [vmem:[#allocation5 + $0x5a8] sm:$0xf0]  ;;  %v8655_v39 = vor.u32 %v11318_v31, %v8652_v33 }
  0xfa   : > { %v11354_v42 = vld [vmem:[#allocation5 + $0xaa4] sm:$0xf0]  ;;  %2889 = vmatpush.bf16.msra.mxu2 %v7535_v37  ;;  %v11254_v28 = vld [vmem:[#allocation5 + $0x78c] sm:$0xf]  ;;  %v8143_v37 = vor.u32 %v11190_v26, %v8140_v27  ;;  %v2673_v7 = vpop.f32.mrf.mxu1 }
  0xfb   : > { %v8779_v48 = vor.u32 %v11354_v42, %v8778_v40  ;;  %v8490_v50 = vld [vmem:[#allocation5 + $0x848] sm:$0xf]  ;;  %2864 = vmatpush.bf16.msra.mxu0 %v8523_v47  ;;  %v11382_v34 = vld [vmem:[#allocation5 + $0xb8c] sm:$0xf]  ;;  %v8399_v38 = vor.u32 %v11254_v28, %v8396_v30 }
  0xfc   : > { %v11282_v51 = vld [vmem:[#allocation5 + $0x864] sm:$0xf0]  ;;  %2902 = vmatpush.bf16.msra.mxu3 %v7791_v41  ;;  %v8908_v35 = vld [vmem:[#allocation5 + $0xba8] sm:$0xf0] }
  0xfd   : > { %v8746_v52 = vld [vmem:[#allocation5 + $0xa48] sm:$0xf]  ;;  %v8491_v59 = vor.u32 %v11282_v51, %v8490_v50  ;;  %2877 = vmatpush.bf16.msra.mxu1 %v8779_v48  ;;  %v11182_v40 = vld [vmem:[#allocation5 + $0x54c] sm:$0xf]  ;;  %v8911_v43 = vor.u32 %v11382_v34, %v8908_v35 }
  0xfe   : > { %v11346_v54 = vld [vmem:[#allocation5 + $0xa64] sm:$0xf0]  ;;  %2890 = vmatpush.bf16.msra.mxu2 %v7503_v49  ;;  %v8108_v41 = vld [vmem:[#allocation5 + $0x568] sm:$0xf0] }
  0xff   : > { %v8458_v60 = vld [vmem:[#allocation5 + $0x808] sm:$0xf]  ;;  %v8747_v62 = vor.u32 %v11346_v54, %v8746_v52  ;;  %2865 = vmatpush.bf16.msra.mxu0 %v8491_v59  ;;  %v11246_v42 = vld [vmem:[#allocation5 + $0x74c] sm:$0xf]  ;;  %v8111_v49 = vor.u32 %v11182_v40, %v8108_v41 }
 0x100   : > { %v11274_v61 = vld [vmem:[#allocation5 + $0x824] sm:$0xf0]  ;;  %2903 = vmatpush.bf16.msra.mxu3 %v7759_v53  ;;  %v8364_v44 = vld [vmem:[#allocation5 + $0x768] sm:$0xf0] }
 0x101   : > { %v8714_v0 = vld [vmem:[#allocation5 + $0xa08] sm:$0xf]  ;;  %v8459_v12 = vor.u32 %v11274_v61, %v8458_v60  ;;  %2878 = vmatpush.bf16.msra.mxu1 %v8747_v62  ;;  %v11310_v45 = vld [vmem:[#allocation5 + $0x94c] sm:$0xf]  ;;  %v8367_v51 = vor.u32 %v11246_v42, %v8364_v44 }
 0x102   : > { %v11338_v3 = vld [vmem:[#allocation5 + $0xa24] sm:$0xf0]  ;;  %2891 = vmatpush.bf16.msra.mxu2 %v7471_v63  ;;  %v8620_v46 = vld [vmem:[#allocation5 + $0x968] sm:$0xf0]  ;;  %v694_v63 = vperm.slane %v12450_v55, 0 }
 0x103   : > { %v8715_v16 = vor.u32 %v11338_v3, %v8714_v0  ;;  %2866 = vmatpush.bf16.msra.mxu0 %v8459_v12  ;;  %v11374_v47 = vld [vmem:[#allocation5 + $0xb4c] sm:$0xf]  ;;  %v8623_v52 = vor.u32 %v11310_v45, %v8620_v46  ;;  %v2662_v46 = vpop.f32.mrf.mxu0 }
 0x104   : > { %2904 = vmatpush.bf16.msra.mxu3 %v7727_v5  ;;  %v8876_v48 = vld [vmem:[#allocation5 + $0xb68] sm:$0xf0] }
 0x105   : > { %2879 = vmatpush.bf16.msra.mxu1 %v8715_v16  ;;  %v11174_v50 = vld [vmem:[#allocation5 + $0x50c] sm:$0xf]  ;;  %v8879_v56 = vor.u32 %v11374_v47, %v8876_v48  ;;  %v2661_v16 = vadd.f32 %v2660_v14, %v694_v63  ;;  %v7666_v63 = vld [vmem:[#allocation5 + $0x1d0] sm:$0xf] }
 0x106   : > { %2892 = vmatpush.bf16.msra.mxu2 %v7439_v17  ;;  %2867 = vmatmul.bf16.vlgmr.msra.gmra.mxu0 %v12430_v32  ;;  %v8076_v53 = vld [vmem:[#allocation5 + $0x528] sm:$0xf0] }
 0x107   : > { %2911 = vmatpush.bf16.msrb.mxu0 %v8175_v23  ;;  %v11238_v54 = vld [vmem:[#allocation5 + $0x70c] sm:$0xf]  ;;  %v8079_v62 = vor.u32 %v11174_v50, %v8076_v53  ;;  %v2674_v28 = vadd.f32 %v2673_v7, %v2661_v16  ;;  %v11203_v7 = vld [vmem:[#allocation5 + $0x5ec] sm:$0xf0] }
 0x108   : > { %2905 = vmatpush.bf16.msra.mxu3 %v7695_v22  ;;  %2880 = vmatmul.bf16.vlgmr.msra.gmra.mxu1 %v12432_v36  ;;  %v8332_v57 = vld [vmem:[#allocation5 + $0x728] sm:$0xf0] }
 0x109   : > { %2924 = vmatpush.bf16.msrb.mxu1 %v8431_v24  ;;  %2893 = vmatmul.bf16.vlgmr.msra.gmra.mxu2 %v12416_v1  ;;  %v11302_v58 = vld [vmem:[#allocation5 + $0x90c] sm:$0xf]  ;;  %v8335_v0 = vor.u32 %v11238_v54, %v8332_v57 }
 0x10a   : > { %2937 = vmatpush.bf16.msrb.mxu2 %v8687_v25  ;;  %v8588_v59 = vld [vmem:[#allocation5 + $0x928] sm:$0xf0] }
 0x10b   : > { %2912 = vmatpush.bf16.msrb.mxu0 %v8143_v37  ;;  %2906 = vmatmul.bf16.vlgmr.msra.gmra.mxu3 %v12418_v2  ;;  %v11366_v60 = vld [vmem:[#allocation5 + $0xb0c] sm:$0xf]  ;;  %v8591_v3 = vor.u32 %v11302_v58, %v8588_v59 }
 0x10c   : > { %2950 = vmatpush.bf16.msrb.mxu3 %v8943_v29  ;;  %v8844_v61 = vld [vmem:[#allocation5 + $0xb28] sm:$0xf0] }
 0x10d   : > { %2925 = vmatpush.bf16.msrb.mxu1 %v8399_v38  ;;  %v11166_v4 = vld [vmem:[#allocation5 + $0x4cc] sm:$0xf]  ;;  %v8847_v8 = vor.u32 %v11366_v60, %v8844_v61 }
 0x10e   : > { %2938 = vmatpush.bf16.msrb.mxu2 %v8655_v39  ;;  %v8044_v5 = vld [vmem:[#allocation5 + $0x4e8] sm:$0xf0]  ;;  %v2675_v39 = vpop.f32.mrf.mxu1 }
 0x10f   : > { %2913 = vmatpush.bf16.msrb.mxu0 %v8111_v49  ;;  %v11230_v6 = vld [vmem:[#allocation5 + $0x6cc] sm:$0xf]  ;;  %v8047_v15 = vor.u32 %v11166_v4, %v8044_v5  ;;  %v11139_v5 = vld [vmem:[#allocation5 + $0x3ec] sm:$0xf0] }
 0x110   : > { %2951 = vmatpush.bf16.msrb.mxu3 %v8911_v43  ;;  %v8300_v9 = vld [vmem:[#allocation5 + $0x6e8] sm:$0xf0]  ;;  %v11123_v39 = vld [vmem:[#allocation5 + $0x36c] sm:$0xf0] }
 0x111   : > { %2926 = vmatpush.bf16.msrb.mxu1 %v8367_v51  ;;  %v11294_v10 = vld [vmem:[#allocation5 + $0x8cc] sm:$0xf]  ;;  %v8303_v17 = vor.u32 %v11230_v6, %v8300_v9  ;;  %v8178_v6 = vld [vmem:[#allocation5 + $0x5d0] sm:$0xf] }
 0x112   : > { %2939 = vmatpush.bf16.msrb.mxu2 %v8623_v52  ;;  %v8556_v11 = vld [vmem:[#allocation5 + $0x8e8] sm:$0xf0]  ;;  %v8179_v16 = vor.u32 %v11203_v7, %v8178_v6  ;;  %v11107_v6 = vld [vmem:[#allocation5 + $0x2ec] sm:$0xf0] }
 0x113   : > { %v11358_v12 = vld [vmem:[#allocation5 + $0xacc] sm:$0xf]  ;;  %2914 = vmatpush.bf16.msrb.mxu0 %v8079_v62  ;;  %v8559_v18 = vor.u32 %v11294_v10, %v8556_v11  ;;  %v2699_v62 = vpop.f32.mrf.mxu3  ;;  %v8434_v11 = vld [vmem:[#allocation5 + $0x7d0] sm:$0xf] }
 0x114   : > { %2952 = vmatpush.bf16.msrb.mxu3 %v8879_v56  ;;  %v8812_v13 = vld [vmem:[#allocation5 + $0xae8] sm:$0xf0]  ;;  %v2686_v56 = vpop.f32.mrf.mxu2  ;;  %v8050_v7 = vld [vmem:[#allocation5 + $0x4d0] sm:$0xf] }
 0x115   : > { %2927 = vmatpush.bf16.msrb.mxu1 %v8335_v0  ;;  %v11158_v19 = vld [vmem:[#allocation5 + $0x48c] sm:$0xf]  ;;  %v8815_v24 = vor.u32 %v11358_v12, %v8812_v13  ;;  %v2687_v61 = vadd.f32 %v2686_v56, %v2674_v28  ;;  %v11075_v0 = vld [vmem:[#allocation5 + $0x1ec] sm:$0xf0] }
 0x116   : > { %2940 = vmatpush.bf16.msrb.mxu2 %v8591_v3  ;;  %v8012_v22 = vld [vmem:[#allocation5 + $0x4a8] sm:$0xf0]  ;;  %v7922_v3 = vld [vmem:[#allocation5 + $0x3d0] sm:$0xf]  ;;  %v7667_v14 = vor.u32 %v11075_v0, %v7666_v63 }
 0x117   : > { %v11222_v23 = vld [vmem:[#allocation5 + $0x68c] sm:$0xf]  ;;  %2915 = vmatpush.bf16.msrb.mxu0 %v8047_v15  ;;  %v8015_v31 = vor.u32 %v11158_v19, %v8012_v22  ;;  %v11267_v12 = vld [vmem:[#allocation5 + $0x7ec] sm:$0xf0]  ;;  %v7923_v15 = vor.u32 %v11139_v5, %v7922_v3 }
 0x118   : > { %2953 = vmatpush.bf16.msrb.mxu3 %v8847_v8  ;;  %v8268_v25 = vld [vmem:[#allocation5 + $0x6a8] sm:$0xf0]  ;;  %v12453_v8 = vadd.f32 %v2699_v62, %v2687_v61  ;;  %v7890_v19 = vld [vmem:[#allocation5 + $0x390] sm:$0xf]  ;;  %v8435_v22 = vor.u32 %v11267_v12, %v8434_v11 }
 0x119   : > { %v11286_v26 = vld [vmem:[#allocation5 + $0x88c] sm:$0xf]  ;;  %2928 = vmatpush.bf16.msrb.mxu1 %v8303_v17  ;;  %v8271_v33 = vor.u32 %v11222_v23, %v8268_v25  ;;  %v7634_v17 = vld [vmem:[#allocation5 + $0x190] sm:$0xf] }
 0x11a   : > { %v8524_v27 = vld [vmem:[#allocation5 + $0x8a8] sm:$0xf0]  ;;  %2941 = vmatpush.bf16.msrb.mxu2 %v8559_v18  ;;  %v11067_v18 = vld [vmem:[#allocation5 + $0x1ac] sm:$0xf0] }
 0x11b   : > { %v11350_v29 = vld [vmem:[#allocation5 + $0xa8c] sm:$0xf]  ;;  %v8527_v34 = vor.u32 %v11286_v26, %v8524_v27  ;;  %2916 = vmatpush.bf16.msrb.mxu0 %v8015_v31  ;;  %v11131_v23 = vld [vmem:[#allocation5 + $0x3ac] sm:$0xf0] }
 0x11c   : > { %v8780_v30 = vld [vmem:[#allocation5 + $0xaa8] sm:$0xf0]  ;;  %2954 = vmatpush.bf16.msrb.mxu3 %v8815_v24  ;;  %v8146_v24 = vld [vmem:[#allocation5 + $0x590] sm:$0xf]  ;;  %v2688_v28 = vpop.f32.mrf.mxu2  ;;  %v7891_v31 = vor.u32 %v11131_v23, %v7890_v19 }
 0x11d   : > { %v11150_v35 = vld [vmem:[#allocation5 + $0x44c] sm:$0xf]  ;;  %v8783_v40 = vor.u32 %v11350_v29, %v8780_v30  ;;  %2929 = vmatpush.bf16.msrb.mxu1 %v8271_v33  ;;  %v11195_v25 = vld [vmem:[#allocation5 + $0x5ac] sm:$0xf0]  ;;  %v7635_v29 = vor.u32 %v11067_v18, %v7634_v17  ;;  %v2701_v30 = vpop.f32.mrf.mxu3 }
 0x11e   : > { %v7980_v37 = vld [vmem:[#allocation5 + $0x468] sm:$0xf0]  ;;  %2942 = vmatpush.bf16.msrb.mxu2 %v8527_v34  ;;  %v8402_v26 = vld [vmem:[#allocation5 + $0x790] sm:$0xf]  ;;  %v8147_v33 = vor.u32 %v11195_v25, %v8146_v24 }
 0x11f   : > { %v11214_v38 = vld [vmem:[#allocation5 + $0x64c] sm:$0xf]  ;;  %v7983_v47 = vor.u32 %v11150_v35, %v7980_v37  ;;  %v11259_v27 = vld [vmem:[#allocation5 + $0x7ac] sm:$0xf0] }
 0x120   : > { %v8236_v41 = vld [vmem:[#allocation5 + $0x668] sm:$0xf0]  ;;  %2955 = vmatpush.bf16.msrb.mxu3 %v8783_v40  ;;  %v7602_v34 = vld [vmem:[#allocation5 + $0x150] sm:$0xf] }
 0x121   : > { %v11278_v42 = vld [vmem:[#allocation5 + $0x84c] sm:$0xf]  ;;  %v8239_v50 = vor.u32 %v11214_v38, %v8236_v41  ;;  %2917 = vmatpush.bf16.msrb.mxu0 %v7983_v47  ;;  %v11059_v35 = vld [vmem:[#allocation5 + $0x16c] sm:$0xf0]  ;;  %v8403_v38 = vor.u32 %v11259_v27, %v8402_v26 }
 0x122   : > { %v8492_v43 = vld [vmem:[#allocation5 + $0x868] sm:$0xf0]  ;;  %v7858_v37 = vld [vmem:[#allocation5 + $0x350] sm:$0xf] }
 0x123   : > { %v11342_v44 = vld [vmem:[#allocation5 + $0xa4c] sm:$0xf]  ;;  %v8495_v51 = vor.u32 %v11278_v42, %v8492_v43  ;;  %2930 = vmatpush.bf16.msrb.mxu1 %v8239_v50  ;;  %v8114_v40 = vld [vmem:[#allocation5 + $0x550] sm:$0xf] }
 0x124   : > { %v8748_v45 = vld [vmem:[#allocation5 + $0xa68] sm:$0xf0]  ;;  %v11187_v41 = vld [vmem:[#allocation5 + $0x56c] sm:$0xf0]  ;;  %v2738_v24 = vpop.f32.mrf.mxu2 }
 0x125   : > { %v11142_v48 = vld [vmem:[#allocation5 + $0x40c] sm:$0xf]  ;;  %v8751_v57 = vor.u32 %v11342_v44, %v8748_v45  ;;  %2943 = vmatpush.bf16.msrb.mxu2 %v8495_v51  ;;  %v8370_v42 = vld [vmem:[#allocation5 + $0x750] sm:$0xf]  ;;  %v7603_v44 = vor.u32 %v11059_v35, %v7602_v34  ;;  %v7859_v45 = vor.u32 %v11123_v39, %v7858_v37  ;;  %v8115_v46 = vor.u32 %v11187_v41, %v8114_v40 }
 0x126   : > { %v7948_v49 = vld [vmem:[#allocation5 + $0x428] sm:$0xf0]  ;;  %v11251_v43 = vld [vmem:[#allocation5 + $0x76c] sm:$0xf0]  ;;  %v2751_v28 = vpop.f32.mrf.mxu3 }
 0x127   : > { %v11206_v52 = vld [vmem:[#allocation5 + $0x60c] sm:$0xf]  ;;  %v7951_v4 = vor.u32 %v11142_v48, %v7948_v49  ;;  %2956 = vmatpush.bf16.msrb.mxu3 %v8751_v57  ;;  %v7570_v47 = vld [vmem:[#allocation5 + $0x110] sm:$0xf]  ;;  %v8371_v50 = vor.u32 %v11251_v43, %v8370_v42 }
 0x128   : > { %v8204_v53 = vld [vmem:[#allocation5 + $0x628] sm:$0xf0]  ;;  %v11051_v48 = vld [vmem:[#allocation5 + $0x12c] sm:$0xf0] }
 0x129   : > { %v11270_v54 = vld [vmem:[#allocation5 + $0x80c] sm:$0xf]  ;;  %v8207_v9 = vor.u32 %v11206_v52, %v8204_v53  ;;  %2918 = vmatpush.bf16.msrb.mxu0 %v7951_v4  ;;  %v7826_v49 = vld [vmem:[#allocation5 + $0x310] sm:$0xf] }
 0x12a   : > { %v8460_v58 = vld [vmem:[#allocation5 + $0x828] sm:$0xf0]  ;;  %v11115_v51 = vld [vmem:[#allocation5 + $0x32c] sm:$0xf0] }
 0x12b   : > { %v11334_v59 = vld [vmem:[#allocation5 + $0xa0c] sm:$0xf]  ;;  %v8463_v10 = vor.u32 %v11270_v54, %v8460_v58  ;;  %2931 = vmatpush.bf16.msrb.mxu1 %v8207_v9  ;;  %v8082_v52 = vld [vmem:[#allocation5 + $0x510] sm:$0xf]  ;;  %v2712_v54 = vpop.f32.mrf.mxu0  ;;  %v7827_v61 = vor.u32 %v11115_v51, %v7826_v49 }
 0x12c   : > { %v8716_v60 = vld [vmem:[#allocation5 + $0xa28] sm:$0xf0]  ;;  %2919 = vmatmul.bf16.vlgmr.msrb.gmra.mxu0 %v12423_v20  ;;  %v11179_v53 = vld [vmem:[#allocation5 + $0x52c] sm:$0xf0]  ;;  %v2713_v58 = vadd.f32 %v2712_v54, %v12453_v8  ;;  %v695_v8 = vperm.slane %v12450_v55, 1 }
 0x12d   : > { %v8719_v13 = vor.u32 %v11334_v59, %v8716_v60  ;;  %2944 = vmatpush.bf16.msrb.mxu2 %v8463_v10  ;;  %2963 = vmatpush.bf16.msra.mxu0 %v7667_v14  ;;  %v8338_v56 = vld [vmem:[#allocation5 + $0x710] sm:$0xf]  ;;  %v7571_v59 = vor.u32 %v11051_v48, %v7570_v47  ;;  %v2725_v60 = vpop.f32.mrf.mxu1  ;;  %v8083_v62 = vor.u32 %v11179_v53, %v8082_v52 }
 0x12e   : > { %2932 = vmatmul.bf16.vlgmr.msrb.gmra.mxu1 %v12425_v21  ;;  %v11243_v57 = vld [vmem:[#allocation5 + $0x72c] sm:$0xf0]  ;;  %v12460_v5 = vadd.f32 %v2725_v60, %v2713_v58  ;;  %v2739_v27 = vadd.f32 %v2738_v24, %v695_v8  ;;  %v11127_v24 = vld [vmem:[#allocation5 + $0x394] sm:$0xf] }
 0x12f   : > { %2957 = vmatpush.bf16.msrb.mxu3 %v8719_v13  ;;  %2976 = vmatpush.bf16.msra.mxu1 %v7923_v15  ;;  %v7538_v63 = vld [vmem:[#allocation5 + $0xd0] sm:$0xf]  ;;  %v8339_v4 = vor.u32 %v11243_v57, %v8338_v56 }
 0x130   : > { %2945 = vmatmul.bf16.vlgmr.msrb.gmra.mxu2 %v12430_v32  ;;  %v11043_v0 = vld [vmem:[#allocation5 + $0xec] sm:$0xf0]  ;;  %v12463_v39 = vadd.f32 %v2751_v28, %v2739_v27 }
 0x131   : > { %2989 = vmatpush.bf16.msra.mxu2 %v8179_v16  ;;  %2964 = vmatpush.bf16.msra.mxu0 %v7635_v29  ;;  %v7794_v3 = vld [vmem:[#allocation5 + $0x2d0] sm:$0xf]  ;;  %v7539_v12 = vor.u32 %v11043_v0, %v7538_v63  ;;  %v2753_v63 = vpop.f32.mrf.mxu3 }
 0x132   : > { %2958 = vmatmul.bf16.vlgmr.msrb.gmra.mxu3 %v12432_v36  ;;  %v11171_v9 = vld [vmem:[#allocation5 + $0x4ec] sm:$0xf0]  ;;  %v7795_v13 = vor.u32 %v11107_v6, %v7794_v3  ;;  %v7668_v6 = vld [vmem:[#allocation5 + $0x1f0] sm:$0xf0] }
 0x133   : > { %3002 = vmatpush.bf16.msra.mxu3 %v8435_v22  ;;  %2977 = vmatpush.bf16.msra.mxu1 %v7891_v31  ;;  %v8306_v10 = vld [vmem:[#allocation5 + $0x6d0] sm:$0xf]  ;;  %v8051_v14 = vor.u32 %v11171_v9, %v8050_v7  ;;  %v2714_v29 = vpop.f32.mrf.mxu0 }
 0x134   : > { %v11235_v11 = vld [vmem:[#allocation5 + $0x6ec] sm:$0xf0] }
 0x135   : > { %2990 = vmatpush.bf16.msra.mxu2 %v8147_v33  ;;  %2965 = vmatpush.bf16.msra.mxu0 %v7603_v44  ;;  %v7506_v15 = vld [vmem:[#allocation5 + $0x90] sm:$0xf]  ;;  %v8307_v18 = vor.u32 %v11235_v11, %v8306_v10  ;;  %v2727_v31 = vpop.f32.mrf.mxu1  ;;  %v11135_v10 = vld [vmem:[#allocation5 + $0x3d4] sm:$0xf] }
 0x136   : > { %v11035_v16 = vld [vmem:[#allocation5 + $0xac] sm:$0xf0]  ;;  %v7924_v11 = vld [vmem:[#allocation5 + $0x3f0] sm:$0xf0] }
 0x137   : > { %3003 = vmatpush.bf16.msra.mxu3 %v8403_v38  ;;  %2978 = vmatpush.bf16.msra.mxu1 %v7859_v45  ;;  %v7762_v17 = vld [vmem:[#allocation5 + $0x290] sm:$0xf]  ;;  %v7507_v30 = vor.u32 %v11035_v16, %v7506_v15 }
 0x138   : > { %v11099_v19 = vld [vmem:[#allocation5 + $0x2ac] sm:$0xf0] }
 0x139   : > { %2991 = vmatpush.bf16.msra.mxu2 %v8115_v46  ;;  %2966 = vmatpush.bf16.msra.mxu0 %v7571_v59  ;;  %v8018_v22 = vld [vmem:[#allocation5 + $0x490] sm:$0xf]  ;;  %v7763_v33 = vor.u32 %v11099_v19, %v7762_v17  ;;  %v2740_v59 = vpop.f32.mrf.mxu2 }
 0x13a   : > { %v11163_v23 = vld [vmem:[#allocation5 + $0x4ac] sm:$0xf0] }
 0x13b   : > { %3004 = vmatpush.bf16.msra.mxu3 %v8371_v50  ;;  %2979 = vmatpush.bf16.msra.mxu1 %v7827_v61  ;;  %v8274_v25 = vld [vmem:[#allocation5 + $0x690] sm:$0xf]  ;;  %v8019_v34 = vor.u32 %v11163_v23, %v8018_v22  ;;  %v11063_v22 = vld [vmem:[#allocation5 + $0x194] sm:$0xf] }
 0x13c   : > { %v11227_v26 = vld [vmem:[#allocation5 + $0x6ac] sm:$0xf0]  ;;  %v7636_v23 = vld [vmem:[#allocation5 + $0x1b0] sm:$0xf0] }
 0x13d   : > { %2992 = vmatpush.bf16.msra.mxu2 %v8083_v62  ;;  %2967 = vmatpush.bf16.msra.mxu0 %v7539_v12  ;;  %v7474_v35 = vld [vmem:[#allocation5 + $0x50] sm:$0xf]  ;;  %v8275_v40 = vor.u32 %v11227_v26, %v8274_v25  ;;  %v7892_v25 = vld [vmem:[#allocation5 + $0x3b0] sm:$0xf0]  ;;  %v7639_v28 = vor.u32 %v11063_v22, %v7636_v23 }
 0x13e   : > { %v11027_v37 = vld [vmem:[#allocation5 + $0x6c] sm:$0xf0]  ;;  %v7508_v22 = vld [vmem:[#allocation5 + $0xb0] sm:$0xf0] }
 0x13f   : > { %3005 = vmatpush.bf16.msra.mxu3 %v8339_v4  ;;  %2980 = vmatpush.bf16.msra.mxu1 %v7795_v13  ;;  %v7730_v38 = vld [vmem:[#allocation5 + $0x250] sm:$0xf]  ;;  %v7475_v46 = vor.u32 %v11027_v37, %v7474_v35  ;;  %v11071_v4 = vld [vmem:[#allocation5 + $0x1d4] sm:$0xf] }
 0x140   : > { %v11091_v41 = vld [vmem:[#allocation5 + $0x26c] sm:$0xf0]  ;;  %v11055_v35 = vld [vmem:[#allocation5 + $0x154] sm:$0xf] }
 0x141   : > { %2993 = vmatpush.bf16.msra.mxu2 %v8051_v14  ;;  %v7986_v42 = vld [vmem:[#allocation5 + $0x450] sm:$0xf]  ;;  %2968 = vmatpush.bf16.msra.mxu0 %v7507_v30  ;;  %v7731_v49 = vor.u32 %v11091_v41, %v7730_v38  ;;  %v7671_v14 = vor.u32 %v11071_v4, %v7668_v6  ;;  %v7604_v37 = vld [vmem:[#allocation5 + $0x170] sm:$0xf0] }
 0x142   : > { %v11155_v43 = vld [vmem:[#allocation5 + $0x46c] sm:$0xf0]  ;;  %v11119_v38 = vld [vmem:[#allocation5 + $0x354] sm:$0xf] }
 0x143   : > { %3006 = vmatpush.bf16.msra.mxu3 %v8307_v18  ;;  %v8242_v44 = vld [vmem:[#allocation5 + $0x650] sm:$0xf]  ;;  %2981 = vmatpush.bf16.msra.mxu1 %v7763_v33  ;;  %v7987_v50 = vor.u32 %v11155_v43, %v7986_v42  ;;  %v7927_v18 = vor.u32 %v11135_v10, %v7924_v11  ;;  %v7895_v33 = vor.u32 %v11127_v24, %v7892_v25  ;;  %v7540_v4 = vld [vmem:[#allocation5 + $0xf0] sm:$0xf0] }
 0x144   : > { %v11219_v45 = vld [vmem:[#allocation5 + $0x66c] sm:$0xf0]  ;;  %v7607_v43 = vor.u32 %v11055_v35, %v7604_v37  ;;  %v2777_v59 = vpop.f32.mrf.mxu1  ;;  %v11095_v23 = vld [vmem:[#allocation5 + $0x294] sm:$0xf] }
 0x145   : > { %v7442_v47 = vld [vmem:[#allocation5 + $0x10] sm:$0xf]  ;;  %2994 = vmatpush.bf16.msra.mxu2 %v8019_v34  ;;  %v8243_v54 = vor.u32 %v11219_v45, %v8242_v44  ;;  %2969 = vmatpush.bf16.msra.mxu0 %v7475_v46  ;;  %v7764_v24 = vld [vmem:[#allocation5 + $0x2b0] sm:$0xf0] }
 0x146   : > { %v11019_v48 = vld [vmem:[#allocation5 + $0x2c] sm:$0xf0]  ;;  %v7767_v35 = vor.u32 %v11095_v23, %v7764_v24 }
 0x147   : > { %v7698_v51 = vld [vmem:[#allocation5 + $0x210] sm:$0xf]  ;;  %3007 = vmatpush.bf16.msra.mxu3 %v8275_v40  ;;  %v7443_v0 = vor.u32 %v11019_v48, %v7442_v47  ;;  %2982 = vmatpush.bf16.msra.mxu1 %v7731_v49  ;;  %v7860_v40 = vld [vmem:[#allocation5 + $0x370] sm:$0xf0] }
 0x148   : > { %v11083_v52 = vld [vmem:[#allocation5 + $0x22c] sm:$0xf0]  ;;  %v7863_v47 = vor.u32 %v11119_v38, %v7860_v40  ;;  %v11047_v49 = vld [vmem:[#allocation5 + $0x114] sm:$0xf] }
 0x149   : > { %v7954_v53 = vld [vmem:[#allocation5 + $0x410] sm:$0xf]  ;;  %2995 = vmatpush.bf16.msra.mxu2 %v7987_v50  ;;  %v7699_v7 = vor.u32 %v11083_v52, %v7698_v51  ;;  %2970 = vmatpush.bf16.msra.mxu0 %v7443_v0  ;;  %v7572_v50 = vld [vmem:[#allocation5 + $0x130] sm:$0xf0] }
 0x14a   : > { %v11147_v56 = vld [vmem:[#allocation5 + $0x42c] sm:$0xf0]  ;;  %v11111_v51 = vld [vmem:[#allocation5 + $0x314] sm:$0xf] }
 0x14b   : > { %v8210_v57 = vld [vmem:[#allocation5 + $0x610] sm:$0xf]  ;;  %v7955_v9 = vor.u32 %v11147_v56, %v7954_v53  ;;  %3008 = vmatpush.bf16.msra.mxu3 %v8243_v54  ;;  %2983 = vmatpush.bf16.msra.mxu1 %v7699_v7  ;;  %v7828_v52 = vld [vmem:[#allocation5 + $0x330] sm:$0xf0]  ;;  %v2764_v54 = vpop.f32.mrf.mxu0 }
 0x14c   : > { %v11211_v58 = vld [vmem:[#allocation5 + $0x62c] sm:$0xf0]  ;;  %2971 = vmatmul.bf16.vlgmr.msra.gmra.mxu0 %v12416_v1  ;;  %v7831_v63 = vor.u32 %v11111_v51, %v7828_v52  ;;  %v11103_v7 = vld [vmem:[#allocation5 + $0x2d4] sm:$0xf] }
 0x14d   : > { %v8690_v60 = vld [vmem:[#allocation5 + $0x9d0] sm:$0xf]  ;;  %v8211_v8 = vor.u32 %v11211_v58, %v8210_v57  ;;  %2996 = vmatpush.bf16.msra.mxu2 %v7955_v9  ;;  %v7575_v57 = vor.u32 %v11047_v49, %v7572_v50  ;;  %v2765_v58 = vadd.f32 %v2764_v54, %v12463_v39  ;;  %v7796_v9 = vld [vmem:[#allocation5 + $0x2f0] sm:$0xf0] }
 0x14e   : > { %v11331_v61 = vld [vmem:[#allocation5 + $0x9ec] sm:$0xf0]  ;;  %2984 = vmatmul.bf16.vlgmr.msra.gmra.mxu1 %v12418_v2  ;;  %v11023_v38 = vld [vmem:[#allocation5 + $0x54] sm:$0xf] }
 0x14f   : > { %v8946_v62 = vld [vmem:[#allocation5 + $0xbd0] sm:$0xf]  ;;  %v8691_v12 = vor.u32 %v11331_v61, %v8690_v60  ;;  %3009 = vmatpush.bf16.msra.mxu3 %v8211_v8  ;;  %v2778_v6 = vadd.f32 %v2777_v59, %v2765_v58  ;;  %v7476_v40 = vld [vmem:[#allocation5 + $0x70] sm:$0xf0] }
 0x150   : > { %v11395_v3 = vld [vmem:[#allocation5 + $0xbec] sm:$0xf0]  ;;  %2997 = vmatmul.bf16.vlgmr.msra.gmra.mxu2 %v12423_v20  ;;  %v11015_v50 = vld [vmem:[#allocation5 + $0x14] sm:$0xf] }
 0x151   : > { %v8947_v13 = vor.u32 %v11395_v3, %v8946_v62  ;;  %v8658_v15 = vld [vmem:[#allocation5 + $0x990] sm:$0xf]  ;;  %3015 = vmatpush.bf16.msrb.mxu0 %v8691_v12  ;;  %3041 = vmatpush.bf16.msrb.mxu2 %v7671_v14  ;;  %v11039_v3 = vld [vmem:[#allocation5 + $0xd4] sm:$0xf]  ;;  %v2790_v12 = vpop.f32.mrf.mxu2 }
 0x152   : > { %v11323_v16 = vld [vmem:[#allocation5 + $0x9ac] sm:$0xf0]  ;;  %3010 = vmatmul.bf16.vlgmr.msra.gmra.mxu3 %v12425_v21  ;;  %v7543_v8 = vor.u32 %v11039_v3, %v7540_v4  ;;  %v11079_v54 = vld [vmem:[#allocation5 + $0x214] sm:$0xf] }
 0x153   : > { %v8914_v17 = vld [vmem:[#allocation5 + $0xb90] sm:$0xf]  ;;  %v8659_v26 = vor.u32 %v11323_v16, %v8658_v15  ;;  %3028 = vmatpush.bf16.msrb.mxu1 %v8947_v13  ;;  %3054 = vmatpush.bf16.msrb.mxu3 %v7927_v18  ;;  %v7799_v15 = vor.u32 %v11103_v7, %v7796_v9  ;;  %v2791_v16 = vadd.f32 %v2790_v12, %v2778_v6  ;;  %v11199_v58 = vld [vmem:[#allocation5 + $0x5d4] sm:$0xf] }
 0x154   : > { %v11387_v19 = vld [vmem:[#allocation5 + $0xbac] sm:$0xf0]  ;;  %v8180_v59 = vld [vmem:[#allocation5 + $0x5f0] sm:$0xf0] }
 0x155   : > { %v8915_v27 = vor.u32 %v11387_v19, %v8914_v17  ;;  %v8626_v29 = vld [vmem:[#allocation5 + $0x950] sm:$0xf]  ;;  %3016 = vmatpush.bf16.msrb.mxu0 %v8659_v26  ;;  %3042 = vmatpush.bf16.msrb.mxu2 %v7639_v28  ;;  %v2803_v17 = vpop.f32.mrf.mxu3  ;;  %v11031_v19 = vld [vmem:[#allocation5 + $0x94] sm:$0xf] }
 0x156   : > { %v11315_v30 = vld [vmem:[#allocation5 + $0x96c] sm:$0xf0]  ;;  %v12470_v25 = vadd.f32 %v2803_v17, %v2791_v16  ;;  %v11391_v6 = vld [vmem:[#allocation5 + $0xbd4] sm:$0xf] }
 0x157   : > { %v8882_v31 = vld [vmem:[#allocation5 + $0xb50] sm:$0xf]  ;;  %v8627_v41 = vor.u32 %v11315_v30, %v8626_v29  ;;  %3029 = vmatpush.bf16.msrb.mxu1 %v8915_v27  ;;  %3055 = vmatpush.bf16.msrb.mxu3 %v7895_v33  ;;  %v2766_v27 = vpop.f32.mrf.mxu0  ;;  %v7511_v29 = vor.u32 %v11031_v19, %v7508_v22  ;;  %v8948_v7 = vld [vmem:[#allocation5 + $0xbf0] sm:$0xf0] }
 0x158   : > { %v11379_v34 = vld [vmem:[#allocation5 + $0xb6c] sm:$0xf0]  ;;  %v11191_v12 = vld [vmem:[#allocation5 + $0x594] sm:$0xf] }
 0x159   : > { %v8883_v42 = vor.u32 %v11379_v34, %v8882_v31  ;;  %v8594_v44 = vld [vmem:[#allocation5 + $0x910] sm:$0xf]  ;;  %3017 = vmatpush.bf16.msrb.mxu0 %v8627_v41  ;;  %3043 = vmatpush.bf16.msrb.mxu2 %v7607_v43  ;;  %v2779_v34 = vpop.f32.mrf.mxu1  ;;  %v11087_v41 = vld [vmem:[#allocation5 + $0x254] sm:$0xf]  ;;  %v2792_v51 = vpop.f32.mrf.mxu2 }
 0x15a   : > { %v11307_v45 = vld [vmem:[#allocation5 + $0x92c] sm:$0xf0]  ;;  %v11319_v16 = vld [vmem:[#allocation5 + $0x994] sm:$0xf] }
 0x15b   : > { %v8850_v46 = vld [vmem:[#allocation5 + $0xb10] sm:$0xf]  ;;  %v8595_v53 = vor.u32 %v11307_v45, %v8594_v44  ;;  %3030 = vmatpush.bf16.msrb.mxu1 %v8883_v42  ;;  %3056 = vmatpush.bf16.msrb.mxu3 %v7863_v47  ;;  %v7732_v42 = vld [vmem:[#allocation5 + $0x270] sm:$0xf0]  ;;  %v7479_v47 = vor.u32 %v11023_v38, %v7476_v40  ;;  %v696_v38 = vperm.slane %v12450_v55, 2 }
 0x15c   : > { %v11371_v48 = vld [vmem:[#allocation5 + $0xb2c] sm:$0xf0]  ;;  %v7735_v52 = vor.u32 %v11087_v41, %v7732_v42  ;;  %v8660_v17 = vld [vmem:[#allocation5 + $0x9b0] sm:$0xf0] }
 0x15d   : > { %v8851_v56 = vor.u32 %v11371_v48, %v8850_v46  ;;  %v8562_v60 = vld [vmem:[#allocation5 + $0x8d0] sm:$0xf]  ;;  %3018 = vmatpush.bf16.msrb.mxu0 %v8595_v53  ;;  %3044 = vmatpush.bf16.msrb.mxu2 %v7575_v57  ;;  %v7444_v53 = vld [vmem:[#allocation5 + $0x30] sm:$0xf0]  ;;  %v2805_v57 = vpop.f32.mrf.mxu3  ;;  %v8663_v24 = vor.u32 %v11319_v16, %v8660_v17 }
 0x15e   : > { %v11299_v61 = vld [vmem:[#allocation5 + $0x8ec] sm:$0xf0]  ;;  %v7447_v4 = vor.u32 %v11015_v50, %v7444_v53  ;;  %v8916_v19 = vld [vmem:[#allocation5 + $0xbb0] sm:$0xf0] }
 0x15f   : > { %v8818_v62 = vld [vmem:[#allocation5 + $0xad0] sm:$0xf]  ;;  %v8563_v10 = vor.u32 %v11299_v61, %v8562_v60  ;;  %3031 = vmatpush.bf16.msrb.mxu1 %v8851_v56  ;;  %3057 = vmatpush.bf16.msrb.mxu3 %v7831_v63  ;;  %v7700_v56 = vld [vmem:[#allocation5 + $0x230] sm:$0xf0] }
 0x160   : > { %v11363_v0 = vld [vmem:[#allocation5 + $0xaec] sm:$0xf0]  ;;  %v11263_v60 = vld [vmem:[#allocation5 + $0x7d4] sm:$0xf]  ;;  %v7703_v9 = vor.u32 %v11079_v54, %v7700_v56 }
 0x161   : > { %v8819_v11 = vor.u32 %v11363_v0, %v8818_v62  ;;  %v8530_v39 = vld [vmem:[#allocation5 + $0x890] sm:$0xf]  ;;  %3019 = vmatpush.bf16.msrb.mxu0 %v8563_v10  ;;  %3045 = vmatpush.bf16.msrb.mxu2 %v7543_v8  ;;  %v8436_v62 = vld [vmem:[#allocation5 + $0x7f0] sm:$0xf0]  ;;  %v8183_v10 = vor.u32 %v11199_v58, %v8180_v59 }
 0x162   : > { %v11291_v13 = vld [vmem:[#allocation5 + $0x8ac] sm:$0xf0]  ;;  %v11327_v63 = vld [vmem:[#allocation5 + $0x9d4] sm:$0xf]  ;;  %v2816_v51 = vpop.f32.mrf.mxu0 }
 0x163   : > { %v8786_v14 = vld [vmem:[#allocation5 + $0xa90] sm:$0xf]  ;;  %v8531_v26 = vor.u32 %v11291_v13, %v8530_v39  ;;  %3032 = vmatpush.bf16.msrb.mxu1 %v8819_v11  ;;  %3058 = vmatpush.bf16.msrb.mxu3 %v7799_v15  ;;  %v8692_v0 = vld [vmem:[#allocation5 + $0x9f0] sm:$0xf0]  ;;  %v8439_v11 = vor.u32 %v11263_v60, %v8436_v62  ;;  %v2817_v53 = vadd.f32 %v2816_v51, %v696_v38 }
 0x164   : > { %v11355_v18 = vld [vmem:[#allocation5 + $0xaac] sm:$0xf0]  ;;  %v8695_v8 = vor.u32 %v11327_v63, %v8692_v0  ;;  %v8148_v39 = vld [vmem:[#allocation5 + $0x5b0] sm:$0xf0]  ;;  %v2829_v54 = vpop.f32.mrf.mxu1 }
 0x165   : > { %v8787_v28 = vor.u32 %v11355_v18, %v8786_v14  ;;  %v8498_v30 = vld [vmem:[#allocation5 + $0x850] sm:$0xf]  ;;  %3020 = vmatpush.bf16.msrb.mxu0 %v8531_v26  ;;  %3046 = vmatpush.bf16.msrb.mxu2 %v7511_v29  ;;  %v11255_v13 = vld [vmem:[#allocation5 + $0x794] sm:$0xf]  ;;  %v8951_v14 = vor.u32 %v11391_v6, %v8948_v7  ;;  %v8151_v22 = vor.u32 %v11191_v12, %v8148_v39 }
 0x166   : > { %v11283_v31 = vld [vmem:[#allocation5 + $0x86c] sm:$0xf0]  ;;  %v8404_v15 = vld [vmem:[#allocation5 + $0x7b0] sm:$0xf0]  ;;  %v2830_v0 = vadd.f32 %v2829_v54, %v2817_v53  ;;  %v7674_v54 = vld [vmem:[#allocation5 + $0x1d8] sm:$0xf] }
 0x167   : > { %v8754_v33 = vld [vmem:[#allocation5 + $0xa50] sm:$0xf]  ;;  %v8499_v43 = vor.u32 %v11283_v31, %v8498_v30  ;;  %3033 = vmatpush.bf16.msrb.mxu1 %v8787_v28  ;;  %3059 = vmatpush.bf16.msrb.mxu3 %v7767_v35  ;;  %v11383_v18 = vld [vmem:[#allocation5 + $0xb94] sm:$0xf]  ;;  %v8407_v23 = vor.u32 %v11255_v13, %v8404_v15 }
 0x168   : > { %v11347_v37 = vld [vmem:[#allocation5 + $0xa6c] sm:$0xf0]  ;;  %v11183_v26 = vld [vmem:[#allocation5 + $0x554] sm:$0xf]  ;;  %v8919_v29 = vor.u32 %v11383_v18, %v8916_v19 }
 0x169   : > { %v8466_v44 = vld [vmem:[#allocation5 + $0x810] sm:$0xf]  ;;  %v8755_v46 = vor.u32 %v11347_v37, %v8754_v33  ;;  %3021 = vmatpush.bf16.msrb.mxu0 %v8499_v43  ;;  %3047 = vmatpush.bf16.msrb.mxu2 %v7479_v47  ;;  %v8116_v27 = vld [vmem:[#allocation5 + $0x570] sm:$0xf0] }
 0x16a   : > { %v11275_v45 = vld [vmem:[#allocation5 + $0x82c] sm:$0xf0]  ;;  %v11247_v28 = vld [vmem:[#allocation5 + $0x754] sm:$0xf]  ;;  %v8119_v37 = vor.u32 %v11183_v26, %v8116_v27  ;;  %v2818_v18 = vpop.f32.mrf.mxu0 }
 0x16b   : > { %v8722_v48 = vld [vmem:[#allocation5 + $0xa10] sm:$0xf]  ;;  %v8467_v61 = vor.u32 %v11275_v45, %v8466_v44  ;;  %3034 = vmatpush.bf16.msrb.mxu1 %v8755_v46  ;;  %3060 = vmatpush.bf16.msrb.mxu3 %v7735_v52  ;;  %v8372_v30 = vld [vmem:[#allocation5 + $0x770] sm:$0xf0] }
 0x16c   : > { %v11339_v49 = vld [vmem:[#allocation5 + $0xa2c] sm:$0xf0]  ;;  %v11311_v31 = vld [vmem:[#allocation5 + $0x954] sm:$0xf]  ;;  %v8375_v40 = vor.u32 %v11247_v28, %v8372_v30  ;;  %v2842_v15 = vpop.f32.mrf.mxu2 }
 0x16d   : > { %v8723_v3 = vor.u32 %v11339_v49, %v8722_v48  ;;  %3022 = vmatpush.bf16.msrb.mxu0 %v8467_v61  ;;  %3048 = vmatpush.bf16.msrb.mxu2 %v7447_v4  ;;  %v8628_v33 = vld [vmem:[#allocation5 + $0x970] sm:$0xf0]  ;;  %v2843_v19 = vadd.f32 %v2842_v15, %v2830_v0  ;;  %v8442_v0 = vld [vmem:[#allocation5 + $0x7d8] sm:$0xf] }
 0x16e   : > { %v11375_v34 = vld [vmem:[#allocation5 + $0xb54] sm:$0xf]  ;;  %v8631_v41 = vor.u32 %v11311_v31, %v8628_v33  ;;  %v8410_v15 = vld [vmem:[#allocation5 + $0x798] sm:$0xf] }
 0x16f   : > { %3035 = vmatpush.bf16.msrb.mxu1 %v8723_v3  ;;  %3061 = vmatpush.bf16.msrb.mxu3 %v7703_v9  ;;  %v8884_v35 = vld [vmem:[#allocation5 + $0xb70] sm:$0xf0] }
 0x170   : > { %3023 = vmatmul.bf16.vlgmr.msrb.gmra.mxu0 %v12430_v32  ;;  %3049 = vmatmul.bf16.vlgmr.msrb.gmra.mxu2 %v12416_v1  ;;  %v11175_v42 = vld [vmem:[#allocation5 + $0x514] sm:$0xf]  ;;  %v8887_v45 = vor.u32 %v11375_v34, %v8884_v35 }
 0x171   : > { %3067 = vmatpush.bf16.msra.mxu0 %v8183_v10  ;;  %3093 = vmatpush.bf16.msra.mxu2 %v8695_v8  ;;  %v8084_v43 = vld [vmem:[#allocation5 + $0x530] sm:$0xf0] }
 0x172   : > { %3036 = vmatmul.bf16.vlgmr.msrb.gmra.mxu1 %v12432_v36  ;;  %3062 = vmatmul.bf16.vlgmr.msrb.gmra.mxu3 %v12418_v2  ;;  %v11239_v44 = vld [vmem:[#allocation5 + $0x714] sm:$0xf]  ;;  %v8087_v52 = vor.u32 %v11175_v42, %v8084_v43 }
 0x173   : > { %3080 = vmatpush.bf16.msra.mxu1 %v8439_v11  ;;  %3106 = vmatpush.bf16.msra.mxu3 %v8951_v14  ;;  %v8340_v46 = vld [vmem:[#allocation5 + $0x730] sm:$0xf0] }
 0x174   : > { %v11303_v47 = vld [vmem:[#allocation5 + $0x914] sm:$0xf]  ;;  %v8343_v55 = vor.u32 %v11239_v44, %v8340_v46  ;;  %v2844_v53 = vpop.f32.mrf.mxu2 }
 0x175   : > { %3068 = vmatpush.bf16.msra.mxu0 %v8151_v22  ;;  %3094 = vmatpush.bf16.msra.mxu2 %v8663_v24  ;;  %v8596_v48 = vld [vmem:[#allocation5 + $0x930] sm:$0xf0]  ;;  %v2855_v22 = vpop.f32.mrf.mxu3  ;;  %v2831_v24 = vpop.f32.mrf.mxu1 }
 0x176   : > { %v11367_v49 = vld [vmem:[#allocation5 + $0xb14] sm:$0xf]  ;;  %v8599_v56 = vor.u32 %v11303_v47, %v8596_v48  ;;  %v12477_v31 = vadd.f32 %v2855_v22, %v2843_v19  ;;  %v7610_v22 = vld [vmem:[#allocation5 + $0x158] sm:$0xf] }
 0x177   : > { %3081 = vmatpush.bf16.msra.mxu1 %v8407_v23  ;;  %3107 = vmatpush.bf16.msra.mxu3 %v8919_v29  ;;  %v8852_v50 = vld [vmem:[#allocation5 + $0xb30] sm:$0xf0]  ;;  %v7866_v24 = vld [vmem:[#allocation5 + $0x358] sm:$0xf] }
 0x178   : > { %v11167_v57 = vld [vmem:[#allocation5 + $0x4d4] sm:$0xf]  ;;  %v8855_v60 = vor.u32 %v11367_v49, %v8852_v50 }
 0x179   : > { %3069 = vmatpush.bf16.msra.mxu0 %v8119_v37  ;;  %3095 = vmatpush.bf16.msra.mxu2 %v8631_v41  ;;  %v8052_v58 = vld [vmem:[#allocation5 + $0x4f0] sm:$0xf0] }
 0x17a   : > { %v11231_v59 = vld [vmem:[#allocation5 + $0x6d4] sm:$0xf]  ;;  %v8055_v6 = vor.u32 %v11167_v57, %v8052_v58 }
 0x17b   : > { %3082 = vmatpush.bf16.msra.mxu1 %v8375_v40  ;;  %3108 = vmatpush.bf16.msra.mxu3 %v8887_v45  ;;  %v8308_v61 = vld [vmem:[#allocation5 + $0x6f0] sm:$0xf0] }
 0x17c   : > { %v11295_v62 = vld [vmem:[#allocation5 + $0x8d4] sm:$0xf]  ;;  %v8311_v7 = vor.u32 %v11231_v59, %v8308_v61  ;;  %v11140_v59 = vld [vmem:[#allocation5 + $0x3f4] sm:$0xf0] }
 0x17d   : > { %v8564_v63 = vld [vmem:[#allocation5 + $0x8f0] sm:$0xf0]  ;;  %3070 = vmatpush.bf16.msra.mxu0 %v8087_v52  ;;  %3096 = vmatpush.bf16.msra.mxu2 %v8599_v56  ;;  %v7930_v56 = vld [vmem:[#allocation5 + $0x3d8] sm:$0xf]  ;;  %v2857_v57 = vpop.f32.mrf.mxu3 }
 0x17e   : > { %v11359_v3 = vld [vmem:[#allocation5 + $0xad4] sm:$0xf]  ;;  %v8567_v9 = vor.u32 %v11295_v62, %v8564_v63  ;;  %v11204_v61 = vld [vmem:[#allocation5 + $0x5f4] sm:$0xf0] }
 0x17f   : > { %v8820_v4 = vld [vmem:[#allocation5 + $0xaf0] sm:$0xf0]  ;;  %3083 = vmatpush.bf16.msra.mxu1 %v8343_v55  ;;  %3109 = vmatpush.bf16.msra.mxu3 %v8855_v60  ;;  %v11076_v55 = vld [vmem:[#allocation5 + $0x1f4] sm:$0xf0] }
 0x180   : > { %v11159_v10 = vld [vmem:[#allocation5 + $0x494] sm:$0xf]  ;;  %v8823_v12 = vor.u32 %v11359_v3, %v8820_v4  ;;  %v8186_v60 = vld [vmem:[#allocation5 + $0x5d8] sm:$0xf] }
 0x181   : > { %v8020_v11 = vld [vmem:[#allocation5 + $0x4b0] sm:$0xf0]  ;;  %3071 = vmatpush.bf16.msra.mxu0 %v8055_v6  ;;  %3097 = vmatpush.bf16.msra.mxu2 %v8567_v9  ;;  %v11268_v3 = vld [vmem:[#allocation5 + $0x7f4] sm:$0xf0]  ;;  %v7675_v6 = vor.u32 %v11076_v55, %v7674_v54  ;;  %v8187_v9 = vor.u32 %v11204_v61, %v8186_v60 }
 0x182   : > { %v11223_v8 = vld [vmem:[#allocation5 + $0x694] sm:$0xf]  ;;  %v8023_v23 = vor.u32 %v11159_v10, %v8020_v11  ;;  %v7642_v10 = vld [vmem:[#allocation5 + $0x198] sm:$0xf] }
 0x183   : > { %v8276_v39 = vld [vmem:[#allocation5 + $0x6b0] sm:$0xf0]  ;;  %3084 = vmatpush.bf16.msra.mxu1 %v8311_v7  ;;  %3110 = vmatpush.bf16.msra.mxu3 %v8823_v12  ;;  %v7931_v7 = vor.u32 %v11140_v59, %v7930_v56  ;;  %v11068_v11 = vld [vmem:[#allocation5 + $0x1b4] sm:$0xf0]  ;;  %v8443_v12 = vor.u32 %v11268_v3, %v8442_v0  ;;  %v12486_v0 = vld [vmem:[#allocation7] sm:$0xff] }
 0x184   : > { %v11287_v13 = vld [vmem:[#allocation5 + $0x894] sm:$0xf]  ;;  %v8279_v26 = vor.u32 %v11223_v8, %v8276_v39  ;;  %v7898_v8 = vld [vmem:[#allocation5 + $0x398] sm:$0xf] }
 0x185   : > { %v8532_v14 = vld [vmem:[#allocation5 + $0x8b0] sm:$0xf0]  ;;  %3072 = vmatpush.bf16.msra.mxu0 %v8023_v23  ;;  %v11132_v39 = vld [vmem:[#allocation5 + $0x3b4] sm:$0xf0] }
 0x186   : > { %v11351_v16 = vld [vmem:[#allocation5 + $0xa94] sm:$0xf]  ;;  %v8535_v27 = vor.u32 %v11287_v13, %v8532_v14  ;;  %v8154_v13 = vld [vmem:[#allocation5 + $0x598] sm:$0xf]  ;;  %v7899_v18 = vor.u32 %v11132_v39, %v7898_v8 }
 0x187   : > { %v8788_v17 = vld [vmem:[#allocation5 + $0xab0] sm:$0xf0]  ;;  %3085 = vmatpush.bf16.msra.mxu1 %v8279_v26  ;;  %v11196_v14 = vld [vmem:[#allocation5 + $0x5b4] sm:$0xf0] }
 0x188   : > { %v11151_v28 = vld [vmem:[#allocation5 + $0x454] sm:$0xf]  ;;  %v8791_v33 = vor.u32 %v11351_v16, %v8788_v17  ;;  %3098 = vmatpush.bf16.msra.mxu2 %v8535_v27  ;;  %v11260_v16 = vld [vmem:[#allocation5 + $0x7b4] sm:$0xf0]  ;;  %v7643_v17 = vor.u32 %v11068_v11, %v7642_v10  ;;  %v8155_v19 = vor.u32 %v11196_v14, %v8154_v13 }
 0x189   : > { %v7988_v29 = vld [vmem:[#allocation5 + $0x470] sm:$0xf0]  ;;  %v11060_v23 = vld [vmem:[#allocation5 + $0x174] sm:$0xf0]  ;;  %v8411_v26 = vor.u32 %v11260_v16, %v8410_v15 }
 0x18a   : > { %v11215_v30 = vld [vmem:[#allocation5 + $0x654] sm:$0xf]  ;;  %v7991_v41 = vor.u32 %v11151_v28, %v7988_v29  ;;  %3111 = vmatpush.bf16.msra.mxu3 %v8791_v33  ;;  %v11124_v27 = vld [vmem:[#allocation5 + $0x374] sm:$0xf0] }
 0x18b   : > { %v8244_v34 = vld [vmem:[#allocation5 + $0x670] sm:$0xf0]  ;;  %v8122_v28 = vld [vmem:[#allocation5 + $0x558] sm:$0xf] }
 0x18c   : > { %v11279_v35 = vld [vmem:[#allocation5 + $0x854] sm:$0xf]  ;;  %v8247_v44 = vor.u32 %v11215_v30, %v8244_v34  ;;  %3073 = vmatpush.bf16.msra.mxu0 %v7991_v41  ;;  %v11188_v29 = vld [vmem:[#allocation5 + $0x574] sm:$0xf0]  ;;  %v7611_v34 = vor.u32 %v11060_v23, %v7610_v22  ;;  %v2894_v13 = vpop.f32.mrf.mxu2 }
 0x18d   : > { %v8500_v37 = vld [vmem:[#allocation5 + $0x870] sm:$0xf0]  ;;  %v8378_v30 = vld [vmem:[#allocation5 + $0x758] sm:$0xf] }
 0x18e   : > { %v11343_v38 = vld [vmem:[#allocation5 + $0xa54] sm:$0xf]  ;;  %v8503_v45 = vor.u32 %v11279_v35, %v8500_v37  ;;  %3086 = vmatpush.bf16.msra.mxu1 %v8247_v44  ;;  %v11252_v33 = vld [vmem:[#allocation5 + $0x774] sm:$0xf0]  ;;  %v7867_v35 = vor.u32 %v11124_v27, %v7866_v24  ;;  %v8123_v37 = vor.u32 %v11188_v29, %v8122_v28 }
 0x18f   : > { %v8756_v40 = vld [vmem:[#allocation5 + $0xa70] sm:$0xf0]  ;;  %v7834_v41 = vld [vmem:[#allocation5 + $0x318] sm:$0xf] }
 0x190   : > { %v11143_v42 = vld [vmem:[#allocation5 + $0x414] sm:$0xf]  ;;  %v8759_v49 = vor.u32 %v11343_v38, %v8756_v40  ;;  %3099 = vmatpush.bf16.msra.mxu2 %v8503_v45  ;;  %v7578_v38 = vld [vmem:[#allocation5 + $0x118] sm:$0xf] }
 0x191   : > { %v7956_v43 = vld [vmem:[#allocation5 + $0x430] sm:$0xf0]  ;;  %v11052_v40 = vld [vmem:[#allocation5 + $0x134] sm:$0xf0] }
 0x192   : > { %v11207_v46 = vld [vmem:[#allocation5 + $0x614] sm:$0xf]  ;;  %v7959_v58 = vor.u32 %v11143_v42, %v7956_v43  ;;  %3112 = vmatpush.bf16.msra.mxu3 %v8759_v49  ;;  %v8379_v42 = vor.u32 %v11252_v33, %v8378_v30  ;;  %v11116_v43 = vld [vmem:[#allocation5 + $0x334] sm:$0xf0] }
 0x193   : > { %v8212_v47 = vld [vmem:[#allocation5 + $0x630] sm:$0xf0]  ;;  %v8090_v44 = vld [vmem:[#allocation5 + $0x518] sm:$0xf] }
 0x194   : > { %v11271_v48 = vld [vmem:[#allocation5 + $0x814] sm:$0xf]  ;;  %v8215_v62 = vor.u32 %v11207_v46, %v8212_v47  ;;  %3074 = vmatpush.bf16.msra.mxu0 %v7959_v58  ;;  %v11180_v45 = vld [vmem:[#allocation5 + $0x534] sm:$0xf0]  ;;  %v2868_v46 = vpop.f32.mrf.mxu0 }
 0x195   : > { %v8468_v50 = vld [vmem:[#allocation5 + $0x830] sm:$0xf0]  ;;  %v8346_v47 = vld [vmem:[#allocation5 + $0x718] sm:$0xf]  ;;  %v2869_v49 = vadd.f32 %v2868_v46, %v12477_v31  ;;  %v8091_v53 = vor.u32 %v11180_v45, %v8090_v44  ;;  %v697_v31 = vperm.slane %v12486_v0, 3 }
 0x196   : > { %v11335_v51 = vld [vmem:[#allocation5 + $0xa14] sm:$0xf]  ;;  %v8471_v63 = vor.u32 %v11271_v48, %v8468_v50  ;;  %3087 = vmatpush.bf16.msra.mxu1 %v8215_v62  ;;  %v11244_v48 = vld [vmem:[#allocation5 + $0x734] sm:$0xf0]  ;;  %v7579_v50 = vor.u32 %v11052_v40, %v7578_v38 }
 0x197   : > { %v8724_v52 = vld [vmem:[#allocation5 + $0xa30] sm:$0xf0]  ;;  %3075 = vmatmul.bf16.vlgmr.msra.gmra.mxu0 %v12423_v20  ;;  %v7546_v54 = vld [vmem:[#allocation5 + $0xd8] sm:$0xf]  ;;  %v8347_v57 = vor.u32 %v11244_v48, %v8346_v47  ;;  %v2895_v16 = vadd.f32 %v2894_v13, %v697_v31  ;;  %v11136_v31 = vld [vmem:[#allocation5 + $0x3dc] sm:$0xf] }
 0x198   : > { %v8727_v4 = vor.u32 %v11335_v51, %v8724_v52  ;;  %3100 = vmatpush.bf16.msra.mxu2 %v8471_v63  ;;  %3119 = vmatpush.bf16.msrb.mxu0 %v7675_v6  ;;  %v2881_v51 = vpop.f32.mrf.mxu1  ;;  %v7835_v52 = vor.u32 %v11116_v43, %v7834_v41  ;;  %v11044_v55 = vld [vmem:[#allocation5 + $0xf4] sm:$0xf0]  ;;  %v11064_v13 = vld [vmem:[#allocation5 + $0x19c] sm:$0xf] }
 0x199   : > { %3088 = vmatmul.bf16.vlgmr.msra.gmra.mxu1 %v12425_v21  ;;  %v7802_v56 = vld [vmem:[#allocation5 + $0x2d8] sm:$0xf]  ;;  %v12484_v58 = vadd.f32 %v2881_v51, %v2869_v49  ;;  %v7547_v3 = vor.u32 %v11044_v55, %v7546_v54 }
 0x19a   : > { %3113 = vmatpush.bf16.msra.mxu3 %v8727_v4  ;;  %3132 = vmatpush.bf16.msrb.mxu1 %v7931_v7  ;;  %v11108_v59 = vld [vmem:[#allocation5 + $0x2f4] sm:$0xf0] }
 0x19b   : > { %3101 = vmatmul.bf16.vlgmr.msra.gmra.mxu2 %v12430_v32  ;;  %v8058_v60 = vld [vmem:[#allocation5 + $0x4d8] sm:$0xf]  ;;  %v7803_v4 = vor.u32 %v11108_v59, %v7802_v56 }
 0x19c   : > { %3145 = vmatpush.bf16.msrb.mxu2 %v8187_v9  ;;  %3120 = vmatpush.bf16.msrb.mxu0 %v7643_v17  ;;  %v11172_v61 = vld [vmem:[#allocation5 + $0x4f4] sm:$0xf0]  ;;  %v2907_v17 = vpop.f32.mrf.mxu3 }
 0x19d   : > { %3114 = vmatmul.bf16.vlgmr.msra.gmra.mxu3 %v12432_v36  ;;  %v8314_v62 = vld [vmem:[#allocation5 + $0x6d8] sm:$0xf]  ;;  %v8059_v6 = vor.u32 %v11172_v61, %v8058_v60  ;;  %v12489_v29 = vadd.f32 %v2907_v17, %v2895_v16  ;;  %v11072_v60 = vld [vmem:[#allocation5 + $0x1dc] sm:$0xf] }
 0x19e   : > { %3158 = vmatpush.bf16.msrb.mxu3 %v8443_v12  ;;  %3133 = vmatpush.bf16.msrb.mxu1 %v7899_v18  ;;  %v11236_v63 = vld [vmem:[#allocation5 + $0x6f4] sm:$0xf0]  ;;  %v2870_v18 = vpop.f32.mrf.mxu0  ;;  %v7676_v61 = vld [vmem:[#allocation5 + $0x1f8] sm:$0xf0] }
 0x19f   : > { %v7514_v7 = vld [vmem:[#allocation5 + $0x98] sm:$0xf]  ;;  %v8315_v11 = vor.u32 %v11236_v63, %v8314_v62  ;;  %v7900_v16 = vld [vmem:[#allocation5 + $0x3b8] sm:$0xf0] }
 0x1a0   : > { %3146 = vmatpush.bf16.msrb.mxu2 %v8155_v19  ;;  %3121 = vmatpush.bf16.msrb.mxu0 %v7611_v34  ;;  %v11036_v9 = vld [vmem:[#allocation5 + $0xb4] sm:$0xf0]  ;;  %v2883_v22 = vpop.f32.mrf.mxu1 }
 0x1a1   : > { %v7770_v10 = vld [vmem:[#allocation5 + $0x298] sm:$0xf]  ;;  %v7515_v19 = vor.u32 %v11036_v9, %v7514_v7  ;;  %v7679_v9 = vor.u32 %v11072_v60, %v7676_v61  ;;  %v11040_v60 = vld [vmem:[#allocation5 + $0xdc] sm:$0xf] }
 0x1a2   : > { %3159 = vmatpush.bf16.msrb.mxu3 %v8411_v26  ;;  %3134 = vmatpush.bf16.msrb.mxu1 %v7867_v35  ;;  %v11100_v8 = vld [vmem:[#allocation5 + $0x2b4] sm:$0xf0]  ;;  %v7548_v61 = vld [vmem:[#allocation5 + $0xf8] sm:$0xf0] }
 0x1a3   : > { %v8026_v12 = vld [vmem:[#allocation5 + $0x498] sm:$0xf]  ;;  %v7771_v23 = vor.u32 %v11100_v8, %v7770_v10 }
 0x1a4   : > { %3147 = vmatpush.bf16.msrb.mxu2 %v8123_v37  ;;  %3122 = vmatpush.bf16.msrb.mxu0 %v7579_v50  ;;  %v11164_v39 = vld [vmem:[#allocation5 + $0x4b4] sm:$0xf0]  ;;  %v2909_v56 = vpop.f32.mrf.mxu3 }
 0x1a5   : > { %v8282_v14 = vld [vmem:[#allocation5 + $0x698] sm:$0xf]  ;;  %v8027_v24 = vor.u32 %v11164_v39, %v8026_v12 }
 0x1a6   : > { %3160 = vmatpush.bf16.msrb.mxu3 %v8379_v42  ;;  %3135 = vmatpush.bf16.msrb.mxu1 %v7835_v52  ;;  %v11228_v15 = vld [vmem:[#allocation5 + $0x6b4] sm:$0xf0]  ;;  %v2896_v52 = vpop.f32.mrf.mxu2 }
 0x1a7   : > { %v7482_v26 = vld [vmem:[#allocation5 + $0x58] sm:$0xf]  ;;  %v8283_v30 = vor.u32 %v11228_v15, %v8282_v14  ;;  %v7644_v14 = vld [vmem:[#allocation5 + $0x1b8] sm:$0xf0] }
 0x1a8   : > { %3148 = vmatpush.bf16.msrb.mxu2 %v8091_v53  ;;  %3123 = vmatpush.bf16.msrb.mxu0 %v7547_v3  ;;  %v11028_v27 = vld [vmem:[#allocation5 + $0x74] sm:$0xf0]  ;;  %v7932_v3 = vld [vmem:[#allocation5 + $0x3f8] sm:$0xf0] }
 0x1a9   : > { %v7738_v28 = vld [vmem:[#allocation5 + $0x258] sm:$0xf]  ;;  %v7483_v40 = vor.u32 %v11028_v27, %v7482_v26  ;;  %v7935_v12 = vor.u32 %v11136_v31, %v7932_v3  ;;  %v11128_v15 = vld [vmem:[#allocation5 + $0x39c] sm:$0xf] }
 0x1aa   : > { %3161 = vmatpush.bf16.msrb.mxu3 %v8347_v57  ;;  %3136 = vmatpush.bf16.msrb.mxu1 %v7803_v4  ;;  %v11092_v33 = vld [vmem:[#allocation5 + $0x274] sm:$0xf0]  ;;  %v7903_v26 = vor.u32 %v11128_v15, %v7900_v16  ;;  %v7772_v15 = vld [vmem:[#allocation5 + $0x2b8] sm:$0xf0] }
 0x1ab   : > { %v7994_v34 = vld [vmem:[#allocation5 + $0x458] sm:$0xf]  ;;  %v7739_v43 = vor.u32 %v11092_v33, %v7738_v28  ;;  %v11056_v28 = vld [vmem:[#allocation5 + $0x15c] sm:$0xf] }
 0x1ac   : > { %3149 = vmatpush.bf16.msrb.mxu2 %v8059_v6  ;;  %v11156_v35 = vld [vmem:[#allocation5 + $0x474] sm:$0xf0]  ;;  %3124 = vmatpush.bf16.msrb.mxu0 %v7515_v19  ;;  %v7647_v19 = vor.u32 %v11064_v13, %v7644_v14  ;;  %v11120_v33 = vld [vmem:[#allocation5 + $0x35c] sm:$0xf] }
 0x1ad   : > { %v8250_v37 = vld [vmem:[#allocation5 + $0x658] sm:$0xf]  ;;  %v7995_v44 = vor.u32 %v11156_v35, %v7994_v34  ;;  %v7868_v34 = vld [vmem:[#allocation5 + $0x378] sm:$0xf0] }
 0x1ae   : > { %3162 = vmatpush.bf16.msrb.mxu3 %v8315_v11  ;;  %v11220_v38 = vld [vmem:[#allocation5 + $0x674] sm:$0xf0]  ;;  %3137 = vmatpush.bf16.msrb.mxu1 %v7771_v23  ;;  %v7516_v13 = vld [vmem:[#allocation5 + $0xb8] sm:$0xf0] }
 0x1af   : > { %v7450_v41 = vld [vmem:[#allocation5 + $0x18] sm:$0xf]  ;;  %v8251_v48 = vor.u32 %v11220_v38, %v8250_v37  ;;  %v11096_v14 = vld [vmem:[#allocation5 + $0x29c] sm:$0xf] }
 0x1b0   : > { %v11020_v42 = vld [vmem:[#allocation5 + $0x34] sm:$0xf0]  ;;  %3150 = vmatpush.bf16.msrb.mxu2 %v8027_v24  ;;  %3125 = vmatpush.bf16.msrb.mxu0 %v7483_v40 }
 0x1b1   : > { %v7706_v45 = vld [vmem:[#allocation5 + $0x218] sm:$0xf]  ;;  %v7451_v57 = vor.u32 %v11020_v42, %v7450_v41 }
 0x1b2   : > { %v11084_v46 = vld [vmem:[#allocation5 + $0x234] sm:$0xf0]  ;;  %3163 = vmatpush.bf16.msrb.mxu3 %v8283_v30  ;;  %3138 = vmatpush.bf16.msrb.mxu1 %v7739_v43  ;;  %v7612_v30 = vld [vmem:[#allocation5 + $0x178] sm:$0xf0]  ;;  %v7871_v43 = vor.u32 %v11120_v33, %v7868_v34 }
 0x1b3   : > { %v7962_v47 = vld [vmem:[#allocation5 + $0x418] sm:$0xf]  ;;  %v7707_v62 = vor.u32 %v11084_v46, %v7706_v45  ;;  %v7615_v38 = vor.u32 %v11056_v28, %v7612_v30  ;;  %v11048_v45 = vld [vmem:[#allocation5 + $0x11c] sm:$0xf] }
 0x1b4   : > { %v11148_v49 = vld [vmem:[#allocation5 + $0x434] sm:$0xf0]  ;;  %3151 = vmatpush.bf16.msrb.mxu2 %v7995_v44  ;;  %3126 = vmatpush.bf16.msrb.mxu0 %v7451_v57  ;;  %v7580_v46 = vld [vmem:[#allocation5 + $0x138] sm:$0xf0] }
 0x1b5   : > { %v8218_v50 = vld [vmem:[#allocation5 + $0x618] sm:$0xf]  ;;  %v7963_v63 = vor.u32 %v11148_v49, %v7962_v47  ;;  %v11112_v47 = vld [vmem:[#allocation5 + $0x31c] sm:$0xf]  ;;  %v7583_v52 = vor.u32 %v11048_v45, %v7580_v46 }
 0x1b6   : > { %v11212_v51 = vld [vmem:[#allocation5 + $0x634] sm:$0xf0]  ;;  %3164 = vmatpush.bf16.msrb.mxu3 %v8251_v48  ;;  %3139 = vmatpush.bf16.msrb.mxu1 %v7707_v62  ;;  %v7836_v48 = vld [vmem:[#allocation5 + $0x338] sm:$0xf0] }
 0x1b7   : > { %v8698_v53 = vld [vmem:[#allocation5 + $0x9d8] sm:$0xf]  ;;  %v8219_v4 = vor.u32 %v11212_v51, %v8218_v50  ;;  %3127 = vmatmul.bf16.vlgmr.msrb.gmra.mxu0 %v12416_v1  ;;  %v12495_v50 = vpop.f32.mrf.mxu0  ;;  %v7839_v57 = vor.u32 %v11112_v47, %v7836_v48  ;;  %v11104_v62 = vld [vmem:[#allocation5 + $0x2dc] sm:$0xf] }
 0x1b8   : > { %v11332_v54 = vld [vmem:[#allocation5 + $0x9f4] sm:$0xf0]  ;;  %3152 = vmatpush.bf16.msrb.mxu2 %v7963_v63  ;;  %v7804_v63 = vld [vmem:[#allocation5 + $0x2f8] sm:$0xf0] }
 0x1b9   : > { %v8954_v55 = vld [vmem:[#allocation5 + $0xbd8] sm:$0xf]  ;;  %v8699_v6 = vor.u32 %v11332_v54, %v8698_v53  ;;  %3140 = vmatmul.bf16.vlgmr.msrb.gmra.mxu1 %v12418_v2  ;;  %v12497_v53 = vpop.f32.mrf.mxu1  ;;  %v11024_v30 = vld [vmem:[#allocation5 + $0x5c] sm:$0xf] }
 0x1ba   : > { %v11396_v59 = vld [vmem:[#allocation5 + $0xbf4] sm:$0xf0]  ;;  %3165 = vmatpush.bf16.msrb.mxu3 %v8219_v4  ;;  %v7551_v4 = vor.u32 %v11040_v60, %v7548_v61  ;;  %v7484_v33 = vld [vmem:[#allocation5 + $0x78] sm:$0xf0] }
 0x1bb   : > { %v8955_v7 = vor.u32 %v11396_v59, %v8954_v55  ;;  %v8666_v10 = vld [vmem:[#allocation5 + $0x998] sm:$0xf]  ;;  %3171 = vmatpush.bf16.msra.mxu0 %v8699_v6  ;;  %3153 = vmatmul.bf16.vlgmr.msrb.gmra.mxu2 %v12423_v20  ;;  %v12499_v6 = vpop.f32.mrf.mxu2  ;;  %v11088_v34 = vld [vmem:[#allocation5 + $0x25c] sm:$0xf] }
 0x1bc   : > { %v11324_v11 = vld [vmem:[#allocation5 + $0x9b4] sm:$0xf0]  ;;  %3197 = vmatpush.bf16.msra.mxu2 %v7679_v9  ;;  %v11016_v45 = vld [vmem:[#allocation5 + $0x1c] sm:$0xf] }
 0x1bd   : > { %v8922_v8 = vld [vmem:[#allocation5 + $0xb98] sm:$0xf]  ;;  %v8667_v17 = vor.u32 %v11324_v11, %v8666_v10  ;;  %3184 = vmatpush.bf16.msra.mxu1 %v8955_v7  ;;  %3166 = vmatmul.bf16.vlgmr.msrb.gmra.mxu3 %v12425_v21  ;;  %v7807_v11 = vor.u32 %v11104_v62, %v7804_v63  ;;  %v7452_v48 = vld [vmem:[#allocation5 + $0x38] sm:$0xf0] }
 0x1be   : > { %v11388_v39 = vld [vmem:[#allocation5 + $0xbb4] sm:$0xf0]  ;;  %3210 = vmatpush.bf16.msra.mxu3 %v7935_v12  ;;  %v11328_v60 = vld [vmem:[#allocation5 + $0x9dc] sm:$0xf]  ;;  %v7455_v63 = vor.u32 %v11016_v45, %v7452_v48 }
 0x1bf   : > { %v8923_v18 = vor.u32 %v11388_v39, %v8922_v8  ;;  %v8634_v22 = vld [vmem:[#allocation5 + $0x958] sm:$0xf]  ;;  %3172 = vmatpush.bf16.msra.mxu0 %v8667_v17  ;;  %v12501_v8 = vpop.f32.mrf.mxu3  ;;  %v11032_v39 = vld [vmem:[#allocation5 + $0x9c] sm:$0xf]  ;;  %v2922_v17 = vpop.f32.mrf.mxu0 }
 0x1c0   : > { %v11316_v23 = vld [vmem:[#allocation5 + $0x974] sm:$0xf0]  ;;  %3198 = vmatpush.bf16.msra.mxu2 %v7647_v19  ;;  %v7519_v19 = vor.u32 %v11032_v39, %v7516_v13  ;;  %v8700_v61 = vld [vmem:[#allocation5 + $0x9f8] sm:$0xf0] }
 0x1c1   : > { %v8890_v24 = vld [vmem:[#allocation5 + $0xb58] sm:$0xf]  ;;  %v8635_v35 = vor.u32 %v11316_v23, %v8634_v22  ;;  %3185 = vmatpush.bf16.msra.mxu1 %v8923_v18  ;;  %v11256_v39 = vld [vmem:[#allocation5 + $0x79c] sm:$0xf] }
 0x1c2   : > { %v11380_v27 = vld [vmem:[#allocation5 + $0xb74] sm:$0xf0]  ;;  %3211 = vmatpush.bf16.msra.mxu3 %v7903_v26  ;;  %v2935_v26 = vpop.f32.mrf.mxu1  ;;  %v11384_v17 = vld [vmem:[#allocation5 + $0xb9c] sm:$0xf] }
 0x1c3   : > { %v8891_v37 = vor.u32 %v11380_v27, %v8890_v24  ;;  %v8602_v40 = vld [vmem:[#allocation5 + $0x918] sm:$0xf]  ;;  %3173 = vmatpush.bf16.msra.mxu0 %v8635_v35  ;;  %v7775_v27 = vor.u32 %v11096_v14, %v7772_v15  ;;  %v7740_v35 = vld [vmem:[#allocation5 + $0x278] sm:$0xf0]  ;;  %v2948_v46 = vpop.f32.mrf.mxu2 }
 0x1c4   : > { %v11308_v41 = vld [vmem:[#allocation5 + $0x934] sm:$0xf0]  ;;  %3199 = vmatpush.bf16.msra.mxu2 %v7615_v38  ;;  %v7743_v47 = vor.u32 %v11088_v34, %v7740_v35  ;;  %v8412_v14 = vld [vmem:[#allocation5 + $0x7b8] sm:$0xf0]  ;;  %v2921_v35 = vadd.f32 %v12495_v50, %v12489_v29 }
 0x1c5   : > { %v8858_v42 = vld [vmem:[#allocation5 + $0xb18] sm:$0xf]  ;;  %v8603_v49 = vor.u32 %v11308_v41, %v8602_v40  ;;  %3186 = vmatpush.bf16.msra.mxu1 %v8891_v37  ;;  %v11320_v15 = vld [vmem:[#allocation5 + $0x99c] sm:$0xf] }
 0x1c6   : > { %v11372_v44 = vld [vmem:[#allocation5 + $0xb34] sm:$0xf0]  ;;  %3212 = vmatpush.bf16.msra.mxu3 %v7871_v43  ;;  %v8124_v26 = vld [vmem:[#allocation5 + $0x578] sm:$0xf0] }
 0x1c7   : > { %v8859_v51 = vor.u32 %v11372_v44, %v8858_v42  ;;  %v8570_v54 = vld [vmem:[#allocation5 + $0x8d8] sm:$0xf]  ;;  %3174 = vmatpush.bf16.msra.mxu0 %v8603_v49  ;;  %v7487_v42 = vor.u32 %v11024_v30, %v7484_v33  ;;  %v11080_v49 = vld [vmem:[#allocation5 + $0x21c] sm:$0xf] }
 0x1c8   : > { %v11300_v55 = vld [vmem:[#allocation5 + $0x8f4] sm:$0xf0]  ;;  %3200 = vmatpush.bf16.msra.mxu2 %v7583_v52  ;;  %v2961_v52 = vpop.f32.mrf.mxu3  ;;  %v8380_v30 = vld [vmem:[#allocation5 + $0x778] sm:$0xf0] }
 0x1c9   : > { %v8826_v56 = vld [vmem:[#allocation5 + $0xad8] sm:$0xf]  ;;  %v8571_v31 = vor.u32 %v11300_v55, %v8570_v54  ;;  %3187 = vmatpush.bf16.msra.mxu1 %v8859_v51  ;;  %v7708_v51 = vld [vmem:[#allocation5 + $0x238] sm:$0xf0] }
 0x1ca   : > { %v11364_v59 = vld [vmem:[#allocation5 + $0xaf4] sm:$0xf0]  ;;  %3213 = vmatpush.bf16.msra.mxu3 %v7839_v57  ;;  %v11200_v54 = vld [vmem:[#allocation5 + $0x5dc] sm:$0xf] }
 0x1cb   : > { %v8827_v3 = vor.u32 %v11364_v59, %v8826_v56  ;;  %v8538_v7 = vld [vmem:[#allocation5 + $0x898] sm:$0xf]  ;;  %3175 = vmatpush.bf16.msra.mxu0 %v8571_v31  ;;  %v8188_v55 = vld [vmem:[#allocation5 + $0x5f8] sm:$0xf0]  ;;  %v12512_v52 = vpop.f32.mrf.mxu1 }
 0x1cc   : > { %v11292_v9 = vld [vmem:[#allocation5 + $0x8b4] sm:$0xf0]  ;;  %3201 = vmatpush.bf16.msra.mxu2 %v7551_v4  ;;  %v11264_v56 = vld [vmem:[#allocation5 + $0x7dc] sm:$0xf]  ;;  %v7711_v4 = vor.u32 %v11080_v49, %v7708_v51  ;;  %v12510_v51 = vpop.f32.mrf.mxu0 }
 0x1cd   : > { %v8794_v10 = vld [vmem:[#allocation5 + $0xa98] sm:$0xf]  ;;  %v8539_v16 = vor.u32 %v11292_v9, %v8538_v7  ;;  %3188 = vmatpush.bf16.msra.mxu1 %v8827_v3  ;;  %v8444_v59 = vld [vmem:[#allocation5 + $0x7f8] sm:$0xf0]  ;;  %v8191_v7 = vor.u32 %v11200_v54, %v8188_v55 }
 0x1ce   : > { %v11356_v12 = vld [vmem:[#allocation5 + $0xab4] sm:$0xf0]  ;;  %3214 = vmatpush.bf16.msra.mxu3 %v7807_v11  ;;  %v11392_v31 = vld [vmem:[#allocation5 + $0xbdc] sm:$0xf]  ;;  %v8447_v9 = vor.u32 %v11264_v56, %v8444_v59 }
 0x1cf   : > { %v8795_v18 = vor.u32 %v11356_v12, %v8794_v10  ;;  %v8506_v22 = vld [vmem:[#allocation5 + $0x858] sm:$0xf]  ;;  %3176 = vmatpush.bf16.msra.mxu0 %v8539_v16  ;;  %v8956_v3 = vld [vmem:[#allocation5 + $0xbf8] sm:$0xf0]  ;;  %v8703_v10 = vor.u32 %v11328_v60, %v8700_v61 }
 0x1d0   : > { %v11284_v23 = vld [vmem:[#allocation5 + $0x874] sm:$0xf0]  ;;  %3202 = vmatpush.bf16.msra.mxu2 %v7519_v19  ;;  %v11192_v11 = vld [vmem:[#allocation5 + $0x59c] sm:$0xf]  ;;  %v8959_v13 = vor.u32 %v11392_v31, %v8956_v3 }
 0x1d1   : > { %v8762_v24 = vld [vmem:[#allocation5 + $0xa58] sm:$0xf]  ;;  %v8507_v37 = vor.u32 %v11284_v23, %v8506_v22  ;;  %3189 = vmatpush.bf16.msra.mxu1 %v8795_v18  ;;  %v8156_v12 = vld [vmem:[#allocation5 + $0x5b8] sm:$0xf0]  ;;  %v8415_v22 = vor.u32 %v11256_v39, %v8412_v14 }
 0x1d2   : > { %v11348_v28 = vld [vmem:[#allocation5 + $0xa74] sm:$0xf0]  ;;  %3215 = vmatpush.bf16.msra.mxu3 %v7775_v27  ;;  %v8668_v16 = vld [vmem:[#allocation5 + $0x9b8] sm:$0xf0]  ;;  %v8159_v19 = vor.u32 %v11192_v11, %v8156_v12 }
 0x1d3   : > { %v8474_v38 = vld [vmem:[#allocation5 + $0x818] sm:$0xf]  ;;  %v8763_v41 = vor.u32 %v11348_v28, %v8762_v24  ;;  %3177 = vmatpush.bf16.msra.mxu0 %v8507_v37  ;;  %v8924_v18 = vld [vmem:[#allocation5 + $0xbb8] sm:$0xf0]  ;;  %v8671_v23 = vor.u32 %v11320_v15, %v8668_v16  ;;  %v12515_v16 = vpop.f32.mrf.mxu2 }
 0x1d4   : > { %v11276_v40 = vld [vmem:[#allocation5 + $0x834] sm:$0xf0]  ;;  %3203 = vmatpush.bf16.msra.mxu2 %v7487_v42  ;;  %v11184_v24 = vld [vmem:[#allocation5 + $0x55c] sm:$0xf]  ;;  %v8927_v28 = vor.u32 %v11384_v17, %v8924_v18 }
 0x1d5   : > { %v8730_v43 = vld [vmem:[#allocation5 + $0xa18] sm:$0xf]  ;;  %v8475_v57 = vor.u32 %v11276_v40, %v8474_v38  ;;  %3190 = vmatpush.bf16.msra.mxu1 %v8763_v41  ;;  %v11248_v27 = vld [vmem:[#allocation5 + $0x75c] sm:$0xf]  ;;  %v8127_v40 = vor.u32 %v11184_v24, %v8124_v26  ;;  %v3284_v24 = vmul.f32 0.044715, %v12470_v25 }
 0x1d6   : > { %v11340_v44 = vld [vmem:[#allocation5 + $0xa34] sm:$0xf0]  ;;  %3216 = vmatpush.bf16.msra.mxu3 %v7743_v47  ;;  %v11312_v33 = vld [vmem:[#allocation5 + $0x95c] sm:$0xf]  ;;  %v8383_v41 = vor.u32 %v11248_v27, %v8380_v30  ;;  %v3285_v26 = vmul.f32 0.044715, %v12484_v58 }
 0x1d7   : > { %v8731_v62 = vor.u32 %v11340_v44, %v8730_v43  ;;  %3178 = vmatpush.bf16.msra.mxu0 %v8475_v57  ;;  %v8636_v34 = vld [vmem:[#allocation5 + $0x978] sm:$0xf0] }
 0x1d8   : > { %3204 = vmatpush.bf16.msra.mxu2 %v7455_v63  ;;  %v11376_v37 = vld [vmem:[#allocation5 + $0xb5c] sm:$0xf]  ;;  %v8639_v42 = vor.u32 %v11312_v33, %v8636_v34 }
 0x1d9   : > { %3191 = vmatpush.bf16.msra.mxu1 %v8731_v62  ;;  %v8892_v38 = vld [vmem:[#allocation5 + $0xb78] sm:$0xf0] }
 0x1da   : > { %3217 = vmatpush.bf16.msra.mxu3 %v7711_v4  ;;  %3179 = vmatmul.bf16.vlgmr.msra.gmra.mxu0 %v12430_v32  ;;  %v11176_v43 = vld [vmem:[#allocation5 + $0x51c] sm:$0xf]  ;;  %v8895_v46 = vor.u32 %v11376_v37, %v8892_v38 }
 0x1db   : > { %3223 = vmatpush.bf16.msrb.mxu0 %v8191_v7  ;;  %3205 = vmatmul.bf16.vlgmr.msra.gmra.mxu2 %v12416_v1  ;;  %v8092_v44 = vld [vmem:[#allocation5 + $0x538] sm:$0xf0]  ;;  %v2934_v1 = vadd.f32 %v12497_v53, %v2921_v35 }
 0x1dc   : > { %3249 = vmatpush.bf16.msrb.mxu2 %v8703_v10  ;;  %3192 = vmatmul.bf16.vlgmr.msra.gmra.mxu1 %v12432_v36  ;;  %v11240_v45 = vld [vmem:[#allocation5 + $0x71c] sm:$0xf] }
 0x1dd   : > { %3236 = vmatpush.bf16.msrb.mxu1 %v8447_v9  ;;  %3218 = vmatmul.bf16.vlgmr.msra.gmra.mxu3 %v12418_v2  ;;  %v8348_v29 = vld [vmem:[#allocation5 + $0x738] sm:$0xf0]  ;;  %v8095_v2 = vor.u32 %v11176_v43, %v8092_v44  ;;  %v2947_v63 = vadd.f32 %v12499_v6, %v2934_v1 }
 0x1de   : > { %3262 = vmatpush.bf16.msrb.mxu3 %v8959_v13  ;;  %v11304_v50 = vld [vmem:[#allocation5 + $0x91c] sm:$0xf]  ;;  %v8351_v54 = vor.u32 %v11240_v45, %v8348_v29 }
 0x1df   : > { %3224 = vmatpush.bf16.msrb.mxu0 %v8159_v19  ;;  %v8604_v47 = vld [vmem:[#allocation5 + $0x938] sm:$0xf0]  ;;  %v12518_v6 = vadd.f32 %v12501_v8, %v2947_v63  ;;  %v2974_v19 = vpop.f32.mrf.mxu0  ;;  %v9442_v63 = vld [vmem:[#allocation8 + $0x3c0] sm:$0xf] }
 0x1e0   : > { %3250 = vmatpush.bf16.msrb.mxu2 %v8671_v23  ;;  %v11368_v48 = vld [vmem:[#allocation5 + $0xb1c] sm:$0xf]  ;;  %v8607_v55 = vor.u32 %v11304_v50, %v8604_v47  ;;  %v3283_v23 = vmul.f32 0.044715, %v12460_v5 }
 0x1e1   : > { %3237 = vmatpush.bf16.msrb.mxu1 %v8415_v22  ;;  %v8860_v49 = vld [vmem:[#allocation5 + $0xb38] sm:$0xf0]  ;;  %v12520_v22 = vpop.f32.mrf.mxu3 }
 0x1e2   : > { %3263 = vmatpush.bf16.msrb.mxu3 %v8927_v28  ;;  %v11168_v56 = vld [vmem:[#allocation5 + $0x4dc] sm:$0xf]  ;;  %v8863_v60 = vor.u32 %v11368_v48, %v8860_v49  ;;  %v2987_v28 = vpop.f32.mrf.mxu1  ;;  %v3291_v45 = vmul.f32 %v3283_v23, %v12460_v5 }
 0x1e3   : > { %3225 = vmatpush.bf16.msrb.mxu0 %v8127_v40  ;;  %v8060_v57 = vld [vmem:[#allocation5 + $0x4f8] sm:$0xf0]  ;;  %v9410_v28 = vld [vmem:[#allocation8 + $0x380] sm:$0xf] }
 0x1e4   : > { %3251 = vmatpush.bf16.msrb.mxu2 %v8639_v42  ;;  %v11232_v59 = vld [vmem:[#allocation5 + $0x6dc] sm:$0xf]  ;;  %v8063_v4 = vor.u32 %v11168_v56, %v8060_v57  ;;  %v3286_v42 = vmul.f32 0.044715, %v12518_v6  ;;  %v3293_v56 = vmul.f32 %v3285_v26, %v12484_v58  ;;  %v9154_v26 = vld [vmem:[#allocation8 + $0x180] sm:$0xf] }
 0x1e5   : > { %3238 = vmatpush.bf16.msrb.mxu1 %v8383_v41  ;;  %v8316_v61 = vld [vmem:[#allocation5 + $0x6f8] sm:$0xf0] }
 0x1e6   : > { %3264 = vmatpush.bf16.msrb.mxu3 %v8895_v46  ;;  %v11296_v62 = vld [vmem:[#allocation5 + $0x8dc] sm:$0xf]  ;;  %v8319_v7 = vor.u32 %v11232_v59, %v8316_v61  ;;  %v698_v46 = vperm.slane %v12486_v0, 4  ;;  %v3000_v0 = vpop.f32.mrf.mxu2 }
 0x1e7   : > { %v8572_v53 = vld [vmem:[#allocation5 + $0x8f8] sm:$0xf0]  ;;  %3226 = vmatpush.bf16.msrb.mxu0 %v8095_v2  ;;  %v9090_v0 = vld [vmem:[#allocation8 + $0x100] sm:$0xf] }
 0x1e8   : > { %v11360_v31 = vld [vmem:[#allocation5 + $0xadc] sm:$0xf]  ;;  %3252 = vmatpush.bf16.msrb.mxu2 %v8607_v55  ;;  %v8575_v9 = vor.u32 %v11296_v62, %v8572_v53  ;;  %v3292_v55 = vmul.f32 %v3284_v24, %v12470_v25  ;;  %v9186_v62 = vld [vmem:[#allocation8 + $0x1c0] sm:$0xf] }
 0x1e9   : > { %v8828_v3 = vld [vmem:[#allocation5 + $0xaf8] sm:$0xf0]  ;;  %3239 = vmatpush.bf16.msrb.mxu1 %v8351_v54  ;;  %v11457_v53 = vld [vmem:[#allocation8 + $0x1dc] sm:$0xf0] }
 0x1ea   : > { %v11160_v10 = vld [vmem:[#allocation5 + $0x49c] sm:$0xf]  ;;  %3265 = vmatpush.bf16.msrb.mxu3 %v8863_v60  ;;  %v8831_v39 = vor.u32 %v11360_v31, %v8828_v3  ;;  %v3013_v31 = vpop.f32.mrf.mxu3  ;;  %v3299_v3 = vmul.f32 %v3291_v45, %v12460_v5  ;;  %v9187_v19 = vor.u32 %v11457_v53, %v9186_v62  ;;  %v11433_v62 = vld [vmem:[#allocation8 + $0x11c] sm:$0xf0] }
 0x1eb   : > { %v8028_v11 = vld [vmem:[#allocation5 + $0x4b8] sm:$0xf0]  ;;  %3227 = vmatpush.bf16.msrb.mxu0 %v8063_v4  ;;  %v9346_v53 = vld [vmem:[#allocation8 + $0x300] sm:$0xf] }
 0x1ec   : > { %v11224_v12 = vld [vmem:[#allocation5 + $0x69c] sm:$0xf]  ;;  %v8031_v27 = vor.u32 %v11160_v10, %v8028_v11  ;;  %3253 = vmatpush.bf16.msrb.mxu2 %v8575_v9  ;;  %v9698_v9 = vld [vmem:[#allocation8 + $0x5c0] sm:$0xf]  ;;  %v3294_v11 = vmul.f32 %v3286_v42, %v12518_v6 }
 0x1ed   : > { %v8284_v13 = vld [vmem:[#allocation5 + $0x6b8] sm:$0xf0]  ;;  %3240 = vmatpush.bf16.msrb.mxu1 %v8319_v7  ;;  %v11521_v7 = vld [vmem:[#allocation8 + $0x3dc] sm:$0xf0] }
 0x1ee   : > { %v11288_v14 = vld [vmem:[#allocation5 + $0x89c] sm:$0xf]  ;;  %v8287_v30 = vor.u32 %v11224_v12, %v8284_v13  ;;  %3266 = vmatpush.bf16.msrb.mxu3 %v8831_v39  ;;  %v11585_v10 = vld [vmem:[#allocation8 + $0x5dc] sm:$0xf0]  ;;  %v9443_v23 = vor.u32 %v11521_v7, %v9442_v63  ;;  %v3024_v7 = vpop.f32.mrf.mxu0 }
 0x1ef   : > { %v8540_v15 = vld [vmem:[#allocation5 + $0x8b8] sm:$0xf0]  ;;  %3228 = vmatpush.bf16.msrb.mxu0 %v8031_v27  ;;  %v9954_v13 = vld [vmem:[#allocation8 + $0x7c0] sm:$0xf]  ;;  %v9699_v24 = vor.u32 %v11585_v10, %v9698_v9  ;;  %v9091_v10 = vor.u32 %v11433_v62, %v9090_v0 }
 0x1f0   : > { %v11352_v17 = vld [vmem:[#allocation5 + $0xa9c] sm:$0xf]  ;;  %v8543_v33 = vor.u32 %v11288_v14, %v8540_v15  ;;  %v11649_v14 = vld [vmem:[#allocation8 + $0x7dc] sm:$0xf0]  ;;  %v3300_v15 = vmul.f32 %v3292_v55, %v12470_v25 }
 0x1f1   : > { %v8796_v18 = vld [vmem:[#allocation5 + $0xab8] sm:$0xf0]  ;;  %3241 = vmatpush.bf16.msrb.mxu1 %v8287_v30  ;;  %v11449_v27 = vld [vmem:[#allocation8 + $0x19c] sm:$0xf0]  ;;  %v2973_v30 = vadd.f32 %v12510_v51, %v698_v46 }
 0x1f2   : > { %v11152_v8 = vld [vmem:[#allocation5 + $0x45c] sm:$0xf]  ;;  %v8799_v37 = vor.u32 %v11352_v17, %v8796_v18  ;;  %3254 = vmatpush.bf16.msrb.mxu2 %v8543_v33  ;;  %v3301_v17 = vmul.f32 %v3293_v56, %v12484_v58  ;;  %v9955_v33 = vor.u32 %v11649_v14, %v9954_v13  ;;  %v3308_v42 = vadd.f32 %v3300_v15, %v12470_v25  ;;  %v9122_v46 = vld [vmem:[#allocation8 + $0x140] sm:$0xf] }
 0x1f3   : > { %v7996_v34 = vld [vmem:[#allocation5 + $0x478] sm:$0xf0]  ;;  %v9155_v51 = vor.u32 %v11449_v27, %v9154_v26  ;;  %v9890_v56 = vld [vmem:[#allocation8 + $0x740] sm:$0xf] }
 0x1f4   : > { %v11216_v35 = vld [vmem:[#allocation5 + $0x65c] sm:$0xf]  ;;  %v7999_v29 = vor.u32 %v11152_v8, %v7996_v34  ;;  %3267 = vmatpush.bf16.msrb.mxu3 %v8799_v37  ;;  %v11513_v8 = vld [vmem:[#allocation8 + $0x39c] sm:$0xf0]  ;;  %v3307_v37 = vadd.f32 %v3299_v3, %v12460_v5 }
 0x1f5   : > { %v8252_v38 = vld [vmem:[#allocation5 + $0x678] sm:$0xf0]  ;;  %v9666_v34 = vld [vmem:[#allocation8 + $0x580] sm:$0xf] }
 0x1f6   : > { %v11280_v40 = vld [vmem:[#allocation5 + $0x85c] sm:$0xf]  ;;  %v8255_v1 = vor.u32 %v11216_v35, %v8252_v38  ;;  %3229 = vmatpush.bf16.msrb.mxu0 %v7999_v29  ;;  %v11577_v35 = vld [vmem:[#allocation8 + $0x59c] sm:$0xf0]  ;;  %v3302_v38 = vmul.f32 %v3294_v11, %v12518_v6  ;;  %v3037_v11 = vpop.f32.mrf.mxu1 }
 0x1f7   : > { %v8508_v41 = vld [vmem:[#allocation5 + $0x878] sm:$0xf0]  ;;  %v9667_v45 = vor.u32 %v11577_v35, %v9666_v34  ;;  %v11441_v29 = vld [vmem:[#allocation8 + $0x15c] sm:$0xf0] }
 0x1f8   : > { %v11344_v43 = vld [vmem:[#allocation5 + $0xa5c] sm:$0xf]  ;;  %v8511_v48 = vor.u32 %v11280_v40, %v8508_v41  ;;  %3242 = vmatpush.bf16.msrb.mxu1 %v8255_v1  ;;  %v9922_v40 = vld [vmem:[#allocation8 + $0x780] sm:$0xf]  ;;  %v3310_v55 = vadd.f32 %v3302_v38, %v12518_v6 }
 0x1f9   : > { %v8764_v44 = vld [vmem:[#allocation5 + $0xa78] sm:$0xf0]  ;;  %v11641_v41 = vld [vmem:[#allocation8 + $0x79c] sm:$0xf0] }
 0x1fa   : > { %v11144_v50 = vld [vmem:[#allocation5 + $0x41c] sm:$0xf]  ;;  %v8767_v57 = vor.u32 %v11344_v43, %v8764_v44  ;;  %3255 = vmatpush.bf16.msrb.mxu2 %v8511_v48  ;;  %v3309_v43 = vadd.f32 %v3301_v17, %v12484_v58  ;;  %v9411_v44 = vor.u32 %v11513_v8, %v9410_v28  ;;  %v9923_v1 = vor.u32 %v11641_v41, %v9922_v40  ;;  %v11505_v48 = vld [vmem:[#allocation8 + $0x35c] sm:$0xf0] }
 0x1fb   : > { %v7964_v47 = vld [vmem:[#allocation5 + $0x438] sm:$0xf0]  ;;  %v9602_v31 = vld [vmem:[#allocation8 + $0x500] sm:$0xf] }
 0x1fc   : > { %v11208_v49 = vld [vmem:[#allocation5 + $0x61c] sm:$0xf]  ;;  %v7967_v4 = vor.u32 %v11144_v50, %v7964_v47  ;;  %3268 = vmatpush.bf16.msrb.mxu3 %v8767_v57  ;;  %v9378_v50 = vld [vmem:[#allocation8 + $0x340] sm:$0xf]  ;;  %v2986_v47 = vadd.f32 %v12512_v52, %v2973_v30  ;;  %v9123_v52 = vor.u32 %v11441_v29, %v9122_v46  ;;  %v3026_v46 = vpop.f32.mrf.mxu0 }
 0x1fd   : > { %v8220_v2 = vld [vmem:[#allocation5 + $0x638] sm:$0xf0]  ;;  %v11633_v57 = vld [vmem:[#allocation8 + $0x75c] sm:$0xf0] }
 0x1fe   : > { %v11272_v54 = vld [vmem:[#allocation5 + $0x81c] sm:$0xf]  ;;  %v8223_v12 = vor.u32 %v11208_v49, %v8220_v2  ;;  %3230 = vmatpush.bf16.msrb.mxu0 %v7967_v4  ;;  %v9634_v49 = vld [vmem:[#allocation8 + $0x540] sm:$0xf]  ;;  %v9891_v63 = vor.u32 %v11633_v57, %v9890_v56  ;;  %v3318_v4 = vmul.f32 0.7978846, %v3310_v55 }
 0x1ff   : > { %v8476_v59 = vld [vmem:[#allocation5 + $0x838] sm:$0xf0]  ;;  %v11569_v2 = vld [vmem:[#allocation8 + $0x55c] sm:$0xf0] }
 0x200   : > { %v11336_v60 = vld [vmem:[#allocation5 + $0xa1c] sm:$0xf]  ;;  %v8479_v39 = vor.u32 %v11272_v54, %v8476_v59  ;;  %3243 = vmatpush.bf16.msrb.mxu1 %v8223_v12  ;;  %v3315_v54 = vmul.f32 0.7978846, %v3307_v37  ;;  %v3316_v59 = vmul.f32 0.7978846, %v3308_v42  ;;  %v12547_v42 = vpop.f32.mrf.mxu2 }
 0x201   : > { %v8732_v61 = vld [vmem:[#allocation5 + $0xa38] sm:$0xf0]  ;;  %3231 = vmatmul.bf16.vlgmr.msrb.gmra.mxu0 %v12423_v20  ;;  %v9379_v20 = vor.u32 %v11505_v48, %v9378_v50  ;;  %v11561_v3 = vld [vmem:[#allocation8 + $0x51c] sm:$0xf0]  ;;  %v3275_v50 = vmul.f32 0.5, %v12460_v5  ;;  %v3039_v48 = vpop.f32.mrf.mxu1  ;;  %v3276_v5 = vmul.f32 0.5, %v12470_v25 }
 0x202   : > { %v8735_v18 = vor.u32 %v11336_v60, %v8732_v61  ;;  %3256 = vmatpush.bf16.msrb.mxu2 %v8479_v39  ;;  %6445 = vmatpush.bf16.msra.mxu0 %v9187_v19  ;;  %v3317_v60 = vmul.f32 0.7978846, %v3309_v43  ;;  %v9635_v61 = vor.u32 %v11569_v2, %v9634_v49  ;;  %12002 = vtanh.f32 %v3315_v54  ;;  %v11625_v9 = vld [vmem:[#allocation8 + $0x71c] sm:$0xf0] }
 0x203   : > { %3244 = vmatmul.bf16.vlgmr.msrb.gmra.mxu1 %v12425_v21  ;;  %v2999_v21 = vadd.f32 %v12515_v16, %v2986_v47  ;;  %12004 = vtanh.f32 %v3316_v59  ;;  %v9603_v39 = vor.u32 %v11561_v3, %v9602_v31  ;;  %v9058_v13 = vld [vmem:[#allocation8 + $0xc0] sm:$0xf] }
 0x204   : > { %3269 = vmatpush.bf16.msrb.mxu3 %v8735_v18  ;;  %6458 = vmatpush.bf16.msra.mxu1 %v9443_v23  ;;  %v11425_v14 = vld [vmem:[#allocation8 + $0xdc] sm:$0xf0]  ;;  %12006 = vtanh.f32 %v3317_v60 }
 0x205   : > { %3257 = vmatmul.bf16.vlgmr.msrb.gmra.mxu2 %v12430_v32  ;;  %v11497_v32 = vld [vmem:[#allocation8 + $0x31c] sm:$0xf0]  ;;  %v3012_v15 = vadd.f32 %v12520_v22, %v2999_v21  ;;  %12008 = vtanh.f32 %v3318_v4  ;;  %v9059_v27 = vor.u32 %v11425_v14, %v9058_v13 }
 0x206   : > { %6471 = vmatpush.bf16.msra.mxu2 %v9699_v24  ;;  %6446 = vmatpush.bf16.msra.mxu0 %v9155_v51  ;;  %v9347_v12 = vor.u32 %v11497_v32, %v9346_v53  ;;  %v9314_v16 = vld [vmem:[#allocation8 + $0x2c0] sm:$0xf] }
 0x207   : > { %3270 = vmatmul.bf16.vlgmr.msrb.gmra.mxu3 %v12432_v36  ;;  %v9858_v36 = vld [vmem:[#allocation8 + $0x700] sm:$0xf]  ;;  %v3025_v37 = vadd.f32 %v3024_v7, %v3012_v15 }
 0x208   : > { %6484 = vmatpush.bf16.msra.mxu3 %v9955_v33  ;;  %6459 = vmatpush.bf16.msra.mxu1 %v9411_v44  ;;  %v9859_v17 = vor.u32 %v11625_v9, %v9858_v36  ;;  %v11489_v18 = vld [vmem:[#allocation8 + $0x2dc] sm:$0xf0]  ;;  %v12003_v28 = vpop.eup %12002  ;;  %v3052_v13 = vpop.f32.mrf.mxu2 }
 0x209   : > { %v9570_v19 = vld [vmem:[#allocation8 + $0x4c0] sm:$0xf]  ;;  %v9315_v30 = vor.u32 %v11489_v18, %v9314_v16  ;;  %v12005_v43 = vpop.eup %12004  ;;  %v3331_v47 = vadd.f32 1.0, %v12003_v28  ;;  %v12552_v59 = vadd.f32 %v3037_v11, %v3025_v37  ;;  %v3278_v28 = vmul.f32 0.5, %v12518_v6 }
 0x20a   : > { %6472 = vmatpush.bf16.msra.mxu2 %v9667_v45  ;;  %6447 = vmatpush.bf16.msra.mxu0 %v9123_v52  ;;  %v11553_v23 = vld [vmem:[#allocation8 + $0x4dc] sm:$0xf0]  ;;  %v12549_v45 = vpop.f32.mrf.mxu3  ;;  %v12007_v29 = vpop.eup %12006  ;;  %v3332_v0 = vadd.f32 1.0, %v12005_v43 }
 0x20b   : > { %v9826_v24 = vld [vmem:[#allocation8 + $0x6c0] sm:$0xf]  ;;  %v9571_v33 = vor.u32 %v11553_v23, %v9570_v19  ;;  %v12009_v49 = vpop.eup %12008  ;;  %v3333_v21 = vadd.f32 1.0, %v12007_v29  ;;  %v3287_v11 = vmul.f32 0.044715, %v12552_v59  ;;  %v3339_v18 = vmul.f32 %v3331_v47, %v3275_v50 }
 0x20c   : > { %6485 = vmatpush.bf16.msra.mxu3 %v9923_v1  ;;  %6460 = vmatpush.bf16.msra.mxu1 %v9379_v20  ;;  %v11617_v26 = vld [vmem:[#allocation8 + $0x6dc] sm:$0xf0]  ;;  %v3277_v19 = vmul.f32 0.5, %v12484_v58  ;;  %v12559_v58 = vld [vmem:[#allocation7] sm:$0xff] }
 0x20d   : > { %v9026_v8 = vld [vmem:[#allocation8 + $0x80] sm:$0xf]  ;;  %v9827_v22 = vor.u32 %v11617_v26, %v9826_v24 }
 0x20e   : > { %6473 = vmatpush.bf16.msra.mxu2 %v9635_v61  ;;  %6448 = vmatpush.bf16.msra.mxu0 %v9091_v10  ;;  %v11417_v34 = vld [vmem:[#allocation8 + $0x9c] sm:$0xf0] }
 0x20f   : > { %v9282_v35 = vld [vmem:[#allocation8 + $0x280] sm:$0xf]  ;;  %v9027_v1 = vor.u32 %v11417_v34, %v9026_v8  ;;  %v3341_v8 = vmul.f32 %v3333_v21, %v3277_v19  ;;  %v3295_v34 = vmul.f32 %v3287_v11, %v12552_v59 }
 0x210   : > { %6486 = vmatpush.bf16.msra.mxu3 %v9891_v63  ;;  %6461 = vmatpush.bf16.msra.mxu1 %v9347_v12  ;;  %v11481_v38 = vld [vmem:[#allocation8 + $0x29c] sm:$0xf0]  ;;  %v3334_v63 = vadd.f32 1.0, %v12009_v49 }
 0x211   : > { %v9538_v40 = vld [vmem:[#allocation8 + $0x480] sm:$0xf]  ;;  %v9283_v2 = vor.u32 %v11481_v38, %v9282_v35  ;;  %v12566_v29 = vpack.c.bf16 %v3341_v8, %v3341_v8  ;;  %v3303_v50 = vmul.f32 %v3295_v34, %v12552_v59 }
 0x212   : > { %6474 = vmatpush.bf16.msra.mxu2 %v9603_v39  ;;  %v11545_v41 = vld [vmem:[#allocation8 + $0x49c] sm:$0xf0]  ;;  %6449 = vmatpush.bf16.msra.mxu0 %v9059_v27  ;;  %v3340_v27 = vmul.f32 %v3332_v0, %v3276_v5 }
 0x213   : > { %v9794_v51 = vld [vmem:[#allocation8 + $0x680] sm:$0xf]  ;;  %v9539_v54 = vor.u32 %v11545_v41, %v9538_v40  ;;  %v699_v40 = vperm.slane %v12559_v58, 5 }
 0x214   : > { %6487 = vmatpush.bf16.msra.mxu3 %v9859_v17  ;;  %v11609_v44 = vld [vmem:[#allocation8 + $0x69c] sm:$0xf0]  ;;  %6462 = vmatpush.bf16.msra.mxu1 %v9315_v30  ;;  %v3065_v17 = vpop.f32.mrf.mxu3  ;;  %v12564_v46 = vpack.c.bf16 %v3340_v27, %v3340_v27 }
 0x215   : > { %v8994_v55 = vld [vmem:[#allocation8 + $0x40] sm:$0xf]  ;;  %v9795_v60 = vor.u32 %v11609_v44, %v9794_v51  ;;  %v12562_v44 = vpack.c.bf16 %v3339_v18, %v3339_v18  ;;  %v3051_v48 = vadd.f32 %v12547_v42, %v699_v40 }
 0x216   : > { %6475 = vmatpush.bf16.msra.mxu2 %v9571_v33  ;;  %v11409_v56 = vld [vmem:[#allocation8 + $0x5c] sm:$0xf0]  ;;  %6450 = vmatpush.bf16.msra.mxu0 %v9027_v1 }
 0x217   : > { %v9250_v57 = vld [vmem:[#allocation8 + $0x240] sm:$0xf]  ;;  %v8995_v32 = vor.u32 %v11409_v56, %v8994_v55  ;;  %v3064_v42 = vadd.f32 %v12549_v45, %v3051_v48 }
 0x218   : > { %6488 = vmatpush.bf16.msra.mxu3 %v9827_v22  ;;  %v11473_v52 = vld [vmem:[#allocation8 + $0x25c] sm:$0xf0]  ;;  %6463 = vmatpush.bf16.msra.mxu1 %v9283_v2  ;;  %v3342_v22 = vmul.f32 %v3334_v63, %v3278_v28 }
 0x219   : > { %v9506_v20 = vld [vmem:[#allocation8 + $0x440] sm:$0xf]  ;;  %v9251_v4 = vor.u32 %v11473_v52, %v9250_v57  ;;  %v3311_v57 = vadd.f32 %v3303_v50, %v12552_v59 }
 0x21a   : > { %v11537_v61 = vld [vmem:[#allocation8 + $0x45c] sm:$0xf0]  ;;  %6476 = vmatpush.bf16.msra.mxu2 %v9539_v54  ;;  %6451 = vmatpush.bf16.msra.mxu0 %v8995_v32  ;;  %v12569_v1 = vpack.c.bf16 %v3342_v22, %v3342_v22 }
 0x21b   : > { %v9762_v62 = vld [vmem:[#allocation8 + $0x640] sm:$0xf]  ;;  %v9507_v7 = vor.u32 %v11537_v61, %v9506_v20  ;;  %v3319_v63 = vmul.f32 0.7978846, %v3311_v57 }
 0x21c   : > { %v11601_v53 = vld [vmem:[#allocation8 + $0x65c] sm:$0xf0]  ;;  %6489 = vmatpush.bf16.msra.mxu3 %v9795_v60  ;;  %6464 = vmatpush.bf16.msra.mxu1 %v9251_v4 }
 0x21d   : > { %v8962_v31 = vld [vmem:[#allocation8] sm:$0xf]  ;;  %v9763_v25 = vor.u32 %v11601_v53, %v9762_v62  ;;  %12010 = vtanh.f32 %v3319_v63  ;;  %v9444_v63 = vld [vmem:[#allocation8 + $0x3e0] sm:$0xf0] }
 0x21e   : > { %v11401_v3 = vld [vmem:[#allocation8 + $0x1c] sm:$0xf0]  ;;  %6477 = vmatpush.bf16.msra.mxu2 %v9507_v7 }
 0x21f   : > { %v9218_v36 = vld [vmem:[#allocation8 + $0x200] sm:$0xf]  ;;  %v8963_v23 = vor.u32 %v11401_v3, %v8962_v31  ;;  %v3076_v31 = vpop.f32.mrf.mxu0 }
 0x220   : > { %v11465_v9 = vld [vmem:[#allocation8 + $0x21c] sm:$0xf0]  ;;  %6490 = vmatpush.bf16.msra.mxu3 %v9763_v25  ;;  %v3077_v7 = vadd.f32 %v3076_v31, %v3064_v42 }
 0x221   : > { %v9474_v10 = vld [vmem:[#allocation8 + $0x400] sm:$0xf]  ;;  %v9219_v30 = vor.u32 %v11465_v9, %v9218_v36  ;;  %6452 = vmatpush.bf16.msra.mxu0 %v8963_v23  ;;  %v3089_v36 = vpop.f32.mrf.mxu1 }
 0x222   : > { %v11529_v12 = vld [vmem:[#allocation8 + $0x41c] sm:$0xf0] }
 0x223   : > { %v9730_v39 = vld [vmem:[#allocation8 + $0x600] sm:$0xf]  ;;  %v9475_v33 = vor.u32 %v11529_v12, %v9474_v10  ;;  %6465 = vmatpush.bf16.msra.mxu1 %v9219_v30 }
 0x224   : > { %v11593_v14 = vld [vmem:[#allocation8 + $0x61c] sm:$0xf0]  ;;  %6453 = vmatmul.bf16.vlgmr.msra.gmra.mxu0 %v12562_v44 }
 0x225   : > { %v10210_v16 = vld [vmem:[#allocation8 + $0x9c0] sm:$0xf]  ;;  %v9731_v35 = vor.u32 %v11593_v14, %v9730_v39  ;;  %6478 = vmatpush.bf16.msra.mxu2 %v9475_v33  ;;  %v3090_v39 = vadd.f32 %v3089_v36, %v3077_v7 }
 0x226   : > { %v11713_v15 = vld [vmem:[#allocation8 + $0x9dc] sm:$0xf0]  ;;  %6466 = vmatmul.bf16.vlgmr.msra.gmra.mxu1 %v12564_v46 }
 0x227   : > { %v10466_v24 = vld [vmem:[#allocation8 + $0xbc0] sm:$0xf]  ;;  %v10211_v37 = vor.u32 %v11713_v15, %v10210_v16  ;;  %6491 = vmatpush.bf16.msra.mxu3 %v9731_v35  ;;  %v3102_v15 = vpop.f32.mrf.mxu2  ;;  %v3078_v34 = vpop.f32.mrf.mxu0 }
 0x228   : > { %v11777_v26 = vld [vmem:[#allocation8 + $0xbdc] sm:$0xf0]  ;;  %6479 = vmatmul.bf16.vlgmr.msra.gmra.mxu2 %v12566_v29  ;;  %v3103_v23 = vadd.f32 %v3102_v15, %v3090_v39  ;;  %v11509_v39 = vld [vmem:[#allocation8 + $0x384] sm:$0xf] }
 0x229   : > { %v10467_v38 = vor.u32 %v11777_v26, %v10466_v24  ;;  %v10178_v41 = vld [vmem:[#allocation8 + $0x980] sm:$0xf]  ;;  %6497 = vmatpush.bf16.msrb.mxu0 %v10211_v37  ;;  %v3115_v24 = vpop.f32.mrf.mxu3  ;;  %v3091_v22 = vpop.f32.mrf.mxu1 }
 0x22a   : > { %v11705_v43 = vld [vmem:[#allocation8 + $0x99c] sm:$0xf0]  ;;  %6492 = vmatmul.bf16.vlgmr.msra.gmra.mxu3 %v12569_v1  ;;  %v12578_v30 = vadd.f32 %v3115_v24, %v3103_v23  ;;  %v11501_v24 = vld [vmem:[#allocation8 + $0x344] sm:$0xf] }
 0x22b   : > { %v10434_v6 = vld [vmem:[#allocation8 + $0xb80] sm:$0xf]  ;;  %v10179_v47 = vor.u32 %v11705_v43, %v10178_v41  ;;  %6510 = vmatpush.bf16.msrb.mxu1 %v10467_v38  ;;  %v12011_v41 = vpop.eup %12010 }
 0x22c   : > { %v11769_v51 = vld [vmem:[#allocation8 + $0xb9c] sm:$0xf0]  ;;  %v3288_v43 = vmul.f32 0.044715, %v12578_v30 }
 0x22d   : > { %v10435_v49 = vor.u32 %v11769_v51, %v10434_v6  ;;  %v10146_v2 = vld [vmem:[#allocation8 + $0x940] sm:$0xf]  ;;  %6498 = vmatpush.bf16.msrb.mxu0 %v10179_v47 }
 0x22e   : > { %v11697_v54 = vld [vmem:[#allocation8 + $0x95c] sm:$0xf0]  ;;  %v3296_v47 = vmul.f32 %v3288_v43, %v12578_v30 }
 0x22f   : > { %v10402_v55 = vld [vmem:[#allocation8 + $0xb40] sm:$0xf]  ;;  %v10147_v60 = vor.u32 %v11697_v54, %v10146_v2  ;;  %6511 = vmatpush.bf16.msrb.mxu1 %v10435_v49  ;;  %v3104_v57 = vpop.f32.mrf.mxu2 }
 0x230   : > { %v11761_v56 = vld [vmem:[#allocation8 + $0xb5c] sm:$0xf0]  ;;  %v3304_v42 = vmul.f32 %v3296_v47, %v12578_v30  ;;  %v11573_v57 = vld [vmem:[#allocation8 + $0x584] sm:$0xf] }
 0x231   : > { %v10114_v52 = vld [vmem:[#allocation8 + $0x900] sm:$0xf]  ;;  %v10403_v20 = vor.u32 %v11761_v56, %v10402_v55  ;;  %6499 = vmatpush.bf16.msrb.mxu0 %v10147_v60  ;;  %v3335_v55 = vadd.f32 1.0, %v12011_v41  ;;  %v3280_v41 = vmul.f32 0.5, %v12578_v30 }
 0x232   : > { %v11689_v61 = vld [vmem:[#allocation8 + $0x91c] sm:$0xf0] }
 0x233   : > { %v10722_v5 = vld [vmem:[#allocation8 + $0xdc0] sm:$0xf]  ;;  %v10115_v32 = vor.u32 %v11689_v61, %v10114_v52  ;;  %6512 = vmatpush.bf16.msrb.mxu1 %v10403_v20  ;;  %v11453_v61 = vld [vmem:[#allocation8 + $0x1c4] sm:$0xf] }
 0x234   : > { %v11841_v0 = vld [vmem:[#allocation8 + $0xddc] sm:$0xf0] }
 0x235   : > { %v10370_v62 = vld [vmem:[#allocation8 + $0xb00] sm:$0xf]  ;;  %v10723_v21 = vor.u32 %v11841_v0, %v10722_v5  ;;  %6500 = vmatpush.bf16.msrb.mxu0 %v10115_v32  ;;  %v9188_v5 = vld [vmem:[#allocation8 + $0x1e0] sm:$0xf0]  ;;  %v3117_v0 = vpop.f32.mrf.mxu3  ;;  %v3312_v32 = vadd.f32 %v3304_v42, %v12578_v30 }
 0x236   : > { %v11753_v53 = vld [vmem:[#allocation8 + $0xb1c] sm:$0xf0]  ;;  %v9191_v7 = vor.u32 %v11453_v61, %v9188_v5  ;;  %v9316_v42 = vld [vmem:[#allocation8 + $0x2e0] sm:$0xf0] }
 0x237   : > { %v10082_v3 = vld [vmem:[#allocation8 + $0x8c0] sm:$0xf]  ;;  %6523 = vmatpush.bf16.msrb.mxu2 %v10723_v21  ;;  %v10371_v4 = vor.u32 %v11753_v53, %v10370_v62  ;;  %v3279_v53 = vmul.f32 0.5, %v12552_v59  ;;  %v11517_v21 = vld [vmem:[#allocation8 + $0x3c4] sm:$0xf] }
 0x238   : > { %v11681_v9 = vld [vmem:[#allocation8 + $0x8dc] sm:$0xf0]  ;;  %v9412_v59 = vld [vmem:[#allocation8 + $0x3a0] sm:$0xf0] }
 0x239   : > { %v10690_v45 = vld [vmem:[#allocation8 + $0xd80] sm:$0xf]  ;;  %v10083_v13 = vor.u32 %v11681_v9, %v10082_v3  ;;  %6513 = vmatpush.bf16.msrb.mxu1 %v10371_v4  ;;  %v3343_v3 = vmul.f32 %v3335_v55, %v3279_v53  ;;  %v9060_v55 = vld [vmem:[#allocation8 + $0xe0] sm:$0xf0] }
 0x23a   : > { %v11833_v10 = vld [vmem:[#allocation8 + $0xd9c] sm:$0xf0] }
 0x23b   : > { %v10338_v11 = vld [vmem:[#allocation8 + $0xac0] sm:$0xf]  ;;  %v10691_v12 = vor.u32 %v11833_v10, %v10690_v45  ;;  %6501 = vmatpush.bf16.msrb.mxu0 %v10083_v13  ;;  %v3320_v45 = vmul.f32 0.7978846, %v3312_v32  ;;  %v9447_v10 = vor.u32 %v11517_v21, %v9444_v63  ;;  %v12585_v13 = vpack.c.bf16 %v3343_v3, %v3343_v3  ;;  %v9028_v63 = vld [vmem:[#allocation8 + $0xa0] sm:$0xf0] }
 0x23c   : > { %v11745_v25 = vld [vmem:[#allocation8 + $0xadc] sm:$0xf0]  ;;  %v11565_v32 = vld [vmem:[#allocation8 + $0x544] sm:$0xf] }
 0x23d   : > { %v10050_v14 = vld [vmem:[#allocation8 + $0x880] sm:$0xf]  ;;  %6524 = vmatpush.bf16.msrb.mxu2 %v10691_v12  ;;  %v10339_v16 = vor.u32 %v11745_v25, %v10338_v11  ;;  %v11445_v11 = vld [vmem:[#allocation8 + $0x184] sm:$0xf]  ;;  %12012 = vtanh.f32 %v3320_v45 }
 0x23e   : > { %v11673_v17 = vld [vmem:[#allocation8 + $0x89c] sm:$0xf0]  ;;  %v9156_v25 = vld [vmem:[#allocation8 + $0x1a0] sm:$0xf0] }
 0x23f   : > { %v10658_v18 = vld [vmem:[#allocation8 + $0xd40] sm:$0xf]  ;;  %v10051_v33 = vor.u32 %v11673_v17, %v10050_v14  ;;  %6514 = vmatpush.bf16.msrb.mxu1 %v10339_v16  ;;  %v9159_v14 = vor.u32 %v11445_v11, %v9156_v25  ;;  %v9415_v17 = vor.u32 %v11509_v39, %v9412_v59  ;;  %v11477_v3 = vld [vmem:[#allocation8 + $0x284] sm:$0xf] }
 0x240   : > { %v11825_v19 = vld [vmem:[#allocation8 + $0xd5c] sm:$0xf0]  ;;  %v11405_v11 = vld [vmem:[#allocation8 + $0x44] sm:$0xf] }
 0x241   : > { %v10306_v26 = vld [vmem:[#allocation8 + $0xa80] sm:$0xf]  ;;  %v10659_v28 = vor.u32 %v11825_v19, %v10658_v18  ;;  %6502 = vmatpush.bf16.msrb.mxu0 %v10051_v33  ;;  %v11437_v18 = vld [vmem:[#allocation8 + $0x144] sm:$0xf] }
 0x242   : > { %v11737_v27 = vld [vmem:[#allocation8 + $0xa9c] sm:$0xf0]  ;;  %v9124_v19 = vld [vmem:[#allocation8 + $0x160] sm:$0xf0] }
 0x243   : > { %v10018_v8 = vld [vmem:[#allocation8 + $0x840] sm:$0xf]  ;;  %6525 = vmatpush.bf16.msrb.mxu2 %v10659_v28  ;;  %v10307_v35 = vor.u32 %v11737_v27, %v10306_v26  ;;  %v9380_v26 = vld [vmem:[#allocation8 + $0x360] sm:$0xf0]  ;;  %v9127_v27 = vor.u32 %v11437_v18, %v9124_v19  ;;  %v12013_v34 = vpop.eup %12012 }
 0x244   : > { %v11665_v37 = vld [vmem:[#allocation8 + $0x85c] sm:$0xf0]  ;;  %v11429_v28 = vld [vmem:[#allocation8 + $0x104] sm:$0xf]  ;;  %v3336_v43 = vadd.f32 1.0, %v12013_v34 }
 0x245   : > { %v10626_v38 = vld [vmem:[#allocation8 + $0xd00] sm:$0xf]  ;;  %v10019_v48 = vor.u32 %v11665_v37, %v10018_v8  ;;  %6515 = vmatpush.bf16.msrb.mxu1 %v10307_v35  ;;  %v9383_v35 = vor.u32 %v11501_v24, %v9380_v26  ;;  %v9092_v37 = vld [vmem:[#allocation8 + $0x120] sm:$0xf0]  ;;  %v700_v24 = vperm.slane %v12559_v58, 6 }
 0x246   : > { %v11817_v40 = vld [vmem:[#allocation8 + $0xd1c] sm:$0xf0]  ;;  %v3344_v47 = vmul.f32 %v3336_v43, %v3280_v41  ;;  %v11469_v18 = vld [vmem:[#allocation8 + $0x244] sm:$0xf] }
 0x247   : > { %v10274_v6 = vld [vmem:[#allocation8 + $0xa40] sm:$0xf]  ;;  %v10627_v50 = vor.u32 %v11817_v40, %v10626_v38  ;;  %6503 = vmatpush.bf16.msrb.mxu0 %v10019_v48  ;;  %v11581_v38 = vld [vmem:[#allocation8 + $0x5c4] sm:$0xf]  ;;  %v9095_v48 = vor.u32 %v11429_v28, %v9092_v37 }
 0x248   : > { %v11729_v51 = vld [vmem:[#allocation8 + $0xa5c] sm:$0xf0]  ;;  %v9700_v40 = vld [vmem:[#allocation8 + $0x5e0] sm:$0xf0]  ;;  %v12593_v30 = vpack.c.bf16 %v3344_v47, %v3344_v47 }
 0x249   : > { %v9986_v49 = vld [vmem:[#allocation8 + $0x800] sm:$0xf]  ;;  %6526 = vmatpush.bf16.msrb.mxu2 %v10627_v50  ;;  %v10275_v56 = vor.u32 %v11729_v51, %v10274_v6  ;;  %v11493_v6 = vld [vmem:[#allocation8 + $0x304] sm:$0xf]  ;;  %v9703_v50 = vor.u32 %v11581_v38, %v9700_v40 }
 0x24a   : > { %v11657_v2 = vld [vmem:[#allocation8 + $0x81c] sm:$0xf0]  ;;  %v9348_v51 = vld [vmem:[#allocation8 + $0x320] sm:$0xf0] }
 0x24b   : > { %v10242_v54 = vld [vmem:[#allocation8 + $0xa00] sm:$0xf]  ;;  %v9987_v31 = vor.u32 %v11657_v2, %v9986_v49  ;;  %6516 = vmatpush.bf16.msrb.mxu1 %v10275_v56  ;;  %v11421_v49 = vld [vmem:[#allocation8 + $0xc4] sm:$0xf]  ;;  %v12589_v2 = vpop.f32.mrf.mxu0  ;;  %v12591_v56 = vpop.f32.mrf.mxu1 }
 0x24c   : > { %v10594_v60 = vld [vmem:[#allocation8 + $0xcc0] sm:$0xf]  ;;  %v9063_v0 = vor.u32 %v11421_v49, %v9060_v55  ;;  %v9252_v19 = vld [vmem:[#allocation8 + $0x260] sm:$0xf0] }
 0x24d   : > { %v11809_v52 = vld [vmem:[#allocation8 + $0xcdc] sm:$0xf0]  ;;  %6504 = vmatpush.bf16.msrb.mxu0 %v9987_v31  ;;  %v9636_v31 = vld [vmem:[#allocation8 + $0x560] sm:$0xf0]  ;;  %v9255_v37 = vor.u32 %v11469_v18, %v9252_v19 }
 0x24e   : > { %v11721_v20 = vld [vmem:[#allocation8 + $0xa1c] sm:$0xf0]  ;;  %v10595_v62 = vor.u32 %v11809_v52, %v10594_v60  ;;  %v9668_v60 = vld [vmem:[#allocation8 + $0x5a0] sm:$0xf0] }
 0x24f   : > { %v10243_v4 = vor.u32 %v11721_v20, %v10242_v54  ;;  %v10562_v36 = vld [vmem:[#allocation8 + $0xc80] sm:$0xf]  ;;  %v9351_v54 = vor.u32 %v11493_v6, %v9348_v51  ;;  %v11485_v52 = vld [vmem:[#allocation8 + $0x2c4] sm:$0xf]  ;;  %v9671_v20 = vor.u32 %v11573_v57, %v9668_v60 }
 0x250   : > { %6527 = vmatpush.bf16.msrb.mxu2 %v10595_v62  ;;  %v11801_v9 = vld [vmem:[#allocation8 + $0xc9c] sm:$0xf0]  ;;  %6505 = vmatmul.bf16.vlgmr.msrb.gmra.mxu0 %v12585_v13  ;;  %v11413_v62 = vld [vmem:[#allocation8 + $0x84] sm:$0xf]  ;;  %v9319_v21 = vor.u32 %v11485_v52, %v9316_v42 }
 0x251   : > { %v10563_v12 = vor.u32 %v11801_v9, %v10562_v36  ;;  %6517 = vmatpush.bf16.msrb.mxu1 %v10243_v4  ;;  %6549 = vmatpush.bf16.msra.mxu0 %v9191_v7  ;;  %v10530_v16 = vld [vmem:[#allocation8 + $0xc40] sm:$0xf]  ;;  %v9284_v4 = vld [vmem:[#allocation8 + $0x2a0] sm:$0xf0]  ;;  %v9639_v7 = vor.u32 %v11565_v32, %v9636_v31  ;;  %v12596_v36 = vpop.f32.mrf.mxu2 }
 0x252   : > { %v11793_v15 = vld [vmem:[#allocation8 + $0xc5c] sm:$0xf0]  ;;  %v9287_v59 = vor.u32 %v11477_v3, %v9284_v4  ;;  %v11461_v34 = vld [vmem:[#allocation8 + $0x204] sm:$0xf] }
 0x253   : > { %v10531_v23 = vor.u32 %v11793_v15, %v10530_v16  ;;  %v10498_v33 = vld [vmem:[#allocation8 + $0xc00] sm:$0xf]  ;;  %v3130_v25 = vpop.f32.mrf.mxu0  ;;  %v3143_v16 = vpop.f32.mrf.mxu1  ;;  %v11557_v15 = vld [vmem:[#allocation8 + $0x504] sm:$0xf] }
 0x254   : > { %6528 = vmatpush.bf16.msrb.mxu2 %v10563_v12  ;;  %v11785_v8 = vld [vmem:[#allocation8 + $0xc1c] sm:$0xf0]  ;;  %6518 = vmatmul.bf16.vlgmr.msrb.gmra.mxu1 %v12593_v30  ;;  %v12598_v12 = vpop.f32.mrf.mxu3  ;;  %v11549_v38 = vld [vmem:[#allocation8 + $0x4c4] sm:$0xf] }
 0x255   : > { %6562 = vmatpush.bf16.msra.mxu1 %v9447_v10  ;;  %6550 = vmatpush.bf16.msra.mxu0 %v9159_v14  ;;  %v10499_v22 = vor.u32 %v11785_v8, %v10498_v33  ;;  %v10978_v61 = vld [vmem:[#allocation8 + $0xfc0] sm:$0xf]  ;;  %v9031_v10 = vor.u32 %v11413_v62, %v9028_v63  ;;  %v8996_v14 = vld [vmem:[#allocation8 + $0x60] sm:$0xf0] }
 0x256   : > { %v11905_v5 = vld [vmem:[#allocation8 + $0xfdc] sm:$0xf0]  ;;  %v8999_v28 = vor.u32 %v11405_v11, %v8996_v14  ;;  %v11397_v33 = vld [vmem:[#allocation8 + $0x4] sm:$0xf] }
 0x257   : > { %v10979_v53 = vor.u32 %v11905_v5, %v10978_v61  ;;  %v10946_v9 = vld [vmem:[#allocation8 + $0xf80] sm:$0xf]  ;;  %v8964_v8 = vld [vmem:[#allocation8 + $0x20] sm:$0xf0] }
 0x258   : > { %6529 = vmatpush.bf16.msrb.mxu2 %v10531_v23  ;;  %v11897_v45 = vld [vmem:[#allocation8 + $0xf9c] sm:$0xf0]  ;;  %v9572_v40 = vld [vmem:[#allocation8 + $0x4e0] sm:$0xf0]  ;;  %v8967_v55 = vor.u32 %v11397_v33, %v8964_v8 }
 0x259   : > { %6563 = vmatpush.bf16.msra.mxu1 %v9415_v17  ;;  %6551 = vmatpush.bf16.msra.mxu0 %v9127_v27  ;;  %v10947_v39 = vor.u32 %v11897_v45, %v10946_v9  ;;  %v9604_v17 = vld [vmem:[#allocation8 + $0x520] sm:$0xf0]  ;;  %v10914_v26 = vld [vmem:[#allocation8 + $0xf40] sm:$0xf]  ;;  %v9575_v51 = vor.u32 %v11549_v38, %v9572_v40 }
 0x25a   : > { %6536 = vmatpush.bf16.msrb.mxu3 %v10979_v53  ;;  %v9607_v23 = vor.u32 %v11557_v15, %v9604_v17  ;;  %v11889_v27 = vld [vmem:[#allocation8 + $0xf5c] sm:$0xf0]  ;;  %v11709_v41 = vld [vmem:[#allocation8 + $0x9c4] sm:$0xf] }
 0x25b   : > { %v10212_v43 = vld [vmem:[#allocation8 + $0x9e0] sm:$0xf0]  ;;  %v10882_v49 = vld [vmem:[#allocation8 + $0xf00] sm:$0xf]  ;;  %v3180_v38 = vpop.f32.mrf.mxu0 }
 0x25c   : > { %6530 = vmatpush.bf16.msrb.mxu2 %v10499_v22  ;;  %v9220_v22 = vld [vmem:[#allocation8 + $0x220] sm:$0xf0]  ;;  %v3169_v57 = vpop.f32.mrf.mxu3  ;;  %v10215_v42 = vor.u32 %v11709_v41, %v10212_v43  ;;  %v10850_v32 = vld [vmem:[#allocation8 + $0xec0] sm:$0xf] }
 0x25d   : > { %6564 = vmatpush.bf16.msra.mxu1 %v9383_v35  ;;  %6552 = vmatpush.bf16.msra.mxu0 %v9095_v48  ;;  %v10915_v35 = vor.u32 %v11889_v27, %v10914_v26  ;;  %v11773_v6 = vld [vmem:[#allocation8 + $0xbc4] sm:$0xf]  ;;  %v3156_v48 = vpop.f32.mrf.mxu2  ;;  %v9223_v52 = vor.u32 %v11461_v34, %v9220_v22  ;;  %v11873_v31 = vld [vmem:[#allocation8 + $0xedc] sm:$0xf0] }
 0x25e   : > { %6537 = vmatpush.bf16.msrb.mxu3 %v10947_v39  ;;  %v10468_v47 = vld [vmem:[#allocation8 + $0xbe0] sm:$0xf0]  ;;  %v10851_v3 = vor.u32 %v11873_v31, %v10850_v32  ;;  %v10818_v14 = vld [vmem:[#allocation8 + $0xe80] sm:$0xf] }
 0x25f   : > { %v10180_v61 = vld [vmem:[#allocation8 + $0x9a0] sm:$0xf0]  ;;  %v10471_v5 = vor.u32 %v11773_v6, %v10468_v47  ;;  %v11865_v16 = vld [vmem:[#allocation8 + $0xe9c] sm:$0xf0] }
 0x260   : > { %6575 = vmatpush.bf16.msra.mxu2 %v9703_v50  ;;  %v3129_v50 = vadd.f32 %v12589_v2, %v700_v24  ;;  %v11541_v62 = vld [vmem:[#allocation8 + $0x484] sm:$0xf]  ;;  %v10819_v15 = vor.u32 %v11865_v16, %v10818_v14  ;;  %v10786_v8 = vld [vmem:[#allocation8 + $0xe40] sm:$0xf] }
 0x261   : > { %6565 = vmatpush.bf16.msra.mxu1 %v9351_v54  ;;  %6553 = vmatpush.bf16.msra.mxu0 %v9063_v0  ;;  %v11881_v54 = vld [vmem:[#allocation8 + $0xf1c] sm:$0xf0]  ;;  %v11765_v0 = vld [vmem:[#allocation8 + $0xb84] sm:$0xf] }
 0x262   : > { %6538 = vmatpush.bf16.msrb.mxu3 %v10915_v35  ;;  %v10883_v60 = vor.u32 %v11881_v54, %v10882_v49  ;;  %v9540_v53 = vld [vmem:[#allocation8 + $0x4a0] sm:$0xf0]  ;;  %v3142_v2 = vadd.f32 %v12591_v56, %v3129_v50  ;;  %v11857_v34 = vld [vmem:[#allocation8 + $0xe5c] sm:$0xf0]  ;;  %v3193_v50 = vpop.f32.mrf.mxu1 }
 0x263   : > { %v9543_v63 = vor.u32 %v11541_v62, %v9540_v53  ;;  %v9508_v9 = vld [vmem:[#allocation8 + $0x460] sm:$0xf0]  ;;  %v10787_v35 = vor.u32 %v11857_v34, %v10786_v8  ;;  %v10754_v47 = vld [vmem:[#allocation8 + $0xe00] sm:$0xf] }
 0x264   : > { %6576 = vmatpush.bf16.msra.mxu2 %v9671_v20  ;;  %v11701_v20 = vld [vmem:[#allocation8 + $0x984] sm:$0xf]  ;;  %v3155_v56 = vadd.f32 %v12596_v36, %v3142_v2 }
 0x265   : > { %6566 = vmatpush.bf16.msra.mxu1 %v9319_v21  ;;  %6554 = vmatpush.bf16.msra.mxu0 %v9031_v10  ;;  %v10436_v21 = vld [vmem:[#allocation8 + $0xba0] sm:$0xf0]  ;;  %v10183_v4 = vor.u32 %v11701_v20, %v10180_v61 }
 0x266   : > { %6539 = vmatpush.bf16.msrb.mxu3 %v10883_v60  ;;  %v10439_v45 = vor.u32 %v11765_v0, %v10436_v21  ;;  %v11693_v10 = vld [vmem:[#allocation8 + $0x944] sm:$0xf]  ;;  %v3168_v36 = vadd.f32 %v12598_v12, %v3155_v56  ;;  %v11849_v12 = vld [vmem:[#allocation8 + $0xe1c] sm:$0xf0] }
 0x267   : > { %v10148_v11 = vld [vmem:[#allocation8 + $0x960] sm:$0xf0]  ;;  %v10755_v49 = vor.u32 %v11849_v12, %v10754_v47 }
 0x268   : > { %6577 = vmatpush.bf16.msra.mxu2 %v9639_v7  ;;  %v11533_v7 = vld [vmem:[#allocation8 + $0x444] sm:$0xf]  ;;  %v10151_v17 = vor.u32 %v11693_v10, %v10148_v11 }
 0x269   : > { %6567 = vmatpush.bf16.msra.mxu1 %v9287_v59  ;;  %6555 = vmatpush.bf16.msra.mxu0 %v8999_v28  ;;  %v11757_v25 = vld [vmem:[#allocation8 + $0xb44] sm:$0xf]  ;;  %v9511_v39 = vor.u32 %v11533_v7, %v9508_v9  ;;  %v3182_v9 = vpop.f32.mrf.mxu0 }
 0x26a   : > { %v10404_v59 = vld [vmem:[#allocation8 + $0xb60] sm:$0xf0]  ;;  %6540 = vmatpush.bf16.msrb.mxu3 %v10851_v3  ;;  %v12613_v3 = vpop.f32.mrf.mxu3 }
 0x26b   : > { %v11525_v18 = vld [vmem:[#allocation8 + $0x404] sm:$0xf] }
 0x26c   : > { %6578 = vmatpush.bf16.msra.mxu2 %v9607_v23  ;;  %v9476_v19 = vld [vmem:[#allocation8 + $0x420] sm:$0xf0]  ;;  %v10407_v23 = vor.u32 %v11757_v25, %v10404_v59  ;;  %v3195_v25 = vpop.f32.mrf.mxu1 }
 0x26d   : > { %6568 = vmatpush.bf16.msra.mxu1 %v9255_v37  ;;  %6556 = vmatpush.bf16.msra.mxu0 %v8967_v55  ;;  %v11685_v24 = vld [vmem:[#allocation8 + $0x904] sm:$0xf]  ;;  %v9479_v28 = vor.u32 %v11525_v18, %v9476_v19 }
 0x26e   : > { %v10116_v26 = vld [vmem:[#allocation8 + $0x920] sm:$0xf0]  ;;  %6541 = vmatpush.bf16.msrb.mxu3 %v10819_v15 }
 0x26f   : > { %v11749_v27 = vld [vmem:[#allocation8 + $0xb04] sm:$0xf]  ;;  %v10119_v37 = vor.u32 %v11685_v24, %v10116_v26  ;;  %v9194_v24 = vld [vmem:[#allocation8 + $0x1c8] sm:$0xf] }
 0x270   : > { %6579 = vmatpush.bf16.msra.mxu2 %v9575_v51  ;;  %6557 = vmatmul.bf16.vlgmr.msra.gmra.mxu0 %v12562_v44  ;;  %v10372_v33 = vld [vmem:[#allocation8 + $0xb20] sm:$0xf0]  ;;  %v3181_v51 = vadd.f32 %v3180_v38, %v3168_v36  ;;  %v11522_v36 = vld [vmem:[#allocation8 + $0x3e4] sm:$0xf0] }
 0x271   : > { %6569 = vmatpush.bf16.msra.mxu1 %v9223_v52  ;;  %6601 = vmatpush.bf16.msrb.mxu0 %v10215_v42  ;;  %v11677_v22 = vld [vmem:[#allocation8 + $0x8c4] sm:$0xf]  ;;  %v10375_v40 = vor.u32 %v11749_v27, %v10372_v33  ;;  %v11458_v27 = vld [vmem:[#allocation8 + $0x1e4] sm:$0xf0] }
 0x272   : > { %v10084_v41 = vld [vmem:[#allocation8 + $0x8e0] sm:$0xf0]  ;;  %6542 = vmatpush.bf16.msrb.mxu3 %v10787_v35  ;;  %v12607_v55 = vadd.f32 %v3193_v50, %v3181_v51  ;;  %v9195_v38 = vor.u32 %v11458_v27, %v9194_v24  ;;  %v9418_v51 = vld [vmem:[#allocation8 + $0x388] sm:$0xf] }
 0x273   : > { %v11741_v43 = vld [vmem:[#allocation8 + $0xac4] sm:$0xf]  ;;  %v10087_v57 = vor.u32 %v11677_v22, %v10084_v41  ;;  %v11514_v50 = vld [vmem:[#allocation8 + $0x3a4] sm:$0xf0] }
 0x274   : > { %6580 = vmatpush.bf16.msra.mxu2 %v9543_v63  ;;  %6570 = vmatmul.bf16.vlgmr.msra.gmra.mxu1 %v12564_v46  ;;  %v10340_v6 = vld [vmem:[#allocation8 + $0xae0] sm:$0xf0]  ;;  %v3289_v61 = vmul.f32 0.044715, %v12607_v55  ;;  %v12611_v63 = vpop.f32.mrf.mxu2  ;;  %v9322_v24 = vld [vmem:[#allocation8 + $0x2c8] sm:$0xf] }
 0x275   : > { %6614 = vmatpush.bf16.msrb.mxu1 %v10471_v5  ;;  %6602 = vmatpush.bf16.msrb.mxu0 %v10183_v4  ;;  %v11645_v48 = vld [vmem:[#allocation8 + $0x7c4] sm:$0xf]  ;;  %v10343_v52 = vor.u32 %v11741_v43, %v10340_v6  ;;  %v9162_v43 = vld [vmem:[#allocation8 + $0x188] sm:$0xf] }
 0x276   : > { %v9956_v54 = vld [vmem:[#allocation8 + $0x7e0] sm:$0xf0]  ;;  %6543 = vmatpush.bf16.msrb.mxu3 %v10755_v49  ;;  %v3297_v2 = vmul.f32 %v3289_v61, %v12607_v55  ;;  %v11450_v6 = vld [vmem:[#allocation8 + $0x1a4] sm:$0xf0] }
 0x277   : > { %v9959_v60 = vor.u32 %v11645_v48, %v9956_v54  ;;  %v11669_v42 = vld [vmem:[#allocation8 + $0x884] sm:$0xf]  ;;  %v701_v48 = vperm.slane %v12559_v58, 7  ;;  %v9163_v54 = vor.u32 %v11450_v6, %v9162_v43  ;;  %v11506_v61 = vld [vmem:[#allocation8 + $0x364] sm:$0xf0] }
 0x278   : > { %6581 = vmatpush.bf16.msra.mxu2 %v9511_v39  ;;  %v10052_v20 = vld [vmem:[#allocation8 + $0x8a0] sm:$0xf0]  ;;  %v11418_v43 = vld [vmem:[#allocation8 + $0xa4] sm:$0xf0] }
 0x279   : > { %6615 = vmatpush.bf16.msrb.mxu1 %v10439_v45  ;;  %6603 = vmatpush.bf16.msrb.mxu0 %v10151_v17  ;;  %v11733_v5 = vld [vmem:[#allocation8 + $0xa84] sm:$0xf]  ;;  %v10055_v21 = vor.u32 %v11669_v42, %v10052_v20  ;;  %v3305_v45 = vmul.f32 %v3297_v2, %v12607_v55  ;;  %v9419_v20 = vor.u32 %v11514_v50, %v9418_v51  ;;  %v9290_v6 = vld [vmem:[#allocation8 + $0x288] sm:$0xf] }
 0x27a   : > { %v10308_v0 = vld [vmem:[#allocation8 + $0xaa0] sm:$0xf0]  ;;  %6588 = vmatpush.bf16.msra.mxu3 %v9959_v60  ;;  %v11442_v60 = vld [vmem:[#allocation8 + $0x164] sm:$0xf0] }
 0x27b   : > { %v11637_v62 = vld [vmem:[#allocation8 + $0x784] sm:$0xf]  ;;  %v10311_v31 = vor.u32 %v11733_v5, %v10308_v0  ;;  %v3313_v59 = vadd.f32 %v3305_v45, %v12607_v55  ;;  %v11482_v51 = vld [vmem:[#allocation8 + $0x2a4] sm:$0xf0] }
 0x27c   : > { %6582 = vmatpush.bf16.msra.mxu2 %v9479_v28  ;;  %v9924_v53 = vld [vmem:[#allocation8 + $0x7a0] sm:$0xf0]  ;;  %v9450_v28 = vld [vmem:[#allocation8 + $0x3c8] sm:$0xf]  ;;  %v3208_v35 = vpop.f32.mrf.mxu2 }
 0x27d   : > { %6616 = vmatpush.bf16.msrb.mxu1 %v10407_v23  ;;  %6604 = vmatpush.bf16.msrb.mxu0 %v10119_v37  ;;  %v9927_v32 = vor.u32 %v11637_v62, %v9924_v53  ;;  %v11661_v4 = vld [vmem:[#allocation8 + $0x844] sm:$0xf]  ;;  %v3321_v26 = vmul.f32 0.7978846, %v3313_v59  ;;  %v9451_v41 = vor.u32 %v11522_v36, %v9450_v28  ;;  %v3281_v62 = vmul.f32 0.5, %v12607_v55 }
 0x27e   : > { %v10020_v7 = vld [vmem:[#allocation8 + $0x860] sm:$0xf0]  ;;  %v3232_v28 = vpop.f32.mrf.mxu0 }
 0x27f   : > { %v11725_v10 = vld [vmem:[#allocation8 + $0xa44] sm:$0xf]  ;;  %6589 = vmatpush.bf16.msra.mxu3 %v9927_v32  ;;  %v10023_v14 = vor.u32 %v11661_v4, %v10020_v7  ;;  %12014 = vtanh.f32 %v3321_v26  ;;  %v9098_v4 = vld [vmem:[#allocation8 + $0x108] sm:$0xf] }
 0x280   : > { %v10276_v11 = vld [vmem:[#allocation8 + $0xa60] sm:$0xf0]  ;;  %v11434_v7 = vld [vmem:[#allocation8 + $0x124] sm:$0xf0] }
 0x281   : > { %6617 = vmatpush.bf16.msrb.mxu1 %v10375_v40  ;;  %6605 = vmatpush.bf16.msrb.mxu0 %v10087_v57  ;;  %v11629_v39 = vld [vmem:[#allocation8 + $0x744] sm:$0xf]  ;;  %v10279_v18 = vor.u32 %v11725_v10, %v10276_v11  ;;  %v3221_v40 = vpop.f32.mrf.mxu3  ;;  %v9130_v57 = vld [vmem:[#allocation8 + $0x148] sm:$0xf] }
 0x282   : > { %v9892_v56 = vld [vmem:[#allocation8 + $0x760] sm:$0xf0]  ;;  %v9354_v10 = vld [vmem:[#allocation8 + $0x308] sm:$0xf] }
 0x283   : > { %v11653_v16 = vld [vmem:[#allocation8 + $0x804] sm:$0xf]  ;;  %v9895_v17 = vor.u32 %v11629_v39, %v9892_v56  ;;  %v11498_v11 = vld [vmem:[#allocation8 + $0x324] sm:$0xf0]  ;;  %v3207_v39 = vadd.f32 %v12611_v63, %v701_v48 }
 0x284   : > { %v9988_v15 = vld [vmem:[#allocation8 + $0x820] sm:$0xf0]  ;;  %v11490_v26 = vld [vmem:[#allocation8 + $0x2e4] sm:$0xf0] }
 0x285   : > { %6618 = vmatpush.bf16.msrb.mxu1 %v10343_v52  ;;  %6606 = vmatpush.bf16.msrb.mxu0 %v10055_v21  ;;  %v11717_v19 = vld [vmem:[#allocation8 + $0xa04] sm:$0xf]  ;;  %v9991_v34 = vor.u32 %v11653_v16, %v9988_v15  ;;  %v9386_v52 = vld [vmem:[#allocation8 + $0x348] sm:$0xf]  ;;  %v12015_v42 = vpop.eup %12014  ;;  %v9099_v15 = vor.u32 %v11434_v7, %v9098_v4  ;;  %v3220_v63 = vadd.f32 %v12613_v3, %v3207_v39 }
 0x286   : > { %v10244_v23 = vld [vmem:[#allocation8 + $0xa20] sm:$0xf0]  ;;  %6590 = vmatpush.bf16.msra.mxu3 %v9895_v17  ;;  %v3337_v53 = vadd.f32 1.0, %v12015_v42  ;;  %v9387_v9 = vor.u32 %v11506_v61, %v9386_v52  ;;  %v9066_v17 = vld [vmem:[#allocation8 + $0xc8] sm:$0xf]  ;;  %v3234_v61 = vpop.f32.mrf.mxu0 }
 0x287   : > { %v11621_v33 = vld [vmem:[#allocation8 + $0x704] sm:$0xf]  ;;  %v10247_v22 = vor.u32 %v11717_v19, %v10244_v23  ;;  %v9355_v19 = vor.u32 %v11498_v11, %v9354_v10  ;;  %v9258_v52 = vld [vmem:[#allocation8 + $0x248] sm:$0xf] }
 0x288   : > { %v9860_v8 = vld [vmem:[#allocation8 + $0x720] sm:$0xf0]  ;;  %v3345_v32 = vmul.f32 %v3337_v53, %v3281_v62  ;;  %v3258_v48 = vpop.f32.mrf.mxu2  ;;  %v9226_v7 = vld [vmem:[#allocation8 + $0x208] sm:$0xf] }
 0x289   : > { %6619 = vmatpush.bf16.msrb.mxu1 %v10311_v31  ;;  %6607 = vmatpush.bf16.msrb.mxu0 %v10023_v14  ;;  %v9863_v37 = vor.u32 %v11621_v33, %v9860_v8  ;;  %v11613_v47 = vld [vmem:[#allocation8 + $0x6c4] sm:$0xf]  ;;  %v9131_v31 = vor.u32 %v11442_v60, %v9130_v57  ;;  %v9002_v57 = vld [vmem:[#allocation8 + $0x48] sm:$0xf] }
 0x28a   : > { %v9828_v12 = vld [vmem:[#allocation8 + $0x6e0] sm:$0xf0]  ;;  %v12621_v25 = vpack.c.bf16 %v3345_v32, %v3345_v32  ;;  %v11410_v60 = vld [vmem:[#allocation8 + $0x64] sm:$0xf0] }
 0x28b   : > { %6591 = vmatpush.bf16.msra.mxu3 %v9863_v37  ;;  %v9831_v49 = vor.u32 %v11613_v47, %v9828_v12  ;;  %v11837_v5 = vld [vmem:[#allocation8 + $0xdc4] sm:$0xf]  ;;  %v3233_v37 = vadd.f32 %v3232_v28, %v3220_v63  ;;  %v11402_v32 = vld [vmem:[#allocation8 + $0x24] sm:$0xf0] }
 0x28c   : > { %v10724_v0 = vld [vmem:[#allocation8 + $0xde0] sm:$0xf0]  ;;  %6531 = vmatmul.bf16.vlgmr.msrb.gmra.mxu2 %v12621_v25  ;;  %v11714_v11 = vld [vmem:[#allocation8 + $0x9e4] sm:$0xf0] }
 0x28d   : > { %6620 = vmatpush.bf16.msrb.mxu1 %v10279_v18  ;;  %6608 = vmatpush.bf16.msrb.mxu0 %v9991_v34  ;;  %v11605_v58 = vld [vmem:[#allocation8 + $0x684] sm:$0xf]  ;;  %v10727_v45 = vor.u32 %v11837_v5, %v10724_v0  ;;  %v11426_v18 = vld [vmem:[#allocation8 + $0xe4] sm:$0xf0]  ;;  %v3245_v34 = vpop.f32.mrf.mxu1 }
 0x28e   : > { %v9796_v2 = vld [vmem:[#allocation8 + $0x6a0] sm:$0xf0]  ;;  %v3246_v47 = vadd.f32 %v3245_v34, %v3233_v37  ;;  %v11474_v5 = vld [vmem:[#allocation8 + $0x264] sm:$0xf0] }
 0x28f   : > { %6592 = vmatpush.bf16.msra.mxu3 %v9831_v49  ;;  %v9799_v21 = vor.u32 %v11605_v58, %v9796_v2  ;;  %v11829_v55 = vld [vmem:[#allocation8 + $0xd84] sm:$0xf]  ;;  %6627 = vmatpush.bf16.msrb.mxu2 %v10727_v45  ;;  %v9291_v49 = vor.u32 %v11482_v51, %v9290_v6  ;;  %v9003_v2 = vor.u32 %v11410_v60, %v9002_v57  ;;  %v10218_v45 = vld [vmem:[#allocation8 + $0x9c8] sm:$0xf] }
 0x290   : > { %6609 = vmatmul.bf16.vlgmr.msrb.gmra.mxu0 %v12585_v13  ;;  %v10692_v56 = vld [vmem:[#allocation8 + $0xda0] sm:$0xf0]  ;;  %v3259_v42 = vadd.f32 %v3258_v48, %v3246_v47  ;;  %v11778_v39 = vld [vmem:[#allocation8 + $0xbe4] sm:$0xf0] }
 0x291   : > { %6621 = vmatpush.bf16.msrb.mxu1 %v10247_v22  ;;  %6653 = vmatpush.bf16.msra.mxu0 %v9195_v38  ;;  %v11597_v59 = vld [vmem:[#allocation8 + $0x644] sm:$0xf]  ;;  %v10695_v23 = vor.u32 %v11829_v55, %v10692_v56  ;;  %v9067_v22 = vor.u32 %v11426_v18, %v9066_v17  ;;  %v9323_v38 = vor.u32 %v11490_v26, %v9322_v24  ;;  %v10474_v55 = vld [vmem:[#allocation8 + $0xbc8] sm:$0xf] }
 0x292   : > { %v9764_v14 = vld [vmem:[#allocation8 + $0x660] sm:$0xf0]  ;;  %v10219_v18 = vor.u32 %v11714_v11, %v10218_v45  ;;  %v10475_v24 = vor.u32 %v11778_v39, %v10474_v55  ;;  %v11706_v63 = vld [vmem:[#allocation8 + $0x9a4] sm:$0xf0] }
 0x293   : > { %6593 = vmatpush.bf16.msra.mxu3 %v9799_v21  ;;  %v9767_v16 = vor.u32 %v11597_v59, %v9764_v14  ;;  %v11821_v27 = vld [vmem:[#allocation8 + $0xd44] sm:$0xf]  ;;  %6628 = vmatpush.bf16.msrb.mxu2 %v10695_v23  ;;  %v8970_v21 = vld [vmem:[#allocation8 + $0x8] sm:$0xf] }
 0x294   : > { %6622 = vmatmul.bf16.vlgmr.msrb.gmra.mxu1 %v12593_v30  ;;  %v10660_v36 = vld [vmem:[#allocation8 + $0xd60] sm:$0xf0]  ;;  %v10442_v28 = vld [vmem:[#allocation8 + $0xb88] sm:$0xf] }
 0x295   : > { %6666 = vmatpush.bf16.msra.mxu1 %v9451_v41  ;;  %6654 = vmatpush.bf16.msra.mxu0 %v9163_v54  ;;  %v11589_v33 = vld [vmem:[#allocation8 + $0x604] sm:$0xf]  ;;  %v10663_v40 = vor.u32 %v11821_v27, %v10660_v36  ;;  %v9034_v41 = vld [vmem:[#allocation8 + $0x88] sm:$0xf]  ;;  %v3247_v53 = vpop.f32.mrf.mxu1 }
 0x296   : > { %v9732_v8 = vld [vmem:[#allocation8 + $0x620] sm:$0xf0]  ;;  %v9035_v12 = vor.u32 %v11418_v43, %v9034_v41  ;;  %v10186_v27 = vld [vmem:[#allocation8 + $0x988] sm:$0xf] }
 0x297   : > { %6594 = vmatpush.bf16.msra.mxu3 %v9767_v16  ;;  %v9735_v35 = vor.u32 %v11589_v33, %v9732_v8  ;;  %v11813_v50 = vld [vmem:[#allocation8 + $0xd04] sm:$0xf]  ;;  %6629 = vmatpush.bf16.msrb.mxu2 %v10663_v40  ;;  %v8971_v16 = vor.u32 %v11402_v32, %v8970_v21  ;;  %v11770_v36 = vld [vmem:[#allocation8 + $0xba4] sm:$0xf0] }
 0x298   : > { %v10628_v3 = vld [vmem:[#allocation8 + $0xd20] sm:$0xf0]  ;;  %v10154_v37 = vld [vmem:[#allocation8 + $0x948] sm:$0xf] }
 0x299   : > { %6667 = vmatpush.bf16.msra.mxu1 %v9419_v20  ;;  %6655 = vmatpush.bf16.msra.mxu0 %v9131_v31  ;;  %v10631_v54 = vor.u32 %v11813_v50, %v10628_v3  ;;  %v3271_v20 = vpop.f32.mrf.mxu3  ;;  %v11805_v0 = vld [vmem:[#allocation8 + $0xcc4] sm:$0xf]  ;;  %v9259_v31 = vor.u32 %v11474_v5, %v9258_v52  ;;  %v11698_v41 = vld [vmem:[#allocation8 + $0x964] sm:$0xf0] }
 0x29a   : > { %v10596_v62 = vld [vmem:[#allocation8 + $0xce0] sm:$0xf0]  ;;  %v12626_v58 = vadd.f32 %v3271_v20, %v3259_v42  ;;  %v10410_v43 = vld [vmem:[#allocation8 + $0xb48] sm:$0xf] }
 0x29b   : > { %6595 = vmatpush.bf16.msra.mxu3 %v9735_v35  ;;  %6630 = vmatpush.bf16.msrb.mxu2 %v10631_v54  ;;  %v10599_v4 = vor.u32 %v11805_v0, %v10596_v62  ;;  %v11797_v56 = vld [vmem:[#allocation8 + $0xc84] sm:$0xf]  ;;  %v10187_v35 = vor.u32 %v11706_v63, %v10186_v27  ;;  %v11762_v6 = vld [vmem:[#allocation8 + $0xb64] sm:$0xf0] }
 0x29c   : > { %v3290_v10 = vmul.f32 0.044715, %v12626_v58  ;;  %v10564_v59 = vld [vmem:[#allocation8 + $0xca0] sm:$0xf0]  ;;  %6583 = vmatmul.bf16.vlgmr.msra.gmra.mxu2 %v12566_v29  ;;  %v9706_v3 = vld [vmem:[#allocation8 + $0x5c8] sm:$0xf] }
 0x29d   : > { %6668 = vmatpush.bf16.msra.mxu1 %v9387_v9  ;;  %6656 = vmatpush.bf16.msra.mxu0 %v9099_v15  ;;  %v11466_v9 = vld [vmem:[#allocation8 + $0x224] sm:$0xf0]  ;;  %v3260_v15 = vpop.f32.mrf.mxu2  ;;  %v10567_v26 = vor.u32 %v11797_v56, %v10564_v59  ;;  %v11789_v33 = vld [vmem:[#allocation8 + $0xc44] sm:$0xf] }
 0x29e   : > { %v3298_v14 = vmul.f32 %v3290_v10, %v12626_v58  ;;  %v9227_v17 = vor.u32 %v11466_v9, %v9226_v7  ;;  %v10532_v8 = vld [vmem:[#allocation8 + $0xc60] sm:$0xf0]  ;;  %v11586_v47 = vld [vmem:[#allocation8 + $0x5e4] sm:$0xf0]  ;;  %v3282_v7 = vmul.f32 0.5, %v12626_v58 }
 0x29f   : > { %6631 = vmatpush.bf16.msrb.mxu2 %v10599_v4  ;;  %v10535_v40 = vor.u32 %v11789_v33, %v10532_v8  ;;  %v11781_v51 = vld [vmem:[#allocation8 + $0xc04] sm:$0xf]  ;;  %v10122_v57 = vld [vmem:[#allocation8 + $0x908] sm:$0xf]  ;;  %v9707_v52 = vor.u32 %v11586_v47, %v9706_v3 }
 0x2a0   : > { %v10500_v50 = vld [vmem:[#allocation8 + $0xc20] sm:$0xf0]  ;;  %v11690_v60 = vld [vmem:[#allocation8 + $0x924] sm:$0xf0] }
 0x2a1   : > { %6669 = vmatpush.bf16.msra.mxu1 %v9355_v19  ;;  %6657 = vmatpush.bf16.msra.mxu0 %v9067_v22  ;;  %v3306_v19 = vmul.f32 %v3298_v14, %v12626_v58  ;;  %v3273_v23 = vpop.f32.mrf.mxu3  ;;  %v12635_v48 = vld [vmem:[#allocation10] sm:$0xff]  ;;  %v10503_v54 = vor.u32 %v11781_v51, %v10500_v50  ;;  %v10378_v42 = vld [vmem:[#allocation8 + $0xb08] sm:$0xf]  ;;  %v10123_v62 = vor.u32 %v11690_v60, %v10122_v57  ;;  %v6454_v45 = vpop.f32.mrf.mxu0 }
 0x2a2   : > { %v11754_v20 = vld [vmem:[#allocation8 + $0xb24] sm:$0xf0]  ;;  %v3869_v61 = vperm.slane %v12635_v48, 0  ;;  %v11901_v53 = vld [vmem:[#allocation8 + $0xfc4] sm:$0xf] }
 0x2a3   : > { %v3314_v34 = vadd.f32 %v3306_v19, %v12626_v58  ;;  %6632 = vmatpush.bf16.msrb.mxu2 %v10567_v26  ;;  %v9674_v5 = vld [vmem:[#allocation8 + $0x588] sm:$0xf]  ;;  %v10379_v21 = vor.u32 %v11754_v20, %v10378_v42  ;;  %v10980_v32 = vld [vmem:[#allocation8 + $0xfe0] sm:$0xf0]  ;;  %v6467_v56 = vpop.f32.mrf.mxu1 }
 0x2a4   : > { %v11578_v0 = vld [vmem:[#allocation8 + $0x5a4] sm:$0xf0]  ;;  %v6455_v39 = vadd.f32 %v6454_v45, %v3869_v61  ;;  %v11893_v58 = vld [vmem:[#allocation8 + $0xf84] sm:$0xf] }
 0x2a5   : > { %6670 = vmatpush.bf16.msra.mxu1 %v9323_v38  ;;  %6658 = vmatpush.bf16.msra.mxu0 %v9035_v12  ;;  %v3322_v22 = vmul.f32 0.7978846, %v3314_v34  ;;  %v10443_v38 = vor.u32 %v11770_v36, %v10442_v28  ;;  %v10155_v12 = vor.u32 %v11698_v41, %v10154_v37  ;;  %v11682_v4 = vld [vmem:[#allocation8 + $0x8e4] sm:$0xf0]  ;;  %v9675_v10 = vor.u32 %v11578_v0, %v9674_v5  ;;  %v10948_v63 = vld [vmem:[#allocation8 + $0xfa0] sm:$0xf0] }
 0x2a6   : > { %v10346_v11 = vld [vmem:[#allocation8 + $0xac8] sm:$0xf]  ;;  %v10951_v37 = vor.u32 %v11893_v58, %v10948_v63  ;;  %v10916_v3 = vld [vmem:[#allocation8 + $0xf60] sm:$0xf0]  ;;  %v11510_v58 = vld [vmem:[#allocation8 + $0x38c] sm:$0xf] }
 0x2a7   : > { %12016 = vtanh.f32 %v3322_v22  ;;  %6633 = vmatpush.bf16.msrb.mxu2 %v10535_v40  ;;  %v11746_v55 = vld [vmem:[#allocation8 + $0xae4] sm:$0xf0]  ;;  %v11877_v42 = vld [vmem:[#allocation8 + $0xf04] sm:$0xf] }
 0x2a8   : > { %v9642_v59 = vld [vmem:[#allocation8 + $0x548] sm:$0xf]  ;;  %v10347_v19 = vor.u32 %v11746_v55, %v10346_v11  ;;  %v10884_v5 = vld [vmem:[#allocation8 + $0xf20] sm:$0xf0] }
 0x2a9   : > { %6671 = vmatpush.bf16.msra.mxu1 %v9291_v49  ;;  %6659 = vmatpush.bf16.msra.mxu0 %v9003_v2  ;;  %v10411_v49 = vor.u32 %v11762_v6, %v10410_v43  ;;  %v11570_v14 = vld [vmem:[#allocation8 + $0x564] sm:$0xf0]  ;;  %v6456_v51 = vpop.f32.mrf.mxu0  ;;  %v10887_v55 = vor.u32 %v11877_v42, %v10884_v5  ;;  %v11494_v42 = vld [vmem:[#allocation8 + $0x30c] sm:$0xf] }
 0x2aa   : > { %v10058_v23 = vld [vmem:[#allocation8 + $0x888] sm:$0xf]  ;;  %v9643_v27 = vor.u32 %v11570_v14, %v9642_v59 }
 0x2ab   : > { %6634 = vmatpush.bf16.msrb.mxu2 %v10503_v54  ;;  %v10314_v28 = vld [vmem:[#allocation8 + $0xa88] sm:$0xf] }
 0x2ac   : > { %v11738_v36 = vld [vmem:[#allocation8 + $0xaa4] sm:$0xf0] }
 0x2ad   : > { %6672 = vmatpush.bf16.msra.mxu1 %v9259_v31  ;;  %6660 = vmatpush.bf16.msra.mxu0 %v8971_v16  ;;  %v12017_v2 = vpop.eup %12016  ;;  %v10090_v31 = vld [vmem:[#allocation8 + $0x8c8] sm:$0xf]  ;;  %v10315_v22 = vor.u32 %v11738_v36, %v10314_v28  ;;  %v6493_v6 = vpop.f32.mrf.mxu3 }
 0x2ae   : > { %v3338_v9 = vadd.f32 1.0, %v12017_v2  ;;  %6635 = vmatmul.bf16.vlgmr.msrb.gmra.mxu2 %v12621_v25  ;;  %v10091_v15 = vor.u32 %v11682_v4, %v10090_v31  ;;  %v9610_v33 = vld [vmem:[#allocation8 + $0x508] sm:$0xf]  ;;  %v9196_v31 = vld [vmem:[#allocation8 + $0x1e8] sm:$0xf0] }
 0x2af   : > { %6679 = vmatpush.bf16.msra.mxu2 %v9707_v52  ;;  %v11562_v8 = vld [vmem:[#allocation8 + $0x524] sm:$0xf0]  ;;  %v11518_v4 = vld [vmem:[#allocation8 + $0x3cc] sm:$0xf] }
 0x2b0   : > { %6661 = vmatmul.bf16.vlgmr.msra.gmra.mxu0 %v12562_v44  ;;  %v3346_v16 = vmul.f32 %v3338_v9, %v3282_v7  ;;  %v10026_v40 = vld [vmem:[#allocation8 + $0x848] sm:$0xf]  ;;  %v9611_v50 = vor.u32 %v11562_v8, %v9610_v33  ;;  %v9452_v7 = vld [vmem:[#allocation8 + $0x3e8] sm:$0xf0]  ;;  %v11861_v33 = vld [vmem:[#allocation8 + $0xe84] sm:$0xf] }
 0x2b1   : > { %6673 = vmatpush.bf16.msra.mxu1 %v9227_v17  ;;  %6705 = vmatpush.bf16.msrb.mxu0 %v10219_v18  ;;  %v6468_v17 = vadd.f32 %v6467_v56, %v6455_v39  ;;  %v10983_v18 = vor.u32 %v11901_v53, %v10980_v32  ;;  %v11666_v41 = vld [vmem:[#allocation8 + $0x864] sm:$0xf0]  ;;  %v11454_v32 = vld [vmem:[#allocation8 + $0x1cc] sm:$0xf]  ;;  %v9455_v14 = vor.u32 %v11518_v4, %v9452_v7  ;;  %v10820_v8 = vld [vmem:[#allocation8 + $0xea0] sm:$0xf0] }
 0x2b2   : > { %v12640_v26 = vpack.c.bf16 %v3346_v16, %v3346_v16  ;;  %v10282_v47 = vld [vmem:[#allocation8 + $0xa48] sm:$0xf]  ;;  %v10027_v52 = vor.u32 %v11666_v41, %v10026_v40  ;;  %v9199_v59 = vor.u32 %v11454_v32, %v9196_v31  ;;  %v11869_v16 = vld [vmem:[#allocation8 + $0xec4] sm:$0xf]  ;;  %v11422_v4 = vld [vmem:[#allocation8 + $0xcc] sm:$0xf] }
 0x2b3   : > { %6680 = vmatpush.bf16.msra.mxu2 %v9675_v10  ;;  %v9578_v54 = vld [vmem:[#allocation8 + $0x4c8] sm:$0xf]  ;;  %v9068_v7 = vld [vmem:[#allocation8 + $0xe8] sm:$0xf0] }
 0x2b4   : > { %6674 = vmatmul.bf16.vlgmr.msra.gmra.mxu1 %v12564_v46  ;;  %6544 = vmatmul.bf16.vlgmr.msrb.gmra.mxu3 %v12640_v26  ;;  %v11554_v57 = vld [vmem:[#allocation8 + $0x4e4] sm:$0xf0] }
 0x2b5   : > { %6718 = vmatpush.bf16.msrb.mxu1 %v10475_v24  ;;  %6706 = vmatpush.bf16.msrb.mxu0 %v10187_v35  ;;  %v11674_v24 = vld [vmem:[#allocation8 + $0x8a4] sm:$0xf0]  ;;  %v6480_v35 = vpop.f32.mrf.mxu2  ;;  %v9579_v53 = vor.u32 %v11554_v57, %v9578_v54  ;;  %v6495_v56 = vpop.f32.mrf.mxu3  ;;  %v11430_v54 = vld [vmem:[#allocation8 + $0x10c] sm:$0xf] }
 0x2b6   : > { %v10059_v34 = vor.u32 %v11674_v24, %v10058_v23  ;;  %6640 = vmatpush.bf16.msrb.mxu3 %v10983_v18  ;;  %v6481_v43 = vadd.f32 %v6480_v35, %v6468_v17  ;;  %v9994_v0 = vld [vmem:[#allocation8 + $0x808] sm:$0xf]  ;;  %v11446_v17 = vld [vmem:[#allocation8 + $0x18c] sm:$0xf] }
 0x2b7   : > { %6681 = vmatpush.bf16.msra.mxu2 %v9643_v27  ;;  %v10250_v2 = vld [vmem:[#allocation8 + $0xa08] sm:$0xf]  ;;  %v9420_v23 = vld [vmem:[#allocation8 + $0x3a8] sm:$0xf0] }
 0x2b8   : > { %v12643_v60 = vadd.f32 %v6493_v6, %v6481_v43  ;;  %v9546_v45 = vld [vmem:[#allocation8 + $0x488] sm:$0xf]  ;;  %v9423_v36 = vor.u32 %v11510_v58, %v9420_v23  ;;  %v10823_v43 = vor.u32 %v11861_v33, %v10820_v8  ;;  %v9100_v57 = vld [vmem:[#allocation8 + $0x128] sm:$0xf0] }
 0x2b9   : > { %6719 = vmatpush.bf16.msrb.mxu1 %v10443_v38  ;;  %6707 = vmatpush.bf16.msrb.mxu0 %v10155_v12  ;;  %v11885_v38 = vld [vmem:[#allocation8 + $0xf44] sm:$0xf]  ;;  %v11730_v12 = vld [vmem:[#allocation8 + $0xa64] sm:$0xf0]  ;;  %v9036_v58 = vld [vmem:[#allocation8 + $0xa8] sm:$0xf0] }
 0x2ba   : > { %6641 = vmatpush.bf16.msrb.mxu3 %v10951_v37  ;;  %v10919_v20 = vor.u32 %v11885_v38, %v10916_v3  ;;  %v10283_v61 = vor.u32 %v11730_v12, %v10282_v47  ;;  %v11546_v10 = vld [vmem:[#allocation8 + $0x4a4] sm:$0xf0]  ;;  %v9132_v37 = vld [vmem:[#allocation8 + $0x168] sm:$0xf0]  ;;  %v11853_v47 = vld [vmem:[#allocation8 + $0xe44] sm:$0xf] }
 0x2bb   : > { %6682 = vmatpush.bf16.msra.mxu2 %v9611_v50  ;;  %v9547_v18 = vor.u32 %v11546_v10, %v9546_v45  ;;  %v9514_v24 = vld [vmem:[#allocation8 + $0x448] sm:$0xf]  ;;  %v9388_v38 = vld [vmem:[#allocation8 + $0x368] sm:$0xf0]  ;;  %v10788_v12 = vld [vmem:[#allocation8 + $0xe60] sm:$0xf0] }
 0x2bc   : > { %v11538_v27 = vld [vmem:[#allocation8 + $0x464] sm:$0xf0]  ;;  %v11486_v10 = vld [vmem:[#allocation8 + $0x2cc] sm:$0xf] }
 0x2bd   : > { %6720 = vmatpush.bf16.msrb.mxu1 %v10411_v49  ;;  %6708 = vmatpush.bf16.msrb.mxu0 %v10123_v62  ;;  %v6469_v49 = vpop.f32.mrf.mxu1  ;;  %v11658_v62 = vld [vmem:[#allocation8 + $0x824] sm:$0xf0]  ;;  %v6482_v11 = vpop.f32.mrf.mxu2  ;;  %v9515_v35 = vor.u32 %v11538_v27, %v9514_v24  ;;  %v11478_v24 = vld [vmem:[#allocation8 + $0x28c] sm:$0xf] }
 0x2be   : > { %v9995_v9 = vor.u32 %v11658_v62, %v9994_v0  ;;  %6642 = vmatpush.bf16.msrb.mxu3 %v10919_v20  ;;  %v9482_v40 = vld [vmem:[#allocation8 + $0x408] sm:$0xf]  ;;  %v9356_v20 = vld [vmem:[#allocation8 + $0x328] sm:$0xf0]  ;;  %v9103_v62 = vor.u32 %v11430_v54, %v9100_v57 }
 0x2bf   : > { %6683 = vmatpush.bf16.msra.mxu2 %v9579_v53  ;;  %v11530_v41 = vld [vmem:[#allocation8 + $0x424] sm:$0xf0]  ;;  %v11845_v53 = vld [vmem:[#allocation8 + $0xe04] sm:$0xf]  ;;  %v9359_v32 = vor.u32 %v11494_v42, %v9356_v20  ;;  %v9324_v11 = vld [vmem:[#allocation8 + $0x2e8] sm:$0xf0] }
 0x2c0   : > { %v10730_v6 = vld [vmem:[#allocation8 + $0xdc8] sm:$0xf]  ;;  %v9483_v49 = vor.u32 %v11530_v41, %v9482_v40  ;;  %v9292_v27 = vld [vmem:[#allocation8 + $0x2a8] sm:$0xf0] }
 0x2c1   : > { %6721 = vmatpush.bf16.msrb.mxu1 %v10379_v21  ;;  %6709 = vmatpush.bf16.msrb.mxu0 %v10091_v15  ;;  %v11722_v21 = vld [vmem:[#allocation8 + $0xa24] sm:$0xf0]  ;;  %v10852_v15 = vld [vmem:[#allocation8 + $0xee0] sm:$0xf0]  ;;  %v9295_v8 = vor.u32 %v11478_v24, %v9292_v27  ;;  %v11470_v40 = vld [vmem:[#allocation8 + $0x24c] sm:$0xf] }
 0x2c2   : > { %v10251_v39 = vor.u32 %v11722_v21, %v10250_v2  ;;  %6643 = vmatpush.bf16.msrb.mxu3 %v10887_v55  ;;  %v10855_v63 = vor.u32 %v11869_v16, %v10852_v15  ;;  %v11842_v51 = vld [vmem:[#allocation8 + $0xde4] sm:$0xf0]  ;;  %v10756_v2 = vld [vmem:[#allocation8 + $0xe20] sm:$0xf0]  ;;  %v9071_v16 = vor.u32 %v11422_v4, %v9068_v7  ;;  %v9260_v41 = vld [vmem:[#allocation8 + $0x268] sm:$0xf0] }
 0x2c3   : > { %6684 = vmatpush.bf16.msra.mxu2 %v9547_v18  ;;  %v10698_v5 = vld [vmem:[#allocation8 + $0xd88] sm:$0xf]  ;;  %v9263_v54 = vor.u32 %v11470_v40, %v9260_v41  ;;  %v11462_v42 = vld [vmem:[#allocation8 + $0x20c] sm:$0xf] }
 0x2c4   : > { %6596 = vmatmul.bf16.vlgmr.msra.gmra.mxu3 %v12569_v1  ;;  %v11834_v0 = vld [vmem:[#allocation8 + $0xda4] sm:$0xf0]  ;;  %v9228_v20 = vld [vmem:[#allocation8 + $0x228] sm:$0xf0] }
 0x2c5   : > { %6722 = vmatpush.bf16.msrb.mxu1 %v10347_v19  ;;  %6710 = vmatpush.bf16.msrb.mxu0 %v10059_v34  ;;  %v9164_v19 = vld [vmem:[#allocation8 + $0x1a8] sm:$0xf0]  ;;  %v9962_v21 = vld [vmem:[#allocation8 + $0x7c8] sm:$0xf]  ;;  %v10699_v45 = vor.u32 %v11834_v0, %v10698_v5  ;;  %v9231_v4 = vor.u32 %v11462_v42, %v9228_v20 }
 0x2c6   : > { %v9167_v28 = vor.u32 %v11446_v17, %v9164_v19  ;;  %v11438_v34 = vld [vmem:[#allocation8 + $0x14c] sm:$0xf]  ;;  %6644 = vmatpush.bf16.msrb.mxu3 %v10855_v63  ;;  %v11650_v31 = vld [vmem:[#allocation8 + $0x7e4] sm:$0xf0]  ;;  %v9327_v17 = vor.u32 %v11486_v10, %v9324_v11 }
 0x2c7   : > { %v9135_v50 = vor.u32 %v11438_v34, %v9132_v37  ;;  %6685 = vmatpush.bf16.msra.mxu2 %v9515_v35  ;;  %v10666_v56 = vld [vmem:[#allocation8 + $0xd48] sm:$0xf]  ;;  %v11414_v19 = vld [vmem:[#allocation8 + $0x8c] sm:$0xf] }
 0x2c8   : > { %v9930_v15 = vld [vmem:[#allocation8 + $0x788] sm:$0xf]  ;;  %v11406_v35 = vld [vmem:[#allocation8 + $0x4c] sm:$0xf] }
 0x2c9   : > { %6723 = vmatpush.bf16.msrb.mxu1 %v10315_v22  ;;  %6711 = vmatpush.bf16.msrb.mxu0 %v10027_v52  ;;  %v11502_v22 = vld [vmem:[#allocation8 + $0x34c] sm:$0xf]  ;;  %v10731_v52 = vor.u32 %v11842_v51, %v10730_v6  ;;  %v11642_v18 = vld [vmem:[#allocation8 + $0x7a4] sm:$0xf0] }
 0x2ca   : > { %v9391_v3 = vor.u32 %v11502_v22, %v9388_v38  ;;  %6645 = vmatpush.bf16.msrb.mxu3 %v10823_v43  ;;  %v11818_v63 = vld [vmem:[#allocation8 + $0xd24] sm:$0xf0]  ;;  %v9004_v37 = vld [vmem:[#allocation8 + $0x68] sm:$0xf0] }
 0x2cb   : > { %6686 = vmatpush.bf16.msra.mxu2 %v9483_v49  ;;  %v9898_v33 = vld [vmem:[#allocation8 + $0x748] sm:$0xf]  ;;  %v11398_v49 = vld [vmem:[#allocation8 + $0xc] sm:$0xf] }
 0x2cc   : > { %v11634_v34 = vld [vmem:[#allocation8 + $0x764] sm:$0xf0]  ;;  %v11710_v5 = vld [vmem:[#allocation8 + $0x9cc] sm:$0xf] }
 0x2cd   : > { %6724 = vmatpush.bf16.msrb.mxu1 %v10283_v61  ;;  %6712 = vmatpush.bf16.msrb.mxu0 %v9995_v9  ;;  %v10791_v61 = vor.u32 %v11853_v47, %v10788_v12  ;;  %v6506_v9 = vpop.f32.mrf.mxu0  ;;  %v10602_v43 = vld [vmem:[#allocation8 + $0xcc8] sm:$0xf]  ;;  %v9899_v51 = vor.u32 %v11634_v34, %v9898_v33  ;;  %v10220_v0 = vld [vmem:[#allocation8 + $0x9e8] sm:$0xf0] }
 0x2ce   : > { %v6507_v55 = vadd.f32 %v6506_v9, %v12643_v60  ;;  %6687 = vmatmul.bf16.vlgmr.msra.gmra.mxu2 %v12566_v29  ;;  %v10634_v60 = vld [vmem:[#allocation8 + $0xd08] sm:$0xf]  ;;  %v10223_v7 = vor.u32 %v11710_v5, %v10220_v0  ;;  %v11694_v27 = vld [vmem:[#allocation8 + $0x94c] sm:$0xf] }
 0x2cf   : > { %6731 = vmatpush.bf16.msrb.mxu2 %v10731_v52  ;;  %6646 = vmatpush.bf16.msrb.mxu3 %v10791_v61  ;;  %v10635_v38 = vor.u32 %v11818_v63, %v10634_v60  ;;  %v11810_v6 = vld [vmem:[#allocation8 + $0xce4] sm:$0xf0]  ;;  %v8972_v52 = vld [vmem:[#allocation8 + $0x28] sm:$0xf0] }
 0x2d0   : > { %6713 = vmatmul.bf16.vlgmr.msrb.gmra.mxu0 %v12585_v13  ;;  %v9866_v47 = vld [vmem:[#allocation8 + $0x708] sm:$0xf]  ;;  %v10603_v61 = vor.u32 %v11810_v6, %v10602_v43  ;;  %v10156_v60 = vld [vmem:[#allocation8 + $0x968] sm:$0xf0] }
 0x2d1   : > { %6725 = vmatpush.bf16.msrb.mxu1 %v10251_v39  ;;  %6757 = vmatpush.bf16.msra.mxu0 %v9199_v59  ;;  %v10759_v39 = vor.u32 %v11845_v53, %v10756_v2  ;;  %v11826_v59 = vld [vmem:[#allocation8 + $0xd64] sm:$0xf0]  ;;  %v10476_v53 = vld [vmem:[#allocation8 + $0xbe8] sm:$0xf0] }
 0x2d2   : > { %v10667_v23 = vor.u32 %v11826_v59, %v10666_v56  ;;  %v11626_v12 = vld [vmem:[#allocation8 + $0x724] sm:$0xf0]  ;;  %v11766_v56 = vld [vmem:[#allocation8 + $0xb8c] sm:$0xf] }
 0x2d3   : > { %6732 = vmatpush.bf16.msrb.mxu2 %v10699_v45  ;;  %6647 = vmatpush.bf16.msrb.mxu3 %v10759_v39  ;;  %v10570_v2 = vld [vmem:[#allocation8 + $0xc88] sm:$0xf]  ;;  %v10188_v39 = vld [vmem:[#allocation8 + $0x9a8] sm:$0xf0] }
 0x2d4   : > { %6726 = vmatmul.bf16.vlgmr.msrb.gmra.mxu1 %v12593_v30  ;;  %v9834_v9 = vld [vmem:[#allocation8 + $0x6c8] sm:$0xf]  ;;  %v10444_v59 = vld [vmem:[#allocation8 + $0xba8] sm:$0xf0] }
 0x2d5   : > { %6770 = vmatpush.bf16.msra.mxu1 %v9455_v14  ;;  %6758 = vmatpush.bf16.msra.mxu0 %v9167_v28  ;;  %v9963_v14 = vor.u32 %v11650_v31, %v9962_v21  ;;  %v9931_v28 = vor.u32 %v11642_v18, %v9930_v15  ;;  %v6508_v22 = vpop.f32.mrf.mxu0  ;;  %v11802_v21 = vld [vmem:[#allocation8 + $0xca4] sm:$0xf0]  ;;  %v8975_v31 = vor.u32 %v11398_v49, %v8972_v52  ;;  %v11758_v63 = vld [vmem:[#allocation8 + $0xb4c] sm:$0xf] }
 0x2d6   : > { %6648 = vmatmul.bf16.vlgmr.msrb.gmra.mxu3 %v12640_v26  ;;  %v11618_v45 = vld [vmem:[#allocation8 + $0x6e4] sm:$0xf0]  ;;  %v10571_v11 = vor.u32 %v11802_v21, %v10570_v2  ;;  %v11582_v34 = vld [vmem:[#allocation8 + $0x5cc] sm:$0xf] }
 0x2d7   : > { %6692 = vmatpush.bf16.msra.mxu3 %v9963_v14  ;;  %6733 = vmatpush.bf16.msrb.mxu2 %v10667_v23  ;;  %v10538_v14 = vld [vmem:[#allocation8 + $0xc48] sm:$0xf]  ;;  %v9835_v15 = vor.u32 %v11618_v45, %v9834_v9  ;;  %v10447_v23 = vor.u32 %v11766_v56, %v10444_v59  ;;  %v11686_v43 = vld [vmem:[#allocation8 + $0x90c] sm:$0xf] }
 0x2d8   : > { %v11786_v33 = vld [vmem:[#allocation8 + $0xc24] sm:$0xf0]  ;;  %v10124_v6 = vld [vmem:[#allocation8 + $0x928] sm:$0xf0] }
 0x2d9   : > { %6771 = vmatpush.bf16.msra.mxu1 %v9423_v36  ;;  %6759 = vmatpush.bf16.msra.mxu0 %v9135_v50  ;;  %v9039_v36 = vor.u32 %v11414_v19, %v9036_v58  ;;  %v9007_v50 = vor.u32 %v11406_v35, %v9004_v37  ;;  %v9802_v19 = vld [vmem:[#allocation8 + $0x688] sm:$0xf]  ;;  %v9708_v35 = vld [vmem:[#allocation8 + $0x5e8] sm:$0xf0]  ;;  %v10159_v37 = vor.u32 %v11694_v27, %v10156_v60 }
 0x2da   : > { %v11610_v58 = vld [vmem:[#allocation8 + $0x6a4] sm:$0xf0]  ;;  %v11574_v49 = vld [vmem:[#allocation8 + $0x58c] sm:$0xf]  ;;  %v10127_v52 = vor.u32 %v11686_v43, %v10124_v6 }
 0x2db   : > { %6693 = vmatpush.bf16.msra.mxu3 %v9931_v28  ;;  %6734 = vmatpush.bf16.msrb.mxu2 %v10635_v38  ;;  %v10412_v28 = vld [vmem:[#allocation8 + $0xb68] sm:$0xf0]  ;;  %v9770_v22 = vld [vmem:[#allocation8 + $0x648] sm:$0xf] }
 0x2dc   : > { %v11602_v38 = vld [vmem:[#allocation8 + $0x664] sm:$0xf0]  ;;  %v10415_v40 = vor.u32 %v11758_v63, %v10412_v28  ;;  %v11566_v9 = vld [vmem:[#allocation8 + $0x54c] sm:$0xf] }
 0x2dd   : > { %6772 = vmatpush.bf16.msra.mxu1 %v9391_v3  ;;  %6760 = vmatpush.bf16.msra.mxu0 %v9103_v62  ;;  %v6519_v3 = vpop.f32.mrf.mxu1  ;;  %v11774_v62 = vld [vmem:[#allocation8 + $0xbcc] sm:$0xf]  ;;  %v9738_v42 = vld [vmem:[#allocation8 + $0x608] sm:$0xf] }
 0x2de   : > { %v12651_v57 = vadd.f32 %v6519_v3, %v6507_v55  ;;  %v10479_v10 = vor.u32 %v11774_v62, %v10476_v53  ;;  %v11702_v55 = vld [vmem:[#allocation8 + $0x98c] sm:$0xf]  ;;  %v11594_v20 = vld [vmem:[#allocation8 + $0x624] sm:$0xf0] }
 0x2df   : > { %6694 = vmatpush.bf16.msra.mxu3 %v9899_v51  ;;  %6735 = vmatpush.bf16.msrb.mxu2 %v10603_v61  ;;  %v10191_v18 = vor.u32 %v11702_v55, %v10188_v39  ;;  %v9711_v51 = vor.u32 %v11582_v34, %v9708_v35  ;;  %v10380_v3 = vld [vmem:[#allocation8 + $0xb28] sm:$0xf0]  ;;  %v10986_v61 = vld [vmem:[#allocation8 + $0xfc8] sm:$0xf] }
 0x2e0   : > { %v11906_v0 = vld [vmem:[#allocation8 + $0xfe4] sm:$0xf0]  ;;  %v11678_v62 = vld [vmem:[#allocation8 + $0x8cc] sm:$0xf] }
 0x2e1   : > { %6773 = vmatpush.bf16.msra.mxu1 %v9359_v32  ;;  %6761 = vmatpush.bf16.msra.mxu0 %v9071_v16  ;;  %v9867_v32 = vor.u32 %v11626_v12, %v9866_v47  ;;  %v11794_v16 = vld [vmem:[#allocation8 + $0xc64] sm:$0xf0]  ;;  %v3870_v47 = vperm.slane %v12635_v48, 1  ;;  %v9771_v12 = vor.u32 %v11602_v38, %v9770_v22  ;;  %v10092_v53 = vld [vmem:[#allocation8 + $0x8e8] sm:$0xf0] }
 0x2e2   : > { %v10539_v24 = vor.u32 %v11794_v16, %v10538_v14  ;;  %v9644_v45 = vld [vmem:[#allocation8 + $0x568] sm:$0xf0]  ;;  %v10954_v55 = vld [vmem:[#allocation8 + $0xf88] sm:$0xf] }
 0x2e3   : > { %6695 = vmatpush.bf16.msra.mxu3 %v9867_v32  ;;  %6736 = vmatpush.bf16.msrb.mxu2 %v10571_v11  ;;  %v11742_v32 = vld [vmem:[#allocation8 + $0xacc] sm:$0xf]  ;;  %v10095_v11 = vor.u32 %v11678_v62, %v10092_v53  ;;  %v11898_v59 = vld [vmem:[#allocation8 + $0xfa4] sm:$0xf0] }
 0x2e4   : > { %v11670_v14 = vld [vmem:[#allocation8 + $0x88c] sm:$0xf]  ;;  %v10922_v27 = vld [vmem:[#allocation8 + $0xf48] sm:$0xf] }
 0x2e5   : > { %6774 = vmatpush.bf16.msra.mxu1 %v9327_v17  ;;  %6762 = vmatpush.bf16.msra.mxu0 %v9039_v36  ;;  %v6521_v17 = vpop.f32.mrf.mxu1  ;;  %v10506_v36 = vld [vmem:[#allocation8 + $0xc08] sm:$0xf]  ;;  %v10060_v16 = vld [vmem:[#allocation8 + $0x8a8] sm:$0xf0] }
 0x2e6   : > { %v10507_v41 = vor.u32 %v11786_v33, %v10506_v36  ;;  %v11734_v17 = vld [vmem:[#allocation8 + $0xa8c] sm:$0xf]  ;;  %v11890_v63 = vld [vmem:[#allocation8 + $0xf64] sm:$0xf0] }
 0x2e7   : > { %6696 = vmatpush.bf16.msra.mxu3 %v9835_v15  ;;  %6737 = vmatpush.bf16.msrb.mxu2 %v10539_v24  ;;  %v9647_v15 = vor.u32 %v11566_v9, %v9644_v45  ;;  %v10063_v24 = vor.u32 %v11670_v14, %v10060_v16  ;;  %v11662_v28 = vld [vmem:[#allocation8 + $0x84c] sm:$0xf]  ;;  %v10890_v43 = vld [vmem:[#allocation8 + $0xf08] sm:$0xf]  ;;  %v9426_v9 = vld [vmem:[#allocation8 + $0x390] sm:$0xf] }
 0x2e8   : > { %v10028_v36 = vld [vmem:[#allocation8 + $0x868] sm:$0xf0]  ;;  %v11882_v6 = vld [vmem:[#allocation8 + $0xf24] sm:$0xf0]  ;;  %v11515_v45 = vld [vmem:[#allocation8 + $0x3ac] sm:$0xf0] }
 0x2e9   : > { %6775 = vmatpush.bf16.msra.mxu1 %v9295_v8  ;;  %6763 = vmatpush.bf16.msra.mxu0 %v9007_v50  ;;  %v9803_v8 = vor.u32 %v11610_v58, %v9802_v19  ;;  %v11750_v50 = vld [vmem:[#allocation8 + $0xb0c] sm:$0xf]  ;;  %v11866_v14 = vld [vmem:[#allocation8 + $0xea4] sm:$0xf0]  ;;  %v9427_v16 = vor.u32 %v11515_v45, %v9426_v9  ;;  %v11419_v9 = vld [vmem:[#allocation8 + $0xac] sm:$0xf0] }
 0x2ea   : > { %v10383_v5 = vor.u32 %v11750_v50, %v10380_v3  ;;  %v11558_v19 = vld [vmem:[#allocation8 + $0x50c] sm:$0xf] }
 0x2eb   : > { %6697 = vmatpush.bf16.msra.mxu3 %v9803_v8  ;;  %6738 = vmatpush.bf16.msrb.mxu2 %v10507_v41  ;;  %v9612_v58 = vld [vmem:[#allocation8 + $0x528] sm:$0xf0]  ;;  %v10031_v41 = vor.u32 %v11662_v28, %v10028_v36  ;;  %v10794_v36 = vld [vmem:[#allocation8 + $0xe48] sm:$0xf] }
 0x2ec   : > { %v9615_v8 = vor.u32 %v11558_v19, %v9612_v58  ;;  %v11726_v34 = vld [vmem:[#allocation8 + $0xa4c] sm:$0xf]  ;;  %v9394_v19 = vld [vmem:[#allocation8 + $0x350] sm:$0xf] }
 0x2ed   : > { %6776 = vmatpush.bf16.msra.mxu1 %v9263_v54  ;;  %6764 = vmatpush.bf16.msra.mxu0 %v8975_v31  ;;  %v9676_v54 = vld [vmem:[#allocation8 + $0x5a8] sm:$0xf0]  ;;  %v6558_v2 = vpop.f32.mrf.mxu0  ;;  %v11507_v58 = vld [vmem:[#allocation8 + $0x36c] sm:$0xf0] }
 0x2ee   : > { %v9679_v21 = vor.u32 %v11574_v49, %v9676_v54  ;;  %v10348_v31 = vld [vmem:[#allocation8 + $0xae8] sm:$0xf0]  ;;  %v6559_v48 = vadd.f32 %v6558_v2, %v3870_v47  ;;  %6739 = vmatmul.bf16.vlgmr.msrb.gmra.mxu2 %v12621_v25  ;;  %v9202_v54 = vld [vmem:[#allocation8 + $0x1d0] sm:$0xf] }
 0x2ef   : > { %6783 = vmatpush.bf16.msra.mxu2 %v9711_v51  ;;  %6698 = vmatpush.bf16.msra.mxu3 %v9771_v12  ;;  %v10351_v56 = vor.u32 %v11742_v32, %v10348_v31  ;;  %v10284_v35 = vld [vmem:[#allocation8 + $0xa68] sm:$0xf0]  ;;  %v11874_v32 = vld [vmem:[#allocation8 + $0xee4] sm:$0xf0] }
 0x2f0   : > { %6765 = vmatmul.bf16.vlgmr.msra.gmra.mxu0 %v12562_v44  ;;  %v11550_v22 = vld [vmem:[#allocation8 + $0x4cc] sm:$0xf]  ;;  %v10287_v50 = vor.u32 %v11726_v34, %v10284_v35  ;;  %v9106_v35 = vld [vmem:[#allocation8 + $0x110] sm:$0xf] }
 0x2f1   : > { %6777 = vmatpush.bf16.msra.mxu1 %v9231_v4  ;;  %6809 = vmatpush.bf16.msrb.mxu0 %v10223_v7  ;;  %v6571_v4 = vpop.f32.mrf.mxu1  ;;  %v9739_v7 = vor.u32 %v11594_v20, %v9738_v42  ;;  %v9580_v38 = vld [vmem:[#allocation8 + $0x4e8] sm:$0xf0]  ;;  %v9458_v42 = vld [vmem:[#allocation8 + $0x3d0] sm:$0xf] }
 0x2f2   : > { %v12657_v39 = vadd.f32 %v6571_v4, %v6559_v48  ;;  %v11654_v51 = vld [vmem:[#allocation8 + $0x80c] sm:$0xf]  ;;  %v9583_v49 = vor.u32 %v11550_v22, %v9580_v38  ;;  %v11523_v20 = vld [vmem:[#allocation8 + $0x3ec] sm:$0xf0] }
 0x2f3   : > { %6784 = vmatpush.bf16.msra.mxu2 %v9679_v21  ;;  %6699 = vmatpush.bf16.msra.mxu3 %v9739_v7  ;;  %v9996_v3 = vld [vmem:[#allocation8 + $0x828] sm:$0xf0]  ;;  %v10858_v21 = vld [vmem:[#allocation8 + $0xec8] sm:$0xf]  ;;  %v9459_v31 = vor.u32 %v11523_v20, %v9458_v42  ;;  %v9170_v4 = vld [vmem:[#allocation8 + $0x190] sm:$0xf] }
 0x2f4   : > { %6778 = vmatmul.bf16.vlgmr.msra.gmra.mxu1 %v12564_v46  ;;  %v11718_v47 = vld [vmem:[#allocation8 + $0xa0c] sm:$0xf]  ;;  %v9999_v62 = vor.u32 %v11654_v51, %v9996_v3  ;;  %v11451_v7 = vld [vmem:[#allocation8 + $0x1ac] sm:$0xf0]  ;;  %v11850_v3 = vld [vmem:[#allocation8 + $0xe24] sm:$0xf0] }
 0x2f5   : > { %6822 = vmatpush.bf16.msrb.mxu1 %v10479_v10  ;;  %6810 = vmatpush.bf16.msrb.mxu0 %v10191_v18  ;;  %v10987_v10 = vor.u32 %v11906_v0, %v10986_v61  ;;  %v10316_v18 = vld [vmem:[#allocation8 + $0xaa8] sm:$0xf0]  ;;  %v6560_v33 = vpop.f32.mrf.mxu0  ;;  %v10891_v0 = vor.u32 %v11882_v6, %v10890_v43  ;;  %v9362_v38 = vld [vmem:[#allocation8 + $0x310] sm:$0xf] }
 0x2f6   : > { %v10319_v60 = vor.u32 %v11734_v17, %v10316_v18  ;;  %6700 = vmatmul.bf16.vlgmr.msra.gmra.mxu3 %v12569_v1  ;;  %v10252_v12 = vld [vmem:[#allocation8 + $0xa28] sm:$0xf0]  ;;  %v9138_v17 = vld [vmem:[#allocation8 + $0x150] sm:$0xf]  ;;  %v11858_v33 = vld [vmem:[#allocation8 + $0xe64] sm:$0xf0] }
 0x2f7   : > { %6744 = vmatpush.bf16.msrb.mxu3 %v10987_v10  ;;  %6785 = vmatpush.bf16.msra.mxu2 %v9647_v15  ;;  %v11542_v61 = vld [vmem:[#allocation8 + $0x48c] sm:$0xf]  ;;  %v10255_v53 = vor.u32 %v11718_v47, %v10252_v12  ;;  %v11443_v18 = vld [vmem:[#allocation8 + $0x16c] sm:$0xf0] }
 0x2f8   : > { %v11534_v10 = vld [vmem:[#allocation8 + $0x44c] sm:$0xf]  ;;  %v9139_v28 = vor.u32 %v11443_v18, %v9138_v17  ;;  %v9010_v18 = vld [vmem:[#allocation8 + $0x50] sm:$0xf] }
 0x2f9   : > { %6823 = vmatpush.bf16.msrb.mxu1 %v10447_v23  ;;  %6811 = vmatpush.bf16.msrb.mxu0 %v10159_v37  ;;  %v10955_v23 = vor.u32 %v11898_v59, %v10954_v55  ;;  %v6573_v37 = vpop.f32.mrf.mxu1  ;;  %v10859_v55 = vor.u32 %v11874_v32, %v10858_v21  ;;  %v10826_v59 = vld [vmem:[#allocation8 + $0xe88] sm:$0xf]  ;;  %v11830_v43 = vld [vmem:[#allocation8 + $0xd8c] sm:$0xf] }
 0x2fa   : > { %v11435_v37 = vld [vmem:[#allocation8 + $0x12c] sm:$0xf0]  ;;  %v10700_v6 = vld [vmem:[#allocation8 + $0xda8] sm:$0xf0] }
 0x2fb   : > { %6745 = vmatpush.bf16.msrb.mxu3 %v10955_v23  ;;  %6786 = vmatpush.bf16.msra.mxu2 %v9615_v8  ;;  %v11526_v23 = vld [vmem:[#allocation8 + $0x40c] sm:$0xf]  ;;  %v9395_v8 = vor.u32 %v11507_v58, %v9394_v19  ;;  %v9107_v51 = vor.u32 %v11435_v37, %v9106_v35  ;;  %v10703_v20 = vor.u32 %v11830_v43, %v10700_v6  ;;  %v11411_v19 = vld [vmem:[#allocation8 + $0x6c] sm:$0xf0] }
 0x2fc   : > { %v11646_v47 = vld [vmem:[#allocation8 + $0x7cc] sm:$0xf]  ;;  %v8978_v35 = vld [vmem:[#allocation8 + $0x10] sm:$0xf] }
 0x2fd   : > { %6824 = vmatpush.bf16.msrb.mxu1 %v10415_v40  ;;  %6812 = vmatpush.bf16.msrb.mxu0 %v10127_v52  ;;  %v10923_v40 = vor.u32 %v11890_v63, %v10922_v27  ;;  %v11459_v52 = vld [vmem:[#allocation8 + $0x1ec] sm:$0xf0]  ;;  %v10827_v27 = vor.u32 %v11866_v14, %v10826_v59  ;;  %v10732_v63 = vld [vmem:[#allocation8 + $0xde8] sm:$0xf0] }
 0x2fe   : > { %v9203_v2 = vor.u32 %v11459_v52, %v9202_v54  ;;  %v9074_v54 = vld [vmem:[#allocation8 + $0xd0] sm:$0xf]  ;;  %v9900_v17 = vld [vmem:[#allocation8 + $0x768] sm:$0xf0] }
 0x2ff   : > { %6746 = vmatpush.bf16.msrb.mxu3 %v10923_v40  ;;  %6787 = vmatpush.bf16.msra.mxu2 %v9583_v49  ;;  %v11499_v40 = vld [vmem:[#allocation8 + $0x32c] sm:$0xf0]  ;;  %v9964_v49 = vld [vmem:[#allocation8 + $0x7e8] sm:$0xf0] }
 0x300   : > { %v9363_v12 = vor.u32 %v11499_v40, %v9362_v38  ;;  %v11427_v52 = vld [vmem:[#allocation8 + $0xec] sm:$0xf0]  ;;  %v9967_v21 = vor.u32 %v11646_v47, %v9964_v49  ;;  %v11798_v47 = vld [vmem:[#allocation8 + $0xc8c] sm:$0xf] }
 0x301   : > { %6825 = vmatpush.bf16.msrb.mxu1 %v10383_v5  ;;  %6813 = vmatpush.bf16.msrb.mxu0 %v10095_v11  ;;  %v9548_v5 = vld [vmem:[#allocation8 + $0x4a8] sm:$0xf0]  ;;  %v9075_v32 = vor.u32 %v11427_v52, %v9074_v54  ;;  %v9234_v38 = vld [vmem:[#allocation8 + $0x210] sm:$0xf] }
 0x302   : > { %v9551_v48 = vor.u32 %v11542_v61, %v9548_v5  ;;  %v9516_v11 = vld [vmem:[#allocation8 + $0x468] sm:$0xf0]  ;;  %v9330_v61 = vld [vmem:[#allocation8 + $0x2d0] sm:$0xf] }
 0x303   : > { %6747 = vmatpush.bf16.msrb.mxu3 %v10891_v0  ;;  %v9519_v15 = vor.u32 %v11534_v10, %v9516_v11  ;;  %v11491_v5 = vld [vmem:[#allocation8 + $0x2ec] sm:$0xf0] }
 0x304   : > { %6788 = vmatpush.bf16.msra.mxu2 %v9551_v48  ;;  %v9331_v48 = vor.u32 %v11491_v5, %v9330_v61  ;;  %v9298_v10 = vld [vmem:[#allocation8 + $0x290] sm:$0xf]  ;;  %v11614_v61 = vld [vmem:[#allocation8 + $0x6cc] sm:$0xf] }
 0x305   : > { %6826 = vmatpush.bf16.msrb.mxu1 %v10351_v56  ;;  %6814 = vmatpush.bf16.msrb.mxu0 %v10063_v24  ;;  %v9171_v56 = vor.u32 %v11451_v7, %v9170_v4  ;;  %v9484_v24 = vld [vmem:[#allocation8 + $0x428] sm:$0xf0]  ;;  %v9042_v7 = vld [vmem:[#allocation8 + $0x90] sm:$0xf] }
 0x306   : > { %v9487_v34 = vor.u32 %v11526_v23, %v9484_v24  ;;  %v9932_v4 = vld [vmem:[#allocation8 + $0x7a8] sm:$0xf0]  ;;  %v11483_v11 = vld [vmem:[#allocation8 + $0x2ac] sm:$0xf0]  ;;  %v9043_v14 = vor.u32 %v11419_v9, %v9042_v7 }
 0x307   : > { %6748 = vmatpush.bf16.msrb.mxu3 %v10859_v55  ;;  %v11814_v55 = vld [vmem:[#allocation8 + $0xd0c] sm:$0xf]  ;;  %v9266_v24 = vld [vmem:[#allocation8 + $0x250] sm:$0xf] }
 0x308   : > { %6789 = vmatpush.bf16.msra.mxu2 %v9519_v15  ;;  %v9299_v15 = vor.u32 %v11483_v11, %v9298_v10  ;;  %v11467_v40 = vld [vmem:[#allocation8 + $0x22c] sm:$0xf0]  ;;  %v9836_v5 = vld [vmem:[#allocation8 + $0x6e8] sm:$0xf0] }
 0x309   : > { %6827 = vmatpush.bf16.msrb.mxu1 %v10319_v60  ;;  %6815 = vmatpush.bf16.msrb.mxu0 %v10031_v41  ;;  %v11838_v60 = vld [vmem:[#allocation8 + $0xdcc] sm:$0xf]  ;;  %v10795_v41 = vor.u32 %v11858_v33, %v10794_v36  ;;  %v9011_v33 = vor.u32 %v11411_v19, %v9010_v18  ;;  %v10226_v6 = vld [vmem:[#allocation8 + $0x9d0] sm:$0xf]  ;;  %v9235_v52 = vor.u32 %v11467_v40, %v9234_v38 }
 0x30a   : > { %v10735_v22 = vor.u32 %v11838_v60, %v10732_v63  ;;  %v11806_v63 = vld [vmem:[#allocation8 + $0xccc] sm:$0xf]  ;;  %v9839_v7 = vor.u32 %v11614_v61, %v9836_v5  ;;  %v9682_v40 = vld [vmem:[#allocation8 + $0x590] sm:$0xf] }
 0x30b   : > { %6749 = vmatpush.bf16.msrb.mxu3 %v10827_v27  ;;  %v11475_v27 = vld [vmem:[#allocation8 + $0x26c] sm:$0xf0]  ;;  %v9804_v10 = vld [vmem:[#allocation8 + $0x6a8] sm:$0xf0] }
 0x30c   : > { %6790 = vmatpush.bf16.msra.mxu2 %v9487_v34  ;;  %v9868_v34 = vld [vmem:[#allocation8 + $0x728] sm:$0xf0]  ;;  %v9267_v37 = vor.u32 %v11475_v27, %v9266_v24  ;;  %v10354_v5 = vld [vmem:[#allocation8 + $0xad0] sm:$0xf] }
 0x30d   : > { %6828 = vmatpush.bf16.msrb.mxu1 %v10287_v50  ;;  %6816 = vmatpush.bf16.msrb.mxu0 %v9999_v62  ;;  %v10762_v50 = vld [vmem:[#allocation8 + $0xe08] sm:$0xf]  ;;  %v12662_v42 = vpop.f32.mrf.mxu0  ;;  %v10508_v18 = vld [vmem:[#allocation8 + $0xc28] sm:$0xf0] }
 0x30e   : > { %v10763_v62 = vor.u32 %v11850_v3, %v10762_v50  ;;  %v10482_v50 = vld [vmem:[#allocation8 + $0xbd0] sm:$0xf]  ;;  %v11598_v27 = vld [vmem:[#allocation8 + $0x64c] sm:$0xf] }
 0x30f   : > { %6750 = vmatpush.bf16.msrb.mxu3 %v10795_v41  ;;  %6791 = vmatmul.bf16.vlgmr.msra.gmra.mxu2 %v12566_v29  ;;  %v12668_v41 = vpop.f32.mrf.mxu2  ;;  %v11779_v3 = vld [vmem:[#allocation8 + $0xbec] sm:$0xf0] }
 0x310   : > { %6817 = vmatmul.bf16.vlgmr.msrb.gmra.mxu0 %v12585_v13  ;;  %6835 = vmatpush.bf16.msrb.mxu2 %v10735_v22  ;;  %v11403_v22 = vld [vmem:[#allocation8 + $0x2c] sm:$0xf0] }
 0x311   : > { %6829 = vmatpush.bf16.msrb.mxu1 %v10255_v53  ;;  %6861 = vmatpush.bf16.msra.mxu0 %v9203_v2  ;;  %v12664_v0 = vpop.f32.mrf.mxu1  ;;  %v11822_v53 = vld [vmem:[#allocation8 + $0xd4c] sm:$0xf]  ;;  %v8979_v54 = vor.u32 %v11403_v22, %v8978_v35  ;;  %v11755_v35 = vld [vmem:[#allocation8 + $0xb2c] sm:$0xf0] }
 0x312   : > { %v10668_v2 = vld [vmem:[#allocation8 + $0xd68] sm:$0xf0] }
 0x313   : > { %v10671_v45 = vor.u32 %v11822_v53, %v10668_v2  ;;  %6751 = vmatpush.bf16.msrb.mxu3 %v10763_v62  ;;  %v10483_v62 = vor.u32 %v11779_v3, %v10482_v50  ;;  %v10194_v2 = vld [vmem:[#allocation8 + $0x990] sm:$0xf]  ;;  %v9740_v50 = vld [vmem:[#allocation8 + $0x628] sm:$0xf0] }
 0x314   : > { %6830 = vmatmul.bf16.vlgmr.msrb.gmra.mxu1 %v12593_v30  ;;  %6836 = vmatpush.bf16.msrb.mxu2 %v10703_v20  ;;  %v11902_v3 = vld [vmem:[#allocation8 + $0xfcc] sm:$0xf] }
 0x315   : > { %6874 = vmatpush.bf16.msra.mxu1 %v9459_v31  ;;  %6862 = vmatpush.bf16.msra.mxu0 %v9171_v56  ;;  %v11638_v31 = vld [vmem:[#allocation8 + $0x78c] sm:$0xf]  ;;  %v6612_v58 = vpop.f32.mrf.mxu0 }
 0x316   : > { %v10636_v56 = vld [vmem:[#allocation8 + $0xd28] sm:$0xf0]  ;;  %v9935_v59 = vor.u32 %v11638_v31, %v9932_v4  ;;  %6752 = vmatmul.bf16.vlgmr.msrb.gmra.mxu3 %v12640_v26  ;;  %v11771_v31 = vld [vmem:[#allocation8 + $0xbac] sm:$0xf0] }
 0x317   : > { %6796 = vmatpush.bf16.msra.mxu3 %v9967_v21  ;;  %v10639_v23 = vor.u32 %v11814_v55, %v10636_v56  ;;  %v11707_v21 = vld [vmem:[#allocation8 + $0x9ac] sm:$0xf0]  ;;  %v10540_v4 = vld [vmem:[#allocation8 + $0xc68] sm:$0xf0]  ;;  %v6534_v11 = vpop.f32.mrf.mxu2 }
 0x318   : > { %6837 = vmatpush.bf16.msrb.mxu2 %v10671_v45  ;;  %v10195_v9 = vor.u32 %v11707_v21, %v10194_v2  ;;  %v11606_v45 = vld [vmem:[#allocation8 + $0x68c] sm:$0xf]  ;;  %v9714_v58 = vld [vmem:[#allocation8 + $0x5d0] sm:$0xf] }
 0x319   : > { %6875 = vmatpush.bf16.msra.mxu1 %v9427_v16  ;;  %6863 = vmatpush.bf16.msra.mxu0 %v9139_v28  ;;  %v11630_v16 = vld [vmem:[#allocation8 + $0x74c] sm:$0xf]  ;;  %v6625_v60 = vpop.f32.mrf.mxu1  ;;  %v9807_v19 = vor.u32 %v11606_v45, %v9804_v10  ;;  %v10066_v11 = vld [vmem:[#allocation8 + $0x890] sm:$0xf] }
 0x31a   : > { %v10604_v28 = vld [vmem:[#allocation8 + $0xce8] sm:$0xf0]  ;;  %v9903_v36 = vor.u32 %v11630_v16, %v9900_v17  ;;  %v10418_v16 = vld [vmem:[#allocation8 + $0xb50] sm:$0xf] }
 0x31b   : > { %6797 = vmatpush.bf16.msra.mxu3 %v9935_v59  ;;  %v10607_v43 = vor.u32 %v11806_v63, %v10604_v28  ;;  %v10162_v59 = vld [vmem:[#allocation8 + $0x950] sm:$0xf]  ;;  %v11782_v17 = vld [vmem:[#allocation8 + $0xc0c] sm:$0xf] }
 0x31c   : > { %6838 = vmatpush.bf16.msrb.mxu2 %v10639_v23  ;;  %v11587_v23 = vld [vmem:[#allocation8 + $0x5ec] sm:$0xf0]  ;;  %v9772_v60 = vld [vmem:[#allocation8 + $0x668] sm:$0xf0]  ;;  %v10511_v28 = vor.u32 %v11782_v17, %v10508_v18 }
 0x31d   : > { %6876 = vmatpush.bf16.msra.mxu1 %v9395_v8  ;;  %6864 = vmatpush.bf16.msra.mxu0 %v9107_v51  ;;  %v11622_v8 = vld [vmem:[#allocation8 + $0x70c] sm:$0xf]  ;;  %v11715_v51 = vld [vmem:[#allocation8 + $0x9ec] sm:$0xf0]  ;;  %v9775_v38 = vor.u32 %v11598_v27, %v9772_v60 }
 0x31e   : > { %v9871_v49 = vor.u32 %v11622_v8, %v9868_v34  ;;  %v10227_v20 = vor.u32 %v11715_v51, %v10226_v6  ;;  %v9715_v8 = vor.u32 %v11587_v23, %v9714_v58  ;;  %v10386_v34 = vld [vmem:[#allocation8 + $0xb10] sm:$0xf]  ;;  %v11590_v51 = vld [vmem:[#allocation8 + $0x60c] sm:$0xf] }
 0x31f   : > { %6798 = vmatpush.bf16.msra.mxu3 %v9903_v36  ;;  %v10130_v36 = vld [vmem:[#allocation8 + $0x910] sm:$0xf]  ;;  %v9743_v21 = vor.u32 %v11590_v51, %v9740_v50  ;;  %v10956_v10 = vld [vmem:[#allocation8 + $0xfa8] sm:$0xf0] }
 0x320   : > { %6839 = vmatpush.bf16.msrb.mxu2 %v10607_v43  ;;  %v11579_v43 = vld [vmem:[#allocation8 + $0x5ac] sm:$0xf0] }
 0x321   : > { %6877 = vmatpush.bf16.msra.mxu1 %v9363_v12  ;;  %6865 = vmatpush.bf16.msra.mxu0 %v9075_v32  ;;  %v10572_v12 = vld [vmem:[#allocation8 + $0xca8] sm:$0xf0]  ;;  %v10450_v32 = vld [vmem:[#allocation8 + $0xb90] sm:$0xf]  ;;  %v9683_v61 = vor.u32 %v11579_v43, %v9682_v40 }
 0x322   : > { %v10575_v53 = vor.u32 %v11798_v47, %v10572_v12  ;;  %v10451_v55 = vor.u32 %v11771_v31, %v10450_v32  ;;  %v12675_v47 = vpop.f32.mrf.mxu2  ;;  %v10387_v12 = vor.u32 %v11755_v35, %v10386_v34  ;;  %v9650_v32 = vld [vmem:[#allocation8 + $0x550] sm:$0xf]  ;;  %v11878_v40 = vld [vmem:[#allocation8 + $0xf0c] sm:$0xf] }
 0x323   : > { %6799 = vmatpush.bf16.msra.mxu3 %v9871_v49  ;;  %v10988_v49 = vld [vmem:[#allocation8 + $0xfe8] sm:$0xf0]  ;;  %v11571_v31 = vld [vmem:[#allocation8 + $0x56c] sm:$0xf0] }
 0x324   : > { %6840 = vmatpush.bf16.msrb.mxu2 %v10575_v53  ;;  %v10034_v27 = vld [vmem:[#allocation8 + $0x850] sm:$0xf]  ;;  %v10892_v43 = vld [vmem:[#allocation8 + $0xf28] sm:$0xf0] }
 0x325   : > { %6878 = vmatpush.bf16.msra.mxu1 %v9331_v48  ;;  %6866 = vmatpush.bf16.msra.mxu0 %v9043_v14  ;;  %v11790_v48 = vld [vmem:[#allocation8 + $0xc4c] sm:$0xf]  ;;  %v11699_v14 = vld [vmem:[#allocation8 + $0x96c] sm:$0xf0] }
 0x326   : > { %v10543_v56 = vor.u32 %v11790_v48, %v10540_v4  ;;  %v10163_v24 = vor.u32 %v11699_v14, %v10162_v59  ;;  %v10991_v48 = vor.u32 %v11902_v3, %v10988_v49  ;;  %v10322_v59 = vld [vmem:[#allocation8 + $0xa90] sm:$0xf] }
 0x327   : > { %6800 = vmatpush.bf16.msra.mxu3 %v9839_v7  ;;  %v11894_v7 = vld [vmem:[#allocation8 + $0xf8c] sm:$0xf]  ;;  %v11739_v14 = vld [vmem:[#allocation8 + $0xaac] sm:$0xf0] }
 0x328   : > { %6841 = vmatpush.bf16.msrb.mxu2 %v10543_v56  ;;  %v9651_v56 = vor.u32 %v11571_v31, %v9650_v32  ;;  %v10959_v17 = vor.u32 %v11894_v7, %v10956_v10  ;;  %v10323_v23 = vor.u32 %v11739_v14, %v10322_v59  ;;  %v11667_v60 = vld [vmem:[#allocation8 + $0x86c] sm:$0xf0]  ;;  %v11870_v31 = vld [vmem:[#allocation8 + $0xecc] sm:$0xf]  ;;  %v11447_v10 = vld [vmem:[#allocation8 + $0x194] sm:$0xf] }
 0x329   : > { %6879 = vmatpush.bf16.msra.mxu1 %v9299_v15  ;;  %6867 = vmatpush.bf16.msra.mxu0 %v9011_v33  ;;  %v11763_v15 = vld [vmem:[#allocation8 + $0xb6c] sm:$0xf0] }
 0x32a   : > { %v10419_v63 = vor.u32 %v11763_v15, %v10418_v16  ;;  %v11691_v33 = vld [vmem:[#allocation8 + $0x92c] sm:$0xf0]  ;;  %v6586_v58 = vpop.f32.mrf.mxu2 }
 0x32b   : > { %6801 = vmatpush.bf16.msra.mxu3 %v9807_v19  ;;  %v10131_v6 = vor.u32 %v11691_v33, %v10130_v36  ;;  %v9618_v16 = vld [vmem:[#allocation8 + $0x510] sm:$0xf]  ;;  %v11886_v19 = vld [vmem:[#allocation8 + $0xf4c] sm:$0xf] }
 0x32c   : > { %6842 = vmatpush.bf16.msrb.mxu2 %v10511_v28  ;;  %v11563_v15 = vld [vmem:[#allocation8 + $0x52c] sm:$0xf0] }
 0x32d   : > { %6880 = vmatpush.bf16.msra.mxu1 %v9267_v37  ;;  %6868 = vmatpush.bf16.msra.mxu0 %v8979_v54  ;;  %v12672_v37 = vld [vmem:[#allocation10] sm:$0xff]  ;;  %v10098_v54 = vld [vmem:[#allocation8 + $0x8d0] sm:$0xf]  ;;  %v9619_v28 = vor.u32 %v11563_v15, %v9618_v16  ;;  %v6533_v15 = vadd.f32 %v12668_v41, %v12651_v57 }
 0x32e   : > { %v3871_v22 = vperm.slane %v12672_v37, 2  ;;  %v10290_v36 = vld [vmem:[#allocation8 + $0xa50] sm:$0xf] }
 0x32f   : > { %6802 = vmatpush.bf16.msra.mxu3 %v9775_v38  ;;  %6843 = vmatmul.bf16.vlgmr.msrb.gmra.mxu2 %v12621_v25  ;;  %v11731_v33 = vld [vmem:[#allocation8 + $0xa6c] sm:$0xf0]  ;;  %v10035_v38 = vor.u32 %v11667_v60, %v10034_v27  ;;  %v11439_v27 = vld [vmem:[#allocation8 + $0x154] sm:$0xf] }
 0x330   : > { %6869 = vmatmul.bf16.vlgmr.msra.gmra.mxu0 %v12562_v44  ;;  %6887 = vmatpush.bf16.msra.mxu2 %v9715_v8  ;;  %v9586_v34 = vld [vmem:[#allocation8 + $0x4d0] sm:$0xf]  ;;  %v10291_v51 = vor.u32 %v11731_v33, %v10290_v36  ;;  %v9140_v60 = vld [vmem:[#allocation8 + $0x170] sm:$0xf0] }
 0x331   : > { %6881 = vmatpush.bf16.msra.mxu1 %v9235_v52  ;;  %6913 = vmatpush.bf16.msrb.mxu0 %v10227_v20  ;;  %v11683_v52 = vld [vmem:[#allocation8 + $0x8ec] sm:$0xf0]  ;;  %v6662_v20 = vpop.f32.mrf.mxu0  ;;  %v6675_v2 = vpop.f32.mrf.mxu1  ;;  %v9396_v36 = vld [vmem:[#allocation8 + $0x370] sm:$0xf0] }
 0x332   : > { %v6663_v53 = vadd.f32 %v6662_v20, %v3871_v22  ;;  %v10099_v4 = vor.u32 %v11683_v52, %v10098_v54  ;;  %v11555_v35 = vld [vmem:[#allocation8 + $0x4ec] sm:$0xf0]  ;;  %v11455_v54 = vld [vmem:[#allocation8 + $0x1d4] sm:$0xf] }
 0x333   : > { %6803 = vmatpush.bf16.msra.mxu3 %v9743_v21  ;;  %v11659_v50 = vld [vmem:[#allocation8 + $0x82c] sm:$0xf0]  ;;  %v9587_v49 = vor.u32 %v11555_v35, %v9586_v34  ;;  %v9204_v52 = vld [vmem:[#allocation8 + $0x1f0] sm:$0xf0]  ;;  %v9143_v35 = vor.u32 %v11439_v27, %v9140_v60 }
 0x334   : > { %6882 = vmatmul.bf16.vlgmr.msra.gmra.mxu1 %v12564_v46  ;;  %6888 = vmatpush.bf16.msra.mxu2 %v9683_v61  ;;  %v10258_v3 = vld [vmem:[#allocation8 + $0xa10] sm:$0xf]  ;;  %v11519_v20 = vld [vmem:[#allocation8 + $0x3d4] sm:$0xf]  ;;  %v9207_v32 = vor.u32 %v11455_v54, %v9204_v52 }
 0x335   : > { %6926 = vmatpush.bf16.msrb.mxu1 %v10483_v62  ;;  %6914 = vmatpush.bf16.msrb.mxu0 %v10195_v9  ;;  %v11747_v62 = vld [vmem:[#allocation8 + $0xaec] sm:$0xf0]  ;;  %v12678_v9 = vadd.f32 %v6675_v2, %v6663_v53  ;;  %v9460_v61 = vld [vmem:[#allocation8 + $0x3f0] sm:$0xf0]  ;;  %v10895_v53 = vor.u32 %v11878_v40, %v10892_v43 }
 0x336   : > { %v10355_v45 = vor.u32 %v11747_v62, %v10354_v5  ;;  %6804 = vmatmul.bf16.vlgmr.msra.gmra.mxu3 %v12569_v1  ;;  %v9554_v5 = vld [vmem:[#allocation8 + $0x490] sm:$0xf]  ;;  %v9463_v7 = vor.u32 %v11519_v20, %v9460_v61  ;;  %v11479_v27 = vld [vmem:[#allocation8 + $0x294] sm:$0xf] }
 0x337   : > { %6848 = vmatpush.bf16.msrb.mxu3 %v10991_v48  ;;  %v11547_v62 = vld [vmem:[#allocation8 + $0x4ac] sm:$0xf0]  ;;  %v10860_v48 = vld [vmem:[#allocation8 + $0xee8] sm:$0xf0]  ;;  %v6545_v58 = vpop.f32.mrf.mxu3  ;;  %v9300_v60 = vld [vmem:[#allocation8 + $0x2b0] sm:$0xf0] }
 0x338   : > { %6889 = vmatpush.bf16.msra.mxu2 %v9651_v56  ;;  %v9428_v56 = vld [vmem:[#allocation8 + $0x3b0] sm:$0xf0]  ;;  %v9522_v59 = vld [vmem:[#allocation8 + $0x450] sm:$0xf]  ;;  %v10863_v16 = vor.u32 %v11870_v31, %v10860_v48 }
 0x339   : > { %6927 = vmatpush.bf16.msrb.mxu1 %v10451_v55  ;;  %6915 = vmatpush.bf16.msrb.mxu0 %v10163_v24  ;;  %v11675_v55 = vld [vmem:[#allocation8 + $0x8ac] sm:$0xf0]  ;;  %v10924_v24 = vld [vmem:[#allocation8 + $0xf68] sm:$0xf0]  ;;  %v6677_v8 = vpop.f32.mrf.mxu1  ;;  %v11423_v31 = vld [vmem:[#allocation8 + $0xd4] sm:$0xf] }
 0x33a   : > { %v10067_v18 = vor.u32 %v11675_v55, %v10066_v11  ;;  %v10927_v22 = vor.u32 %v11886_v19, %v10924_v24  ;;  %v9172_v11 = vld [vmem:[#allocation8 + $0x1b0] sm:$0xf0]  ;;  %v11539_v14 = vld [vmem:[#allocation8 + $0x46c] sm:$0xf0]  ;;  %v10828_v19 = vld [vmem:[#allocation8 + $0xea8] sm:$0xf0] }
 0x33b   : > { %6849 = vmatpush.bf16.msrb.mxu3 %v10959_v17  ;;  %v11511_v55 = vld [vmem:[#allocation8 + $0x394] sm:$0xf]  ;;  %v9175_v17 = vor.u32 %v11447_v10, %v9172_v11  ;;  %v9523_v24 = vor.u32 %v11539_v14, %v9522_v59  ;;  %v9490_v33 = vld [vmem:[#allocation8 + $0x410] sm:$0xf] }
 0x33c   : > { %6890 = vmatpush.bf16.msra.mxu2 %v9619_v28  ;;  %v6546_v28 = vadd.f32 %v6545_v58, %v6533_v15  ;;  %v11531_v57 = vld [vmem:[#allocation8 + $0x42c] sm:$0xf0]  ;;  %v9076_v48 = vld [vmem:[#allocation8 + $0xf0] sm:$0xf0] }
 0x33d   : > { %6928 = vmatpush.bf16.msrb.mxu1 %v10419_v63  ;;  %6916 = vmatpush.bf16.msrb.mxu0 %v10131_v6  ;;  %v6664_v63 = vpop.f32.mrf.mxu0  ;;  %v10002_v6 = vld [vmem:[#allocation8 + $0x810] sm:$0xf]  ;;  %v11487_v10 = vld [vmem:[#allocation8 + $0x2d4] sm:$0xf]  ;;  %v9079_v15 = vor.u32 %v11423_v31, %v9076_v48 }
 0x33e   : > { %v10003_v2 = vor.u32 %v11659_v50, %v10002_v6  ;;  %v11503_v63 = vld [vmem:[#allocation8 + $0x354] sm:$0xf]  ;;  %v10738_v8 = vld [vmem:[#allocation8 + $0xdd0] sm:$0xf]  ;;  %7277 = vst [vmem:[%s12690_s9] sm:$0xff] %v6546_v28  ;;  %v9491_v6 = vor.u32 %v11531_v57, %v9490_v33 }
 0x33f   : > { %6850 = vmatpush.bf16.msrb.mxu3 %v10927_v22  ;;  %v11843_v34 = vld [vmem:[#allocation8 + $0xdec] sm:$0xf0]  ;;  %v11854_v22 = vld [vmem:[#allocation8 + $0xe4c] sm:$0xf]  ;;  %v9399_v43 = vor.u32 %v11503_v63, %v9396_v36  ;;  %v9108_v50 = vld [vmem:[#allocation8 + $0x130] sm:$0xf0]  ;;  %v6585_v36 = vadd.f32 %v12675_v47, %v12657_v39 }
 0x340   : > { %6891 = vmatpush.bf16.msra.mxu2 %v9587_v49  ;;  %v9364_v49 = vld [vmem:[#allocation8 + $0x330] sm:$0xf0]  ;;  %v10706_v52 = vld [vmem:[#allocation8 + $0xd90] sm:$0xf] }
 0x341   : > { %6929 = vmatpush.bf16.msrb.mxu1 %v10387_v12  ;;  %6917 = vmatpush.bf16.msrb.mxu0 %v10099_v4  ;;  %v11723_v12 = vld [vmem:[#allocation8 + $0xa2c] sm:$0xf0]  ;;  %v12682_v4 = vpop.f32.mrf.mxu2  ;;  %v9332_v11 = vld [vmem:[#allocation8 + $0x2f0] sm:$0xf0] }
 0x342   : > { %v10259_v21 = vor.u32 %v11723_v12, %v10258_v3  ;;  %v10739_v3 = vor.u32 %v11843_v34, %v10738_v8  ;;  %v11495_v12 = vld [vmem:[#allocation8 + $0x314] sm:$0xf]  ;;  %v11835_v20 = vld [vmem:[#allocation8 + $0xdac] sm:$0xf0]  ;;  %v9303_v34 = vor.u32 %v11479_v27, %v9300_v60 }
 0x343   : > { %6851 = vmatpush.bf16.msrb.mxu3 %v10895_v53  ;;  %v9970_v53 = vld [vmem:[#allocation8 + $0x7d0] sm:$0xf]  ;;  %v11415_v58 = vld [vmem:[#allocation8 + $0x94] sm:$0xf] }
 0x344   : > { %v10674_v59 = vld [vmem:[#allocation8 + $0xd50] sm:$0xf]  ;;  %v10228_v31 = vld [vmem:[#allocation8 + $0x9f0] sm:$0xf0] }
 0x345   : > { %6930 = vmatpush.bf16.msrb.mxu1 %v10355_v45  ;;  %6918 = vmatpush.bf16.msrb.mxu0 %v10067_v18  ;;  %v9555_v45 = vor.u32 %v11547_v62, %v9554_v5  ;;  %v11862_v18 = vld [vmem:[#allocation8 + $0xe8c] sm:$0xf]  ;;  %v11827_v14 = vld [vmem:[#allocation8 + $0xd6c] sm:$0xf0]  ;;  %v11775_v48 = vld [vmem:[#allocation8 + $0xbd4] sm:$0xf] }
 0x346   : > { %v10831_v41 = vor.u32 %v11862_v18, %v10828_v19  ;;  %v11846_v5 = vld [vmem:[#allocation8 + $0xe0c] sm:$0xf]  ;;  %v9335_v18 = vor.u32 %v11487_v10, %v9332_v11  ;;  %v11643_v19 = vld [vmem:[#allocation8 + $0x7ac] sm:$0xf0]  ;;  %v11767_v27 = vld [vmem:[#allocation8 + $0xb94] sm:$0xf] }
 0x347   : > { %6892 = vmatpush.bf16.msra.mxu2 %v9555_v45  ;;  %6852 = vmatpush.bf16.msrb.mxu3 %v10863_v16  ;;  %v10764_v62 = vld [vmem:[#allocation8 + $0xe28] sm:$0xf0]  ;;  %v10707_v45 = vor.u32 %v11835_v20, %v10706_v52  ;;  %v10642_v63 = vld [vmem:[#allocation8 + $0xd10] sm:$0xf]  ;;  %v10452_v60 = vld [vmem:[#allocation8 + $0xbb0] sm:$0xf0] }
 0x348   : > { %v11819_v28 = vld [vmem:[#allocation8 + $0xd2c] sm:$0xf0] }
 0x349   : > { %6931 = vmatpush.bf16.msrb.mxu1 %v10323_v23  ;;  %6919 = vmatpush.bf16.msrb.mxu0 %v10035_v38  ;;  %v9431_v23 = vor.u32 %v11511_v55, %v9428_v56  ;;  %v10796_v38 = vld [vmem:[#allocation8 + $0xe68] sm:$0xf0]  ;;  %v6638_v40 = vpop.f32.mrf.mxu2  ;;  %v10767_v56 = vor.u32 %v11846_v5, %v10764_v62  ;;  %v10610_v47 = vld [vmem:[#allocation8 + $0xcd0] sm:$0xf]  ;;  %v8980_v62 = vld [vmem:[#allocation8 + $0x30] sm:$0xf0] }
 0x34a   : > { %v10799_v54 = vor.u32 %v11854_v22, %v10796_v38  ;;  %v11407_v22 = vld [vmem:[#allocation8 + $0x54] sm:$0xf]  ;;  %v9874_v52 = vld [vmem:[#allocation8 + $0x710] sm:$0xf] }
 0x34b   : > { %6893 = vmatpush.bf16.msra.mxu2 %v9523_v24  ;;  %6853 = vmatpush.bf16.msrb.mxu3 %v10831_v41  ;;  %v10675_v24 = vor.u32 %v11827_v14, %v10674_v59  ;;  %v9906_v41 = vld [vmem:[#allocation8 + $0x750] sm:$0xf]  ;;  %v9012_v38 = vld [vmem:[#allocation8 + $0x70] sm:$0xf0] }
 0x34c   : > { %v11627_v20 = vld [vmem:[#allocation8 + $0x72c] sm:$0xf0] }
 0x34d   : > { %6932 = vmatpush.bf16.msrb.mxu1 %v10291_v51  ;;  %6920 = vmatpush.bf16.msrb.mxu0 %v10003_v2  ;;  %v11431_v51 = vld [vmem:[#allocation8 + $0x114] sm:$0xf]  ;;  %v6547_v2 = vpop.f32.mrf.mxu3  ;;  %v10578_v10 = vld [vmem:[#allocation8 + $0xc90] sm:$0xf] }
 0x34e   : > { %v9111_v61 = vor.u32 %v11431_v51, %v9108_v50  ;;  %v11471_v51 = vld [vmem:[#allocation8 + $0x254] sm:$0xf]  ;;  %v11803_v11 = vld [vmem:[#allocation8 + $0xcac] sm:$0xf0] }
 0x34f   : > { %6894 = vmatpush.bf16.msra.mxu2 %v9491_v6  ;;  %6854 = vmatpush.bf16.msrb.mxu3 %v10799_v54  ;;  %v10643_v6 = vor.u32 %v11819_v28, %v10642_v63  ;;  %v9268_v50 = vld [vmem:[#allocation8 + $0x270] sm:$0xf0]  ;;  %v9015_v54 = vor.u32 %v11407_v22, %v9012_v38  ;;  %v10546_v63 = vld [vmem:[#allocation8 + $0xc50] sm:$0xf] }
 0x350   : > { %6921 = vmatmul.bf16.vlgmr.msrb.gmra.mxu0 %v12585_v13  ;;  %v9271_v5 = vor.u32 %v11471_v51, %v9268_v50  ;;  %v9236_v2 = vld [vmem:[#allocation8 + $0x230] sm:$0xf0]  ;;  %v11795_v28 = vld [vmem:[#allocation8 + $0xc6c] sm:$0xf0] }
 0x351   : > { %6933 = vmatpush.bf16.msrb.mxu1 %v10259_v21  ;;  %6965 = vmatpush.bf16.msra.mxu0 %v9207_v32  ;;  %v9367_v21 = vor.u32 %v11495_v12, %v9364_v49  ;;  %v11651_v32 = vld [vmem:[#allocation8 + $0x7ec] sm:$0xf0]  ;;  %v12695_v55 = vpop.f32.mrf.mxu1  ;;  %v10164_v22 = vld [vmem:[#allocation8 + $0x970] sm:$0xf0] }
 0x352   : > { %6895 = vmatmul.bf16.vlgmr.msra.gmra.mxu2 %v12566_v29  ;;  %v9971_v16 = vor.u32 %v11651_v32, %v9970_v53  ;;  %v11463_v53 = vld [vmem:[#allocation8 + $0x214] sm:$0xf] }
 0x353   : > { %6939 = vmatpush.bf16.msrb.mxu2 %v10739_v3  ;;  %6855 = vmatpush.bf16.msrb.mxu3 %v10767_v56  ;;  %v11811_v3 = vld [vmem:[#allocation8 + $0xcec] sm:$0xf0]  ;;  %v11711_v32 = vld [vmem:[#allocation8 + $0x9d4] sm:$0xf]  ;;  %v9875_v56 = vor.u32 %v11627_v20, %v9874_v52 }
 0x354   : > { %6934 = vmatmul.bf16.vlgmr.msrb.gmra.mxu1 %v12593_v30  ;;  %v11759_v38 = vld [vmem:[#allocation8 + $0xb54] sm:$0xf] }
 0x355   : > { %6978 = vmatpush.bf16.msra.mxu1 %v9463_v7  ;;  %6966 = vmatpush.bf16.msra.mxu0 %v9175_v17  ;;  %v12693_v7 = vpop.f32.mrf.mxu0  ;;  %v9938_v17 = vld [vmem:[#allocation8 + $0x790] sm:$0xf]  ;;  %v6597_v8 = vpop.f32.mrf.mxu3 }
 0x356   : > { %v9939_v33 = vor.u32 %v11643_v19, %v9938_v17  ;;  %v6598_v40 = vadd.f32 %v6597_v8, %v6585_v36  ;;  %6856 = vmatmul.bf16.vlgmr.msrb.gmra.mxu3 %v12640_v26  ;;  %v9842_v17 = vld [vmem:[#allocation8 + $0x6d0] sm:$0xf]  ;;  %v10455_v8 = vor.u32 %v11767_v27, %v10452_v60 }
 0x357   : > { %6940 = vmatpush.bf16.msrb.mxu2 %v10707_v45  ;;  %6900 = vmatpush.bf16.msra.mxu3 %v9971_v16  ;;  %v9239_v16 = vor.u32 %v11463_v53, %v9236_v2 }
 0x358   : > { %v6611_v12 = vadd.f32 %v12662_v42, %v6598_v40  ;;  %v10484_v42 = vld [vmem:[#allocation8 + $0xbf0] sm:$0xf0] }
 0x359   : > { %6979 = vmatpush.bf16.msra.mxu1 %v9431_v23  ;;  %6967 = vmatpush.bf16.msra.mxu0 %v9143_v35  ;;  %v9044_v23 = vld [vmem:[#allocation8 + $0xb0] sm:$0xf0]  ;;  %v11635_v35 = vld [vmem:[#allocation8 + $0x76c] sm:$0xf0]  ;;  %v6729_v39 = vpop.f32.mrf.mxu1  ;;  %v10487_v19 = vor.u32 %v11775_v48, %v10484_v42 }
 0x35a   : > { %v9047_v57 = vor.u32 %v11415_v58, %v9044_v23  ;;  %v9907_v49 = vor.u32 %v11635_v35, %v9906_v41  ;;  %v6624_v45 = vadd.f32 %v12664_v0, %v6611_v12  ;;  %v10579_v58 = vor.u32 %v11803_v11, %v10578_v10  ;;  %v11703_v23 = vld [vmem:[#allocation8 + $0x994] sm:$0xf]  ;;  %v12703_v0 = vpop.f32.mrf.mxu2  ;;  %v11611_v41 = vld [vmem:[#allocation8 + $0x6ac] sm:$0xf0] }
 0x35b   : > { %6941 = vmatpush.bf16.msrb.mxu2 %v10675_v24  ;;  %6901 = vmatpush.bf16.msra.mxu3 %v9939_v33  ;;  %v10196_v24 = vld [vmem:[#allocation8 + $0x9b0] sm:$0xf0]  ;;  %v9746_v10 = vld [vmem:[#allocation8 + $0x610] sm:$0xf] }
 0x35c   : > { %v10199_v33 = vor.u32 %v11703_v23, %v10196_v24  ;;  %v11695_v35 = vld [vmem:[#allocation8 + $0x954] sm:$0xf]  ;;  %v6637_v51 = vadd.f32 %v12682_v4, %v6624_v45  ;;  %v11595_v11 = vld [vmem:[#allocation8 + $0x62c] sm:$0xf0] }
 0x35d   : > { %6980 = vmatpush.bf16.msra.mxu1 %v9399_v43  ;;  %6968 = vmatpush.bf16.msra.mxu0 %v9111_v61  ;;  %v6716_v43 = vpop.f32.mrf.mxu0  ;;  %v11399_v61 = vld [vmem:[#allocation8 + $0x14] sm:$0xf]  ;;  %v6599_v14 = vpop.f32.mrf.mxu3  ;;  %v10167_v12 = vor.u32 %v11695_v35, %v10164_v22 }
 0x35e   : > { %v8983_v59 = vor.u32 %v11399_v61, %v8980_v62  ;;  %v10420_v40 = vld [vmem:[#allocation8 + $0xb70] sm:$0xf0]  ;;  %v10514_v43 = vld [vmem:[#allocation8 + $0xc10] sm:$0xf] }
 0x35f   : > { %6942 = vmatpush.bf16.msrb.mxu2 %v10643_v6  ;;  %6902 = vmatpush.bf16.msra.mxu3 %v9907_v49  ;;  %v11787_v6 = vld [vmem:[#allocation8 + $0xc2c] sm:$0xf0]  ;;  %v11583_v39 = vld [vmem:[#allocation8 + $0x5d4] sm:$0xf]  ;;  %v10423_v20 = vor.u32 %v11759_v38, %v10420_v40 }
 0x360   : > { %v9778_v49 = vld [vmem:[#allocation8 + $0x650] sm:$0xf]  ;;  %v10515_v61 = vor.u32 %v11787_v6, %v10514_v43  ;;  %v10132_v62 = vld [vmem:[#allocation8 + $0x930] sm:$0xf0] }
 0x361   : > { %6981 = vmatpush.bf16.msra.mxu1 %v9367_v21  ;;  %6969 = vmatpush.bf16.msra.mxu0 %v9079_v15  ;;  %v10611_v21 = vor.u32 %v11811_v3, %v10610_v47  ;;  %v10231_v15 = vor.u32 %v11711_v32, %v10228_v31  ;;  %v9716_v47 = vld [vmem:[#allocation8 + $0x5f0] sm:$0xf0]  ;;  %v3872_v32 = vperm.slane %v12672_v37, 3  ;;  %v11907_v14 = vld [vmem:[#allocation8 + $0xfec] sm:$0xf0]  ;;  %v9747_v37 = vor.u32 %v11595_v11, %v9746_v10 }
 0x362   : > { %v6690_v53 = vpop.f32.mrf.mxu2  ;;  %v9719_v2 = vor.u32 %v11583_v39, %v9716_v47  ;;  %v10388_v4 = vld [vmem:[#allocation8 + $0xb30] sm:$0xf0]  ;;  %v10930_v39 = vld [vmem:[#allocation8 + $0xf50] sm:$0xf] }
 0x363   : > { %6943 = vmatpush.bf16.msrb.mxu2 %v10611_v21  ;;  %6903 = vmatpush.bf16.msra.mxu3 %v9875_v56  ;;  %v11751_v21 = vld [vmem:[#allocation8 + $0xb14] sm:$0xf]  ;;  %v10994_v56 = vld [vmem:[#allocation8 + $0xfd0] sm:$0xf] }
 0x364   : > { %v11575_v48 = vld [vmem:[#allocation8 + $0x594] sm:$0xf] }
 0x365   : > { %6982 = vmatpush.bf16.msra.mxu1 %v9335_v18  ;;  %6970 = vmatpush.bf16.msra.mxu0 %v9047_v57  ;;  %v11619_v18 = vld [vmem:[#allocation8 + $0x6ec] sm:$0xf0]  ;;  %v6649_v3 = vpop.f32.mrf.mxu3  ;;  %v9684_v45 = vld [vmem:[#allocation8 + $0x5b0] sm:$0xf0] }
 0x366   : > { %v9843_v36 = vor.u32 %v11619_v18, %v9842_v17  ;;  %v9810_v57 = vld [vmem:[#allocation8 + $0x690] sm:$0xf]  ;;  %v6650_v52 = vadd.f32 %v6649_v3, %v6637_v51  ;;  %v9687_v17 = vor.u32 %v11575_v48, %v9684_v45  ;;  %v11743_v18 = vld [vmem:[#allocation8 + $0xad4] sm:$0xf] }
 0x367   : > { %6944 = vmatpush.bf16.msrb.mxu2 %v10579_v58  ;;  %v9811_v50 = vor.u32 %v11611_v41, %v9810_v57  ;;  %v11567_v23 = vld [vmem:[#allocation8 + $0x554] sm:$0xf]  ;;  %v11899_v41 = vld [vmem:[#allocation8 + $0xfac] sm:$0xf0] }
 0x368   : > { %6904 = vmatpush.bf16.msra.mxu3 %v9843_v36  ;;  %7278 = vst [vmem:[%s12690_s9 + $0x8] sm:$0xff] %v6650_v52  ;;  %v9652_v24 = vld [vmem:[#allocation8 + $0x570] sm:$0xf0]  ;;  %v11891_v3 = vld [vmem:[#allocation8 + $0xf6c] sm:$0xf0] }
 0x369   : > { %6983 = vmatpush.bf16.msra.mxu1 %v9303_v34  ;;  %6971 = vmatpush.bf16.msra.mxu0 %v9015_v54  ;;  %v10547_v34 = vor.u32 %v11795_v28, %v10546_v63  ;;  %v11603_v54 = vld [vmem:[#allocation8 + $0x66c] sm:$0xf0]  ;;  %v10995_v28 = vor.u32 %v11907_v14, %v10994_v56  ;;  %v9655_v22 = vor.u32 %v11567_v23, %v9652_v24  ;;  %v11735_v38 = vld [vmem:[#allocation8 + $0xa94] sm:$0xf]  ;;  %v9210_v56 = vld [vmem:[#allocation8 + $0x1d8] sm:$0xf] }
 0x36a   : > { %v9779_v31 = vor.u32 %v11603_v54, %v9778_v49  ;;  %v10324_v40 = vld [vmem:[#allocation8 + $0xab0] sm:$0xf0]  ;;  %v9466_v14 = vld [vmem:[#allocation8 + $0x3d8] sm:$0xf]  ;;  %v10866_v23 = vld [vmem:[#allocation8 + $0xed0] sm:$0xf] }
 0x36b   : > { %6945 = vmatpush.bf16.msrb.mxu2 %v10547_v34  ;;  %v10068_v34 = vld [vmem:[#allocation8 + $0x8b0] sm:$0xf0]  ;;  %v10327_v47 = vor.u32 %v11735_v38, %v10324_v40  ;;  %v11875_v24 = vld [vmem:[#allocation8 + $0xeec] sm:$0xf0] }
 0x36c   : > { %6905 = vmatpush.bf16.msra.mxu3 %v9811_v50  ;;  %v11559_v43 = vld [vmem:[#allocation8 + $0x514] sm:$0xf]  ;;  %v10834_v38 = vld [vmem:[#allocation8 + $0xe90] sm:$0xf] }
 0x36d   : > { %6984 = vmatpush.bf16.msra.mxu1 %v9271_v5  ;;  %6972 = vmatpush.bf16.msra.mxu0 %v8983_v59  ;;  %v11687_v5 = vld [vmem:[#allocation8 + $0x914] sm:$0xf]  ;;  %v10391_v59 = vor.u32 %v11751_v21, %v10388_v4  ;;  %v6766_v58 = vpop.f32.mrf.mxu0  ;;  %v6651_v63 = vpop.f32.mrf.mxu3  ;;  %v10898_v4 = vld [vmem:[#allocation8 + $0xf10] sm:$0xf] }
 0x36e   : > { %v10135_v42 = vor.u32 %v11687_v5, %v10132_v62  ;;  %v6767_v27 = vadd.f32 %v6766_v58, %v3872_v32  ;;  %v9620_v6 = vld [vmem:[#allocation8 + $0x530] sm:$0xf0]  ;;  %v11883_v32 = vld [vmem:[#allocation8 + $0xf2c] sm:$0xf0]  ;;  %v9178_v63 = vld [vmem:[#allocation8 + $0x198] sm:$0xf] }
 0x36f   : > { %6946 = vmatpush.bf16.msrb.mxu2 %v10515_v61  ;;  %v10036_v49 = vld [vmem:[#allocation8 + $0x870] sm:$0xf0]  ;;  %v9623_v54 = vor.u32 %v11559_v43, %v9620_v6  ;;  %v11867_v40 = vld [vmem:[#allocation8 + $0xeac] sm:$0xf0] }
 0x370   : > { %6973 = vmatmul.bf16.vlgmr.msra.gmra.mxu0 %v12562_v44  ;;  %6906 = vmatpush.bf16.msra.mxu3 %v9779_v31  ;;  %v11727_v52 = vld [vmem:[#allocation8 + $0xa54] sm:$0xf] }
 0x371   : > { %6985 = vmatpush.bf16.msra.mxu1 %v9239_v16  ;;  %7017 = vmatpush.bf16.msrb.mxu0 %v10231_v15  ;;  %v11679_v16 = vld [vmem:[#allocation8 + $0x8d4] sm:$0xf]  ;;  %v6779_v60 = vpop.f32.mrf.mxu1 }
 0x372   : > { %v10100_v15 = vld [vmem:[#allocation8 + $0x8f0] sm:$0xf0]  ;;  %6947 = vmatmul.bf16.vlgmr.msrb.gmra.mxu2 %v12621_v25  ;;  %v12711_v35 = vadd.f32 %v6779_v60, %v6767_v27 }
 0x373   : > { %6991 = vmatpush.bf16.msra.mxu2 %v9719_v2  ;;  %v10103_v36 = vor.u32 %v11679_v16, %v10100_v15  ;;  %v11551_v5 = vld [vmem:[#allocation8 + $0x4d4] sm:$0xf]  ;;  %v10931_v2 = vor.u32 %v11891_v3, %v10930_v39  ;;  %v11524_v16 = vld [vmem:[#allocation8 + $0x3f4] sm:$0xf0] }
 0x374   : > { %6986 = vmatmul.bf16.vlgmr.msra.gmra.mxu1 %v12564_v46  ;;  %6907 = vmatpush.bf16.msra.mxu3 %v9747_v37  ;;  %v9588_v62 = vld [vmem:[#allocation8 + $0x4f0] sm:$0xf0]  ;;  %v9467_v27 = vor.u32 %v11524_v16, %v9466_v14  ;;  %v9402_v39 = vld [vmem:[#allocation8 + $0x358] sm:$0xf]  ;;  %v10770_v14 = vld [vmem:[#allocation8 + $0xe10] sm:$0xf] }
 0x375   : > { %7030 = vmatpush.bf16.msrb.mxu1 %v10487_v19  ;;  %7018 = vmatpush.bf16.msrb.mxu0 %v10199_v33  ;;  %v10356_v19 = vld [vmem:[#allocation8 + $0xaf0] sm:$0xf0]  ;;  %v10962_v33 = vld [vmem:[#allocation8 + $0xf90] sm:$0xf]  ;;  %v6768_v61 = vpop.f32.mrf.mxu0  ;;  %v9591_v11 = vor.u32 %v11551_v5, %v9588_v62 }
 0x376   : > { %v10359_v57 = vor.u32 %v11743_v18, %v10356_v19  ;;  %v10963_v51 = vor.u32 %v11899_v41, %v10962_v33  ;;  %v11655_v31 = vld [vmem:[#allocation8 + $0x814] sm:$0xf]  ;;  %v10899_v18 = vor.u32 %v11883_v32, %v10898_v4  ;;  %v12714_v33 = vpop.f32.mrf.mxu2  ;;  %v10802_v62 = vld [vmem:[#allocation8 + $0xe50] sm:$0xf]  ;;  %v9114_v32 = vld [vmem:[#allocation8 + $0x118] sm:$0xf] }
 0x377   : > { %6992 = vmatpush.bf16.msra.mxu2 %v9687_v17  ;;  %6908 = vmatmul.bf16.vlgmr.msra.gmra.mxu3 %v12569_v1  ;;  %v10004_v45 = vld [vmem:[#allocation8 + $0x830] sm:$0xf0]  ;;  %v11851_v16 = vld [vmem:[#allocation8 + $0xe2c] sm:$0xf0] }
 0x378   : > { %6952 = vmatpush.bf16.msrb.mxu3 %v10995_v28  ;;  %v10260_v10 = vld [vmem:[#allocation8 + $0xa30] sm:$0xf0]  ;;  %v10007_v19 = vor.u32 %v11655_v31, %v10004_v45  ;;  %v11452_v28 = vld [vmem:[#allocation8 + $0x1b4] sm:$0xf0] }
 0x379   : > { %7031 = vmatpush.bf16.msrb.mxu1 %v10455_v8  ;;  %7019 = vmatpush.bf16.msrb.mxu0 %v10167_v12  ;;  %v11671_v8 = vld [vmem:[#allocation8 + $0x894] sm:$0xf]  ;;  %v6781_v53 = vpop.f32.mrf.mxu1  ;;  %v6701_v61 = vpop.f32.mrf.mxu3  ;;  %v11436_v31 = vld [vmem:[#allocation8 + $0x134] sm:$0xf0] }
 0x37a   : > { %v10071_v50 = vor.u32 %v11671_v8, %v10068_v34  ;;  %v11663_v12 = vld [vmem:[#allocation8 + $0x854] sm:$0xf]  ;;  %v10867_v34 = vor.u32 %v11875_v24, %v10866_v23  ;;  %v11859_v53 = vld [vmem:[#allocation8 + $0xe6c] sm:$0xf0]  ;;  %v11500_v45 = vld [vmem:[#allocation8 + $0x334] sm:$0xf0] }
 0x37b   : > { %6993 = vmatpush.bf16.msra.mxu2 %v9655_v22  ;;  %v10039_v21 = vor.u32 %v11663_v12, %v10036_v49  ;;  %v11543_v15 = vld [vmem:[#allocation8 + $0x494] sm:$0xf]  ;;  %v9179_v22 = vor.u32 %v11452_v28, %v9178_v63  ;;  %v6689_v49 = vadd.f32 %v12703_v0, %v12678_v9  ;;  %v9370_v0 = vld [vmem:[#allocation8 + $0x318] sm:$0xf] }
 0x37c   : > { %6953 = vmatpush.bf16.msrb.mxu3 %v10963_v51  ;;  %v9556_v17 = vld [vmem:[#allocation8 + $0x4b0] sm:$0xf0]  ;;  %v9146_v51 = vld [vmem:[#allocation8 + $0x158] sm:$0xf] }
 0x37d   : > { %7032 = vmatpush.bf16.msrb.mxu1 %v10423_v20  ;;  %7020 = vmatpush.bf16.msrb.mxu0 %v10135_v42  ;;  %v10292_v20 = vld [vmem:[#allocation8 + $0xa70] sm:$0xf0]  ;;  %v9559_v60 = vor.u32 %v11543_v15, %v9556_v17  ;;  %v9371_v17 = vor.u32 %v11500_v45, %v9370_v0  ;;  %v9338_v23 = vld [vmem:[#allocation8 + $0x2d8] sm:$0xf] }
 0x37e   : > { %v10295_v48 = vor.u32 %v11727_v52, %v10292_v20  ;;  %v11719_v42 = vld [vmem:[#allocation8 + $0xa14] sm:$0xf]  ;;  %v11492_v24 = vld [vmem:[#allocation8 + $0x2f4] sm:$0xf0] }
 0x37f   : > { %6994 = vmatpush.bf16.msra.mxu2 %v9623_v54  ;;  %v10263_v58 = vor.u32 %v11719_v42, %v10260_v10  ;;  %v11535_v41 = vld [vmem:[#allocation8 + $0x454] sm:$0xf]  ;;  %v10835_v54 = vor.u32 %v11867_v40, %v10834_v38  ;;  %v10803_v10 = vor.u32 %v11859_v53, %v10802_v62  ;;  %v9050_v38 = vld [vmem:[#allocation8 + $0x98] sm:$0xf] }
 0x380   : > { %6954 = vmatpush.bf16.msrb.mxu3 %v10931_v2  ;;  %v9524_v8 = vld [vmem:[#allocation8 + $0x470] sm:$0xf0]  ;;  %v6702_v2 = vadd.f32 %v6701_v61, %v6689_v49  ;;  %v11420_v40 = vld [vmem:[#allocation8 + $0xb4] sm:$0xf0] }
 0x381   : > { %7033 = vmatpush.bf16.msrb.mxu1 %v10391_v59  ;;  %7021 = vmatpush.bf16.msrb.mxu0 %v10103_v36  ;;  %v11460_v59 = vld [vmem:[#allocation8 + $0x1f4] sm:$0xf0]  ;;  %v9527_v6 = vor.u32 %v11535_v41, %v9524_v8  ;;  %v11527_v3 = vld [vmem:[#allocation8 + $0x414] sm:$0xf] }
 0x382   : > { %v9211_v37 = vor.u32 %v11460_v59, %v9210_v56  ;;  %v9434_v36 = vld [vmem:[#allocation8 + $0x398] sm:$0xf]  ;;  %v9492_v12 = vld [vmem:[#allocation8 + $0x430] sm:$0xf0]  ;;  %v6715_v42 = vadd.f32 %v12693_v7, %v6702_v2  ;;  %v9115_v59 = vor.u32 %v11436_v31, %v9114_v32 }
 0x383   : > { %6995 = vmatpush.bf16.msra.mxu2 %v9591_v11  ;;  %v11839_v52 = vld [vmem:[#allocation8 + $0xdd4] sm:$0xf]  ;;  %v9495_v4 = vor.u32 %v11527_v3, %v9492_v12  ;;  %v9051_v3 = vor.u32 %v11420_v40, %v9050_v38  ;;  %v11476_v62 = vld [vmem:[#allocation8 + $0x274] sm:$0xf0] }
 0x384   : > { %6955 = vmatpush.bf16.msrb.mxu3 %v10899_v18  ;;  %v10740_v20 = vld [vmem:[#allocation8 + $0xdf0] sm:$0xf0]  ;;  %v8986_v0 = vld [vmem:[#allocation8 + $0x18] sm:$0xf] }
 0x385   : > { %7034 = vmatpush.bf16.msrb.mxu1 %v10359_v57  ;;  %7022 = vmatpush.bf16.msrb.mxu0 %v10071_v50  ;;  %v11516_v57 = vld [vmem:[#allocation8 + $0x3b4] sm:$0xf0]  ;;  %v10743_v9 = vor.u32 %v11839_v52, %v10740_v20  ;;  %v11831_v11 = vld [vmem:[#allocation8 + $0xd94] sm:$0xf] }
 0x386   : > { %v9435_v43 = vor.u32 %v11516_v57, %v9434_v36  ;;  %v11444_v50 = vld [vmem:[#allocation8 + $0x174] sm:$0xf0]  ;;  %v10708_v56 = vld [vmem:[#allocation8 + $0xdb0] sm:$0xf0]  ;;  %v6703_v57 = vpop.f32.mrf.mxu3 }
 0x387   : > { %6996 = vmatpush.bf16.msra.mxu2 %v9559_v60  ;;  %v9147_v5 = vor.u32 %v11444_v50, %v9146_v51  ;;  %v11647_v15 = vld [vmem:[#allocation8 + $0x7d4] sm:$0xf]  ;;  %v10711_v7 = vor.u32 %v11831_v11, %v10708_v56  ;;  %v10771_v60 = vor.u32 %v11851_v16, %v10770_v14  ;;  %v11484_v51 = vld [vmem:[#allocation8 + $0x2b4] sm:$0xf0] }
 0x388   : > { %6956 = vmatpush.bf16.msrb.mxu3 %v10867_v34  ;;  %v9972_v18 = vld [vmem:[#allocation8 + $0x7f0] sm:$0xf0]  ;;  %v9339_v34 = vor.u32 %v11492_v24, %v9338_v23  ;;  %v9018_v52 = vld [vmem:[#allocation8 + $0x58] sm:$0xf] }
 0x389   : > { %7035 = vmatpush.bf16.msrb.mxu1 %v10327_v47  ;;  %7023 = vmatpush.bf16.msrb.mxu0 %v10039_v21  ;;  %v11508_v47 = vld [vmem:[#allocation8 + $0x374] sm:$0xf0]  ;;  %v11823_v63 = vld [vmem:[#allocation8 + $0xd54] sm:$0xf]  ;;  %v9975_v41 = vor.u32 %v11647_v15, %v9972_v18 }
 0x38a   : > { %v9403_v21 = vor.u32 %v11508_v47, %v9402_v39  ;;  %v10676_v28 = vld [vmem:[#allocation8 + $0xd70] sm:$0xf0]  ;;  %v11412_v20 = vld [vmem:[#allocation8 + $0x74] sm:$0xf0] }
 0x38b   : > { %6997 = vmatpush.bf16.msra.mxu2 %v9527_v6  ;;  %v9306_v6 = vld [vmem:[#allocation8 + $0x298] sm:$0xf]  ;;  %v11815_v50 = vld [vmem:[#allocation8 + $0xd14] sm:$0xf]  ;;  %v9019_v31 = vor.u32 %v11412_v20, %v9018_v52 }
 0x38c   : > { %6957 = vmatpush.bf16.msrb.mxu3 %v10835_v54  ;;  %v10644_v39 = vld [vmem:[#allocation8 + $0xd30] sm:$0xf0]  ;;  %v9307_v49 = vor.u32 %v11484_v51, %v9306_v6  ;;  %v11468_v11 = vld [vmem:[#allocation8 + $0x234] sm:$0xf0] }
 0x38d   : > { %7036 = vmatpush.bf16.msrb.mxu1 %v10295_v48  ;;  %7024 = vmatpush.bf16.msrb.mxu0 %v10007_v19  ;;  %v6742_v48 = vpop.f32.mrf.mxu2  ;;  %v9082_v19 = vld [vmem:[#allocation8 + $0xd8] sm:$0xf]  ;;  %v11631_v12 = vld [vmem:[#allocation8 + $0x754] sm:$0xf]  ;;  %v10647_v61 = vor.u32 %v11815_v50, %v10644_v39 }
 0x38e   : > { %v9908_v54 = vld [vmem:[#allocation8 + $0x770] sm:$0xf0]  ;;  %v11716_v14 = vld [vmem:[#allocation8 + $0x9f4] sm:$0xf0] }
 0x38f   : > { %6998 = vmatpush.bf16.msra.mxu2 %v9495_v4  ;;  %v11807_v2 = vld [vmem:[#allocation8 + $0xcd4] sm:$0xf]  ;;  %v9911_v32 = vor.u32 %v11631_v12, %v9908_v54  ;;  %v10490_v16 = vld [vmem:[#allocation8 + $0xbd8] sm:$0xf] }
 0x390   : > { %7025 = vmatmul.bf16.vlgmr.msrb.gmra.mxu0 %v12585_v13  ;;  %6958 = vmatpush.bf16.msrb.mxu3 %v10803_v10  ;;  %v11623_v48 = vld [vmem:[#allocation8 + $0x714] sm:$0xf]  ;;  %v9242_v10 = vld [vmem:[#allocation8 + $0x218] sm:$0xf] }
 0x391   : > { %7037 = vmatpush.bf16.msrb.mxu1 %v10263_v58  ;;  %7069 = vmatpush.bf16.msra.mxu0 %v9211_v37  ;;  %v11428_v58 = vld [vmem:[#allocation8 + $0xf4] sm:$0xf0]  ;;  %v12722_v37 = vadd.f32 %v12695_v55, %v6715_v42  ;;  %v12726_v36 = vpop.f32.mrf.mxu1  ;;  %v11639_v55 = vld [vmem:[#allocation8 + $0x794] sm:$0xf] }
 0x392   : > { %6999 = vmatmul.bf16.vlgmr.msra.gmra.mxu2 %v12566_v29  ;;  %v9083_v8 = vor.u32 %v11428_v58, %v9082_v19  ;;  %v11404_v42 = vld [vmem:[#allocation8 + $0x34] sm:$0xf0]  ;;  %v10580_v18 = vld [vmem:[#allocation8 + $0xcb0] sm:$0xf0] }
 0x393   : > { %7043 = vmatpush.bf16.msrb.mxu2 %v10743_v9  ;;  %v9876_v9 = vld [vmem:[#allocation8 + $0x730] sm:$0xf0]  ;;  %v11780_v15 = vld [vmem:[#allocation8 + $0xbf4] sm:$0xf0]  ;;  %v8987_v58 = vor.u32 %v11404_v42, %v8986_v0  ;;  %v6741_v20 = vadd.f32 %v12714_v33, %v12722_v37  ;;  %v12737_v37 = vld [vmem:[#allocation10] sm:$0xff] }
 0x394   : > { %7038 = vmatmul.bf16.vlgmr.msrb.gmra.mxu1 %v12593_v30  ;;  %6959 = vmatpush.bf16.msrb.mxu3 %v10771_v60  ;;  %v9879_v19 = vor.u32 %v11623_v48, %v9876_v9  ;;  %v11615_v24 = vld [vmem:[#allocation8 + $0x6d4] sm:$0xf]  ;;  %v10202_v57 = vld [vmem:[#allocation8 + $0x998] sm:$0xf] }
 0x395   : > { %7082 = vmatpush.bf16.msra.mxu1 %v9467_v27  ;;  %7070 = vmatpush.bf16.msra.mxu0 %v9179_v22  ;;  %v12724_v27 = vpop.f32.mrf.mxu0  ;;  %v9940_v22 = vld [vmem:[#allocation8 + $0x7b0] sm:$0xf0]  ;;  %v10426_v12 = vld [vmem:[#allocation8 + $0xb58] sm:$0xf] }
 0x396   : > { %v9943_v47 = vor.u32 %v11639_v55, %v9940_v22  ;;  %v9844_v60 = vld [vmem:[#allocation8 + $0x6f0] sm:$0xf0]  ;;  %v12730_v55 = vpop.f32.mrf.mxu2  ;;  %v10138_v9 = vld [vmem:[#allocation8 + $0x918] sm:$0xf] }
 0x397   : > { %7044 = vmatpush.bf16.msrb.mxu2 %v10711_v7  ;;  %6960 = vmatmul.bf16.vlgmr.msrb.gmra.mxu3 %v12640_v26  ;;  %v9243_v7 = vor.u32 %v11468_v11, %v9242_v10  ;;  %v11791_v22 = vld [vmem:[#allocation8 + $0xc54] sm:$0xf]  ;;  %v9847_v40 = vor.u32 %v11615_v24, %v9844_v60  ;;  %v11692_v0 = vld [vmem:[#allocation8 + $0x934] sm:$0xf0]  ;;  %v3873_v11 = vperm.slane %v12737_v37, 4 }
 0x398   : > { %7004 = vmatpush.bf16.msra.mxu3 %v9975_v41  ;;  %v11708_v41 = vld [vmem:[#allocation8 + $0x9b4] sm:$0xf0]  ;;  %v10548_v38 = vld [vmem:[#allocation8 + $0xc70] sm:$0xf0] }
 0x399   : > { %7083 = vmatpush.bf16.msra.mxu1 %v9435_v43  ;;  %7071 = vmatpush.bf16.msra.mxu0 %v9147_v5  ;;  %v10679_v43 = vor.u32 %v11823_v63, %v10676_v28  ;;  %v9274_v5 = vld [vmem:[#allocation8 + $0x258] sm:$0xf]  ;;  %v6833_v4 = vpop.f32.mrf.mxu1  ;;  %v10491_v63 = vor.u32 %v11780_v15, %v10490_v16  ;;  %v11607_v6 = vld [vmem:[#allocation8 + $0x694] sm:$0xf]  ;;  %v10551_v39 = vor.u32 %v11791_v22, %v10548_v38 }
 0x39a   : > { %v9275_v45 = vor.u32 %v11476_v62, %v9274_v5  ;;  %v9812_v51 = vld [vmem:[#allocation8 + $0x6b0] sm:$0xf0]  ;;  %v9722_v5 = vld [vmem:[#allocation8 + $0x5d8] sm:$0xf]  ;;  %v10139_v16 = vor.u32 %v11692_v0, %v10138_v9 }
 0x39b   : > { %7045 = vmatpush.bf16.msrb.mxu2 %v10679_v43  ;;  %v10203_v43 = vor.u32 %v11708_v41, %v10202_v57  ;;  %v11783_v54 = vld [vmem:[#allocation8 + $0xc14] sm:$0xf]  ;;  %v11588_v62 = vld [vmem:[#allocation8 + $0x5f4] sm:$0xf0] }
 0x39c   : > { %7005 = vmatpush.bf16.msra.mxu3 %v9943_v47  ;;  %v10170_v47 = vld [vmem:[#allocation8 + $0x958] sm:$0xf]  ;;  %v10516_v52 = vld [vmem:[#allocation8 + $0xc30] sm:$0xf0]  ;;  %v9723_v42 = vor.u32 %v11588_v62, %v9722_v5 }
 0x39d   : > { %7084 = vmatpush.bf16.msra.mxu1 %v9403_v21  ;;  %7072 = vmatpush.bf16.msra.mxu0 %v9115_v59  ;;  %v6820_v53 = vpop.f32.mrf.mxu0  ;;  %v10612_v21 = vld [vmem:[#allocation8 + $0xcf0] sm:$0xf0]  ;;  %v10234_v59 = vld [vmem:[#allocation8 + $0x9d8] sm:$0xf]  ;;  %v10519_v48 = vor.u32 %v11783_v54, %v10516_v52 }
 0x39e   : > { %v10615_v56 = vor.u32 %v11807_v2, %v10612_v21  ;;  %v10235_v23 = vor.u32 %v11716_v14, %v10234_v59  ;;  %v6753_v53 = vpop.f32.mrf.mxu3  ;;  %v11599_v21 = vld [vmem:[#allocation8 + $0x654] sm:$0xf]  ;;  %v10394_v10 = vld [vmem:[#allocation8 + $0xb18] sm:$0xf] }
 0x39f   : > { %7046 = vmatpush.bf16.msrb.mxu2 %v10647_v61  ;;  %v9815_v61 = vor.u32 %v11607_v6, %v9812_v51  ;;  %v9780_v4 = vld [vmem:[#allocation8 + $0x670] sm:$0xf0]  ;;  %v11756_v33 = vld [vmem:[#allocation8 + $0xb34] sm:$0xf0] }
 0x3a0   : > { %7006 = vmatpush.bf16.msra.mxu3 %v9911_v32  ;;  %v6754_v32 = vadd.f32 %v6753_v53, %v6741_v20  ;;  %v9690_v59 = vld [vmem:[#allocation8 + $0x598] sm:$0xf]  ;;  %v11591_v15 = vld [vmem:[#allocation8 + $0x614] sm:$0xf] }
 0x3a1   : > { %7085 = vmatpush.bf16.msra.mxu1 %v9371_v17  ;;  %7073 = vmatpush.bf16.msra.mxu0 %v9083_v8  ;;  %v11799_v17 = vld [vmem:[#allocation8 + $0xc94] sm:$0xf]  ;;  %v10458_v8 = vld [vmem:[#allocation8 + $0xb98] sm:$0xf] }
 0x3a2   : > { %v10583_v28 = vor.u32 %v11799_v17, %v10580_v18  ;;  %7279 = vst [vmem:[%s12690_s9 + $0x10] sm:$0xff] %v6754_v32  ;;  %v11580_v14 = vld [vmem:[#allocation8 + $0x5b4] sm:$0xf0]  ;;  %v9748_v17 = vld [vmem:[#allocation8 + $0x630] sm:$0xf0] }
 0x3a3   : > { %7047 = vmatpush.bf16.msrb.mxu2 %v10615_v56  ;;  %v9783_v56 = vor.u32 %v11599_v21, %v9780_v4  ;;  %v11903_v18 = vld [vmem:[#allocation8 + $0xfd4] sm:$0xf]  ;;  %v9691_v24 = vor.u32 %v11580_v14, %v9690_v59  ;;  %v10362_v60 = vld [vmem:[#allocation8 + $0xad8] sm:$0xf]  ;;  %v9751_v57 = vor.u32 %v11591_v15, %v9748_v17 }
 0x3a4   : > { %7007 = vmatpush.bf16.msra.mxu3 %v9879_v19  ;;  %v10395_v19 = vor.u32 %v11756_v33, %v10394_v10  ;;  %v9658_v41 = vld [vmem:[#allocation8 + $0x558] sm:$0xf]  ;;  %v11895_v6 = vld [vmem:[#allocation8 + $0xf94] sm:$0xf] }
 0x3a5   : > { %7086 = vmatpush.bf16.msra.mxu1 %v9339_v34  ;;  %7074 = vmatpush.bf16.msra.mxu0 %v9051_v3  ;;  %v11772_v34 = vld [vmem:[#allocation8 + $0xbb4] sm:$0xf0]  ;;  %v11887_v62 = vld [vmem:[#allocation8 + $0xf54] sm:$0xf] }
 0x3a6   : > { %v10459_v50 = vor.u32 %v11772_v34, %v10458_v8  ;;  %v11700_v3 = vld [vmem:[#allocation8 + $0x974] sm:$0xf0]  ;;  %v6755_v38 = vpop.f32.mrf.mxu3 }
 0x3a7   : > { %7048 = vmatpush.bf16.msrb.mxu2 %v10583_v28  ;;  %v10171_v2 = vor.u32 %v11700_v3, %v10170_v47  ;;  %v11572_v8 = vld [vmem:[#allocation8 + $0x574] sm:$0xf0] }
 0x3a8   : > { %7008 = vmatpush.bf16.msra.mxu3 %v9847_v40  ;;  %v11676_v47 = vld [vmem:[#allocation8 + $0x8b4] sm:$0xf0] }
 0x3a9   : > { %7087 = vmatpush.bf16.msra.mxu1 %v9307_v49  ;;  %7075 = vmatpush.bf16.msra.mxu0 %v9019_v31  ;;  %v11764_v49 = vld [vmem:[#allocation8 + $0xb74] sm:$0xf0] }
 0x3aa   : > { %v10427_v31 = vor.u32 %v11764_v49, %v10426_v12  ;;  %v9659_v12 = vor.u32 %v11572_v8, %v9658_v41  ;;  %v10330_v49 = vld [vmem:[#allocation8 + $0xa98] sm:$0xf]  ;;  %v11871_v8 = vld [vmem:[#allocation8 + $0xed4] sm:$0xf] }
 0x3ab   : > { %7049 = vmatpush.bf16.msrb.mxu2 %v10551_v39  ;;  %v10074_v39 = vld [vmem:[#allocation8 + $0x898] sm:$0xf] }
 0x3ac   : > { %7009 = vmatpush.bf16.msra.mxu3 %v9815_v61  ;;  %v11740_v54 = vld [vmem:[#allocation8 + $0xab4] sm:$0xf0]  ;;  %v10075_v5 = vor.u32 %v11676_v47, %v10074_v39 }
 0x3ad   : > { %7088 = vmatpush.bf16.msra.mxu1 %v9275_v45  ;;  %7076 = vmatpush.bf16.msra.mxu0 %v8987_v58  ;;  %v6794_v45 = vpop.f32.mrf.mxu2  ;;  %v10996_v58 = vld [vmem:[#allocation8 + $0xff0] sm:$0xf0]  ;;  %v6870_v28 = vpop.f32.mrf.mxu0  ;;  %v9626_v52 = vld [vmem:[#allocation8 + $0x518] sm:$0xf]  ;;  %v10331_v53 = vor.u32 %v11740_v54, %v10330_v49 }
 0x3ae   : > { %v6871_v34 = vadd.f32 %v6870_v28, %v3873_v11  ;;  %v10999_v40 = vor.u32 %v11903_v18, %v10996_v58  ;;  %v11564_v20 = vld [vmem:[#allocation8 + $0x534] sm:$0xf0]  ;;  %v11879_v11 = vld [vmem:[#allocation8 + $0xf14] sm:$0xf]  ;;  %v9212_v58 = vld [vmem:[#allocation8 + $0x1f8] sm:$0xf0] }
 0x3af   : > { %7050 = vmatpush.bf16.msrb.mxu2 %v10519_v48  ;;  %v10042_v21 = vld [vmem:[#allocation8 + $0x858] sm:$0xf]  ;;  %v9627_v32 = vor.u32 %v11564_v20, %v9626_v52  ;;  %v11863_v54 = vld [vmem:[#allocation8 + $0xe94] sm:$0xf] }
 0x3b0   : > { %7077 = vmatmul.bf16.vlgmr.msra.gmra.mxu0 %v12562_v44  ;;  %7010 = vmatpush.bf16.msra.mxu3 %v9783_v56  ;;  %v11668_v4 = vld [vmem:[#allocation8 + $0x874] sm:$0xf0]  ;;  %v10900_v56 = vld [vmem:[#allocation8 + $0xf30] sm:$0xf0] }
 0x3b1   : > { %7089 = vmatpush.bf16.msra.mxu1 %v9243_v7  ;;  %7121 = vmatpush.bf16.msrb.mxu0 %v10235_v23  ;;  %v10106_v7 = vld [vmem:[#allocation8 + $0x8d8] sm:$0xf]  ;;  %v6883_v22 = vpop.f32.mrf.mxu1  ;;  %v10043_v33 = vor.u32 %v11668_v4, %v10042_v21  ;;  %v10836_v52 = vld [vmem:[#allocation8 + $0xeb0] sm:$0xf0] }
 0x3b2   : > { %v11684_v23 = vld [vmem:[#allocation8 + $0x8f4] sm:$0xf0]  ;;  %7051 = vmatmul.bf16.vlgmr.msrb.gmra.mxu2 %v12621_v25  ;;  %v12741_v3 = vadd.f32 %v6883_v22, %v6871_v34  ;;  %v10868_v34 = vld [vmem:[#allocation8 + $0xef0] sm:$0xf0] }
 0x3b3   : > { %7095 = vmatpush.bf16.msra.mxu2 %v9723_v42  ;;  %v11732_v48 = vld [vmem:[#allocation8 + $0xa74] sm:$0xf0] }
 0x3b4   : > { %7090 = vmatmul.bf16.vlgmr.msra.gmra.mxu1 %v12564_v46  ;;  %7011 = vmatpush.bf16.msra.mxu3 %v9751_v57  ;;  %v9594_v0 = vld [vmem:[#allocation8 + $0x4d8] sm:$0xf] }
 0x3b5   : > { %7134 = vmatpush.bf16.msrb.mxu1 %v10491_v63  ;;  %7122 = vmatpush.bf16.msrb.mxu0 %v10203_v43  ;;  %v11748_v63 = vld [vmem:[#allocation8 + $0xaf4] sm:$0xf0]  ;;  %v10107_v43 = vor.u32 %v11684_v23, %v10106_v7  ;;  %v6872_v9 = vpop.f32.mrf.mxu0  ;;  %v11520_v7 = vld [vmem:[#allocation8 + $0x3dc] sm:$0xf] }
 0x3b6   : > { %v10363_v51 = vor.u32 %v11748_v63, %v10362_v60  ;;  %v11556_v45 = vld [vmem:[#allocation8 + $0x4f4] sm:$0xf0]  ;;  %v9468_v23 = vld [vmem:[#allocation8 + $0x3f8] sm:$0xf0]  ;;  %v10903_v63 = vor.u32 %v11879_v11, %v10900_v56 }
 0x3b7   : > { %7096 = vmatpush.bf16.msra.mxu2 %v9691_v24  ;;  %7012 = vmatmul.bf16.vlgmr.msra.gmra.mxu3 %v12569_v1  ;;  %v10010_v59 = vld [vmem:[#allocation8 + $0x818] sm:$0xf]  ;;  %v9595_v18 = vor.u32 %v11556_v45, %v9594_v0  ;;  %v9471_v22 = vor.u32 %v11520_v7, %v9468_v23  ;;  %v11847_v23 = vld [vmem:[#allocation8 + $0xe14] sm:$0xf] }
 0x3b8   : > { %7056 = vmatpush.bf16.msrb.mxu3 %v10999_v40  ;;  %v10266_v15 = vld [vmem:[#allocation8 + $0xa18] sm:$0xf]  ;;  %v11448_v40 = vld [vmem:[#allocation8 + $0x19c] sm:$0xf] }
 0x3b9   : > { %7135 = vmatpush.bf16.msrb.mxu1 %v10459_v50  ;;  %7123 = vmatpush.bf16.msrb.mxu0 %v10171_v2  ;;  %v10964_v50 = vld [vmem:[#allocation8 + $0xfb0] sm:$0xf0]  ;;  %v6885_v42 = vpop.f32.mrf.mxu1  ;;  %v11724_v17 = vld [vmem:[#allocation8 + $0xa34] sm:$0xf0]  ;;  %v6805_v0 = vpop.f32.mrf.mxu3 }
 0x3ba   : > { %v10967_v61 = vor.u32 %v11895_v6, %v10964_v50  ;;  %v10932_v2 = vld [vmem:[#allocation8 + $0xf70] sm:$0xf0]  ;;  %v9562_v24 = vld [vmem:[#allocation8 + $0x498] sm:$0xf]  ;;  %v10267_v57 = vor.u32 %v11724_v17, %v10266_v15  ;;  %v11512_v6 = vld [vmem:[#allocation8 + $0x39c] sm:$0xf] }
 0x3bb   : > { %7097 = vmatpush.bf16.msra.mxu2 %v9659_v12  ;;  %v10935_v10 = vor.u32 %v11887_v62, %v10932_v2  ;;  %v11548_v60 = vld [vmem:[#allocation8 + $0x4b4] sm:$0xf0]  ;;  %v9436_v50 = vld [vmem:[#allocation8 + $0x3b8] sm:$0xf0]  ;;  %v10871_v12 = vor.u32 %v11871_v8, %v10868_v34  ;;  %v11855_v42 = vld [vmem:[#allocation8 + $0xe54] sm:$0xf] }
 0x3bc   : > { %7057 = vmatpush.bf16.msrb.mxu3 %v10967_v61  ;;  %v9563_v38 = vor.u32 %v11548_v60, %v9562_v24  ;;  %v9530_v39 = vld [vmem:[#allocation8 + $0x458] sm:$0xf]  ;;  %v9439_v20 = vor.u32 %v11512_v6, %v9436_v50  ;;  %v9148_v62 = vld [vmem:[#allocation8 + $0x178] sm:$0xf0]  ;;  %v10772_v24 = vld [vmem:[#allocation8 + $0xe30] sm:$0xf0] }
 0x3bd   : > { %7136 = vmatpush.bf16.msrb.mxu1 %v10427_v31  ;;  %7124 = vmatpush.bf16.msrb.mxu0 %v10139_v16  ;;  %v10298_v31 = vld [vmem:[#allocation8 + $0xa58] sm:$0xf]  ;;  %v9404_v2 = vld [vmem:[#allocation8 + $0x378] sm:$0xf0] }
 0x3be   : > { %v10299_v14 = vor.u32 %v11732_v48, %v10298_v31  ;;  %v11660_v16 = vld [vmem:[#allocation8 + $0x834] sm:$0xf0]  ;;  %v10839_v31 = vor.u32 %v11863_v54, %v10836_v52  ;;  %v9372_v15 = vld [vmem:[#allocation8 + $0x338] sm:$0xf0] }
 0x3bf   : > { %7098 = vmatpush.bf16.msra.mxu2 %v9627_v32  ;;  %v10011_v28 = vor.u32 %v11660_v16, %v10010_v59  ;;  %v11540_v47 = vld [vmem:[#allocation8 + $0x474] sm:$0xf0]  ;;  %v6793_v32 = vadd.f32 %v12730_v55, %v12711_v35  ;;  %v11432_v59 = vld [vmem:[#allocation8 + $0x11c] sm:$0xf] }
 0x3c0   : > { %7058 = vmatpush.bf16.msrb.mxu3 %v10935_v10  ;;  %v9531_v61 = vor.u32 %v11540_v47, %v9530_v39  ;;  %v9498_v21 = vld [vmem:[#allocation8 + $0x418] sm:$0xf]  ;;  %v10804_v10 = vld [vmem:[#allocation8 + $0xe70] sm:$0xf0]  ;;  %v11496_v55 = vld [vmem:[#allocation8 + $0x31c] sm:$0xf] }
 0x3c1   : > { %7137 = vmatpush.bf16.msrb.mxu1 %v10395_v19  ;;  %7125 = vmatpush.bf16.msrb.mxu0 %v10107_v43  ;;  %v11456_v19 = vld [vmem:[#allocation8 + $0x1dc] sm:$0xf]  ;;  %v11532_v4 = vld [vmem:[#allocation8 + $0x434] sm:$0xf0]  ;;  %v6807_v39 = vpop.f32.mrf.mxu3 }
 0x3c2   : > { %v9215_v41 = vor.u32 %v11456_v19, %v9212_v58  ;;  %v9180_v43 = vld [vmem:[#allocation8 + $0x1b8] sm:$0xf0]  ;;  %v10746_v48 = vld [vmem:[#allocation8 + $0xdd8] sm:$0xf]  ;;  %v9499_v56 = vor.u32 %v11532_v4, %v9498_v21 }
 0x3c3   : > { %7099 = vmatpush.bf16.msra.mxu2 %v9595_v18  ;;  %v9183_v49 = vor.u32 %v11448_v40, %v9180_v43  ;;  %v11844_v9 = vld [vmem:[#allocation8 + $0xdf4] sm:$0xf0]  ;;  %v10807_v18 = vor.u32 %v11855_v42, %v10804_v10  ;;  %v11488_v34 = vld [vmem:[#allocation8 + $0x2dc] sm:$0xf]  ;;  %v10775_v40 = vor.u32 %v11847_v23, %v10772_v24 }
 0x3c4   : > { %7059 = vmatpush.bf16.msrb.mxu3 %v10903_v63  ;;  %v10747_v35 = vor.u32 %v11844_v9, %v10746_v48  ;;  %v10714_v19 = vld [vmem:[#allocation8 + $0xd98] sm:$0xf]  ;;  %v9375_v63 = vor.u32 %v11496_v55, %v9372_v15  ;;  %v11416_v52 = vld [vmem:[#allocation8 + $0x9c] sm:$0xf] }
 0x3c5   : > { %7138 = vmatpush.bf16.msrb.mxu1 %v10363_v51  ;;  %7126 = vmatpush.bf16.msrb.mxu0 %v10075_v5  ;;  %v12744_v51 = vpop.f32.mrf.mxu2  ;;  %v11440_v5 = vld [vmem:[#allocation8 + $0x15c] sm:$0xf]  ;;  %v11836_v58 = vld [vmem:[#allocation8 + $0xdb4] sm:$0xf0] }
 0x3c6   : > { %v9151_v45 = vor.u32 %v11440_v5, %v9148_v62  ;;  %v9978_v60 = vld [vmem:[#allocation8 + $0x7d8] sm:$0xf]  ;;  %v11480_v5 = vld [vmem:[#allocation8 + $0x29c] sm:$0xf] }
 0x3c7   : > { %7100 = vmatpush.bf16.msra.mxu2 %v9563_v38  ;;  %v10682_v43 = vld [vmem:[#allocation8 + $0xd58] sm:$0xf]  ;;  %v9308_v62 = vld [vmem:[#allocation8 + $0x2b8] sm:$0xf0] }
 0x3c8   : > { %7060 = vmatpush.bf16.msrb.mxu3 %v10871_v12  ;;  %v11828_v6 = vld [vmem:[#allocation8 + $0xd74] sm:$0xf0]  ;;  %v11408_v9 = vld [vmem:[#allocation8 + $0x5c] sm:$0xf] }
 0x3c9   : > { %7139 = vmatpush.bf16.msrb.mxu1 %v10331_v53  ;;  %7127 = vmatpush.bf16.msrb.mxu0 %v10043_v33  ;;  %v11504_v53 = vld [vmem:[#allocation8 + $0x35c] sm:$0xf]  ;;  %v6806_v33 = vadd.f32 %v6805_v0, %v6793_v32  ;;  %v11644_v54 = vld [vmem:[#allocation8 + $0x7b4] sm:$0xf0] }
 0x3ca   : > { %v9407_v11 = vor.u32 %v11504_v53, %v9404_v2  ;;  %v10650_v53 = vld [vmem:[#allocation8 + $0xd18] sm:$0xf]  ;;  %v9020_v0 = vld [vmem:[#allocation8 + $0x78] sm:$0xf0] }
 0x3cb   : > { %7101 = vmatpush.bf16.msra.mxu2 %v9531_v61  ;;  %v6819_v17 = vadd.f32 %v12724_v27, %v6806_v33  ;;  %v10715_v27 = vor.u32 %v11836_v58, %v10714_v19  ;;  %v10683_v61 = vor.u32 %v11828_v6, %v10682_v43  ;;  %v11820_v2 = vld [vmem:[#allocation8 + $0xd34] sm:$0xf0]  ;;  %v11472_v42 = vld [vmem:[#allocation8 + $0x25c] sm:$0xf] }
 0x3cc   : > { %7061 = vmatpush.bf16.msrb.mxu3 %v10839_v31  ;;  %v9914_v32 = vld [vmem:[#allocation8 + $0x758] sm:$0xf]  ;;  %v9311_v31 = vor.u32 %v11480_v5, %v9308_v62  ;;  %v9276_v10 = vld [vmem:[#allocation8 + $0x278] sm:$0xf0] }
 0x3cd   : > { %7140 = vmatpush.bf16.msrb.mxu1 %v10299_v14  ;;  %7128 = vmatpush.bf16.msrb.mxu0 %v10011_v28  ;;  %v9116_v14 = vld [vmem:[#allocation8 + $0x138] sm:$0xf0]  ;;  %v6846_v16 = vpop.f32.mrf.mxu2  ;;  %v11652_v28 = vld [vmem:[#allocation8 + $0x7f4] sm:$0xf0]  ;;  %v12752_v8 = vadd.f32 %v12726_v36, %v6819_v17  ;;  %v12754_v38 = vpop.f32.mrf.mxu0  ;;  %v9279_v17 = vor.u32 %v11472_v42, %v9276_v10 }
 0x3ce   : > { %v9119_v7 = vor.u32 %v11432_v59, %v9116_v14  ;;  %v9979_v47 = vor.u32 %v11652_v28, %v9978_v60  ;;  %v9946_v36 = vld [vmem:[#allocation8 + $0x798] sm:$0xf]  ;;  %v9023_v16 = vor.u32 %v11408_v9, %v9020_v0  ;;  %v11400_v15 = vld [vmem:[#allocation8 + $0x1c] sm:$0xf] }
 0x3cf   : > { %7102 = vmatpush.bf16.msra.mxu2 %v9499_v56  ;;  %v9947_v21 = vor.u32 %v11644_v54, %v9946_v36  ;;  %v11636_v48 = vld [vmem:[#allocation8 + $0x774] sm:$0xf0]  ;;  %v11464_v19 = vld [vmem:[#allocation8 + $0x21c] sm:$0xf] }
 0x3d0   : > { %7129 = vmatmul.bf16.vlgmr.msrb.gmra.mxu0 %v12585_v13  ;;  %7062 = vmatpush.bf16.msrb.mxu3 %v10807_v18  ;;  %v11812_v56 = vld [vmem:[#allocation8 + $0xcf4] sm:$0xf0]  ;;  %v9915_v14 = vor.u32 %v11636_v48, %v9914_v32  ;;  %v8988_v18 = vld [vmem:[#allocation8 + $0x38] sm:$0xf0] }
 0x3d1   : > { %7141 = vmatpush.bf16.msrb.mxu1 %v10267_v57  ;;  %7173 = vmatpush.bf16.msra.mxu0 %v9215_v41  ;;  %v11424_v57 = vld [vmem:[#allocation8 + $0xdc] sm:$0xf]  ;;  %v12756_v50 = vpop.f32.mrf.mxu1  ;;  %v11628_v55 = vld [vmem:[#allocation8 + $0x734] sm:$0xf0] }
 0x3d2   : > { %v9084_v41 = vld [vmem:[#allocation8 + $0xf8] sm:$0xf0]  ;;  %7103 = vmatmul.bf16.vlgmr.msra.gmra.mxu2 %v12566_v29  ;;  %v10586_v28 = vld [vmem:[#allocation8 + $0xc98] sm:$0xf] }
 0x3d3   : > { %7147 = vmatpush.bf16.msrb.mxu2 %v10747_v35  ;;  %v9087_v12 = vor.u32 %v11424_v57, %v9084_v41  ;;  %v9882_v35 = vld [vmem:[#allocation8 + $0x718] sm:$0xf]  ;;  %v9244_v58 = vld [vmem:[#allocation8 + $0x238] sm:$0xf0] }
 0x3d4   : > { %7142 = vmatmul.bf16.vlgmr.msrb.gmra.mxu1 %v12593_v30  ;;  %7063 = vmatpush.bf16.msrb.mxu3 %v10775_v40  ;;  %v11712_v23 = vld [vmem:[#allocation8 + $0x9dc] sm:$0xf]  ;;  %v11804_v57 = vld [vmem:[#allocation8 + $0xcb4] sm:$0xf0]  ;;  %v9883_v41 = vor.u32 %v11628_v55, %v9882_v35 }
 0x3d5   : > { %7186 = vmatpush.bf16.msra.mxu1 %v9471_v22  ;;  %7174 = vmatpush.bf16.msra.mxu0 %v9183_v49  ;;  %v9340_v22 = vld [vmem:[#allocation8 + $0x2f8] sm:$0xf0]  ;;  %v6924_v33 = vpop.f32.mrf.mxu0  ;;  %v9850_v40 = vld [vmem:[#allocation8 + $0x6d8] sm:$0xf]  ;;  %v10587_v39 = vor.u32 %v11804_v57, %v10586_v28 }
 0x3d6   : > { %v9343_v49 = vor.u32 %v11488_v34, %v9340_v22  ;;  %v10236_v24 = vld [vmem:[#allocation8 + $0x9f8] sm:$0xf0]  ;;  %v9247_v34 = vor.u32 %v11464_v19, %v9244_v58  ;;  %v11620_v43 = vld [vmem:[#allocation8 + $0x6f4] sm:$0xf0] }
 0x3d7   : > { %7148 = vmatpush.bf16.msrb.mxu2 %v10715_v27  ;;  %7064 = vmatmul.bf16.vlgmr.msrb.gmra.mxu3 %v12640_v26  ;;  %v11776_v60 = vld [vmem:[#allocation8 + $0xbdc] sm:$0xf]  ;;  %v8991_v27 = vor.u32 %v11400_v15, %v8988_v18  ;;  %v10239_v22 = vor.u32 %v11712_v23, %v10236_v24  ;;  %v9818_v62 = vld [vmem:[#allocation8 + $0x698] sm:$0xf] }
 0x3d8   : > { %7108 = vmatpush.bf16.msra.mxu3 %v9979_v47  ;;  %v11704_v47 = vld [vmem:[#allocation8 + $0x99c] sm:$0xf]  ;;  %v10522_v9 = vld [vmem:[#allocation8 + $0xc18] sm:$0xf] }
 0x3d9   : > { %7187 = vmatpush.bf16.msra.mxu1 %v9439_v20  ;;  %7175 = vmatpush.bf16.msra.mxu0 %v9151_v45  ;;  %v9052_v20 = vld [vmem:[#allocation8 + $0xb8] sm:$0xf0]  ;;  %v10651_v45 = vor.u32 %v11820_v2, %v10650_v53  ;;  %v6937_v59 = vpop.f32.mrf.mxu1  ;;  %v11612_v53 = vld [vmem:[#allocation8 + $0x6b4] sm:$0xf0] }
 0x3da   : > { %v9055_v4 = vor.u32 %v11416_v52, %v9052_v20  ;;  %v11768_v36 = vld [vmem:[#allocation8 + $0xb9c] sm:$0xf]  ;;  %v10554_v52 = vld [vmem:[#allocation8 + $0xc58] sm:$0xf]  ;;  %v9819_v42 = vor.u32 %v11612_v53, %v9818_v62 }
 0x3db   : > { %7149 = vmatpush.bf16.msrb.mxu2 %v10683_v61  ;;  %v10460_v54 = vld [vmem:[#allocation8 + $0xbb8] sm:$0xf0]  ;;  %v11796_v20 = vld [vmem:[#allocation8 + $0xc74] sm:$0xf0]  ;;  %v9851_v61 = vor.u32 %v11620_v43, %v9850_v40 }
 0x3dc   : > { %7109 = vmatpush.bf16.msra.mxu3 %v9947_v21  ;;  %v10463_v2 = vor.u32 %v11768_v36, %v10460_v54  ;;  %v10555_v21 = vor.u32 %v11796_v20, %v10554_v52  ;;  %v10172_v32 = vld [vmem:[#allocation8 + $0x978] sm:$0xf0]  ;;  %v11788_v0 = vld [vmem:[#allocation8 + $0xc34] sm:$0xf0] }
 0x3dd   : > { %7188 = vmatpush.bf16.msra.mxu1 %v9407_v11  ;;  %7176 = vmatpush.bf16.msra.mxu0 %v9119_v7  ;;  %v10618_v11 = vld [vmem:[#allocation8 + $0xcd8] sm:$0xf]  ;;  %v10428_v48 = vld [vmem:[#allocation8 + $0xb78] sm:$0xf0]  ;;  %v10523_v35 = vor.u32 %v11788_v0, %v10522_v9 }
 0x3de   : > { %v10619_v7 = vor.u32 %v11812_v56, %v10618_v11  ;;  %v11584_v10 = vld [vmem:[#allocation8 + $0x5dc] sm:$0xf]  ;;  %v6857_v11 = vpop.f32.mrf.mxu3  ;;  %v9786_v59 = vld [vmem:[#allocation8 + $0x658] sm:$0xf] }
 0x3df   : > { %7150 = vmatpush.bf16.msrb.mxu2 %v10651_v45  ;;  %v6845_v45 = vadd.f32 %v12744_v51, %v12752_v8  ;;  %v9724_v33 = vld [vmem:[#allocation8 + $0x5f8] sm:$0xf0]  ;;  %v3874_v8 = vperm.slane %v12737_v37, 5  ;;  %v9754_v24 = vld [vmem:[#allocation8 + $0x618] sm:$0xf] }
 0x3e0   : > { %7110 = vmatpush.bf16.msra.mxu3 %v9915_v14  ;;  %v11604_v14 = vld [vmem:[#allocation8 + $0x674] sm:$0xf0]  ;;  %v11688_v55 = vld [vmem:[#allocation8 + $0x91c] sm:$0xf] }
 0x3e1   : > { %7189 = vmatpush.bf16.msra.mxu1 %v9375_v63  ;;  %7177 = vmatpush.bf16.msra.mxu0 %v9087_v12  ;;  %v10492_v63 = vld [vmem:[#allocation8 + $0xbf8] sm:$0xf0]  ;;  %v9787_v19 = vor.u32 %v11604_v14, %v9786_v59  ;;  %v11908_v57 = vld [vmem:[#allocation8 + $0xff4] sm:$0xf0] }
 0x3e2   : > { %v10495_v6 = vor.u32 %v11776_v60, %v10492_v63  ;;  %v10204_v12 = vld [vmem:[#allocation8 + $0x9b8] sm:$0xf0]  ;;  %v11596_v60 = vld [vmem:[#allocation8 + $0x634] sm:$0xf0] }
 0x3e3   : > { %7151 = vmatpush.bf16.msrb.mxu2 %v10619_v7  ;;  %v10207_v5 = vor.u32 %v11704_v47, %v10204_v12  ;;  %v11752_v18 = vld [vmem:[#allocation8 + $0xb1c] sm:$0xf]  ;;  %v11002_v63 = vld [vmem:[#allocation8 + $0xfd8] sm:$0xf] }
 0x3e4   : > { %7111 = vmatpush.bf16.msra.mxu3 %v9883_v41  ;;  %v10396_v51 = vld [vmem:[#allocation8 + $0xb38] sm:$0xf0]  ;;  %v11003_v52 = vor.u32 %v11908_v57, %v11002_v63  ;;  %v11900_v62 = vld [vmem:[#allocation8 + $0xfb4] sm:$0xf0] }
 0x3e5   : > { %7190 = vmatpush.bf16.msra.mxu1 %v9343_v49  ;;  %7178 = vmatpush.bf16.msra.mxu0 %v9055_v4  ;;  %v12760_v49 = vpop.f32.mrf.mxu2  ;;  %v11696_v4 = vld [vmem:[#allocation8 + $0x95c] sm:$0xf]  ;;  %v10399_v28 = vor.u32 %v11752_v18, %v10396_v51  ;;  %v10906_v18 = vld [vmem:[#allocation8 + $0xf18] sm:$0xf] }
 0x3e6   : > { %v10175_v56 = vor.u32 %v11696_v4, %v10172_v32  ;;  %v11576_v58 = vld [vmem:[#allocation8 + $0x59c] sm:$0xf]  ;;  %v6859_v54 = vpop.f32.mrf.mxu3 }
 0x3e7   : > { %7152 = vmatpush.bf16.msrb.mxu2 %v10587_v39  ;;  %v9692_v7 = vld [vmem:[#allocation8 + $0x5b8] sm:$0xf0] }
 0x3e8   : > { %7112 = vmatpush.bf16.msra.mxu3 %v9851_v61  ;;  %v11680_v41 = vld [vmem:[#allocation8 + $0x8dc] sm:$0xf]  ;;  %v10970_v61 = vld [vmem:[#allocation8 + $0xf98] sm:$0xf] }
 0x3e9   : > { %7191 = vmatpush.bf16.msra.mxu1 %v9311_v31  ;;  %7179 = vmatpush.bf16.msra.mxu0 %v9023_v16  ;;  %v11760_v31 = vld [vmem:[#allocation8 + $0xb5c] sm:$0xf]  ;;  %v6858_v16 = vadd.f32 %v6857_v11, %v6845_v45  ;;  %v10971_v0 = vor.u32 %v11900_v62, %v10970_v61 }
 0x3ea   : > { %v10364_v40 = vld [vmem:[#allocation8 + $0xaf8] sm:$0xf0] }
 0x3eb   : > { %7153 = vmatpush.bf16.msrb.mxu2 %v10555_v21  ;;  %7280 = vst [vmem:[%s12690_s9 + $0x18] sm:$0xff] %v6858_v16  ;;  %v11568_v39 = vld [vmem:[#allocation8 + $0x55c] sm:$0xf] }
 0x3ec   : > { %7113 = vmatpush.bf16.msra.mxu3 %v9819_v42  ;;  %v9660_v47 = vld [vmem:[#allocation8 + $0x578] sm:$0xf0]  ;;  %v10938_v42 = vld [vmem:[#allocation8 + $0xf58] sm:$0xf] }
 0x3ed   : > { %7192 = vmatpush.bf16.msra.mxu1 %v9279_v17  ;;  %7180 = vmatpush.bf16.msra.mxu0 %v8991_v27  ;;  %v6898_v15 = vpop.f32.mrf.mxu2  ;;  %v9727_v17 = vor.u32 %v11584_v10, %v9724_v33  ;;  %v10108_v27 = vld [vmem:[#allocation8 + $0x8f8] sm:$0xf0]  ;;  %v6974_v43 = vpop.f32.mrf.mxu0  ;;  %v9663_v4 = vor.u32 %v11568_v39, %v9660_v47  ;;  %v11892_v33 = vld [vmem:[#allocation8 + $0xf74] sm:$0xf0] }
 0x3ee   : > { %v6975_v12 = vadd.f32 %v6974_v43, %v3874_v8  ;;  %v10111_v20 = vor.u32 %v11680_v41, %v10108_v27  ;;  %v11672_v53 = vld [vmem:[#allocation8 + $0x89c] sm:$0xf]  ;;  %v10939_v15 = vor.u32 %v11892_v33, %v10938_v42  ;;  %v11884_v8 = vld [vmem:[#allocation8 + $0xf34] sm:$0xf0] }
 0x3ef   : > { %7154 = vmatpush.bf16.msrb.mxu2 %v10523_v35  ;;  %v11736_v32 = vld [vmem:[#allocation8 + $0xa9c] sm:$0xf]  ;;  %v10874_v27 = vld [vmem:[#allocation8 + $0xed8] sm:$0xf] }
 0x3f0   : > { %7181 = vmatmul.bf16.vlgmr.msra.gmra.mxu0 %v12562_v44  ;;  %v10431_v44 = vor.u32 %v11760_v31, %v10428_v48  ;;  %7114 = vmatpush.bf16.msra.mxu3 %v9787_v19  ;;  %v10332_v31 = vld [vmem:[#allocation8 + $0xab8] sm:$0xf0]  ;;  %v10842_v47 = vld [vmem:[#allocation8 + $0xe98] sm:$0xf] }
 0x3f1   : > { %7193 = vmatpush.bf16.msra.mxu1 %v9247_v34  ;;  %7225 = vmatpush.bf16.msrb.mxu0 %v10239_v22  ;;  %v9695_v34 = vor.u32 %v11576_v58, %v9692_v7  ;;  %v11744_v22 = vld [vmem:[#allocation8 + $0xadc] sm:$0xf]  ;;  %v6987_v36 = vpop.f32.mrf.mxu1  ;;  %v10335_v10 = vor.u32 %v11736_v32, %v10332_v31 }
 0x3f2   : > { %7155 = vmatmul.bf16.vlgmr.msrb.gmra.mxu2 %v12621_v25  ;;  %v12769_v21 = vadd.f32 %v6987_v36, %v6975_v12  ;;  %v11560_v48 = vld [vmem:[#allocation8 + $0x51c] sm:$0xf]  ;;  %v11868_v12 = vld [vmem:[#allocation8 + $0xeb4] sm:$0xf0] }
 0x3f3   : > { %7199 = vmatpush.bf16.msra.mxu2 %v9727_v17  ;;  %v9628_v9 = vld [vmem:[#allocation8 + $0x538] sm:$0xf0]  ;;  %v10843_v61 = vor.u32 %v11868_v12, %v10842_v47 }
 0x3f4   : > { %7194 = vmatmul.bf16.vlgmr.msra.gmra.mxu1 %v12564_v46  ;;  %v10140_v46 = vld [vmem:[#allocation8 + $0x938] sm:$0xf0]  ;;  %v9631_v59 = vor.u32 %v11560_v48, %v9628_v9 }
 0x3f5   : > { %7238 = vmatpush.bf16.msrb.mxu1 %v10495_v6  ;;  %7226 = vmatpush.bf16.msrb.mxu0 %v10207_v5  ;;  %v10143_v23 = vor.u32 %v11688_v55, %v10140_v46  ;;  %v9755_v6 = vor.u32 %v11596_v60, %v9754_v24  ;;  %v10367_v5 = vor.u32 %v11744_v22, %v10364_v40  ;;  %v11664_v11 = vld [vmem:[#allocation8 + $0x85c] sm:$0xf]  ;;  %v12772_v40 = vpop.f32.mrf.mxu2 }
 0x3f6   : > { %v11728_v14 = vld [vmem:[#allocation8 + $0xa5c] sm:$0xf] }
 0x3f7   : > { %7200 = vmatpush.bf16.msra.mxu2 %v9695_v34  ;;  %7115 = vmatpush.bf16.msra.mxu3 %v9755_v6  ;;  %v10300_v16 = vld [vmem:[#allocation8 + $0xa78] sm:$0xf0]  ;;  %v11876_v34 = vld [vmem:[#allocation8 + $0xef4] sm:$0xf0] }
 0x3f8   : > { %v11552_v35 = vld [vmem:[#allocation8 + $0x4dc] sm:$0xf]  ;;  %v10303_v51 = vor.u32 %v11728_v14, %v10300_v16  ;;  %v10875_v39 = vor.u32 %v11876_v34, %v10874_v27 }
 0x3f9   : > { %7239 = vmatpush.bf16.msrb.mxu1 %v10463_v2  ;;  %7227 = vmatpush.bf16.msrb.mxu0 %v10175_v56  ;;  %v10076_v2 = vld [vmem:[#allocation8 + $0x8b8] sm:$0xf0]  ;;  %v6989_v46 = vpop.f32.mrf.mxu1 }
 0x3fa   : > { %v10079_v45 = vor.u32 %v11672_v53, %v10076_v2  ;;  %v10044_v56 = vld [vmem:[#allocation8 + $0x878] sm:$0xf0]  ;;  %7116 = vmatmul.bf16.vlgmr.msra.gmra.mxu3 %v12569_v1  ;;  %v6909_v53 = vpop.f32.mrf.mxu3  ;;  %v10810_v2 = vld [vmem:[#allocation8 + $0xe58] sm:$0xf] }
 0x3fb   : > { %7160 = vmatpush.bf16.msrb.mxu3 %v11003_v52  ;;  %7201 = vmatpush.bf16.msra.mxu2 %v9663_v4  ;;  %v9596_v55 = vld [vmem:[#allocation8 + $0x4f8] sm:$0xf0]  ;;  %v10047_v17 = vor.u32 %v11664_v11, %v10044_v56  ;;  %v11860_v4 = vld [vmem:[#allocation8 + $0xe74] sm:$0xf0] }
 0x3fc   : > { %v11656_v19 = vld [vmem:[#allocation8 + $0x81c] sm:$0xf]  ;;  %v9599_v7 = vor.u32 %v11552_v35, %v9596_v55 }
 0x3fd   : > { %7240 = vmatpush.bf16.msrb.mxu1 %v10431_v44  ;;  %7228 = vmatpush.bf16.msrb.mxu0 %v10143_v23  ;;  %v6976_v44 = vpop.f32.mrf.mxu0  ;;  %v10012_v58 = vld [vmem:[#allocation8 + $0x838] sm:$0xf0]  ;;  %v6950_v48 = vpop.f32.mrf.mxu2 }
 0x3fe   : > { %v11720_v23 = vld [vmem:[#allocation8 + $0xa1c] sm:$0xf]  ;;  %v10015_v57 = vor.u32 %v11656_v19, %v10012_v58 }
 0x3ff   : > { %7161 = vmatpush.bf16.msrb.mxu3 %v10971_v0  ;;  %7202 = vmatpush.bf16.msra.mxu2 %v9631_v59  ;;  %v10268_v24 = vld [vmem:[#allocation8 + $0xa38] sm:$0xf0]  ;;  %v10811_v0 = vor.u32 %v11860_v4, %v10810_v2 }
 0x400   : > { %v11544_v60 = vld [vmem:[#allocation8 + $0x49c] sm:$0xf]  ;;  %v10271_v41 = vor.u32 %v11720_v23, %v10268_v24 }
 0x401   : > { %7241 = vmatpush.bf16.msrb.mxu1 %v10399_v28  ;;  %7229 = vmatpush.bf16.msrb.mxu0 %v10111_v20  ;;  %v9564_v63 = vld [vmem:[#allocation8 + $0x4b8] sm:$0xf0]  ;;  %v10907_v28 = vor.u32 %v11884_v8, %v10906_v18  ;;  %v6897_v20 = vadd.f32 %v12760_v49, %v12741_v3  ;;  %v10778_v49 = vld [vmem:[#allocation8 + $0xe18] sm:$0xf] }
 0x402   : > { %v9567_v22 = vor.u32 %v11544_v60, %v9564_v63  ;;  %v11536_v43 = vld [vmem:[#allocation8 + $0x45c] sm:$0xf]  ;;  %v6911_v44 = vpop.f32.mrf.mxu3 }
 0x403   : > { %7162 = vmatpush.bf16.msrb.mxu3 %v10939_v15  ;;  %7203 = vmatpush.bf16.msra.mxu2 %v9599_v7  ;;  %v9532_v6 = vld [vmem:[#allocation8 + $0x478] sm:$0xf0]  ;;  %v6910_v32 = vadd.f32 %v6909_v53, %v6897_v20 }
 0x404   : > { %v9535_v36 = vor.u32 %v11536_v43, %v9532_v6  ;;  %v11528_v54 = vld [vmem:[#allocation8 + $0x41c] sm:$0xf] }
 0x405   : > { %7242 = vmatpush.bf16.msrb.mxu1 %v10367_v5  ;;  %7230 = vmatpush.bf16.msrb.mxu0 %v10079_v45  ;;  %v9500_v52 = vld [vmem:[#allocation8 + $0x438] sm:$0xf0] }
 0x406   : > { %v11840_v5 = vld [vmem:[#allocation8 + $0xddc] sm:$0xf]  ;;  %v9503_v31 = vor.u32 %v11528_v54, %v9500_v52 }
 0x407   : > { %7163 = vmatpush.bf16.msrb.mxu3 %v10907_v28  ;;  %7204 = vmatpush.bf16.msra.mxu2 %v9567_v22  ;;  %v10748_v62 = vld [vmem:[#allocation8 + $0xdf8] sm:$0xf0] }
 0x408   : > { %v10751_v9 = vor.u32 %v11840_v5, %v10748_v62  ;;  %v11832_v45 = vld [vmem:[#allocation8 + $0xd9c] sm:$0xf] }
 0x409   : > { %7243 = vmatpush.bf16.msrb.mxu1 %v10335_v10  ;;  %7231 = vmatpush.bf16.msrb.mxu0 %v10047_v17  ;;  %v10716_v3 = vld [vmem:[#allocation8 + $0xdb8] sm:$0xf0] }
 0x40a   : > { %v11648_v42 = vld [vmem:[#allocation8 + $0x7dc] sm:$0xf]  ;;  %v10719_v11 = vor.u32 %v11832_v45, %v10716_v3 }
 0x40b   : > { %7164 = vmatpush.bf16.msrb.mxu3 %v10875_v39  ;;  %7205 = vmatpush.bf16.msra.mxu2 %v9535_v36  ;;  %v9980_v10 = vld [vmem:[#allocation8 + $0x7f8] sm:$0xf0] }
 0x40c   : > { %v11824_v14 = vld [vmem:[#allocation8 + $0xd5c] sm:$0xf]  ;;  %v9983_v35 = vor.u32 %v11648_v42, %v9980_v10 }
 0x40d   : > { %7244 = vmatpush.bf16.msrb.mxu1 %v10303_v51  ;;  %7232 = vmatpush.bf16.msrb.mxu0 %v10015_v57  ;;  %v12780_v56 = vpop.f32.mrf.mxu0  ;;  %v10684_v16 = vld [vmem:[#allocation8 + $0xd78] sm:$0xf0] }
 0x40e   : > { %v11640_v55 = vld [vmem:[#allocation8 + $0x79c] sm:$0xf]  ;;  %v10687_v15 = vor.u32 %v11824_v14, %v10684_v16 }
 0x40f   : > { %7165 = vmatpush.bf16.msrb.mxu3 %v10843_v61  ;;  %7206 = vmatpush.bf16.msra.mxu2 %v9503_v31  ;;  %v9948_v46 = vld [vmem:[#allocation8 + $0x7b8] sm:$0xf0] }
 0x410   : > { %7233 = vmatmul.bf16.vlgmr.msrb.gmra.mxu0 %v12585_v13  ;;  %v6923_v13 = vadd.f32 %v12754_v38, %v6910_v32  ;;  %v10652_v17 = vld [vmem:[#allocation8 + $0xd38] sm:$0xf0]  ;;  %v9951_v18 = vor.u32 %v11640_v55, %v9948_v46 }
 0x411   : > { %7245 = vmatpush.bf16.msrb.mxu1 %v10271_v41  ;;  %v12782_v38 = vpop.f32.mrf.mxu1  ;;  %v11632_v51 = vld [vmem:[#allocation8 + $0x75c] sm:$0xf] }
 0x412   : > { %v6936_v33 = vadd.f32 %v12756_v50, %v6923_v13  ;;  %7207 = vmatmul.bf16.vlgmr.msra.gmra.mxu2 %v12566_v29  ;;  %v11816_v50 = vld [vmem:[#allocation8 + $0xd1c] sm:$0xf]  ;;  %v3875_v13 = vperm.slane %v12737_v37, 6 }
 0x413   : > { %7251 = vmatpush.bf16.msrb.mxu2 %v10751_v9  ;;  %7166 = vmatpush.bf16.msrb.mxu3 %v10811_v0  ;;  %v9916_v8 = vld [vmem:[#allocation8 + $0x778] sm:$0xf0]  ;;  %v10655_v19 = vor.u32 %v11816_v50, %v10652_v17 }
 0x414   : > { %7246 = vmatmul.bf16.vlgmr.msrb.gmra.mxu1 %v12593_v30  ;;  %v11852_v30 = vld [vmem:[#allocation8 + $0xe34] sm:$0xf0]  ;;  %v11808_v7 = vld [vmem:[#allocation8 + $0xcdc] sm:$0xf]  ;;  %v9919_v24 = vor.u32 %v11632_v51, %v9916_v8  ;;  %v6949_v5 = vadd.f32 %v12772_v40, %v6936_v33 }
 0x415   : > { %v10779_v59 = vor.u32 %v11852_v30, %v10778_v49  ;;  %v7028_v58 = vpop.f32.mrf.mxu0  ;;  %v10620_v23 = vld [vmem:[#allocation8 + $0xcf8] sm:$0xf0]  ;;  %v7000_v6 = vpop.f32.mrf.mxu2 }
 0x416   : > { %v11624_v60 = vld [vmem:[#allocation8 + $0x71c] sm:$0xf]  ;;  %v10623_v28 = vor.u32 %v11808_v7, %v10620_v23  ;;  %v7001_v23 = vadd.f32 %v7000_v6, %v12769_v21 }
 0x417   : > { %7252 = vmatpush.bf16.msrb.mxu2 %v10719_v11  ;;  %7167 = vmatpush.bf16.msrb.mxu3 %v10779_v59  ;;  %v9884_v63 = vld [vmem:[#allocation8 + $0x738] sm:$0xf0] }
 0x418   : > { %v11800_v57 = vld [vmem:[#allocation8 + $0xc9c] sm:$0xf]  ;;  %v9887_v27 = vor.u32 %v11624_v60, %v9884_v63 }
 0x419   : > { %v7041_v29 = vpop.f32.mrf.mxu1  ;;  %v10588_v41 = vld [vmem:[#allocation8 + $0xcb8] sm:$0xf0] }
 0x41a   : > { %7168 = vmatmul.bf16.vlgmr.msrb.gmra.mxu3 %v12640_v26  ;;  %v11616_v34 = vld [vmem:[#allocation8 + $0x6dc] sm:$0xf]  ;;  %v10591_v43 = vor.u32 %v11800_v57, %v10588_v41  ;;  %v6961_v53 = vpop.f32.mrf.mxu3 }
 0x41b   : > { %7212 = vmatpush.bf16.msra.mxu3 %v9983_v35  ;;  %7253 = vmatpush.bf16.msrb.mxu2 %v10687_v15  ;;  %v9852_v22 = vld [vmem:[#allocation8 + $0x6f8] sm:$0xf0]  ;;  %v6962_v32 = vadd.f32 %v6961_v53, %v6949_v5 }
 0x41c   : > { %v11792_v39 = vld [vmem:[#allocation8 + $0xc5c] sm:$0xf]  ;;  %v9855_v12 = vor.u32 %v11616_v34, %v9852_v22 }
 0x41d   : > { %v10556_v47 = vld [vmem:[#allocation8 + $0xc78] sm:$0xf0]  ;;  %v7002_v48 = vpop.f32.mrf.mxu2  ;;  %7281 = vst [vmem:[%s12690_s9 + $0x20] sm:$0xff] %v6962_v32 }
 0x41e   : > { %v11608_v36 = vld [vmem:[#allocation8 + $0x69c] sm:$0xf]  ;;  %v10559_v52 = vor.u32 %v11792_v39, %v10556_v47 }
 0x41f   : > { %7213 = vmatpush.bf16.msra.mxu3 %v9951_v18  ;;  %7254 = vmatpush.bf16.msrb.mxu2 %v10655_v19  ;;  %v9820_v54 = vld [vmem:[#allocation8 + $0x6b8] sm:$0xf0] }
 0x420   : > { %v11784_v20 = vld [vmem:[#allocation8 + $0xc1c] sm:$0xf]  ;;  %v9823_v62 = vor.u32 %v11608_v36, %v9820_v54 }
 0x421   : > { %v10524_v61 = vld [vmem:[#allocation8 + $0xc38] sm:$0xf0] }
 0x422   : > { %v11600_v2 = vld [vmem:[#allocation8 + $0x65c] sm:$0xf]  ;;  %v10527_v31 = vor.u32 %v11784_v20, %v10524_v61  ;;  %v6963_v33 = vpop.f32.mrf.mxu3  ;;  %v12022_v61 = vld [vmem:[#allocation10] sm:$0xff] }
 0x423   : > { %7214 = vmatpush.bf16.msra.mxu3 %v9919_v24  ;;  %7255 = vmatpush.bf16.msrb.mxu2 %v10623_v28  ;;  %v9788_v4 = vld [vmem:[#allocation8 + $0x678] sm:$0xf0]  ;;  %v3876_v5 = vperm.slane %v12022_v61, 7 }
 0x424   : > { %v9791_v9 = vor.u32 %v11600_v2, %v9788_v4  ;;  %v11592_v0 = vld [vmem:[#allocation8 + $0x61c] sm:$0xf] }
 0x425   : > { %v9756_v45 = vld [vmem:[#allocation8 + $0x638] sm:$0xf0] }
 0x426   : > { %v11904_v3 = vld [vmem:[#allocation8 + $0xfdc] sm:$0xf]  ;;  %v9759_v40 = vor.u32 %v11592_v0, %v9756_v45 }
 0x427   : > { %7215 = vmatpush.bf16.msra.mxu3 %v9887_v27  ;;  %7256 = vmatpush.bf16.msrb.mxu2 %v10591_v43  ;;  %v11004_v49 = vld [vmem:[#allocation8 + $0xff8] sm:$0xf0] }
 0x428   : > { %v11007_v11 = vor.u32 %v11904_v3, %v11004_v49  ;;  %v11896_v59 = vld [vmem:[#allocation8 + $0xf9c] sm:$0xf] }
 0x429   : > { %v10972_v14 = vld [vmem:[#allocation8 + $0xfb8] sm:$0xf0] }
 0x42a   : > { %v10975_v37 = vor.u32 %v11896_v59, %v10972_v14  ;;  %v11888_v44 = vld [vmem:[#allocation8 + $0xf5c] sm:$0xf] }
 0x42b   : > { %7216 = vmatpush.bf16.msra.mxu3 %v9855_v12  ;;  %7257 = vmatpush.bf16.msrb.mxu2 %v10559_v52  ;;  %v10940_v35 = vld [vmem:[#allocation8 + $0xf78] sm:$0xf0] }
 0x42c   : > { %v10943_v15 = vor.u32 %v11888_v44, %v10940_v35  ;;  %v11880_v50 = vld [vmem:[#allocation8 + $0xf1c] sm:$0xf] }
 0x42d   : > { %v7078_v30 = vpop.f32.mrf.mxu0  ;;  %v10908_v17 = vld [vmem:[#allocation8 + $0xf38] sm:$0xf0] }
 0x42e   : > { %v7079_v42 = vadd.f32 %v7078_v30, %v3875_v13  ;;  %v10911_v18 = vor.u32 %v11880_v50, %v10908_v17  ;;  %v10876_v51 = vld [vmem:[#allocation8 + $0xef8] sm:$0xf0] }
 0x42f   : > { %7217 = vmatpush.bf16.msra.mxu3 %v9823_v62  ;;  %7258 = vmatpush.bf16.msrb.mxu2 %v10527_v31  ;;  %v11864_v58 = vld [vmem:[#allocation8 + $0xe9c] sm:$0xf] }
 0x430   : > { %v10844_v7 = vld [vmem:[#allocation8 + $0xeb8] sm:$0xf0] }
 0x431   : > { %v7091_v10 = vpop.f32.mrf.mxu1  ;;  %v10847_v29 = vor.u32 %v11864_v58, %v10844_v7  ;;  %v11856_v24 = vld [vmem:[#allocation8 + $0xe5c] sm:$0xf] }
 0x432   : > { %7259 = vmatmul.bf16.vlgmr.msrb.gmra.mxu2 %v12621_v25  ;;  %v7092_v16 = vadd.f32 %v7091_v10, %v7079_v42  ;;  %v11872_v25 = vld [vmem:[#allocation8 + $0xedc] sm:$0xf] }
 0x433   : > { %7218 = vmatpush.bf16.msra.mxu3 %v9791_v9  ;;  %v10879_v19 = vor.u32 %v11872_v25, %v10876_v51  ;;  %v10812_v60 = vld [vmem:[#allocation8 + $0xe78] sm:$0xf0] }
 0x434   : > { %v10815_v41 = vor.u32 %v11856_v24, %v10812_v60  ;;  %v11848_v27 = vld [vmem:[#allocation8 + $0xe1c] sm:$0xf] }
 0x435   : > { %v7080_v55 = vpop.f32.mrf.mxu0  ;;  %v7052_v8 = vpop.f32.mrf.mxu2  ;;  %v10780_v34 = vld [vmem:[#allocation8 + $0xe38] sm:$0xf0] }
 0x436   : > { %v10783_v39 = vor.u32 %v11848_v27, %v10780_v34 }
 0x437   : > { %7219 = vmatpush.bf16.msra.mxu3 %v9759_v40 }
 0x439   : > { %v7093_v46 = vpop.f32.mrf.mxu1 }
 0x43a   : > { %7220 = vmatmul.bf16.vlgmr.msra.gmra.mxu3 %v12569_v1  ;;  %v7013_v1 = vpop.f32.mrf.mxu3 }
 0x43b   : > { %7264 = vmatpush.bf16.msrb.mxu3 %v11007_v11  ;;  %v7014_v63 = vadd.f32 %v7013_v1, %v7001_v23 }
 0x43d   : > { %v7054_v28 = vpop.f32.mrf.mxu2  ;;  %v7027_v57 = vadd.f32 %v12780_v56, %v7014_v63 }
 0x43f   : > { %7265 = vmatpush.bf16.msrb.mxu3 %v10975_v37  ;;  %v7040_v22 = vadd.f32 %v12782_v38, %v7027_v57 }
 0x441   : > { %v7053_v54 = vadd.f32 %v7052_v8, %v7040_v22 }
 0x442   : > { %v7015_v6 = vpop.f32.mrf.mxu3 }
 0x443   : > { %7266 = vmatpush.bf16.msrb.mxu3 %v10943_v15 }
 0x447   : > { %7267 = vmatpush.bf16.msrb.mxu3 %v10911_v18 }
 0x44b   : > { %7268 = vmatpush.bf16.msrb.mxu3 %v10879_v19 }
 0x44d   : > { %v7130_v43 = vpop.f32.mrf.mxu0 }
 0x44f   : > { %7269 = vmatpush.bf16.msrb.mxu3 %v10847_v29 }
 0x451   : > { %v7143_v21 = vpop.f32.mrf.mxu1 }
 0x453   : > { %7270 = vmatpush.bf16.msrb.mxu3 %v10815_v41 }
 0x455   : > { %v7132_v47 = vpop.f32.mrf.mxu0  ;;  %v7104_v36 = vpop.f32.mrf.mxu2 }
 0x456   : > { %v7105_v9 = vadd.f32 %v7104_v36, %v7092_v16 }
 0x457   : > { %7271 = vmatpush.bf16.msrb.mxu3 %v10783_v39 }
 0x459   : > { %v7145_v12 = vpop.f32.mrf.mxu1 }
 0x45a   : > { %7272 = vmatmul.bf16.vlgmr.msrb.gmra.mxu3 %v12640_v26  ;;  %v7065_v56 = vpop.f32.mrf.mxu3 }
 0x45b   : > { %v7066_v52 = vadd.f32 %v7065_v56, %v7053_v54 }
 0x45d   : > { %v7106_v20 = vpop.f32.mrf.mxu2  ;;  %7282 = vst [vmem:[%s12690_s9 + $0x28] sm:$0xff] %v7066_v52 }
 0x462   : > { %v7067_v2 = vpop.f32.mrf.mxu3 }
 0x46d   : > { %v7182_v62 = vpop.f32.mrf.mxu0 }
 0x46e   : > { %v7183_v38 = vadd.f32 %v7182_v62, %v3876_v5 }
 0x471   : > { %v7195_v53 = vpop.f32.mrf.mxu1 }
 0x472   : > { %v7196_v4 = vadd.f32 %v7195_v53, %v7183_v38 }
 0x475   : > { %v7184_v32 = vpop.f32.mrf.mxu0  ;;  %v7156_v48 = vpop.f32.mrf.mxu2 }
 0x479   : > { %v7197_v31 = vpop.f32.mrf.mxu1 }
 0x47d   : > { %v7117_v26 = vpop.f32.mrf.mxu3  ;;  %v7158_v0 = vpop.f32.mrf.mxu2 }
 0x47e   : > { %v7118_v13 = vadd.f32 %v7117_v26, %v7105_v9 }
 0x480   : > { %v7131_v45 = vadd.f32 %v7130_v43, %v7118_v13 }
 0x482   : > { %v7144_v3 = vadd.f32 %v7143_v21, %v7131_v45 }
 0x484   : > { %v7157_v11 = vadd.f32 %v7156_v48, %v7144_v3 }
 0x485   : > { %v7119_v40 = vpop.f32.mrf.mxu3 }
 0x48d   : > { %v7234_v49 = vpop.f32.mrf.mxu0 }
 0x491   : > { %v7247_v30 = vpop.f32.mrf.mxu1 }
 0x495   : > { %v7236_v42 = vpop.f32.mrf.mxu0  ;;  %v7208_v33 = vpop.f32.mrf.mxu2 }
 0x496   : > { %v7209_v35 = vadd.f32 %v7208_v33, %v7196_v4 }
 0x499   : > { %v7249_v10 = vpop.f32.mrf.mxu1 }
 0x49d   : > { %v7169_v59 = vpop.f32.mrf.mxu3  ;;  %v7210_v37 = vpop.f32.mrf.mxu2 }
 0x49e   : > { %v7170_v14 = vadd.f32 %v7169_v59, %v7157_v11 }
 0x4a0   : > { %7283 = vst [vmem:[%s12690_s9 + $0x30] sm:$0xff] %v7170_v14 }
 0x4a5   : > { %v7171_v16 = vpop.f32.mrf.mxu3 }
 0x4b5   : > { %v7260_v44 = vpop.f32.mrf.mxu2 }
 0x4bd   : > { %v7221_v55 = vpop.f32.mrf.mxu3  ;;  %v7262_v15 = vpop.f32.mrf.mxu2 }
 0x4be   : > { %v7222_v46 = vadd.f32 %v7221_v55, %v7209_v35 }
 0x4c0   : > { %v7235_v50 = vadd.f32 %v7234_v49, %v7222_v46 }
 0x4c2   : > { %v7248_v17 = vadd.f32 %v7247_v30, %v7235_v50 }
 0x4c4   : > { %v7261_v25 = vadd.f32 %v7260_v44, %v7248_v17 }
 0x4c5   : > { %v7223_v18 = vpop.f32.mrf.mxu3 }
 0x4dd   : > { %v7273_v51 = vpop.f32.mrf.mxu3 }
 0x4de   : > { %v7274_v8 = vadd.f32 %v7273_v51, %v7261_v25 }
 0x4e0   : > { %7284 = vst [vmem:[%s12690_s9 + $0x38] sm:$0xff] %v7274_v8 }
 0x4e1   : > { %12200 = shalt.err (!%p12197_p9)
}
 0x4e2   : > { %11931 = dma.vmem_to_hbm [thread:$0]  (%p12368_p4), %s7300_s27, 1024, %s7302_s28, %s7286_s30  }
 0x4e5   : > { %v7275_v19 = vpop.f32.mrf.mxu3 }
 0x4e6 PF: > { %s7313_s7 = sand.u32 1, %s12235_s18   ;;  %p12846_p10 = scmp.ge.s32.totalorder %s12247_s21, 2 }
 0x4e7   : > { %s7314_s17 = scalar_lea.sflag [#allocation4], %s7313_s7 }
 0x4e8   : > { %p11951_p11 = pnand %p12846_p10, %p12372_p6 }
 0x4ea   : > { %p11952_p13 = pneg %p11951_p11 }
 0x4ec   : > { %12230 = dma.done.wait (%p11952_p13), %s7314_s17, 1024  }
 0x4ed   : > { %12232 = vsyncadd (%p11952_p13), %s7314_s17, 4294966272  ;;  %p20_p0 = scmp.ge.s32.totalorder %s12346_s29, 4   ;;  %s12847_s18 = smov %s12239_s19 }
 0x4ee   : > { %s12848_s19 = smov %s12243_s20  ;;  %s12849_s20 = smov %s12357_s8 }
 0x4ef   : > { %s12850_s21 = smov %s12346_s29  ;;  %22 = sbr.rel (!%p20_p0) target bundleno = 9 (0x9), region = 101 }
 0x4f4   :  { %7320 = vsyncpa [#allocation3], 1 }
 0x4f5   :  { %7322 = vsyncpa [#allocation3 + $0x1], 1 }
 0x4f6   :  { %7323 = vsyncpa [#allocation6], 1 }
 0x4f7   :  { %7324 = vsyncpa [#allocation9], 1 }
 0x4f8   :  { %7325 = vsyncpa [#allocation4], 1 }
 0x4f9   :  { %7327 = vsyncpa [#allocation4 + $0x1], 1 }

</bundles_post_ra>
